<compile_context>
chip_gen: v5e
topology: v5e:2x2
jax: 0.10.0
libtpu: 0.0.40
codegen_flags: <defaults>
</compile_context>

<pallas_src>
import functools

import jax
import jax.numpy as jnp
from jax.experimental import pallas as pl
from jax.experimental.pallas import tpu as pltpu


# --------------------------------------------------------------------------
# kernel
# --------------------------------------------------------------------------
def _resblock_kernel(x_ref, mask_ref, ln1_g_ref, ln1_b_ref,
                     wqkv_ref, bqkv_ref, wout_ref, bout_ref,
                     ln2_g_ref, ln2_b_ref, wfc_ref, bfc_ref,
                     wproj_ref, bproj_ref, o_ref,
                     *, n_head: int, head_dim: int, compute_dtype,
                     use_mask: bool, transpose_split: bool, gelu_lowp: bool):
    eps = 1e-5
    bt, s, d = x_ref.shape                    # (Bt, S, D) batch block
    cdtype = compute_dtype                    # MXU operand dtype (bf16 by default)

    def layer_norm(zf, g_ref, b_ref):
        # f32 LayerNorm (mirrors the fp16-safe LayerNorm subclass) -> cdtype.
        mu = jnp.mean(zf, axis=-1, keepdims=True)
        zc = zf - mu
        var = jnp.mean(zc * zc, axis=-1, keepdims=True)
        y = zc * jax.lax.rsqrt(var + eps)
        return (y * g_ref[...] + b_ref[...]).astype(cdtype)

    def split_heads(t2d):                     # (Bt*S, D) -> (Bt*H, S, hd)
        if transpose_split:
            t = t2d.reshape(bt, s, n_head, head_dim)
            return jnp.transpose(t, (0, 2, 1, 3)).reshape(bt * n_head, s, head_dim)
        t = t2d.reshape(bt, s, d)
        parts = [t[:, :, hh * head_dim:(hh + 1) * head_dim] for hh in range(n_head)]
        return jnp.stack(parts, axis=1).reshape(bt * n_head, s, head_dim)

    def merge_heads(t3d):                     # (Bt*H, S, hd) -> (Bt*S, D)
        t = t3d.reshape(bt, n_head, s, head_dim)
        if transpose_split:
            return jnp.transpose(t, (0, 2, 1, 3)).reshape(bt * s, d)
        return jnp.concatenate([t[:, hh] for hh in range(n_head)],
                               axis=-1).reshape(bt * s, d)

    # f32 residual stream held in-kernel (matmul operands cast to cdtype).
    x_f32 = x_ref[...].reshape(bt * s, d).astype(jnp.float32)

    # ---------------- attention branch ----------------
    h = layer_norm(x_f32, ln1_g_ref, ln1_b_ref)                       # (Bt*S, D)
    qkv = jnp.dot(h, wqkv_ref[...], preferred_element_type=jnp.float32)
    qkv = (qkv + bqkv_ref[...]).astype(cdtype)                        # (Bt*S, 3D)

    # 1/sqrt(head_dim) is folded into wqkv/bqkv on the host; D-wide q/k/v
    # column slices are 128-aligned for real model widths.
    qh = split_heads(qkv[:, 0 * d:1 * d])
    kh = split_heads(qkv[:, 1 * d:2 * d])
    vh = split_heads(qkv[:, 2 * d:3 * d])

    scores = jnp.einsum('bqd,bkd->bqk', qh, kh,
                        preferred_element_type=jnp.float32)           # (Bt*H, S, S)
    if use_mask:
        scores = scores + mask_ref[...][None]
    m = jnp.max(scores, axis=-1, keepdims=True)
    e = jnp.exp(scores - m)
    p = e / jnp.sum(e, axis=-1, keepdims=True)                        # exact f32 softmax
    ctx = jnp.einsum('bqk,bkd->bqd', p.astype(cdtype), vh,
                     preferred_element_type=jnp.float32)
    ctx = merge_heads(ctx.astype(cdtype))                             # (Bt*S, D)

    attn = jnp.dot(ctx, wout_ref[...],
                   preferred_element_type=jnp.float32) + bout_ref[...]
    x_f32 = x_f32 + attn                                              # residual 1 (f32)

    # ---------------- MLP branch ----------------
    h2 = layer_norm(x_f32, ln2_g_ref, ln2_b_ref)
    g = jnp.dot(h2, wfc_ref[...],
                preferred_element_type=jnp.float32) + bfc_ref[...]    # (Bt*S, 4D) f32
    if gelu_lowp:
        a = g.astype(cdtype)                                          # bf16 VPU/EUP
        a = a * (1.0 / (1.0 + jnp.exp(-1.702 * a)))
    else:
        a = (g * (1.0 / (1.0 + jnp.exp(-1.702 * g)))).astype(cdtype)
    mlp = jnp.dot(a, wproj_ref[...],
                  preferred_element_type=jnp.float32) + bproj_ref[...]

    o_ref[...] = (x_f32 + mlp).astype(o_ref.dtype).reshape(bt, s, d)


# --------------------------------------------------------------------------
# host-side helpers
# --------------------------------------------------------------------------
def _tpu_info():
    """(physical VMEM bytes, TensorCores per chip, has bf16 VPU/EUP)."""
    vmem_bytes = 64 * 1024 * 1024          # conservative fallback (v7x size)
    n_cores, bf16_vpu = 1, True
    try:
        info = pltpu.get_tpu_info()
        vmem_bytes = int(getattr(info, "vmem_capacity_bytes", vmem_bytes))
    except Exception:
        pass
    kind = ""
    try:
        kind = jax.devices()[0].device_kind.lower()
    except Exception:
        pass
    if ("v5 lite" in kind) or ("v5lite" in kind) or ("v5e" in kind):
        bf16_vpu = False                   # v5e has no bf16 VALU/EUP
    if ("v7" in kind) or ("tpu7" in kind) or kind.endswith("7x"):
        n_cores = 2                        # v7x: 2 TensorCores per chip
    return vmem_bytes, n_cores, bf16_vpu


def _estimate_resblock_vmem(bt, s, d, h, x_item, c_item):
    wbytes = 12 * d * d * c_item + 14 * d * 4 + s * s * 4   # weights (single-buffered)
    io = 2 * (2 * bt * s * d * x_item)                       # x + out blocks, 2x buffered
    rows = bt * s
    inter = rows * 4 * (d + 3 * d + 4 * d + 2 * d)           # f32 intermediates
    inter += rows * c_item * (3 * d + 4 * d + 2 * d)         # compute-dtype copies
    inter += bt * h * s * s * 4 * 2                          # scores + probs (f32)
    return wbytes + io + inter


def _choose_batch_block(bs, s, d, h, x_item, c_item, n_cores, vmem_budget):
    # 2 grid steps only when there are 2 TensorCores to shard them over;
    # single step otherwise (maximizes the MXU M dim, no pipeline overhead).
    max_bb = bs // 2 if (n_cores >= 2 and bs >= 2 and bs % 2 == 0) else bs
    divisors = [q for q in range(1, bs + 1) if bs % q == 0 and q <= max_bb]
    for q in sorted(divisors, reverse=True):
        if _estimate_resblock_vmem(q, s, d, h, x_item, c_item) <= vmem_budget:
            return q
    return 1


def _build_resblock_call(bs, seq, d_model, n_head, head_dim, batch_block,
                         x_dtype, cdtype, use_mask, gelu_lowp,
                         transpose_split, buffered_weights, vmem_limit_bytes):
    kernel = functools.partial(
        _resblock_kernel, n_head=n_head, head_dim=head_dim, compute_dtype=cdtype,
        use_mask=use_mask, transpose_split=transpose_split, gelu_lowp=gelu_lowp)

    def inv2(shape):
        # grid-invariant operand: constant index_map, single-buffered if supported.
        if buffered_weights:
            return pl.BlockSpec(shape, lambda b: (0, 0), pipeline_mode=pl.Buffered(1))
        return pl.BlockSpec(shape, lambda b: (0, 0))

    d = d_model
    in_specs = [
        pl.BlockSpec((batch_block, seq, d), lambda b: (b, 0, 0)),   # x
        inv2((seq, seq)),                                           # mask (f32)
        inv2((1, d)), inv2((1, d)),                                 # ln1 gamma/beta
        inv2((d, 3 * d)), inv2((1, 3 * d)),                         # wqkv^T, bqkv
        inv2((d, d)), inv2((1, d)),                                 # wout^T, bout
        inv2((1, d)), inv2((1, d)),                                 # ln2 gamma/beta
        inv2((d, 4 * d)), inv2((1, 4 * d)),                         # c_fc^T, b_fc
        inv2((4 * d, d)), inv2((1, d)),                             # c_proj^T, b_proj
    ]

    B, S, D, H = bs, seq, d_model, n_head
    flops = (2 * B * S * D * 3 * D          # qkv projection
             + 2 * B * S * S * D * 2        # scores + ctx (all heads)
             + 2 * B * S * D * D            # out projection
             + 2 * B * S * D * 4 * D * 2)   # mlp c_fc + c_proj
    transcendentals = B * H * S * S + B * S * 4 * D
    c_item = jnp.dtype(cdtype).itemsize
    x_item = jnp.dtype(x_dtype).itemsize
    bytes_accessed = int(2 * B * S * D * x_item + S * S * 4
                         + 12 * D * D * c_item + 14 * D * 4)

    return pl.pallas_call(
        kernel,
        out_shape=jax.ShapeDtypeStruct((bs, seq, d_model), x_dtype),
        grid=(bs // batch_block,),
        in_specs=in_specs,
        out_specs=pl.BlockSpec((batch_block, seq, d), lambda b: (b, 0, 0)),
        compiler_params=pltpu.CompilerParams(
            dimension_semantics=("parallel",),
            vmem_limit_bytes=int(vmem_limit_bytes)),
        cost_estimate=pl.CostEstimate(flops=int(flops),
                                      transcendentals=int(transcendentals),
                                      bytes_accessed=bytes_accessed),
    )


# (transpose_split, buffered_weights): preferred first, proven-safe last.
_CFG_ORDER = ((True, True), (True, False), (False, True), (False, False))
_CFG_CACHE = {}


def _select_lowering_config(builder, args, key):
    """One-time probe on tiny concrete data: pick the fastest config that both
    lowers on this Mosaic version and matches the proven safe path numerically."""
    cfg = _CFG_CACHE.get(key)
    if cfg is not None:
        return cfg
    k = jax.random.PRNGKey(0)
    template = []
    for a in args:
        k, sub = jax.random.split(k)
        template.append((0.1 * jax.random.normal(sub, a.shape, jnp.float32)
                         ).astype(a.dtype))
    template = tuple(template)
    ref_out = None
    try:
        ref_out = jax.block_until_ready(builder(_CFG_ORDER[-1])(*template))
    except Exception:
        ref_out = None
    chosen = _CFG_ORDER[-1]
    for cfg_try in _CFG_ORDER[:-1]:
        try:
            out = jax.block_until_ready(builder(cfg_try)(*template))
            if ref_out is None or bool(jnp.allclose(
                    out.astype(jnp.float32), ref_out.astype(jnp.float32),
                    atol=1e-3, rtol=1e-3)):
                chosen = cfg_try
                break
        except Exception:
            continue
    _CFG_CACHE[key] = chosen
    return chosen


def residual_attention_block(x, mask, p, n_head, *, compute_dtype=None,
                             batch_block=None):
    bs, seq, d_model = x.shape
    assert d_model % n_head == 0, "d_model must be divisible by n_head"
    head_dim = d_model // n_head
    cdtype = jnp.dtype(compute_dtype) if compute_dtype is not None else jnp.dtype(x.dtype)

    vmem_bytes, n_cores, bf16_vpu = _tpu_info()
    vmem_budget = max(int(vmem_bytes * 0.75), 32 * 1024 * 1024)
    gelu_lowp = (cdtype == jnp.bfloat16) and bf16_vpu

    use_mask = mask is not None
    mask_f32 = (mask.astype(jnp.float32) if use_mask
                else jnp.zeros((seq, seq), jnp.float32))

    # Host-side, one-time weight prep (PyTorch Linear: y = x @ W.T + b).
    # Fold 1/sqrt(head_dim) into the Q rows of wqkv/bqkv; pre-transpose all weights.
    scale = 1.0 / (float(head_dim) ** 0.5)
    row_scale = jnp.concatenate([jnp.full((d_model,), scale, jnp.float32),
                                 jnp.ones((2 * d_model,), jnp.float32)])
    wqkv = jnp.asarray(p['wqkv'], jnp.float32)                 # (3D, D)
    wqkv_t = (wqkv * row_scale[:, None]).T.astype(cdtype)      # (D, 3D)
    bqkv = (jnp.asarray(p['bqkv'], jnp.float32) * row_scale).reshape(1, -1)
    wout_t = jnp.asarray(p['wout'], jnp.float32).T.astype(cdtype)    # (D, D)
    wfc_t = jnp.asarray(p['wfc'], jnp.float32).T.astype(cdtype)      # (D, 4D)
    wproj_t = jnp.asarray(p['wproj'], jnp.float32).T.astype(cdtype)  # (4D, D)
    bout = jnp.asarray(p['bout'], jnp.float32).reshape(1, -1)
    bfc = jnp.asarray(p['bfc'], jnp.float32).reshape(1, -1)
    bproj = jnp.asarray(p['bproj'], jnp.float32).reshape(1, -1)
    ln1_g = jnp.asarray(p['ln1_g'], jnp.float32).reshape(1, -1)
    ln1_b = jnp.asarray(p['ln1_b'], jnp.float32).reshape(1, -1)
    ln2_g = jnp.asarray(p['ln2_g'], jnp.float32).reshape(1, -1)
    ln2_b = jnp.asarray(p['ln2_b'], jnp.float32).reshape(1, -1)

    x_item = jnp.dtype(x.dtype).itemsize
    c_item = jnp.dtype(cdtype).itemsize
    if batch_block is None:
        batch_block = _choose_batch_block(bs, seq, d_model, n_head,
                                          x_item, c_item, n_cores, vmem_budget)
    assert bs % batch_block == 0

    args = (x, mask_f32, ln1_g, ln1_b, wqkv_t, bqkv, wout_t, bout,
            ln2_g, ln2_b, wfc_t, bfc, wproj_t, bproj)

    def builder(cfg):
        transpose_split, buffered_weights = cfg
        return _build_resblock_call(
            bs, seq, d_model, n_head, head_dim, batch_block,
            x.dtype, cdtype, use_mask, gelu_lowp,
            transpose_split, buffered_weights, vmem_budget)

    cfg_key = (bs, seq, d_model, n_head, batch_block, str(x.dtype), str(cdtype),
               use_mask, gelu_lowp)
    cfg = _select_lowering_config(builder, args, cfg_key)
    return builder(cfg)(*args)


def transformer_forward(x, mask, params, n_head, *,
                        compute_dtype=jnp.bfloat16, batch_block=None):
    """Pallas equivalent of Transformer.forward: sequential ResidualAttentionBlocks."""
    # TODO(synk): on v5e/v7x, add cross-pallas_call prefetch (P10) of layer l+1
    # weights during layer l to hide the per-layer weight DMA at small batch.
    for p in params:
        x = residual_attention_block(x, mask, p, n_head,
                                     compute_dtype=compute_dtype,
                                     batch_block=batch_block)
    return x


# --------------------------------------------------------------------------
# pure-JAX reference (mirrors the PyTorch forward) and demo
# --------------------------------------------------------------------------
def _reference(x, mask, params, n_head):
    bs, seq, d = x.shape
    hd = d // n_head

    def layer_norm(z, g, b, eps=1e-5):
        zf = z.astype(jnp.float32)
        mu = zf.mean(-1, keepdims=True)
        var = ((zf - mu) ** 2).mean(-1, keepdims=True)
        return (((zf - mu) / jnp.sqrt(var + eps)) * g + b).astype(z.dtype)

    for p in params:
        h = layer_norm(x, p['ln1_g'], p['ln1_b'])
        qkv = h @ p['wqkv'].T + p['bqkv']
        qkv = qkv.reshape(bs, seq, 3, n_head, hd).transpose(2, 0, 3, 1, 4)
        q, k, v = qkv[0], qkv[1], qkv[2]                               # (B, H, S, hd)
        scores = jnp.einsum('bhqd,bhkd->bhqk', q, k) / jnp.sqrt(hd)
        if mask is not None:
            scores = scores + mask[None, None]
        pr = jax.nn.softmax(scores, axis=-1)
        ctx = jnp.einsum('bhqk,bhkd->bhqd', pr, v)
        ctx = ctx.transpose(0, 2, 1, 3).reshape(bs, seq, d)
        x = x + (ctx @ p['wout'].T + p['bout'])
        h2 = layer_norm(x, p['ln2_g'], p['ln2_b'])
        g = h2 @ p['wfc'].T + p['bfc']
        g = g * (1.0 / (1.0 + jnp.exp(-1.702 * g)))
        x = x + (g @ p['wproj'].T + p['bproj'])
    return x


if __name__ == "__main__":
    bs, seq, width, heads, layers = 2, 8, 32, 4, 2

    key = jax.random.PRNGKey(0)
    kx, key = jax.random.split(key)
    x = jax.random.normal(kx, (bs, seq, width), dtype=jnp.float32)

    # Additive causal mask (same semantics as CLIP's build_attention_mask).
    mask = jnp.where(jnp.tril(jnp.ones((seq, seq), dtype=bool)), 0.0, -1e9
                     ).astype(jnp.float32)

    D = width
    params = []
    for _ in range(layers):
        keys = jax.random.split(key, 13)
        key = keys[0]
        kqw, kqb, kow, kob, kfw, kfb, kpw, kpb, kg1, kb1, kg2, kb2 = keys[1:]
        params.append(dict(
            ln1_g=1.0 + 0.1 * jax.random.normal(kg1, (D,), jnp.float32),
            ln1_b=0.1 * jax.random.normal(kb1, (D,), jnp.float32),
            wqkv=0.1 * jax.random.normal(kqw, (3 * D, D), jnp.float32),
            bqkv=0.1 * jax.random.normal(kqb, (3 * D,), jnp.float32),
            wout=0.1 * jax.random.normal(kow, (D, D), jnp.float32),
            bout=0.1 * jax.random.normal(kob, (D,), jnp.float32),
            ln2_g=1.0 + 0.1 * jax.random.normal(kg2, (D,), jnp.float32),
            ln2_b=0.1 * jax.random.normal(kb2, (D,), jnp.float32),
            wfc=0.1 * jax.random.normal(kfw, (4 * D, D), jnp.float32),
            bfc=0.1 * jax.random.normal(kfb, (4 * D,), jnp.float32),
            wproj=0.1 * jax.random.normal(kpw, (D, 4 * D), jnp.float32),
            bproj=0.1 * jax.random.normal(kpb, (D,), jnp.float32),
        ))

    ref = _reference(x, mask, params, n_head=heads)

    # 1) f32 compute path: tight parity check against the pure-JAX reference.
    out_f32 = jax.block_until_ready(
        transformer_forward(x, mask, params, heads, compute_dtype=jnp.float32))
    assert out_f32.shape == (bs, seq, width)
    assert jnp.allclose(out_f32, ref, atol=2e-2, rtol=2e-2), (
        "f32 path mismatch vs reference; max abs diff = %g"
        % float(jnp.max(jnp.abs(out_f32 - ref))))

    # 2) bf16 compute path (default; native MXU dtype): looser tolerance.
    out_bf16 = jax.block_until_ready(
        transformer_forward(x, mask, params, heads))
    assert out_bf16.shape == (bs, seq, width) and out_bf16.dtype == x.dtype
    assert jnp.allclose(out_bf16, ref, atol=1e-1, rtol=1e-1), (
        "bf16 path mismatch vs reference; max abs diff = %g"
        % float(jnp.max(jnp.abs(out_bf16 - ref))))

    print("KERNEL_OK")
</pallas_src>

<mosaic_0001>
module attributes {stable_mosaic.version = 11 : i64} {
  func.func @_resblock_kernel(%arg0: i32, %arg1: memref<2x8x32xf32, #tpu.memory_space<vmem>>, %arg2: memref<8x8xf32, #tpu.memory_space<vmem>>, %arg3: memref<1x32xf32, #tpu.memory_space<vmem>>, %arg4: memref<1x32xf32, #tpu.memory_space<vmem>>, %arg5: memref<32x96xf32, #tpu.memory_space<vmem>>, %arg6: memref<1x96xf32, #tpu.memory_space<vmem>>, %arg7: memref<32x32xf32, #tpu.memory_space<vmem>>, %arg8: memref<1x32xf32, #tpu.memory_space<vmem>>, %arg9: memref<1x32xf32, #tpu.memory_space<vmem>>, %arg10: memref<1x32xf32, #tpu.memory_space<vmem>>, %arg11: memref<32x128xf32, #tpu.memory_space<vmem>>, %arg12: memref<1x128xf32, #tpu.memory_space<vmem>>, %arg13: memref<128x32xf32, #tpu.memory_space<vmem>>, %arg14: memref<1x32xf32, #tpu.memory_space<vmem>>, %arg15: memref<2x8x32xf32, #tpu.memory_space<vmem>>) attributes {dimension_semantics = [#tpu.dimension_semantics<parallel>], iteration_bounds = array<i64: 1>, scalar_prefetch = 0 : i64, scratch_operands = 0 : i64, tpu.core_type = #tpu.core_type<tc>, window_params = [{transform_indices = @transform_0, window_bounds = array<i64: 2, 8, 32>}, {pipeline_mode = #tpu.pipeline_mode<synchronous>, transform_indices = @transform_1, window_bounds = array<i64: 8, 8>}, {pipeline_mode = #tpu.pipeline_mode<synchronous>, transform_indices = @transform_2, window_bounds = array<i64: 1, 32>}, {pipeline_mode = #tpu.pipeline_mode<synchronous>, transform_indices = @transform_3, window_bounds = array<i64: 1, 32>}, {pipeline_mode = #tpu.pipeline_mode<synchronous>, transform_indices = @transform_4, window_bounds = array<i64: 32, 96>}, {pipeline_mode = #tpu.pipeline_mode<synchronous>, transform_indices = @transform_5, window_bounds = array<i64: 1, 96>}, {pipeline_mode = #tpu.pipeline_mode<synchronous>, transform_indices = @transform_6, window_bounds = array<i64: 32, 32>}, {pipeline_mode = #tpu.pipeline_mode<synchronous>, transform_indices = @transform_7, window_bounds = array<i64: 1, 32>}, {pipeline_mode = #tpu.pipeline_mode<synchronous>, transform_indices = @transform_8, window_bounds = array<i64: 1, 32>}, {pipeline_mode = #tpu.pipeline_mode<synchronous>, transform_indices = @transform_9, window_bounds = array<i64: 1, 32>}, {pipeline_mode = #tpu.pipeline_mode<synchronous>, transform_indices = @transform_10, window_bounds = array<i64: 32, 128>}, {pipeline_mode = #tpu.pipeline_mode<synchronous>, transform_indices = @transform_11, window_bounds = array<i64: 1, 128>}, {pipeline_mode = #tpu.pipeline_mode<synchronous>, transform_indices = @transform_12, window_bounds = array<i64: 128, 32>}, {pipeline_mode = #tpu.pipeline_mode<synchronous>, transform_indices = @transform_13, window_bounds = array<i64: 1, 32>}, {transform_indices = @transform_14, window_bounds = array<i64: 2, 8, 32>}]} {
    %c0 = arith.constant 0 : index
    %c0_0 = arith.constant 0 : index
    %c0_1 = arith.constant 0 : index
    %0 = vector.load %arg1[%c0, %c0_0, %c0_1] : memref<2x8x32xf32, #tpu.memory_space<vmem>>, vector<2x8x32xf32>
    %1 = vector.shape_cast %0 : vector<2x8x32xf32> to vector<16x32xf32>
    %cst = arith.constant dense<0.000000e+00> : vector<16xf32>
    %2 = vector.multi_reduction <add>, %1, %cst [1] : vector<16x32xf32> to vector<16xf32>
    %3 = vector.shape_cast %2 : vector<16xf32> to vector<16x1xf32>
    %cst_2 = arith.constant 3.200000e+01 : f32
    %4 = vector.broadcast %cst_2 : f32 to vector<16x1xf32>
    %5 = arith.divf %3, %4 : vector<16x1xf32>
    %6 = vector.broadcast %5 : vector<16x1xf32> to vector<16x32xf32>
    %7 = arith.subf %1, %6 : vector<16x32xf32>
    %8 = arith.mulf %7, %7 : vector<16x32xf32>
    %cst_3 = arith.constant dense<0.000000e+00> : vector<16xf32>
    %9 = vector.multi_reduction <add>, %8, %cst_3 [1] : vector<16x32xf32> to vector<16xf32>
    %10 = vector.shape_cast %9 : vector<16xf32> to vector<16x1xf32>
    %cst_4 = arith.constant 3.200000e+01 : f32
    %11 = vector.broadcast %cst_4 : f32 to vector<16x1xf32>
    %12 = arith.divf %10, %11 : vector<16x1xf32>
    %cst_5 = arith.constant 9.99999974E-6 : f32
    %13 = vector.broadcast %cst_5 : f32 to vector<16x1xf32>
    %14 = arith.addf %12, %13 : vector<16x1xf32>
    %15 = math.rsqrt %14 : vector<16x1xf32>
    %16 = vector.broadcast %15 : vector<16x1xf32> to vector<16x32xf32>
    %17 = arith.mulf %7, %16 : vector<16x32xf32>
    %c0_6 = arith.constant 0 : index
    %c0_7 = arith.constant 0 : index
    %18 = vector.load %arg3[%c0_6, %c0_7] : memref<1x32xf32, #tpu.memory_space<vmem>>, vector<1x32xf32>
    %19 = vector.broadcast %18 : vector<1x32xf32> to vector<16x32xf32>
    %20 = arith.mulf %17, %19 : vector<16x32xf32>
    %c0_8 = arith.constant 0 : index
    %c0_9 = arith.constant 0 : index
    %21 = vector.load %arg4[%c0_8, %c0_9] : memref<1x32xf32, #tpu.memory_space<vmem>>, vector<1x32xf32>
    %22 = vector.broadcast %21 : vector<1x32xf32> to vector<16x32xf32>
    %23 = arith.addf %20, %22 : vector<16x32xf32>
    %c0_10 = arith.constant 0 : index
    %c0_11 = arith.constant 0 : index
    %24 = vector.load %arg5[%c0_10, %c0_11] : memref<32x96xf32, #tpu.memory_space<vmem>>, vector<32x96xf32>
    %cst_12 = arith.constant dense<0.000000e+00> : vector<16x96xf32>
    %25 = tpu.matmul %23, %24, %cst_12 {dimension_numbers = #tpu.dot_dimension_numbers<[1], [0], [0], [1], [0, 0, 1, 1], [], []>} : vector<16x32xf32>, vector<32x96xf32>, vector<16x96xf32> -> vector<16x96xf32>
    %c0_13 = arith.constant 0 : index
    %c0_14 = arith.constant 0 : index
    %26 = vector.load %arg6[%c0_13, %c0_14] : memref<1x96xf32, #tpu.memory_space<vmem>>, vector<1x96xf32>
    %27 = vector.broadcast %26 : vector<1x96xf32> to vector<16x96xf32>
    %28 = arith.addf %25, %27 : vector<16x96xf32>
    %29 = vector.extract_strided_slice %28 {offsets = [0, 0], sizes = [16, 32], strides = [1, 1]} : vector<16x96xf32> to vector<16x32xf32>
    %30 = vector.shape_cast %29 : vector<16x32xf32> to vector<2x8x32xf32>
    %31 = vector.extract_strided_slice %30 {offsets = [0, 0, 0], sizes = [2, 8, 8], strides = [1, 1, 1]} : vector<2x8x32xf32> to vector<2x8x8xf32>
    %32 = vector.extract_strided_slice %30 {offsets = [0, 0, 8], sizes = [2, 8, 8], strides = [1, 1, 1]} : vector<2x8x32xf32> to vector<2x8x8xf32>
    %33 = vector.extract_strided_slice %30 {offsets = [0, 0, 16], sizes = [2, 8, 8], strides = [1, 1, 1]} : vector<2x8x32xf32> to vector<2x8x8xf32>
    %34 = vector.extract_strided_slice %30 {offsets = [0, 0, 24], sizes = [2, 8, 8], strides = [1, 1, 1]} : vector<2x8x32xf32> to vector<2x8x8xf32>
    %35 = vector.shape_cast %31 : vector<2x8x8xf32> to vector<2x1x8x8xf32>
    %36 = vector.shape_cast %32 : vector<2x8x8xf32> to vector<2x1x8x8xf32>
    %37 = vector.shape_cast %33 : vector<2x8x8xf32> to vector<2x1x8x8xf32>
    %38 = vector.shape_cast %34 : vector<2x8x8xf32> to vector<2x1x8x8xf32>
    %39 = tpu.concatenate %35, %36, %37, %38 in 1 : vector<2x1x8x8xf32>, vector<2x1x8x8xf32>, vector<2x1x8x8xf32>, vector<2x1x8x8xf32> -> vector<2x4x8x8xf32>
    %40 = vector.shape_cast %39 : vector<2x4x8x8xf32> to vector<8x8x8xf32>
    %41 = vector.extract_strided_slice %28 {offsets = [0, 32], sizes = [16, 32], strides = [1, 1]} : vector<16x96xf32> to vector<16x32xf32>
    %42 = vector.shape_cast %41 : vector<16x32xf32> to vector<2x8x32xf32>
    %43 = vector.extract_strided_slice %42 {offsets = [0, 0, 0], sizes = [2, 8, 8], strides = [1, 1, 1]} : vector<2x8x32xf32> to vector<2x8x8xf32>
    %44 = vector.extract_strided_slice %42 {offsets = [0, 0, 8], sizes = [2, 8, 8], strides = [1, 1, 1]} : vector<2x8x32xf32> to vector<2x8x8xf32>
    %45 = vector.extract_strided_slice %42 {offsets = [0, 0, 16], sizes = [2, 8, 8], strides = [1, 1, 1]} : vector<2x8x32xf32> to vector<2x8x8xf32>
    %46 = vector.extract_strided_slice %42 {offsets = [0, 0, 24], sizes = [2, 8, 8], strides = [1, 1, 1]} : vector<2x8x32xf32> to vector<2x8x8xf32>
    %47 = vector.shape_cast %43 : vector<2x8x8xf32> to vector<2x1x8x8xf32>
    %48 = vector.shape_cast %44 : vector<2x8x8xf32> to vector<2x1x8x8xf32>
    %49 = vector.shape_cast %45 : vector<2x8x8xf32> to vector<2x1x8x8xf32>
    %50 = vector.shape_cast %46 : vector<2x8x8xf32> to vector<2x1x8x8xf32>
    %51 = tpu.concatenate %47, %48, %49, %50 in 1 : vector<2x1x8x8xf32>, vector<2x1x8x8xf32>, vector<2x1x8x8xf32>, vector<2x1x8x8xf32> -> vector<2x4x8x8xf32>
    %52 = vector.shape_cast %51 : vector<2x4x8x8xf32> to vector<8x8x8xf32>
    %53 = vector.extract_strided_slice %28 {offsets = [0, 64], sizes = [16, 32], strides = [1, 1]} : vector<16x96xf32> to vector<16x32xf32>
    %54 = vector.shape_cast %53 : vector<16x32xf32> to vector<2x8x32xf32>
    %55 = vector.extract_strided_slice %54 {offsets = [0, 0, 0], sizes = [2, 8, 8], strides = [1, 1, 1]} : vector<2x8x32xf32> to vector<2x8x8xf32>
    %56 = vector.extract_strided_slice %54 {offsets = [0, 0, 8], sizes = [2, 8, 8], strides = [1, 1, 1]} : vector<2x8x32xf32> to vector<2x8x8xf32>
    %57 = vector.extract_strided_slice %54 {offsets = [0, 0, 16], sizes = [2, 8, 8], strides = [1, 1, 1]} : vector<2x8x32xf32> to vector<2x8x8xf32>
    %58 = vector.extract_strided_slice %54 {offsets = [0, 0, 24], sizes = [2, 8, 8], strides = [1, 1, 1]} : vector<2x8x32xf32> to vector<2x8x8xf32>
    %59 = vector.shape_cast %55 : vector<2x8x8xf32> to vector<2x1x8x8xf32>
    %60 = vector.shape_cast %56 : vector<2x8x8xf32> to vector<2x1x8x8xf32>
    %61 = vector.shape_cast %57 : vector<2x8x8xf32> to vector<2x1x8x8xf32>
    %62 = vector.shape_cast %58 : vector<2x8x8xf32> to vector<2x1x8x8xf32>
    %63 = tpu.concatenate %59, %60, %61, %62 in 1 : vector<2x1x8x8xf32>, vector<2x1x8x8xf32>, vector<2x1x8x8xf32>, vector<2x1x8x8xf32> -> vector<2x4x8x8xf32>
    %64 = vector.shape_cast %63 : vector<2x4x8x8xf32> to vector<8x8x8xf32>
    "tpu.trace_start"() <{level = 10 : i32, message = "bqd,bkd->bqk"}> : () -> ()
    %cst_15 = arith.constant dense<0.000000e+00> : vector<8x8x8xf32>
    %65 = tpu.matmul %40, %52, %cst_15 {dimension_numbers = #tpu.dot_dimension_numbers<[2], [2], [1], [1], [0, 0, 0, 1, 1, 1], [0], [0]>} : vector<8x8x8xf32>, vector<8x8x8xf32>, vector<8x8x8xf32> -> vector<8x8x8xf32>
    "tpu.trace_stop"() : () -> ()
    %c0_16 = arith.constant 0 : index
    %c0_17 = arith.constant 0 : index
    %66 = vector.load %arg2[%c0_16, %c0_17] : memref<8x8xf32, #tpu.memory_space<vmem>>, vector<8x8xf32>
    %67 = vector.shape_cast %66 : vector<8x8xf32> to vector<1x8x8xf32>
    %68 = vector.broadcast %67 : vector<1x8x8xf32> to vector<8x8x8xf32>
    %69 = arith.addf %65, %68 : vector<8x8x8xf32>
    %cst_18 = arith.constant dense<0xFF800000> : vector<8x8xf32>
    %70 = vector.multi_reduction <maximumf>, %69, %cst_18 [2] : vector<8x8x8xf32> to vector<8x8xf32>
    %71 = vector.shape_cast %70 : vector<8x8xf32> to vector<8x8x1xf32>
    %72 = vector.broadcast %71 : vector<8x8x1xf32> to vector<8x8x8xf32>
    %73 = arith.subf %69, %72 : vector<8x8x8xf32>
    %74 = math.exp %73 : vector<8x8x8xf32>
    %cst_19 = arith.constant dense<0.000000e+00> : vector<8x8xf32>
    %75 = vector.multi_reduction <add>, %74, %cst_19 [2] : vector<8x8x8xf32> to vector<8x8xf32>
    %76 = vector.shape_cast %75 : vector<8x8xf32> to vector<8x8x1xf32>
    %77 = vector.broadcast %76 : vector<8x8x1xf32> to vector<8x8x8xf32>
    %78 = arith.divf %74, %77 : vector<8x8x8xf32>
    "tpu.trace_start"() <{level = 10 : i32, message = "bqk,bkd->bqd"}> : () -> ()
    %cst_20 = arith.constant dense<0.000000e+00> : vector<8x8x8xf32>
    %79 = tpu.matmul %78, %64, %cst_20 {dimension_numbers = #tpu.dot_dimension_numbers<[2], [1], [1], [2], [0, 0, 0, 1, 1, 2], [0], [0]>} : vector<8x8x8xf32>, vector<8x8x8xf32>, vector<8x8x8xf32> -> vector<8x8x8xf32>
    "tpu.trace_stop"() : () -> ()
    %80 = vector.shape_cast %79 : vector<8x8x8xf32> to vector<2x4x8x8xf32>
    %81 = vector.extract_strided_slice %80 {offsets = [0, 0, 0, 0], sizes = [2, 1, 8, 8], strides = [1, 1, 1, 1]} : vector<2x4x8x8xf32> to vector<2x1x8x8xf32>
    %82 = vector.shape_cast %81 : vector<2x1x8x8xf32> to vector<2x8x8xf32>
    %83 = vector.extract_strided_slice %80 {offsets = [0, 1, 0, 0], sizes = [2, 1, 8, 8], strides = [1, 1, 1, 1]} : vector<2x4x8x8xf32> to vector<2x1x8x8xf32>
    %84 = vector.shape_cast %83 : vector<2x1x8x8xf32> to vector<2x8x8xf32>
    %85 = vector.extract_strided_slice %80 {offsets = [0, 2, 0, 0], sizes = [2, 1, 8, 8], strides = [1, 1, 1, 1]} : vector<2x4x8x8xf32> to vector<2x1x8x8xf32>
    %86 = vector.shape_cast %85 : vector<2x1x8x8xf32> to vector<2x8x8xf32>
    %87 = vector.extract_strided_slice %80 {offsets = [0, 3, 0, 0], sizes = [2, 1, 8, 8], strides = [1, 1, 1, 1]} : vector<2x4x8x8xf32> to vector<2x1x8x8xf32>
    %88 = vector.shape_cast %87 : vector<2x1x8x8xf32> to vector<2x8x8xf32>
    %89 = tpu.concatenate %82, %84, %86, %88 in 2 : vector<2x8x8xf32>, vector<2x8x8xf32>, vector<2x8x8xf32>, vector<2x8x8xf32> -> vector<2x8x32xf32>
    %90 = vector.shape_cast %89 : vector<2x8x32xf32> to vector<16x32xf32>
    %c0_21 = arith.constant 0 : index
    %c0_22 = arith.constant 0 : index
    %91 = vector.load %arg7[%c0_21, %c0_22] : memref<32x32xf32, #tpu.memory_space<vmem>>, vector<32x32xf32>
    %cst_23 = arith.constant dense<0.000000e+00> : vector<16x32xf32>
    %92 = tpu.matmul %90, %91, %cst_23 {dimension_numbers = #tpu.dot_dimension_numbers<[1], [0], [0], [1], [0, 0, 1, 1], [], []>} : vector<16x32xf32>, vector<32x32xf32>, vector<16x32xf32> -> vector<16x32xf32>
    %c0_24 = arith.constant 0 : index
    %c0_25 = arith.constant 0 : index
    %93 = vector.load %arg8[%c0_24, %c0_25] : memref<1x32xf32, #tpu.memory_space<vmem>>, vector<1x32xf32>
    %94 = vector.broadcast %93 : vector<1x32xf32> to vector<16x32xf32>
    %95 = arith.addf %92, %94 : vector<16x32xf32>
    %96 = arith.addf %1, %95 : vector<16x32xf32>
    %cst_26 = arith.constant dense<0.000000e+00> : vector<16xf32>
    %97 = vector.multi_reduction <add>, %96, %cst_26 [1] : vector<16x32xf32> to vector<16xf32>
    %98 = vector.shape_cast %97 : vector<16xf32> to vector<16x1xf32>
    %cst_27 = arith.constant 3.200000e+01 : f32
    %99 = vector.broadcast %cst_27 : f32 to vector<16x1xf32>
    %100 = arith.divf %98, %99 : vector<16x1xf32>
    %101 = vector.broadcast %100 : vector<16x1xf32> to vector<16x32xf32>
    %102 = arith.subf %96, %101 : vector<16x32xf32>
    %103 = arith.mulf %102, %102 : vector<16x32xf32>
    %cst_28 = arith.constant dense<0.000000e+00> : vector<16xf32>
    %104 = vector.multi_reduction <add>, %103, %cst_28 [1] : vector<16x32xf32> to vector<16xf32>
    %105 = vector.shape_cast %104 : vector<16xf32> to vector<16x1xf32>
    %cst_29 = arith.constant 3.200000e+01 : f32
    %106 = vector.broadcast %cst_29 : f32 to vector<16x1xf32>
    %107 = arith.divf %105, %106 : vector<16x1xf32>
    %cst_30 = arith.constant 9.99999974E-6 : f32
    %108 = vector.broadcast %cst_30 : f32 to vector<16x1xf32>
    %109 = arith.addf %107, %108 : vector<16x1xf32>
    %110 = math.rsqrt %109 : vector<16x1xf32>
    %111 = vector.broadcast %110 : vector<16x1xf32> to vector<16x32xf32>
    %112 = arith.mulf %102, %111 : vector<16x32xf32>
    %c0_31 = arith.constant 0 : index
    %c0_32 = arith.constant 0 : index
    %113 = vector.load %arg9[%c0_31, %c0_32] : memref<1x32xf32, #tpu.memory_space<vmem>>, vector<1x32xf32>
    %114 = vector.broadcast %113 : vector<1x32xf32> to vector<16x32xf32>
    %115 = arith.mulf %112, %114 : vector<16x32xf32>
    %c0_33 = arith.constant 0 : index
    %c0_34 = arith.constant 0 : index
    %116 = vector.load %arg10[%c0_33, %c0_34] : memref<1x32xf32, #tpu.memory_space<vmem>>, vector<1x32xf32>
    %117 = vector.broadcast %116 : vector<1x32xf32> to vector<16x32xf32>
    %118 = arith.addf %115, %117 : vector<16x32xf32>
    %c0_35 = arith.constant 0 : index
    %c0_36 = arith.constant 0 : index
    %119 = vector.load %arg11[%c0_35, %c0_36] : memref<32x128xf32, #tpu.memory_space<vmem>>, vector<32x128xf32>
    %cst_37 = arith.constant dense<0.000000e+00> : vector<16x128xf32>
    %120 = tpu.matmul %118, %119, %cst_37 {dimension_numbers = #tpu.dot_dimension_numbers<[1], [0], [0], [1], [0, 0, 1, 1], [], []>} : vector<16x32xf32>, vector<32x128xf32>, vector<16x128xf32> -> vector<16x128xf32>
    %c0_38 = arith.constant 0 : index
    %c0_39 = arith.constant 0 : index
    %121 = vector.load %arg12[%c0_38, %c0_39] : memref<1x128xf32, #tpu.memory_space<vmem>>, vector<1x128xf32>
    %122 = vector.broadcast %121 : vector<1x128xf32> to vector<16x128xf32>
    %123 = arith.addf %120, %122 : vector<16x128xf32>
    %cst_40 = arith.constant -1.702000e+00 : f32
    %124 = vector.broadcast %cst_40 : f32 to vector<16x128xf32>
    %125 = arith.mulf %124, %123 : vector<16x128xf32>
    %126 = math.exp %125 : vector<16x128xf32>
    %cst_41 = arith.constant 1.000000e+00 : f32
    %127 = vector.broadcast %cst_41 : f32 to vector<16x128xf32>
    %128 = arith.addf %127, %126 : vector<16x128xf32>
    %cst_42 = arith.constant 1.000000e+00 : f32
    %129 = vector.broadcast %cst_42 : f32 to vector<16x128xf32>
    %130 = arith.divf %129, %128 : vector<16x128xf32>
    %131 = arith.mulf %123, %130 : vector<16x128xf32>
    %c0_43 = arith.constant 0 : index
    %c0_44 = arith.constant 0 : index
    %132 = vector.load %arg13[%c0_43, %c0_44] : memref<128x32xf32, #tpu.memory_space<vmem>>, vector<128x32xf32>
    %cst_45 = arith.constant dense<0.000000e+00> : vector<16x32xf32>
    %133 = tpu.matmul %131, %132, %cst_45 {dimension_numbers = #tpu.dot_dimension_numbers<[1], [0], [0], [1], [0, 0, 1, 1], [], []>} : vector<16x128xf32>, vector<128x32xf32>, vector<16x32xf32> -> vector<16x32xf32>
    %c0_46 = arith.constant 0 : index
    %c0_47 = arith.constant 0 : index
    %134 = vector.load %arg14[%c0_46, %c0_47] : memref<1x32xf32, #tpu.memory_space<vmem>>, vector<1x32xf32>
    %135 = vector.broadcast %134 : vector<1x32xf32> to vector<16x32xf32>
    %136 = arith.addf %133, %135 : vector<16x32xf32>
    %137 = arith.addf %96, %136 : vector<16x32xf32>
    %138 = vector.shape_cast %137 : vector<16x32xf32> to vector<2x8x32xf32>
    %c0_48 = arith.constant 0 : index
    %c0_49 = arith.constant 0 : index
    %c0_50 = arith.constant 0 : index
    %139 = vector.load %arg15[%c0_48, %c0_49, %c0_50] : memref<2x8x32xf32, #tpu.memory_space<vmem>>, vector<2x8x32xf32>
    tpu.vector_store %arg15[%c0_48, %c0_49, %c0_50], %138 {strides = array<i32>} : memref<2x8x32xf32, #tpu.memory_space<vmem>>, vector<2x8x32xf32>,
    return
  }
  func.func @transform_0(%arg0: i32) -> (i32, i32, i32) {
    %c0_i32 = arith.constant 0 : i32
    %c0_i32_0 = arith.constant 0 : i32
    %c0_i32_1 = arith.constant 0 : i32
    return %arg0, %c0_i32, %c0_i32_0 : i32, i32, i32
  }
  func.func @transform_1(%arg0: i32) -> (i32, i32) {
    %c0_i32 = arith.constant 0 : i32
    %c0_i32_0 = arith.constant 0 : i32
    %c0_i32_1 = arith.constant 0 : i32
    return %c0_i32, %c0_i32_0 : i32, i32
  }
  func.func @transform_2(%arg0: i32) -> (i32, i32) {
    %c0_i32 = arith.constant 0 : i32
    %c0_i32_0 = arith.constant 0 : i32
    %c0_i32_1 = arith.constant 0 : i32
    return %c0_i32, %c0_i32_0 : i32, i32
  }
  func.func @transform_3(%arg0: i32) -> (i32, i32) {
    %c0_i32 = arith.constant 0 : i32
    %c0_i32_0 = arith.constant 0 : i32
    %c0_i32_1 = arith.constant 0 : i32
    return %c0_i32, %c0_i32_0 : i32, i32
  }
  func.func @transform_4(%arg0: i32) -> (i32, i32) {
    %c0_i32 = arith.constant 0 : i32
    %c0_i32_0 = arith.constant 0 : i32
    %c0_i32_1 = arith.constant 0 : i32
    return %c0_i32, %c0_i32_0 : i32, i32
  }
  func.func @transform_5(%arg0: i32) -> (i32, i32) {
    %c0_i32 = arith.constant 0 : i32
    %c0_i32_0 = arith.constant 0 : i32
    %c0_i32_1 = arith.constant 0 : i32
    return %c0_i32, %c0_i32_0 : i32, i32
  }
  func.func @transform_6(%arg0: i32) -> (i32, i32) {
    %c0_i32 = arith.constant 0 : i32
    %c0_i32_0 = arith.constant 0 : i32
    %c0_i32_1 = arith.constant 0 : i32
    return %c0_i32, %c0_i32_0 : i32, i32
  }
  func.func @transform_7(%arg0: i32) -> (i32, i32) {
    %c0_i32 = arith.constant 0 : i32
    %c0_i32_0 = arith.constant 0 : i32
    %c0_i32_1 = arith.constant 0 : i32
    return %c0_i32, %c0_i32_0 : i32, i32
  }
  func.func @transform_8(%arg0: i32) -> (i32, i32) {
    %c0_i32 = arith.constant 0 : i32
    %c0_i32_0 = arith.constant 0 : i32
    %c0_i32_1 = arith.constant 0 : i32
    return %c0_i32, %c0_i32_0 : i32, i32
  }
  func.func @transform_9(%arg0: i32) -> (i32, i32) {
    %c0_i32 = arith.constant 0 : i32
    %c0_i32_0 = arith.constant 0 : i32
    %c0_i32_1 = arith.constant 0 : i32
    return %c0_i32, %c0_i32_0 : i32, i32
  }
  func.func @transform_10(%arg0: i32) -> (i32, i32) {
    %c0_i32 = arith.constant 0 : i32
    %c0_i32_0 = arith.constant 0 : i32
    %c0_i32_1 = arith.constant 0 : i32
    return %c0_i32, %c0_i32_0 : i32, i32
  }
  func.func @transform_11(%arg0: i32) -> (i32, i32) {
    %c0_i32 = arith.constant 0 : i32
    %c0_i32_0 = arith.constant 0 : i32
    %c0_i32_1 = arith.constant 0 : i32
    return %c0_i32, %c0_i32_0 : i32, i32
  }
  func.func @transform_12(%arg0: i32) -> (i32, i32) {
    %c0_i32 = arith.constant 0 : i32
    %c0_i32_0 = arith.constant 0 : i32
    %c0_i32_1 = arith.constant 0 : i32
    return %c0_i32, %c0_i32_0 : i32, i32
  }
  func.func @transform_13(%arg0: i32) -> (i32, i32) {
    %c0_i32 = arith.constant 0 : i32
    %c0_i32_0 = arith.constant 0 : i32
    %c0_i32_1 = arith.constant 0 : i32
    return %c0_i32, %c0_i32_0 : i32, i32
  }
  func.func @transform_14(%arg0: i32) -> (i32, i32, i32) {
    %c0_i32 = arith.constant 0 : i32
    %c0_i32_0 = arith.constant 0 : i32
    %c0_i32_1 = arith.constant 0 : i32
    return %arg0, %c0_i32, %c0_i32_0 : i32, i32, i32
  }
}

module attributes {stable_mosaic.version = 11 : i64} {
  func.func @_resblock_kernel(%arg0: i32, %arg1: memref<2x8x32xf32, #tpu.memory_space<vmem>>, %arg2: memref<8x8xf32, #tpu.memory_space<vmem>>, %arg3: memref<1x32xf32, #tpu.memory_space<vmem>>, %arg4: memref<1x32xf32, #tpu.memory_space<vmem>>, %arg5: memref<32x96xf32, #tpu.memory_space<vmem>>, %arg6: memref<1x96xf32, #tpu.memory_space<vmem>>, %arg7: memref<32x32xf32, #tpu.memory_space<vmem>>, %arg8: memref<1x32xf32, #tpu.memory_space<vmem>>, %arg9: memref<1x32xf32, #tpu.memory_space<vmem>>, %arg10: memref<1x32xf32, #tpu.memory_space<vmem>>, %arg11: memref<32x128xf32, #tpu.memory_space<vmem>>, %arg12: memref<1x128xf32, #tpu.memory_space<vmem>>, %arg13: memref<128x32xf32, #tpu.memory_space<vmem>>, %arg14: memref<1x32xf32, #tpu.memory_space<vmem>>, %arg15: memref<2x8x32xf32, #tpu.memory_space<vmem>>) attributes {dimension_semantics = [#tpu.dimension_semantics<parallel>], iteration_bounds = array<i64: 1>, scalar_prefetch = 0 : i64, scratch_operands = 0 : i64, tpu.core_type = #tpu.core_type<tc>, window_params = [{transform_indices = @transform_0, window_bounds = array<i64: 2, 8, 32>}, {pipeline_mode = #tpu.pipeline_mode<synchronous>, transform_indices = @transform_1, window_bounds = array<i64: 8, 8>}, {pipeline_mode = #tpu.pipeline_mode<synchronous>, transform_indices = @transform_2, window_bounds = array<i64: 1, 32>}, {pipeline_mode = #tpu.pipeline_mode<synchronous>, transform_indices = @transform_3, window_bounds = array<i64: 1, 32>}, {pipeline_mode = #tpu.pipeline_mode<synchronous>, transform_indices = @transform_4, window_bounds = array<i64: 32, 96>}, {pipeline_mode = #tpu.pipeline_mode<synchronous>, transform_indices = @transform_5, window_bounds = array<i64: 1, 96>}, {pipeline_mode = #tpu.pipeline_mode<synchronous>, transform_indices = @transform_6, window_bounds = array<i64: 32, 32>}, {pipeline_mode = #tpu.pipeline_mode<synchronous>, transform_indices = @transform_7, window_bounds = array<i64: 1, 32>}, {pipeline_mode = #tpu.pipeline_mode<synchronous>, transform_indices = @transform_8, window_bounds = array<i64: 1, 32>}, {pipeline_mode = #tpu.pipeline_mode<synchronous>, transform_indices = @transform_9, window_bounds = array<i64: 1, 32>}, {pipeline_mode = #tpu.pipeline_mode<synchronous>, transform_indices = @transform_10, window_bounds = array<i64: 32, 128>}, {pipeline_mode = #tpu.pipeline_mode<synchronous>, transform_indices = @transform_11, window_bounds = array<i64: 1, 128>}, {pipeline_mode = #tpu.pipeline_mode<synchronous>, transform_indices = @transform_12, window_bounds = array<i64: 128, 32>}, {pipeline_mode = #tpu.pipeline_mode<synchronous>, transform_indices = @transform_13, window_bounds = array<i64: 1, 32>}, {transform_indices = @transform_14, window_bounds = array<i64: 2, 8, 32>}]} {
    %c0 = arith.constant 0 : index
    %c0_0 = arith.constant 0 : index
    %c0_1 = arith.constant 0 : index
    %0 = vector.load %arg1[%c0, %c0_0, %c0_1] : memref<2x8x32xf32, #tpu.memory_space<vmem>>, vector<2x8x32xf32>
    %1 = vector.shape_cast %0 : vector<2x8x32xf32> to vector<16x32xf32>
    %cst = arith.constant dense<0.000000e+00> : vector<16xf32>
    %2 = vector.multi_reduction <add>, %1, %cst [1] : vector<16x32xf32> to vector<16xf32>
    %3 = vector.shape_cast %2 : vector<16xf32> to vector<16x1xf32>
    %cst_2 = arith.constant 3.200000e+01 : f32
    %4 = vector.broadcast %cst_2 : f32 to vector<16x1xf32>
    %5 = arith.divf %3, %4 : vector<16x1xf32>
    %6 = vector.broadcast %5 : vector<16x1xf32> to vector<16x32xf32>
    %7 = arith.subf %1, %6 : vector<16x32xf32>
    %8 = arith.mulf %7, %7 : vector<16x32xf32>
    %cst_3 = arith.constant dense<0.000000e+00> : vector<16xf32>
    %9 = vector.multi_reduction <add>, %8, %cst_3 [1] : vector<16x32xf32> to vector<16xf32>
    %10 = vector.shape_cast %9 : vector<16xf32> to vector<16x1xf32>
    %cst_4 = arith.constant 3.200000e+01 : f32
    %11 = vector.broadcast %cst_4 : f32 to vector<16x1xf32>
    %12 = arith.divf %10, %11 : vector<16x1xf32>
    %cst_5 = arith.constant 9.99999974E-6 : f32
    %13 = vector.broadcast %cst_5 : f32 to vector<16x1xf32>
    %14 = arith.addf %12, %13 : vector<16x1xf32>
    %15 = math.rsqrt %14 : vector<16x1xf32>
    %16 = vector.broadcast %15 : vector<16x1xf32> to vector<16x32xf32>
    %17 = arith.mulf %7, %16 : vector<16x32xf32>
    %c0_6 = arith.constant 0 : index
    %c0_7 = arith.constant 0 : index
    %18 = vector.load %arg3[%c0_6, %c0_7] : memref<1x32xf32, #tpu.memory_space<vmem>>, vector<1x32xf32>
    %19 = vector.broadcast %18 : vector<1x32xf32> to vector<16x32xf32>
    %20 = arith.mulf %17, %19 : vector<16x32xf32>
    %c0_8 = arith.constant 0 : index
    %c0_9 = arith.constant 0 : index
    %21 = vector.load %arg4[%c0_8, %c0_9] : memref<1x32xf32, #tpu.memory_space<vmem>>, vector<1x32xf32>
    %22 = vector.broadcast %21 : vector<1x32xf32> to vector<16x32xf32>
    %23 = arith.addf %20, %22 : vector<16x32xf32>
    %c0_10 = arith.constant 0 : index
    %c0_11 = arith.constant 0 : index
    %24 = vector.load %arg5[%c0_10, %c0_11] : memref<32x96xf32, #tpu.memory_space<vmem>>, vector<32x96xf32>
    %cst_12 = arith.constant dense<0.000000e+00> : vector<16x96xf32>
    %25 = tpu.matmul %23, %24, %cst_12 {dimension_numbers = #tpu.dot_dimension_numbers<[1], [0], [0], [1], [0, 0, 1, 1], [], []>} : vector<16x32xf32>, vector<32x96xf32>, vector<16x96xf32> -> vector<16x96xf32>
    %c0_13 = arith.constant 0 : index
    %c0_14 = arith.constant 0 : index
    %26 = vector.load %arg6[%c0_13, %c0_14] : memref<1x96xf32, #tpu.memory_space<vmem>>, vector<1x96xf32>
    %27 = vector.broadcast %26 : vector<1x96xf32> to vector<16x96xf32>
    %28 = arith.addf %25, %27 : vector<16x96xf32>
    %29 = vector.extract_strided_slice %28 {offsets = [0, 0], sizes = [16, 32], strides = [1, 1]} : vector<16x96xf32> to vector<16x32xf32>
    %30 = vector.shape_cast %29 : vector<16x32xf32> to vector<2x8x4x8xf32>
    %31 = tpu.transpose %30, [0, 2, 1, 3] : vector<2x8x4x8xf32> -> vector<2x4x8x8xf32>
    %32 = vector.shape_cast %31 : vector<2x4x8x8xf32> to vector<8x8x8xf32>
    %33 = vector.extract_strided_slice %28 {offsets = [0, 32], sizes = [16, 32], strides = [1, 1]} : vector<16x96xf32> to vector<16x32xf32>
    %34 = vector.shape_cast %33 : vector<16x32xf32> to vector<2x8x4x8xf32>
    %35 = tpu.transpose %34, [0, 2, 1, 3] : vector<2x8x4x8xf32> -> vector<2x4x8x8xf32>
    %36 = vector.shape_cast %35 : vector<2x4x8x8xf32> to vector<8x8x8xf32>
    %37 = vector.extract_strided_slice %28 {offsets = [0, 64], sizes = [16, 32], strides = [1, 1]} : vector<16x96xf32> to vector<16x32xf32>
    %38 = vector.shape_cast %37 : vector<16x32xf32> to vector<2x8x4x8xf32>
    %39 = tpu.transpose %38, [0, 2, 1, 3] : vector<2x8x4x8xf32> -> vector<2x4x8x8xf32>
    %40 = vector.shape_cast %39 : vector<2x4x8x8xf32> to vector<8x8x8xf32>
    "tpu.trace_start"() <{level = 10 : i32, message = "bqd,bkd->bqk"}> : () -> ()
    %cst_15 = arith.constant dense<0.000000e+00> : vector<8x8x8xf32>
    %41 = tpu.matmul %32, %36, %cst_15 {dimension_numbers = #tpu.dot_dimension_numbers<[2], [2], [1], [1], [0, 0, 0, 1, 1, 1], [0], [0]>} : vector<8x8x8xf32>, vector<8x8x8xf32>, vector<8x8x8xf32> -> vector<8x8x8xf32>
    "tpu.trace_stop"() : () -> ()
    %c0_16 = arith.constant 0 : index
    %c0_17 = arith.constant 0 : index
    %42 = vector.load %arg2[%c0_16, %c0_17] : memref<8x8xf32, #tpu.memory_space<vmem>>, vector<8x8xf32>
    %43 = vector.shape_cast %42 : vector<8x8xf32> to vector<1x8x8xf32>
    %44 = vector.broadcast %43 : vector<1x8x8xf32> to vector<8x8x8xf32>
    %45 = arith.addf %41, %44 : vector<8x8x8xf32>
    %cst_18 = arith.constant dense<0xFF800000> : vector<8x8xf32>
    %46 = vector.multi_reduction <maximumf>, %45, %cst_18 [2] : vector<8x8x8xf32> to vector<8x8xf32>
    %47 = vector.shape_cast %46 : vector<8x8xf32> to vector<8x8x1xf32>
    %48 = vector.broadcast %47 : vector<8x8x1xf32> to vector<8x8x8xf32>
    %49 = arith.subf %45, %48 : vector<8x8x8xf32>
    %50 = math.exp %49 : vector<8x8x8xf32>
    %cst_19 = arith.constant dense<0.000000e+00> : vector<8x8xf32>
    %51 = vector.multi_reduction <add>, %50, %cst_19 [2] : vector<8x8x8xf32> to vector<8x8xf32>
    %52 = vector.shape_cast %51 : vector<8x8xf32> to vector<8x8x1xf32>
    %53 = vector.broadcast %52 : vector<8x8x1xf32> to vector<8x8x8xf32>
    %54 = arith.divf %50, %53 : vector<8x8x8xf32>
    "tpu.trace_start"() <{level = 10 : i32, message = "bqk,bkd->bqd"}> : () -> ()
    %cst_20 = arith.constant dense<0.000000e+00> : vector<8x8x8xf32>
    %55 = tpu.matmul %54, %40, %cst_20 {dimension_numbers = #tpu.dot_dimension_numbers<[2], [1], [1], [2], [0, 0, 0, 1, 1, 2], [0], [0]>} : vector<8x8x8xf32>, vector<8x8x8xf32>, vector<8x8x8xf32> -> vector<8x8x8xf32>
    "tpu.trace_stop"() : () -> ()
    %56 = vector.shape_cast %55 : vector<8x8x8xf32> to vector<2x4x8x8xf32>
    %57 = tpu.transpose %56, [0, 2, 1, 3] : vector<2x4x8x8xf32> -> vector<2x8x4x8xf32>
    %58 = vector.shape_cast %57 : vector<2x8x4x8xf32> to vector<16x32xf32>
    %c0_21 = arith.constant 0 : index
    %c0_22 = arith.constant 0 : index
    %59 = vector.load %arg7[%c0_21, %c0_22] : memref<32x32xf32, #tpu.memory_space<vmem>>, vector<32x32xf32>
    %cst_23 = arith.constant dense<0.000000e+00> : vector<16x32xf32>
    %60 = tpu.matmul %58, %59, %cst_23 {dimension_numbers = #tpu.dot_dimension_numbers<[1], [0], [0], [1], [0, 0, 1, 1], [], []>} : vector<16x32xf32>, vector<32x32xf32>, vector<16x32xf32> -> vector<16x32xf32>
    %c0_24 = arith.constant 0 : index
    %c0_25 = arith.constant 0 : index
    %61 = vector.load %arg8[%c0_24, %c0_25] : memref<1x32xf32, #tpu.memory_space<vmem>>, vector<1x32xf32>
    %62 = vector.broadcast %61 : vector<1x32xf32> to vector<16x32xf32>
    %63 = arith.addf %60, %62 : vector<16x32xf32>
    %64 = arith.addf %1, %63 : vector<16x32xf32>
    %cst_26 = arith.constant dense<0.000000e+00> : vector<16xf32>
    %65 = vector.multi_reduction <add>, %64, %cst_26 [1] : vector<16x32xf32> to vector<16xf32>
    %66 = vector.shape_cast %65 : vector<16xf32> to vector<16x1xf32>
    %cst_27 = arith.constant 3.200000e+01 : f32
    %67 = vector.broadcast %cst_27 : f32 to vector<16x1xf32>
    %68 = arith.divf %66, %67 : vector<16x1xf32>
    %69 = vector.broadcast %68 : vector<16x1xf32> to vector<16x32xf32>
    %70 = arith.subf %64, %69 : vector<16x32xf32>
    %71 = arith.mulf %70, %70 : vector<16x32xf32>
    %cst_28 = arith.constant dense<0.000000e+00> : vector<16xf32>
    %72 = vector.multi_reduction <add>, %71, %cst_28 [1] : vector<16x32xf32> to vector<16xf32>
    %73 = vector.shape_cast %72 : vector<16xf32> to vector<16x1xf32>
    %cst_29 = arith.constant 3.200000e+01 : f32
    %74 = vector.broadcast %cst_29 : f32 to vector<16x1xf32>
    %75 = arith.divf %73, %74 : vector<16x1xf32>
    %cst_30 = arith.constant 9.99999974E-6 : f32
    %76 = vector.broadcast %cst_30 : f32 to vector<16x1xf32>
    %77 = arith.addf %75, %76 : vector<16x1xf32>
    %78 = math.rsqrt %77 : vector<16x1xf32>
    %79 = vector.broadcast %78 : vector<16x1xf32> to vector<16x32xf32>
    %80 = arith.mulf %70, %79 : vector<16x32xf32>
    %c0_31 = arith.constant 0 : index
    %c0_32 = arith.constant 0 : index
    %81 = vector.load %arg9[%c0_31, %c0_32] : memref<1x32xf32, #tpu.memory_space<vmem>>, vector<1x32xf32>
    %82 = vector.broadcast %81 : vector<1x32xf32> to vector<16x32xf32>
    %83 = arith.mulf %80, %82 : vector<16x32xf32>
    %c0_33 = arith.constant 0 : index
    %c0_34 = arith.constant 0 : index
    %84 = vector.load %arg10[%c0_33, %c0_34] : memref<1x32xf32, #tpu.memory_space<vmem>>, vector<1x32xf32>
    %85 = vector.broadcast %84 : vector<1x32xf32> to vector<16x32xf32>
    %86 = arith.addf %83, %85 : vector<16x32xf32>
    %c0_35 = arith.constant 0 : index
    %c0_36 = arith.constant 0 : index
    %87 = vector.load %arg11[%c0_35, %c0_36] : memref<32x128xf32, #tpu.memory_space<vmem>>, vector<32x128xf32>
    %cst_37 = arith.constant dense<0.000000e+00> : vector<16x128xf32>
    %88 = tpu.matmul %86, %87, %cst_37 {dimension_numbers = #tpu.dot_dimension_numbers<[1], [0], [0], [1], [0, 0, 1, 1], [], []>} : vector<16x32xf32>, vector<32x128xf32>, vector<16x128xf32> -> vector<16x128xf32>
    %c0_38 = arith.constant 0 : index
    %c0_39 = arith.constant 0 : index
    %89 = vector.load %arg12[%c0_38, %c0_39] : memref<1x128xf32, #tpu.memory_space<vmem>>, vector<1x128xf32>
    %90 = vector.broadcast %89 : vector<1x128xf32> to vector<16x128xf32>
    %91 = arith.addf %88, %90 : vector<16x128xf32>
    %cst_40 = arith.constant -1.702000e+00 : f32
    %92 = vector.broadcast %cst_40 : f32 to vector<16x128xf32>
    %93 = arith.mulf %92, %91 : vector<16x128xf32>
    %94 = math.exp %93 : vector<16x128xf32>
    %cst_41 = arith.constant 1.000000e+00 : f32
    %95 = vector.broadcast %cst_41 : f32 to vector<16x128xf32>
    %96 = arith.addf %95, %94 : vector<16x128xf32>
    %cst_42 = arith.constant 1.000000e+00 : f32
    %97 = vector.broadcast %cst_42 : f32 to vector<16x128xf32>
    %98 = arith.divf %97, %96 : vector<16x128xf32>
    %99 = arith.mulf %91, %98 : vector<16x128xf32>
    %c0_43 = arith.constant 0 : index
    %c0_44 = arith.constant 0 : index
    %100 = vector.load %arg13[%c0_43, %c0_44] : memref<128x32xf32, #tpu.memory_space<vmem>>, vector<128x32xf32>
    %cst_45 = arith.constant dense<0.000000e+00> : vector<16x32xf32>
    %101 = tpu.matmul %99, %100, %cst_45 {dimension_numbers = #tpu.dot_dimension_numbers<[1], [0], [0], [1], [0, 0, 1, 1], [], []>} : vector<16x128xf32>, vector<128x32xf32>, vector<16x32xf32> -> vector<16x32xf32>
    %c0_46 = arith.constant 0 : index
    %c0_47 = arith.constant 0 : index
    %102 = vector.load %arg14[%c0_46, %c0_47] : memref<1x32xf32, #tpu.memory_space<vmem>>, vector<1x32xf32>
    %103 = vector.broadcast %102 : vector<1x32xf32> to vector<16x32xf32>
    %104 = arith.addf %101, %103 : vector<16x32xf32>
    %105 = arith.addf %64, %104 : vector<16x32xf32>
    %106 = vector.shape_cast %105 : vector<16x32xf32> to vector<2x8x32xf32>
    %c0_48 = arith.constant 0 : index
    %c0_49 = arith.constant 0 : index
    %c0_50 = arith.constant 0 : index
    %107 = vector.load %arg15[%c0_48, %c0_49, %c0_50] : memref<2x8x32xf32, #tpu.memory_space<vmem>>, vector<2x8x32xf32>
    tpu.vector_store %arg15[%c0_48, %c0_49, %c0_50], %106 {strides = array<i32>} : memref<2x8x32xf32, #tpu.memory_space<vmem>>, vector<2x8x32xf32>,
    return
  }
  func.func @transform_0(%arg0: i32) -> (i32, i32, i32) {
    %c0_i32 = arith.constant 0 : i32
    %c0_i32_0 = arith.constant 0 : i32
    %c0_i32_1 = arith.constant 0 : i32
    return %arg0, %c0_i32, %c0_i32_0 : i32, i32, i32
  }
  func.func @transform_1(%arg0: i32) -> (i32, i32) {
    %c0_i32 = arith.constant 0 : i32
    %c0_i32_0 = arith.constant 0 : i32
    %c0_i32_1 = arith.constant 0 : i32
    return %c0_i32, %c0_i32_0 : i32, i32
  }
  func.func @transform_2(%arg0: i32) -> (i32, i32) {
    %c0_i32 = arith.constant 0 : i32
    %c0_i32_0 = arith.constant 0 : i32
    %c0_i32_1 = arith.constant 0 : i32
    return %c0_i32, %c0_i32_0 : i32, i32
  }
  func.func @transform_3(%arg0: i32) -> (i32, i32) {
    %c0_i32 = arith.constant 0 : i32
    %c0_i32_0 = arith.constant 0 : i32
    %c0_i32_1 = arith.constant 0 : i32
    return %c0_i32, %c0_i32_0 : i32, i32
  }
  func.func @transform_4(%arg0: i32) -> (i32, i32) {
    %c0_i32 = arith.constant 0 : i32
    %c0_i32_0 = arith.constant 0 : i32
    %c0_i32_1 = arith.constant 0 : i32
    return %c0_i32, %c0_i32_0 : i32, i32
  }
  func.func @transform_5(%arg0: i32) -> (i32, i32) {
    %c0_i32 = arith.constant 0 : i32
    %c0_i32_0 = arith.constant 0 : i32
    %c0_i32_1 = arith.constant 0 : i32
    return %c0_i32, %c0_i32_0 : i32, i32
  }
  func.func @transform_6(%arg0: i32) -> (i32, i32) {
    %c0_i32 = arith.constant 0 : i32
    %c0_i32_0 = arith.constant 0 : i32
    %c0_i32_1 = arith.constant 0 : i32
    return %c0_i32, %c0_i32_0 : i32, i32
  }
  func.func @transform_7(%arg0: i32) -> (i32, i32) {
    %c0_i32 = arith.constant 0 : i32
    %c0_i32_0 = arith.constant 0 : i32
    %c0_i32_1 = arith.constant 0 : i32
    return %c0_i32, %c0_i32_0 : i32, i32
  }
  func.func @transform_8(%arg0: i32) -> (i32, i32) {
    %c0_i32 = arith.constant 0 : i32
    %c0_i32_0 = arith.constant 0 : i32
    %c0_i32_1 = arith.constant 0 : i32
    return %c0_i32, %c0_i32_0 : i32, i32
  }
  func.func @transform_9(%arg0: i32) -> (i32, i32) {
    %c0_i32 = arith.constant 0 : i32
    %c0_i32_0 = arith.constant 0 : i32
    %c0_i32_1 = arith.constant 0 : i32
    return %c0_i32, %c0_i32_0 : i32, i32
  }
  func.func @transform_10(%arg0: i32) -> (i32, i32) {
    %c0_i32 = arith.constant 0 : i32
    %c0_i32_0 = arith.constant 0 : i32
    %c0_i32_1 = arith.constant 0 : i32
    return %c0_i32, %c0_i32_0 : i32, i32
  }
  func.func @transform_11(%arg0: i32) -> (i32, i32) {
    %c0_i32 = arith.constant 0 : i32
    %c0_i32_0 = arith.constant 0 : i32
    %c0_i32_1 = arith.constant 0 : i32
    return %c0_i32, %c0_i32_0 : i32, i32
  }
  func.func @transform_12(%arg0: i32) -> (i32, i32) {
    %c0_i32 = arith.constant 0 : i32
    %c0_i32_0 = arith.constant 0 : i32
    %c0_i32_1 = arith.constant 0 : i32
    return %c0_i32, %c0_i32_0 : i32, i32
  }
  func.func @transform_13(%arg0: i32) -> (i32, i32) {
    %c0_i32 = arith.constant 0 : i32
    %c0_i32_0 = arith.constant 0 : i32
    %c0_i32_1 = arith.constant 0 : i32
    return %c0_i32, %c0_i32_0 : i32, i32
  }
  func.func @transform_14(%arg0: i32) -> (i32, i32, i32) {
    %c0_i32 = arith.constant 0 : i32
    %c0_i32_0 = arith.constant 0 : i32
    %c0_i32_1 = arith.constant 0 : i32
    return %arg0, %c0_i32, %c0_i32_0 : i32, i32, i32
  }
}

module attributes {stable_mosaic.version = 11 : i64} {
  func.func @_resblock_kernel(%arg0: i32, %arg1: memref<2x8x32xf32, #tpu.memory_space<vmem>>, %arg2: memref<8x8xf32, #tpu.memory_space<vmem>>, %arg3: memref<1x32xf32, #tpu.memory_space<vmem>>, %arg4: memref<1x32xf32, #tpu.memory_space<vmem>>, %arg5: memref<32x96xf32, #tpu.memory_space<vmem>>, %arg6: memref<1x96xf32, #tpu.memory_space<vmem>>, %arg7: memref<32x32xf32, #tpu.memory_space<vmem>>, %arg8: memref<1x32xf32, #tpu.memory_space<vmem>>, %arg9: memref<1x32xf32, #tpu.memory_space<vmem>>, %arg10: memref<1x32xf32, #tpu.memory_space<vmem>>, %arg11: memref<32x128xf32, #tpu.memory_space<vmem>>, %arg12: memref<1x128xf32, #tpu.memory_space<vmem>>, %arg13: memref<128x32xf32, #tpu.memory_space<vmem>>, %arg14: memref<1x32xf32, #tpu.memory_space<vmem>>, %arg15: memref<2x8x32xf32, #tpu.memory_space<vmem>>) attributes {dimension_semantics = [#tpu.dimension_semantics<parallel>], iteration_bounds = array<i64: 1>, scalar_prefetch = 0 : i64, scratch_operands = 0 : i64, tpu.core_type = #tpu.core_type<tc>, window_params = [{transform_indices = @transform_0, window_bounds = array<i64: 2, 8, 32>}, {pipeline_mode = #tpu.pipeline_mode<synchronous>, transform_indices = @transform_1, window_bounds = array<i64: 8, 8>}, {pipeline_mode = #tpu.pipeline_mode<synchronous>, transform_indices = @transform_2, window_bounds = array<i64: 1, 32>}, {pipeline_mode = #tpu.pipeline_mode<synchronous>, transform_indices = @transform_3, window_bounds = array<i64: 1, 32>}, {pipeline_mode = #tpu.pipeline_mode<synchronous>, transform_indices = @transform_4, window_bounds = array<i64: 32, 96>}, {pipeline_mode = #tpu.pipeline_mode<synchronous>, transform_indices = @transform_5, window_bounds = array<i64: 1, 96>}, {pipeline_mode = #tpu.pipeline_mode<synchronous>, transform_indices = @transform_6, window_bounds = array<i64: 32, 32>}, {pipeline_mode = #tpu.pipeline_mode<synchronous>, transform_indices = @transform_7, window_bounds = array<i64: 1, 32>}, {pipeline_mode = #tpu.pipeline_mode<synchronous>, transform_indices = @transform_8, window_bounds = array<i64: 1, 32>}, {pipeline_mode = #tpu.pipeline_mode<synchronous>, transform_indices = @transform_9, window_bounds = array<i64: 1, 32>}, {pipeline_mode = #tpu.pipeline_mode<synchronous>, transform_indices = @transform_10, window_bounds = array<i64: 32, 128>}, {pipeline_mode = #tpu.pipeline_mode<synchronous>, transform_indices = @transform_11, window_bounds = array<i64: 1, 128>}, {pipeline_mode = #tpu.pipeline_mode<synchronous>, transform_indices = @transform_12, window_bounds = array<i64: 128, 32>}, {pipeline_mode = #tpu.pipeline_mode<synchronous>, transform_indices = @transform_13, window_bounds = array<i64: 1, 32>}, {transform_indices = @transform_14, window_bounds = array<i64: 2, 8, 32>}]} {
    %c0 = arith.constant 0 : index
    %c0_0 = arith.constant 0 : index
    %c0_1 = arith.constant 0 : index
    %0 = vector.load %arg1[%c0, %c0_0, %c0_1] : memref<2x8x32xf32, #tpu.memory_space<vmem>>, vector<2x8x32xf32>
    %1 = vector.shape_cast %0 : vector<2x8x32xf32> to vector<16x32xf32>
    %cst = arith.constant dense<0.000000e+00> : vector<16xf32>
    %2 = vector.multi_reduction <add>, %1, %cst [1] : vector<16x32xf32> to vector<16xf32>
    %3 = vector.shape_cast %2 : vector<16xf32> to vector<16x1xf32>
    %cst_2 = arith.constant 3.200000e+01 : f32
    %4 = vector.broadcast %cst_2 : f32 to vector<16x1xf32>
    %5 = arith.divf %3, %4 : vector<16x1xf32>
    %6 = vector.broadcast %5 : vector<16x1xf32> to vector<16x32xf32>
    %7 = arith.subf %1, %6 : vector<16x32xf32>
    %8 = arith.mulf %7, %7 : vector<16x32xf32>
    %cst_3 = arith.constant dense<0.000000e+00> : vector<16xf32>
    %9 = vector.multi_reduction <add>, %8, %cst_3 [1] : vector<16x32xf32> to vector<16xf32>
    %10 = vector.shape_cast %9 : vector<16xf32> to vector<16x1xf32>
    %cst_4 = arith.constant 3.200000e+01 : f32
    %11 = vector.broadcast %cst_4 : f32 to vector<16x1xf32>
    %12 = arith.divf %10, %11 : vector<16x1xf32>
    %cst_5 = arith.constant 9.99999974E-6 : f32
    %13 = vector.broadcast %cst_5 : f32 to vector<16x1xf32>
    %14 = arith.addf %12, %13 : vector<16x1xf32>
    %15 = math.rsqrt %14 : vector<16x1xf32>
    %16 = vector.broadcast %15 : vector<16x1xf32> to vector<16x32xf32>
    %17 = arith.mulf %7, %16 : vector<16x32xf32>
    %c0_6 = arith.constant 0 : index
    %c0_7 = arith.constant 0 : index
    %18 = vector.load %arg3[%c0_6, %c0_7] : memref<1x32xf32, #tpu.memory_space<vmem>>, vector<1x32xf32>
    %19 = vector.broadcast %18 : vector<1x32xf32> to vector<16x32xf32>
    %20 = arith.mulf %17, %19 : vector<16x32xf32>
    %c0_8 = arith.constant 0 : index
    %c0_9 = arith.constant 0 : index
    %21 = vector.load %arg4[%c0_8, %c0_9] : memref<1x32xf32, #tpu.memory_space<vmem>>, vector<1x32xf32>
    %22 = vector.broadcast %21 : vector<1x32xf32> to vector<16x32xf32>
    %23 = arith.addf %20, %22 : vector<16x32xf32>
    %c0_10 = arith.constant 0 : index
    %c0_11 = arith.constant 0 : index
    %24 = vector.load %arg5[%c0_10, %c0_11] : memref<32x96xf32, #tpu.memory_space<vmem>>, vector<32x96xf32>
    %cst_12 = arith.constant dense<0.000000e+00> : vector<16x96xf32>
    %25 = tpu.matmul %23, %24, %cst_12 {dimension_numbers = #tpu.dot_dimension_numbers<[1], [0], [0], [1], [0, 0, 1, 1], [], []>} : vector<16x32xf32>, vector<32x96xf32>, vector<16x96xf32> -> vector<16x96xf32>
    %c0_13 = arith.constant 0 : index
    %c0_14 = arith.constant 0 : index
    %26 = vector.load %arg6[%c0_13, %c0_14] : memref<1x96xf32, #tpu.memory_space<vmem>>, vector<1x96xf32>
    %27 = vector.broadcast %26 : vector<1x96xf32> to vector<16x96xf32>
    %28 = arith.addf %25, %27 : vector<16x96xf32>
    %29 = vector.extract_strided_slice %28 {offsets = [0, 0], sizes = [16, 32], strides = [1, 1]} : vector<16x96xf32> to vector<16x32xf32>
    %30 = vector.shape_cast %29 : vector<16x32xf32> to vector<2x8x4x8xf32>
    %31 = tpu.transpose %30, [0, 2, 1, 3] : vector<2x8x4x8xf32> -> vector<2x4x8x8xf32>
    %32 = vector.shape_cast %31 : vector<2x4x8x8xf32> to vector<8x8x8xf32>
    %33 = vector.extract_strided_slice %28 {offsets = [0, 32], sizes = [16, 32], strides = [1, 1]} : vector<16x96xf32> to vector<16x32xf32>
    %34 = vector.shape_cast %33 : vector<16x32xf32> to vector<2x8x4x8xf32>
    %35 = tpu.transpose %34, [0, 2, 1, 3] : vector<2x8x4x8xf32> -> vector<2x4x8x8xf32>
    %36 = vector.shape_cast %35 : vector<2x4x8x8xf32> to vector<8x8x8xf32>
    %37 = vector.extract_strided_slice %28 {offsets = [0, 64], sizes = [16, 32], strides = [1, 1]} : vector<16x96xf32> to vector<16x32xf32>
    %38 = vector.shape_cast %37 : vector<16x32xf32> to vector<2x8x4x8xf32>
    %39 = tpu.transpose %38, [0, 2, 1, 3] : vector<2x8x4x8xf32> -> vector<2x4x8x8xf32>
    %40 = vector.shape_cast %39 : vector<2x4x8x8xf32> to vector<8x8x8xf32>
    "tpu.trace_start"() <{level = 10 : i32, message = "bqd,bkd->bqk"}> : () -> ()
    %cst_15 = arith.constant dense<0.000000e+00> : vector<8x8x8xf32>
    %41 = tpu.matmul %32, %36, %cst_15 {dimension_numbers = #tpu.dot_dimension_numbers<[2], [2], [1], [1], [0, 0, 0, 1, 1, 1], [0], [0]>} : vector<8x8x8xf32>, vector<8x8x8xf32>, vector<8x8x8xf32> -> vector<8x8x8xf32>
    "tpu.trace_stop"() : () -> ()
    %c0_16 = arith.constant 0 : index
    %c0_17 = arith.constant 0 : index
    %42 = vector.load %arg2[%c0_16, %c0_17] : memref<8x8xf32, #tpu.memory_space<vmem>>, vector<8x8xf32>
    %43 = vector.shape_cast %42 : vector<8x8xf32> to vector<1x8x8xf32>
    %44 = vector.broadcast %43 : vector<1x8x8xf32> to vector<8x8x8xf32>
    %45 = arith.addf %41, %44 : vector<8x8x8xf32>
    %cst_18 = arith.constant dense<0xFF800000> : vector<8x8xf32>
    %46 = vector.multi_reduction <maximumf>, %45, %cst_18 [2] : vector<8x8x8xf32> to vector<8x8xf32>
    %47 = vector.shape_cast %46 : vector<8x8xf32> to vector<8x8x1xf32>
    %48 = vector.broadcast %47 : vector<8x8x1xf32> to vector<8x8x8xf32>
    %49 = arith.subf %45, %48 : vector<8x8x8xf32>
    %50 = math.exp %49 : vector<8x8x8xf32>
    %cst_19 = arith.constant dense<0.000000e+00> : vector<8x8xf32>
    %51 = vector.multi_reduction <add>, %50, %cst_19 [2] : vector<8x8x8xf32> to vector<8x8xf32>
    %52 = vector.shape_cast %51 : vector<8x8xf32> to vector<8x8x1xf32>
    %53 = vector.broadcast %52 : vector<8x8x1xf32> to vector<8x8x8xf32>
    %54 = arith.divf %50, %53 : vector<8x8x8xf32>
    "tpu.trace_start"() <{level = 10 : i32, message = "bqk,bkd->bqd"}> : () -> ()
    %cst_20 = arith.constant dense<0.000000e+00> : vector<8x8x8xf32>
    %55 = tpu.matmul %54, %40, %cst_20 {dimension_numbers = #tpu.dot_dimension_numbers<[2], [1], [1], [2], [0, 0, 0, 1, 1, 2], [0], [0]>} : vector<8x8x8xf32>, vector<8x8x8xf32>, vector<8x8x8xf32> -> vector<8x8x8xf32>
    "tpu.trace_stop"() : () -> ()
    %56 = vector.shape_cast %55 : vector<8x8x8xf32> to vector<2x4x8x8xf32>
    %57 = tpu.transpose %56, [0, 2, 1, 3] : vector<2x4x8x8xf32> -> vector<2x8x4x8xf32>
    %58 = vector.shape_cast %57 : vector<2x8x4x8xf32> to vector<16x32xf32>
    %c0_21 = arith.constant 0 : index
    %c0_22 = arith.constant 0 : index
    %59 = vector.load %arg7[%c0_21, %c0_22] : memref<32x32xf32, #tpu.memory_space<vmem>>, vector<32x32xf32>
    %cst_23 = arith.constant dense<0.000000e+00> : vector<16x32xf32>
    %60 = tpu.matmul %58, %59, %cst_23 {dimension_numbers = #tpu.dot_dimension_numbers<[1], [0], [0], [1], [0, 0, 1, 1], [], []>} : vector<16x32xf32>, vector<32x32xf32>, vector<16x32xf32> -> vector<16x32xf32>
    %c0_24 = arith.constant 0 : index
    %c0_25 = arith.constant 0 : index
    %61 = vector.load %arg8[%c0_24, %c0_25] : memref<1x32xf32, #tpu.memory_space<vmem>>, vector<1x32xf32>
    %62 = vector.broadcast %61 : vector<1x32xf32> to vector<16x32xf32>
    %63 = arith.addf %60, %62 : vector<16x32xf32>
    %64 = arith.addf %1, %63 : vector<16x32xf32>
    %cst_26 = arith.constant dense<0.000000e+00> : vector<16xf32>
    %65 = vector.multi_reduction <add>, %64, %cst_26 [1] : vector<16x32xf32> to vector<16xf32>
    %66 = vector.shape_cast %65 : vector<16xf32> to vector<16x1xf32>
    %cst_27 = arith.constant 3.200000e+01 : f32
    %67 = vector.broadcast %cst_27 : f32 to vector<16x1xf32>
    %68 = arith.divf %66, %67 : vector<16x1xf32>
    %69 = vector.broadcast %68 : vector<16x1xf32> to vector<16x32xf32>
    %70 = arith.subf %64, %69 : vector<16x32xf32>
    %71 = arith.mulf %70, %70 : vector<16x32xf32>
    %cst_28 = arith.constant dense<0.000000e+00> : vector<16xf32>
    %72 = vector.multi_reduction <add>, %71, %cst_28 [1] : vector<16x32xf32> to vector<16xf32>
    %73 = vector.shape_cast %72 : vector<16xf32> to vector<16x1xf32>
    %cst_29 = arith.constant 3.200000e+01 : f32
    %74 = vector.broadcast %cst_29 : f32 to vector<16x1xf32>
    %75 = arith.divf %73, %74 : vector<16x1xf32>
    %cst_30 = arith.constant 9.99999974E-6 : f32
    %76 = vector.broadcast %cst_30 : f32 to vector<16x1xf32>
    %77 = arith.addf %75, %76 : vector<16x1xf32>
    %78 = math.rsqrt %77 : vector<16x1xf32>
    %79 = vector.broadcast %78 : vector<16x1xf32> to vector<16x32xf32>
    %80 = arith.mulf %70, %79 : vector<16x32xf32>
    %c0_31 = arith.constant 0 : index
    %c0_32 = arith.constant 0 : index
    %81 = vector.load %arg9[%c0_31, %c0_32] : memref<1x32xf32, #tpu.memory_space<vmem>>, vector<1x32xf32>
    %82 = vector.broadcast %81 : vector<1x32xf32> to vector<16x32xf32>
    %83 = arith.mulf %80, %82 : vector<16x32xf32>
    %c0_33 = arith.constant 0 : index
    %c0_34 = arith.constant 0 : index
    %84 = vector.load %arg10[%c0_33, %c0_34] : memref<1x32xf32, #tpu.memory_space<vmem>>, vector<1x32xf32>
    %85 = vector.broadcast %84 : vector<1x32xf32> to vector<16x32xf32>
    %86 = arith.addf %83, %85 : vector<16x32xf32>
    %c0_35 = arith.constant 0 : index
    %c0_36 = arith.constant 0 : index
    %87 = vector.load %arg11[%c0_35, %c0_36] : memref<32x128xf32, #tpu.memory_space<vmem>>, vector<32x128xf32>
    %cst_37 = arith.constant dense<0.000000e+00> : vector<16x128xf32>
    %88 = tpu.matmul %86, %87, %cst_37 {dimension_numbers = #tpu.dot_dimension_numbers<[1], [0], [0], [1], [0, 0, 1, 1], [], []>} : vector<16x32xf32>, vector<32x128xf32>, vector<16x128xf32> -> vector<16x128xf32>
    %c0_38 = arith.constant 0 : index
    %c0_39 = arith.constant 0 : index
    %89 = vector.load %arg12[%c0_38, %c0_39] : memref<1x128xf32, #tpu.memory_space<vmem>>, vector<1x128xf32>
    %90 = vector.broadcast %89 : vector<1x128xf32> to vector<16x128xf32>
    %91 = arith.addf %88, %90 : vector<16x128xf32>
    %cst_40 = arith.constant -1.702000e+00 : f32
    %92 = vector.broadcast %cst_40 : f32 to vector<16x128xf32>
    %93 = arith.mulf %92, %91 : vector<16x128xf32>
    %94 = math.exp %93 : vector<16x128xf32>
    %cst_41 = arith.constant 1.000000e+00 : f32
    %95 = vector.broadcast %cst_41 : f32 to vector<16x128xf32>
    %96 = arith.addf %95, %94 : vector<16x128xf32>
    %cst_42 = arith.constant 1.000000e+00 : f32
    %97 = vector.broadcast %cst_42 : f32 to vector<16x128xf32>
    %98 = arith.divf %97, %96 : vector<16x128xf32>
    %99 = arith.mulf %91, %98 : vector<16x128xf32>
    %c0_43 = arith.constant 0 : index
    %c0_44 = arith.constant 0 : index
    %100 = vector.load %arg13[%c0_43, %c0_44] : memref<128x32xf32, #tpu.memory_space<vmem>>, vector<128x32xf32>
    %cst_45 = arith.constant dense<0.000000e+00> : vector<16x32xf32>
    %101 = tpu.matmul %99, %100, %cst_45 {dimension_numbers = #tpu.dot_dimension_numbers<[1], [0], [0], [1], [0, 0, 1, 1], [], []>} : vector<16x128xf32>, vector<128x32xf32>, vector<16x32xf32> -> vector<16x32xf32>
    %c0_46 = arith.constant 0 : index
    %c0_47 = arith.constant 0 : index
    %102 = vector.load %arg14[%c0_46, %c0_47] : memref<1x32xf32, #tpu.memory_space<vmem>>, vector<1x32xf32>
    %103 = vector.broadcast %102 : vector<1x32xf32> to vector<16x32xf32>
    %104 = arith.addf %101, %103 : vector<16x32xf32>
    %105 = arith.addf %64, %104 : vector<16x32xf32>
    %106 = vector.shape_cast %105 : vector<16x32xf32> to vector<2x8x32xf32>
    %c0_48 = arith.constant 0 : index
    %c0_49 = arith.constant 0 : index
    %c0_50 = arith.constant 0 : index
    %107 = vector.load %arg15[%c0_48, %c0_49, %c0_50] : memref<2x8x32xf32, #tpu.memory_space<vmem>>, vector<2x8x32xf32>
    tpu.vector_store %arg15[%c0_48, %c0_49, %c0_50], %106 {strides = array<i32>} : memref<2x8x32xf32, #tpu.memory_space<vmem>>, vector<2x8x32xf32>,
    return
  }
  func.func @transform_0(%arg0: i32) -> (i32, i32, i32) {
    %c0_i32 = arith.constant 0 : i32
    %c0_i32_0 = arith.constant 0 : i32
    %c0_i32_1 = arith.constant 0 : i32
    return %arg0, %c0_i32, %c0_i32_0 : i32, i32, i32
  }
  func.func @transform_1(%arg0: i32) -> (i32, i32) {
    %c0_i32 = arith.constant 0 : i32
    %c0_i32_0 = arith.constant 0 : i32
    %c0_i32_1 = arith.constant 0 : i32
    return %c0_i32, %c0_i32_0 : i32, i32
  }
  func.func @transform_2(%arg0: i32) -> (i32, i32) {
    %c0_i32 = arith.constant 0 : i32
    %c0_i32_0 = arith.constant 0 : i32
    %c0_i32_1 = arith.constant 0 : i32
    return %c0_i32, %c0_i32_0 : i32, i32
  }
  func.func @transform_3(%arg0: i32) -> (i32, i32) {
    %c0_i32 = arith.constant 0 : i32
    %c0_i32_0 = arith.constant 0 : i32
    %c0_i32_1 = arith.constant 0 : i32
    return %c0_i32, %c0_i32_0 : i32, i32
  }
  func.func @transform_4(%arg0: i32) -> (i32, i32) {
    %c0_i32 = arith.constant 0 : i32
    %c0_i32_0 = arith.constant 0 : i32
    %c0_i32_1 = arith.constant 0 : i32
    return %c0_i32, %c0_i32_0 : i32, i32
  }
  func.func @transform_5(%arg0: i32) -> (i32, i32) {
    %c0_i32 = arith.constant 0 : i32
    %c0_i32_0 = arith.constant 0 : i32
    %c0_i32_1 = arith.constant 0 : i32
    return %c0_i32, %c0_i32_0 : i32, i32
  }
  func.func @transform_6(%arg0: i32) -> (i32, i32) {
    %c0_i32 = arith.constant 0 : i32
    %c0_i32_0 = arith.constant 0 : i32
    %c0_i32_1 = arith.constant 0 : i32
    return %c0_i32, %c0_i32_0 : i32, i32
  }
  func.func @transform_7(%arg0: i32) -> (i32, i32) {
    %c0_i32 = arith.constant 0 : i32
    %c0_i32_0 = arith.constant 0 : i32
    %c0_i32_1 = arith.constant 0 : i32
    return %c0_i32, %c0_i32_0 : i32, i32
  }
  func.func @transform_8(%arg0: i32) -> (i32, i32) {
    %c0_i32 = arith.constant 0 : i32
    %c0_i32_0 = arith.constant 0 : i32
    %c0_i32_1 = arith.constant 0 : i32
    return %c0_i32, %c0_i32_0 : i32, i32
  }
  func.func @transform_9(%arg0: i32) -> (i32, i32) {
    %c0_i32 = arith.constant 0 : i32
    %c0_i32_0 = arith.constant 0 : i32
    %c0_i32_1 = arith.constant 0 : i32
    return %c0_i32, %c0_i32_0 : i32, i32
  }
  func.func @transform_10(%arg0: i32) -> (i32, i32) {
    %c0_i32 = arith.constant 0 : i32
    %c0_i32_0 = arith.constant 0 : i32
    %c0_i32_1 = arith.constant 0 : i32
    return %c0_i32, %c0_i32_0 : i32, i32
  }
  func.func @transform_11(%arg0: i32) -> (i32, i32) {
    %c0_i32 = arith.constant 0 : i32
    %c0_i32_0 = arith.constant 0 : i32
    %c0_i32_1 = arith.constant 0 : i32
    return %c0_i32, %c0_i32_0 : i32, i32
  }
  func.func @transform_12(%arg0: i32) -> (i32, i32) {
    %c0_i32 = arith.constant 0 : i32
    %c0_i32_0 = arith.constant 0 : i32
    %c0_i32_1 = arith.constant 0 : i32
    return %c0_i32, %c0_i32_0 : i32, i32
  }
  func.func @transform_13(%arg0: i32) -> (i32, i32) {
    %c0_i32 = arith.constant 0 : i32
    %c0_i32_0 = arith.constant 0 : i32
    %c0_i32_1 = arith.constant 0 : i32
    return %c0_i32, %c0_i32_0 : i32, i32
  }
  func.func @transform_14(%arg0: i32) -> (i32, i32, i32) {
    %c0_i32 = arith.constant 0 : i32
    %c0_i32_0 = arith.constant 0 : i32
    %c0_i32_1 = arith.constant 0 : i32
    return %arg0, %c0_i32, %c0_i32_0 : i32, i32, i32
  }
}

module attributes {stable_mosaic.version = 11 : i64} {
  func.func @_resblock_kernel(%arg0: i32, %arg1: memref<2x8x32xf32, #tpu.memory_space<vmem>>, %arg2: memref<8x8xf32, #tpu.memory_space<vmem>>, %arg3: memref<1x32xf32, #tpu.memory_space<vmem>>, %arg4: memref<1x32xf32, #tpu.memory_space<vmem>>, %arg5: memref<32x96xf32, #tpu.memory_space<vmem>>, %arg6: memref<1x96xf32, #tpu.memory_space<vmem>>, %arg7: memref<32x32xf32, #tpu.memory_space<vmem>>, %arg8: memref<1x32xf32, #tpu.memory_space<vmem>>, %arg9: memref<1x32xf32, #tpu.memory_space<vmem>>, %arg10: memref<1x32xf32, #tpu.memory_space<vmem>>, %arg11: memref<32x128xf32, #tpu.memory_space<vmem>>, %arg12: memref<1x128xf32, #tpu.memory_space<vmem>>, %arg13: memref<128x32xf32, #tpu.memory_space<vmem>>, %arg14: memref<1x32xf32, #tpu.memory_space<vmem>>, %arg15: memref<2x8x32xf32, #tpu.memory_space<vmem>>) attributes {dimension_semantics = [#tpu.dimension_semantics<parallel>], iteration_bounds = array<i64: 1>, scalar_prefetch = 0 : i64, scratch_operands = 0 : i64, tpu.core_type = #tpu.core_type<tc>, window_params = [{transform_indices = @transform_0, window_bounds = array<i64: 2, 8, 32>}, {pipeline_mode = #tpu.pipeline_mode<synchronous>, transform_indices = @transform_1, window_bounds = array<i64: 8, 8>}, {pipeline_mode = #tpu.pipeline_mode<synchronous>, transform_indices = @transform_2, window_bounds = array<i64: 1, 32>}, {pipeline_mode = #tpu.pipeline_mode<synchronous>, transform_indices = @transform_3, window_bounds = array<i64: 1, 32>}, {pipeline_mode = #tpu.pipeline_mode<synchronous>, transform_indices = @transform_4, window_bounds = array<i64: 32, 96>}, {pipeline_mode = #tpu.pipeline_mode<synchronous>, transform_indices = @transform_5, window_bounds = array<i64: 1, 96>}, {pipeline_mode = #tpu.pipeline_mode<synchronous>, transform_indices = @transform_6, window_bounds = array<i64: 32, 32>}, {pipeline_mode = #tpu.pipeline_mode<synchronous>, transform_indices = @transform_7, window_bounds = array<i64: 1, 32>}, {pipeline_mode = #tpu.pipeline_mode<synchronous>, transform_indices = @transform_8, window_bounds = array<i64: 1, 32>}, {pipeline_mode = #tpu.pipeline_mode<synchronous>, transform_indices = @transform_9, window_bounds = array<i64: 1, 32>}, {pipeline_mode = #tpu.pipeline_mode<synchronous>, transform_indices = @transform_10, window_bounds = array<i64: 32, 128>}, {pipeline_mode = #tpu.pipeline_mode<synchronous>, transform_indices = @transform_11, window_bounds = array<i64: 1, 128>}, {pipeline_mode = #tpu.pipeline_mode<synchronous>, transform_indices = @transform_12, window_bounds = array<i64: 128, 32>}, {pipeline_mode = #tpu.pipeline_mode<synchronous>, transform_indices = @transform_13, window_bounds = array<i64: 1, 32>}, {transform_indices = @transform_14, window_bounds = array<i64: 2, 8, 32>}]} {
    %c0 = arith.constant 0 : index
    %c0_0 = arith.constant 0 : index
    %c0_1 = arith.constant 0 : index
    %0 = vector.load %arg1[%c0, %c0_0, %c0_1] : memref<2x8x32xf32, #tpu.memory_space<vmem>>, vector<2x8x32xf32>
    %1 = vector.shape_cast %0 : vector<2x8x32xf32> to vector<16x32xf32>
    %cst = arith.constant dense<0.000000e+00> : vector<16xf32>
    %2 = vector.multi_reduction <add>, %1, %cst [1] : vector<16x32xf32> to vector<16xf32>
    %3 = vector.shape_cast %2 : vector<16xf32> to vector<16x1xf32>
    %cst_2 = arith.constant 3.200000e+01 : f32
    %4 = vector.broadcast %cst_2 : f32 to vector<16x1xf32>
    %5 = arith.divf %3, %4 : vector<16x1xf32>
    %6 = vector.broadcast %5 : vector<16x1xf32> to vector<16x32xf32>
    %7 = arith.subf %1, %6 : vector<16x32xf32>
    %8 = arith.mulf %7, %7 : vector<16x32xf32>
    %cst_3 = arith.constant dense<0.000000e+00> : vector<16xf32>
    %9 = vector.multi_reduction <add>, %8, %cst_3 [1] : vector<16x32xf32> to vector<16xf32>
    %10 = vector.shape_cast %9 : vector<16xf32> to vector<16x1xf32>
    %cst_4 = arith.constant 3.200000e+01 : f32
    %11 = vector.broadcast %cst_4 : f32 to vector<16x1xf32>
    %12 = arith.divf %10, %11 : vector<16x1xf32>
    %cst_5 = arith.constant 9.99999974E-6 : f32
    %13 = vector.broadcast %cst_5 : f32 to vector<16x1xf32>
    %14 = arith.addf %12, %13 : vector<16x1xf32>
    %15 = math.rsqrt %14 : vector<16x1xf32>
    %16 = vector.broadcast %15 : vector<16x1xf32> to vector<16x32xf32>
    %17 = arith.mulf %7, %16 : vector<16x32xf32>
    %c0_6 = arith.constant 0 : index
    %c0_7 = arith.constant 0 : index
    %18 = vector.load %arg3[%c0_6, %c0_7] : memref<1x32xf32, #tpu.memory_space<vmem>>, vector<1x32xf32>
    %19 = vector.broadcast %18 : vector<1x32xf32> to vector<16x32xf32>
    %20 = arith.mulf %17, %19 : vector<16x32xf32>
    %c0_8 = arith.constant 0 : index
    %c0_9 = arith.constant 0 : index
    %21 = vector.load %arg4[%c0_8, %c0_9] : memref<1x32xf32, #tpu.memory_space<vmem>>, vector<1x32xf32>
    %22 = vector.broadcast %21 : vector<1x32xf32> to vector<16x32xf32>
    %23 = arith.addf %20, %22 : vector<16x32xf32>
    %c0_10 = arith.constant 0 : index
    %c0_11 = arith.constant 0 : index
    %24 = vector.load %arg5[%c0_10, %c0_11] : memref<32x96xf32, #tpu.memory_space<vmem>>, vector<32x96xf32>
    %cst_12 = arith.constant dense<0.000000e+00> : vector<16x96xf32>
    %25 = tpu.matmul %23, %24, %cst_12 {dimension_numbers = #tpu.dot_dimension_numbers<[1], [0], [0], [1], [0, 0, 1, 1], [], []>} : vector<16x32xf32>, vector<32x96xf32>, vector<16x96xf32> -> vector<16x96xf32>
    %c0_13 = arith.constant 0 : index
    %c0_14 = arith.constant 0 : index
    %26 = vector.load %arg6[%c0_13, %c0_14] : memref<1x96xf32, #tpu.memory_space<vmem>>, vector<1x96xf32>
    %27 = vector.broadcast %26 : vector<1x96xf32> to vector<16x96xf32>
    %28 = arith.addf %25, %27 : vector<16x96xf32>
    %29 = vector.extract_strided_slice %28 {offsets = [0, 0], sizes = [16, 32], strides = [1, 1]} : vector<16x96xf32> to vector<16x32xf32>
    %30 = vector.shape_cast %29 : vector<16x32xf32> to vector<2x8x32xf32>
    %31 = vector.extract_strided_slice %30 {offsets = [0, 0, 0], sizes = [2, 8, 8], strides = [1, 1, 1]} : vector<2x8x32xf32> to vector<2x8x8xf32>
    %32 = vector.extract_strided_slice %30 {offsets = [0, 0, 8], sizes = [2, 8, 8], strides = [1, 1, 1]} : vector<2x8x32xf32> to vector<2x8x8xf32>
    %33 = vector.extract_strided_slice %30 {offsets = [0, 0, 16], sizes = [2, 8, 8], strides = [1, 1, 1]} : vector<2x8x32xf32> to vector<2x8x8xf32>
    %34 = vector.extract_strided_slice %30 {offsets = [0, 0, 24], sizes = [2, 8, 8], strides = [1, 1, 1]} : vector<2x8x32xf32> to vector<2x8x8xf32>
    %35 = vector.shape_cast %31 : vector<2x8x8xf32> to vector<2x1x8x8xf32>
    %36 = vector.shape_cast %32 : vector<2x8x8xf32> to vector<2x1x8x8xf32>
    %37 = vector.shape_cast %33 : vector<2x8x8xf32> to vector<2x1x8x8xf32>
    %38 = vector.shape_cast %34 : vector<2x8x8xf32> to vector<2x1x8x8xf32>
    %39 = tpu.concatenate %35, %36, %37, %38 in 1 : vector<2x1x8x8xf32>, vector<2x1x8x8xf32>, vector<2x1x8x8xf32>, vector<2x1x8x8xf32> -> vector<2x4x8x8xf32>
    %40 = vector.shape_cast %39 : vector<2x4x8x8xf32> to vector<8x8x8xf32>
    %41 = vector.extract_strided_slice %28 {offsets = [0, 32], sizes = [16, 32], strides = [1, 1]} : vector<16x96xf32> to vector<16x32xf32>
    %42 = vector.shape_cast %41 : vector<16x32xf32> to vector<2x8x32xf32>
    %43 = vector.extract_strided_slice %42 {offsets = [0, 0, 0], sizes = [2, 8, 8], strides = [1, 1, 1]} : vector<2x8x32xf32> to vector<2x8x8xf32>
    %44 = vector.extract_strided_slice %42 {offsets = [0, 0, 8], sizes = [2, 8, 8], strides = [1, 1, 1]} : vector<2x8x32xf32> to vector<2x8x8xf32>
    %45 = vector.extract_strided_slice %42 {offsets = [0, 0, 16], sizes = [2, 8, 8], strides = [1, 1, 1]} : vector<2x8x32xf32> to vector<2x8x8xf32>
    %46 = vector.extract_strided_slice %42 {offsets = [0, 0, 24], sizes = [2, 8, 8], strides = [1, 1, 1]} : vector<2x8x32xf32> to vector<2x8x8xf32>
    %47 = vector.shape_cast %43 : vector<2x8x8xf32> to vector<2x1x8x8xf32>
    %48 = vector.shape_cast %44 : vector<2x8x8xf32> to vector<2x1x8x8xf32>
    %49 = vector.shape_cast %45 : vector<2x8x8xf32> to vector<2x1x8x8xf32>
    %50 = vector.shape_cast %46 : vector<2x8x8xf32> to vector<2x1x8x8xf32>
    %51 = tpu.concatenate %47, %48, %49, %50 in 1 : vector<2x1x8x8xf32>, vector<2x1x8x8xf32>, vector<2x1x8x8xf32>, vector<2x1x8x8xf32> -> vector<2x4x8x8xf32>
    %52 = vector.shape_cast %51 : vector<2x4x8x8xf32> to vector<8x8x8xf32>
    %53 = vector.extract_strided_slice %28 {offsets = [0, 64], sizes = [16, 32], strides = [1, 1]} : vector<16x96xf32> to vector<16x32xf32>
    %54 = vector.shape_cast %53 : vector<16x32xf32> to vector<2x8x32xf32>
    %55 = vector.extract_strided_slice %54 {offsets = [0, 0, 0], sizes = [2, 8, 8], strides = [1, 1, 1]} : vector<2x8x32xf32> to vector<2x8x8xf32>
    %56 = vector.extract_strided_slice %54 {offsets = [0, 0, 8], sizes = [2, 8, 8], strides = [1, 1, 1]} : vector<2x8x32xf32> to vector<2x8x8xf32>
    %57 = vector.extract_strided_slice %54 {offsets = [0, 0, 16], sizes = [2, 8, 8], strides = [1, 1, 1]} : vector<2x8x32xf32> to vector<2x8x8xf32>
    %58 = vector.extract_strided_slice %54 {offsets = [0, 0, 24], sizes = [2, 8, 8], strides = [1, 1, 1]} : vector<2x8x32xf32> to vector<2x8x8xf32>
    %59 = vector.shape_cast %55 : vector<2x8x8xf32> to vector<2x1x8x8xf32>
    %60 = vector.shape_cast %56 : vector<2x8x8xf32> to vector<2x1x8x8xf32>
    %61 = vector.shape_cast %57 : vector<2x8x8xf32> to vector<2x1x8x8xf32>
    %62 = vector.shape_cast %58 : vector<2x8x8xf32> to vector<2x1x8x8xf32>
    %63 = tpu.concatenate %59, %60, %61, %62 in 1 : vector<2x1x8x8xf32>, vector<2x1x8x8xf32>, vector<2x1x8x8xf32>, vector<2x1x8x8xf32> -> vector<2x4x8x8xf32>
    %64 = vector.shape_cast %63 : vector<2x4x8x8xf32> to vector<8x8x8xf32>
    "tpu.trace_start"() <{level = 10 : i32, message = "bqd,bkd->bqk"}> : () -> ()
    %cst_15 = arith.constant dense<0.000000e+00> : vector<8x8x8xf32>
    %65 = tpu.matmul %40, %52, %cst_15 {dimension_numbers = #tpu.dot_dimension_numbers<[2], [2], [1], [1], [0, 0, 0, 1, 1, 1], [0], [0]>} : vector<8x8x8xf32>, vector<8x8x8xf32>, vector<8x8x8xf32> -> vector<8x8x8xf32>
    "tpu.trace_stop"() : () -> ()
    %c0_16 = arith.constant 0 : index
    %c0_17 = arith.constant 0 : index
    %66 = vector.load %arg2[%c0_16, %c0_17] : memref<8x8xf32, #tpu.memory_space<vmem>>, vector<8x8xf32>
    %67 = vector.shape_cast %66 : vector<8x8xf32> to vector<1x8x8xf32>
    %68 = vector.broadcast %67 : vector<1x8x8xf32> to vector<8x8x8xf32>
    %69 = arith.addf %65, %68 : vector<8x8x8xf32>
    %cst_18 = arith.constant dense<0xFF800000> : vector<8x8xf32>
    %70 = vector.multi_reduction <maximumf>, %69, %cst_18 [2] : vector<8x8x8xf32> to vector<8x8xf32>
    %71 = vector.shape_cast %70 : vector<8x8xf32> to vector<8x8x1xf32>
    %72 = vector.broadcast %71 : vector<8x8x1xf32> to vector<8x8x8xf32>
    %73 = arith.subf %69, %72 : vector<8x8x8xf32>
    %74 = math.exp %73 : vector<8x8x8xf32>
    %cst_19 = arith.constant dense<0.000000e+00> : vector<8x8xf32>
    %75 = vector.multi_reduction <add>, %74, %cst_19 [2] : vector<8x8x8xf32> to vector<8x8xf32>
    %76 = vector.shape_cast %75 : vector<8x8xf32> to vector<8x8x1xf32>
    %77 = vector.broadcast %76 : vector<8x8x1xf32> to vector<8x8x8xf32>
    %78 = arith.divf %74, %77 : vector<8x8x8xf32>
    "tpu.trace_start"() <{level = 10 : i32, message = "bqk,bkd->bqd"}> : () -> ()
    %cst_20 = arith.constant dense<0.000000e+00> : vector<8x8x8xf32>
    %79 = tpu.matmul %78, %64, %cst_20 {dimension_numbers = #tpu.dot_dimension_numbers<[2], [1], [1], [2], [0, 0, 0, 1, 1, 2], [0], [0]>} : vector<8x8x8xf32>, vector<8x8x8xf32>, vector<8x8x8xf32> -> vector<8x8x8xf32>
    "tpu.trace_stop"() : () -> ()
    %80 = vector.shape_cast %79 : vector<8x8x8xf32> to vector<2x4x8x8xf32>
    %81 = vector.extract_strided_slice %80 {offsets = [0, 0, 0, 0], sizes = [2, 1, 8, 8], strides = [1, 1, 1, 1]} : vector<2x4x8x8xf32> to vector<2x1x8x8xf32>
    %82 = vector.shape_cast %81 : vector<2x1x8x8xf32> to vector<2x8x8xf32>
    %83 = vector.extract_strided_slice %80 {offsets = [0, 1, 0, 0], sizes = [2, 1, 8, 8], strides = [1, 1, 1, 1]} : vector<2x4x8x8xf32> to vector<2x1x8x8xf32>
    %84 = vector.shape_cast %83 : vector<2x1x8x8xf32> to vector<2x8x8xf32>
    %85 = vector.extract_strided_slice %80 {offsets = [0, 2, 0, 0], sizes = [2, 1, 8, 8], strides = [1, 1, 1, 1]} : vector<2x4x8x8xf32> to vector<2x1x8x8xf32>
    %86 = vector.shape_cast %85 : vector<2x1x8x8xf32> to vector<2x8x8xf32>
    %87 = vector.extract_strided_slice %80 {offsets = [0, 3, 0, 0], sizes = [2, 1, 8, 8], strides = [1, 1, 1, 1]} : vector<2x4x8x8xf32> to vector<2x1x8x8xf32>
    %88 = vector.shape_cast %87 : vector<2x1x8x8xf32> to vector<2x8x8xf32>
    %89 = tpu.concatenate %82, %84, %86, %88 in 2 : vector<2x8x8xf32>, vector<2x8x8xf32>, vector<2x8x8xf32>, vector<2x8x8xf32> -> vector<2x8x32xf32>
    %90 = vector.shape_cast %89 : vector<2x8x32xf32> to vector<16x32xf32>
    %c0_21 = arith.constant 0 : index
    %c0_22 = arith.constant 0 : index
    %91 = vector.load %arg7[%c0_21, %c0_22] : memref<32x32xf32, #tpu.memory_space<vmem>>, vector<32x32xf32>
    %cst_23 = arith.constant dense<0.000000e+00> : vector<16x32xf32>
    %92 = tpu.matmul %90, %91, %cst_23 {dimension_numbers = #tpu.dot_dimension_numbers<[1], [0], [0], [1], [0, 0, 1, 1], [], []>} : vector<16x32xf32>, vector<32x32xf32>, vector<16x32xf32> -> vector<16x32xf32>
    %c0_24 = arith.constant 0 : index
    %c0_25 = arith.constant 0 : index
    %93 = vector.load %arg8[%c0_24, %c0_25] : memref<1x32xf32, #tpu.memory_space<vmem>>, vector<1x32xf32>
    %94 = vector.broadcast %93 : vector<1x32xf32> to vector<16x32xf32>
    %95 = arith.addf %92, %94 : vector<16x32xf32>
    %96 = arith.addf %1, %95 : vector<16x32xf32>
    %cst_26 = arith.constant dense<0.000000e+00> : vector<16xf32>
    %97 = vector.multi_reduction <add>, %96, %cst_26 [1] : vector<16x32xf32> to vector<16xf32>
    %98 = vector.shape_cast %97 : vector<16xf32> to vector<16x1xf32>
    %cst_27 = arith.constant 3.200000e+01 : f32
    %99 = vector.broadcast %cst_27 : f32 to vector<16x1xf32>
    %100 = arith.divf %98, %99 : vector<16x1xf32>
    %101 = vector.broadcast %100 : vector<16x1xf32> to vector<16x32xf32>
    %102 = arith.subf %96, %101 : vector<16x32xf32>
    %103 = arith.mulf %102, %102 : vector<16x32xf32>
    %cst_28 = arith.constant dense<0.000000e+00> : vector<16xf32>
    %104 = vector.multi_reduction <add>, %103, %cst_28 [1] : vector<16x32xf32> to vector<16xf32>
    %105 = vector.shape_cast %104 : vector<16xf32> to vector<16x1xf32>
    %cst_29 = arith.constant 3.200000e+01 : f32
    %106 = vector.broadcast %cst_29 : f32 to vector<16x1xf32>
    %107 = arith.divf %105, %106 : vector<16x1xf32>
    %cst_30 = arith.constant 9.99999974E-6 : f32
    %108 = vector.broadcast %cst_30 : f32 to vector<16x1xf32>
    %109 = arith.addf %107, %108 : vector<16x1xf32>
    %110 = math.rsqrt %109 : vector<16x1xf32>
    %111 = vector.broadcast %110 : vector<16x1xf32> to vector<16x32xf32>
    %112 = arith.mulf %102, %111 : vector<16x32xf32>
    %c0_31 = arith.constant 0 : index
    %c0_32 = arith.constant 0 : index
    %113 = vector.load %arg9[%c0_31, %c0_32] : memref<1x32xf32, #tpu.memory_space<vmem>>, vector<1x32xf32>
    %114 = vector.broadcast %113 : vector<1x32xf32> to vector<16x32xf32>
    %115 = arith.mulf %112, %114 : vector<16x32xf32>
    %c0_33 = arith.constant 0 : index
    %c0_34 = arith.constant 0 : index
    %116 = vector.load %arg10[%c0_33, %c0_34] : memref<1x32xf32, #tpu.memory_space<vmem>>, vector<1x32xf32>
    %117 = vector.broadcast %116 : vector<1x32xf32> to vector<16x32xf32>
    %118 = arith.addf %115, %117 : vector<16x32xf32>
    %c0_35 = arith.constant 0 : index
    %c0_36 = arith.constant 0 : index
    %119 = vector.load %arg11[%c0_35, %c0_36] : memref<32x128xf32, #tpu.memory_space<vmem>>, vector<32x128xf32>
    %cst_37 = arith.constant dense<0.000000e+00> : vector<16x128xf32>
    %120 = tpu.matmul %118, %119, %cst_37 {dimension_numbers = #tpu.dot_dimension_numbers<[1], [0], [0], [1], [0, 0, 1, 1], [], []>} : vector<16x32xf32>, vector<32x128xf32>, vector<16x128xf32> -> vector<16x128xf32>
    %c0_38 = arith.constant 0 : index
    %c0_39 = arith.constant 0 : index
    %121 = vector.load %arg12[%c0_38, %c0_39] : memref<1x128xf32, #tpu.memory_space<vmem>>, vector<1x128xf32>
    %122 = vector.broadcast %121 : vector<1x128xf32> to vector<16x128xf32>
    %123 = arith.addf %120, %122 : vector<16x128xf32>
    %cst_40 = arith.constant -1.702000e+00 : f32
    %124 = vector.broadcast %cst_40 : f32 to vector<16x128xf32>
    %125 = arith.mulf %124, %123 : vector<16x128xf32>
    %126 = math.exp %125 : vector<16x128xf32>
    %cst_41 = arith.constant 1.000000e+00 : f32
    %127 = vector.broadcast %cst_41 : f32 to vector<16x128xf32>
    %128 = arith.addf %127, %126 : vector<16x128xf32>
    %cst_42 = arith.constant 1.000000e+00 : f32
    %129 = vector.broadcast %cst_42 : f32 to vector<16x128xf32>
    %130 = arith.divf %129, %128 : vector<16x128xf32>
    %131 = arith.mulf %123, %130 : vector<16x128xf32>
    %c0_43 = arith.constant 0 : index
    %c0_44 = arith.constant 0 : index
    %132 = vector.load %arg13[%c0_43, %c0_44] : memref<128x32xf32, #tpu.memory_space<vmem>>, vector<128x32xf32>
    %cst_45 = arith.constant dense<0.000000e+00> : vector<16x32xf32>
    %133 = tpu.matmul %131, %132, %cst_45 {dimension_numbers = #tpu.dot_dimension_numbers<[1], [0], [0], [1], [0, 0, 1, 1], [], []>} : vector<16x128xf32>, vector<128x32xf32>, vector<16x32xf32> -> vector<16x32xf32>
    %c0_46 = arith.constant 0 : index
    %c0_47 = arith.constant 0 : index
    %134 = vector.load %arg14[%c0_46, %c0_47] : memref<1x32xf32, #tpu.memory_space<vmem>>, vector<1x32xf32>
    %135 = vector.broadcast %134 : vector<1x32xf32> to vector<16x32xf32>
    %136 = arith.addf %133, %135 : vector<16x32xf32>
    %137 = arith.addf %96, %136 : vector<16x32xf32>
    %138 = vector.shape_cast %137 : vector<16x32xf32> to vector<2x8x32xf32>
    %c0_48 = arith.constant 0 : index
    %c0_49 = arith.constant 0 : index
    %c0_50 = arith.constant 0 : index
    %139 = vector.load %arg15[%c0_48, %c0_49, %c0_50] : memref<2x8x32xf32, #tpu.memory_space<vmem>>, vector<2x8x32xf32>
    tpu.vector_store %arg15[%c0_48, %c0_49, %c0_50], %138 {strides = array<i32>} : memref<2x8x32xf32, #tpu.memory_space<vmem>>, vector<2x8x32xf32>,
    return
  }
  func.func @transform_0(%arg0: i32) -> (i32, i32, i32) {
    %c0_i32 = arith.constant 0 : i32
    %c0_i32_0 = arith.constant 0 : i32
    %c0_i32_1 = arith.constant 0 : i32
    return %arg0, %c0_i32, %c0_i32_0 : i32, i32, i32
  }
  func.func @transform_1(%arg0: i32) -> (i32, i32) {
    %c0_i32 = arith.constant 0 : i32
    %c0_i32_0 = arith.constant 0 : i32
    %c0_i32_1 = arith.constant 0 : i32
    return %c0_i32, %c0_i32_0 : i32, i32
  }
  func.func @transform_2(%arg0: i32) -> (i32, i32) {
    %c0_i32 = arith.constant 0 : i32
    %c0_i32_0 = arith.constant 0 : i32
    %c0_i32_1 = arith.constant 0 : i32
    return %c0_i32, %c0_i32_0 : i32, i32
  }
  func.func @transform_3(%arg0: i32) -> (i32, i32) {
    %c0_i32 = arith.constant 0 : i32
    %c0_i32_0 = arith.constant 0 : i32
    %c0_i32_1 = arith.constant 0 : i32
    return %c0_i32, %c0_i32_0 : i32, i32
  }
  func.func @transform_4(%arg0: i32) -> (i32, i32) {
    %c0_i32 = arith.constant 0 : i32
    %c0_i32_0 = arith.constant 0 : i32
    %c0_i32_1 = arith.constant 0 : i32
    return %c0_i32, %c0_i32_0 : i32, i32
  }
  func.func @transform_5(%arg0: i32) -> (i32, i32) {
    %c0_i32 = arith.constant 0 : i32
    %c0_i32_0 = arith.constant 0 : i32
    %c0_i32_1 = arith.constant 0 : i32
    return %c0_i32, %c0_i32_0 : i32, i32
  }
  func.func @transform_6(%arg0: i32) -> (i32, i32) {
    %c0_i32 = arith.constant 0 : i32
    %c0_i32_0 = arith.constant 0 : i32
    %c0_i32_1 = arith.constant 0 : i32
    return %c0_i32, %c0_i32_0 : i32, i32
  }
  func.func @transform_7(%arg0: i32) -> (i32, i32) {
    %c0_i32 = arith.constant 0 : i32
    %c0_i32_0 = arith.constant 0 : i32
    %c0_i32_1 = arith.constant 0 : i32
    return %c0_i32, %c0_i32_0 : i32, i32
  }
  func.func @transform_8(%arg0: i32) -> (i32, i32) {
    %c0_i32 = arith.constant 0 : i32
    %c0_i32_0 = arith.constant 0 : i32
    %c0_i32_1 = arith.constant 0 : i32
    return %c0_i32, %c0_i32_0 : i32, i32
  }
  func.func @transform_9(%arg0: i32) -> (i32, i32) {
    %c0_i32 = arith.constant 0 : i32
    %c0_i32_0 = arith.constant 0 : i32
    %c0_i32_1 = arith.constant 0 : i32
    return %c0_i32, %c0_i32_0 : i32, i32
  }
  func.func @transform_10(%arg0: i32) -> (i32, i32) {
    %c0_i32 = arith.constant 0 : i32
    %c0_i32_0 = arith.constant 0 : i32
    %c0_i32_1 = arith.constant 0 : i32
    return %c0_i32, %c0_i32_0 : i32, i32
  }
  func.func @transform_11(%arg0: i32) -> (i32, i32) {
    %c0_i32 = arith.constant 0 : i32
    %c0_i32_0 = arith.constant 0 : i32
    %c0_i32_1 = arith.constant 0 : i32
    return %c0_i32, %c0_i32_0 : i32, i32
  }
  func.func @transform_12(%arg0: i32) -> (i32, i32) {
    %c0_i32 = arith.constant 0 : i32
    %c0_i32_0 = arith.constant 0 : i32
    %c0_i32_1 = arith.constant 0 : i32
    return %c0_i32, %c0_i32_0 : i32, i32
  }
  func.func @transform_13(%arg0: i32) -> (i32, i32) {
    %c0_i32 = arith.constant 0 : i32
    %c0_i32_0 = arith.constant 0 : i32
    %c0_i32_1 = arith.constant 0 : i32
    return %c0_i32, %c0_i32_0 : i32, i32
  }
  func.func @transform_14(%arg0: i32) -> (i32, i32, i32) {
    %c0_i32 = arith.constant 0 : i32
    %c0_i32_0 = arith.constant 0 : i32
    %c0_i32_1 = arith.constant 0 : i32
    return %arg0, %c0_i32, %c0_i32_0 : i32, i32, i32
  }
}

module attributes {stable_mosaic.version = 11 : i64} {
  func.func @_resblock_kernel(%arg0: i32, %arg1: memref<2x8x32xf32, #tpu.memory_space<vmem>>, %arg2: memref<8x8xf32, #tpu.memory_space<vmem>>, %arg3: memref<1x32xf32, #tpu.memory_space<vmem>>, %arg4: memref<1x32xf32, #tpu.memory_space<vmem>>, %arg5: memref<32x96xf32, #tpu.memory_space<vmem>>, %arg6: memref<1x96xf32, #tpu.memory_space<vmem>>, %arg7: memref<32x32xf32, #tpu.memory_space<vmem>>, %arg8: memref<1x32xf32, #tpu.memory_space<vmem>>, %arg9: memref<1x32xf32, #tpu.memory_space<vmem>>, %arg10: memref<1x32xf32, #tpu.memory_space<vmem>>, %arg11: memref<32x128xf32, #tpu.memory_space<vmem>>, %arg12: memref<1x128xf32, #tpu.memory_space<vmem>>, %arg13: memref<128x32xf32, #tpu.memory_space<vmem>>, %arg14: memref<1x32xf32, #tpu.memory_space<vmem>>, %arg15: memref<2x8x32xf32, #tpu.memory_space<vmem>>) attributes {dimension_semantics = [#tpu.dimension_semantics<parallel>], iteration_bounds = array<i64: 1>, scalar_prefetch = 0 : i64, scratch_operands = 0 : i64, tpu.core_type = #tpu.core_type<tc>, window_params = [{transform_indices = @transform_0, window_bounds = array<i64: 2, 8, 32>}, {pipeline_mode = #tpu.pipeline_mode<synchronous>, transform_indices = @transform_1, window_bounds = array<i64: 8, 8>}, {pipeline_mode = #tpu.pipeline_mode<synchronous>, transform_indices = @transform_2, window_bounds = array<i64: 1, 32>}, {pipeline_mode = #tpu.pipeline_mode<synchronous>, transform_indices = @transform_3, window_bounds = array<i64: 1, 32>}, {pipeline_mode = #tpu.pipeline_mode<synchronous>, transform_indices = @transform_4, window_bounds = array<i64: 32, 96>}, {pipeline_mode = #tpu.pipeline_mode<synchronous>, transform_indices = @transform_5, window_bounds = array<i64: 1, 96>}, {pipeline_mode = #tpu.pipeline_mode<synchronous>, transform_indices = @transform_6, window_bounds = array<i64: 32, 32>}, {pipeline_mode = #tpu.pipeline_mode<synchronous>, transform_indices = @transform_7, window_bounds = array<i64: 1, 32>}, {pipeline_mode = #tpu.pipeline_mode<synchronous>, transform_indices = @transform_8, window_bounds = array<i64: 1, 32>}, {pipeline_mode = #tpu.pipeline_mode<synchronous>, transform_indices = @transform_9, window_bounds = array<i64: 1, 32>}, {pipeline_mode = #tpu.pipeline_mode<synchronous>, transform_indices = @transform_10, window_bounds = array<i64: 32, 128>}, {pipeline_mode = #tpu.pipeline_mode<synchronous>, transform_indices = @transform_11, window_bounds = array<i64: 1, 128>}, {pipeline_mode = #tpu.pipeline_mode<synchronous>, transform_indices = @transform_12, window_bounds = array<i64: 128, 32>}, {pipeline_mode = #tpu.pipeline_mode<synchronous>, transform_indices = @transform_13, window_bounds = array<i64: 1, 32>}, {transform_indices = @transform_14, window_bounds = array<i64: 2, 8, 32>}]} {
    %c0 = arith.constant 0 : index
    %c0_0 = arith.constant 0 : index
    %c0_1 = arith.constant 0 : index
    %0 = vector.load %arg1[%c0, %c0_0, %c0_1] : memref<2x8x32xf32, #tpu.memory_space<vmem>>, vector<2x8x32xf32>
    %1 = vector.shape_cast %0 : vector<2x8x32xf32> to vector<16x32xf32>
    %cst = arith.constant dense<0.000000e+00> : vector<16xf32>
    %2 = vector.multi_reduction <add>, %1, %cst [1] : vector<16x32xf32> to vector<16xf32>
    %3 = vector.shape_cast %2 : vector<16xf32> to vector<16x1xf32>
    %cst_2 = arith.constant 3.200000e+01 : f32
    %4 = vector.broadcast %cst_2 : f32 to vector<16x1xf32>
    %5 = arith.divf %3, %4 : vector<16x1xf32>
    %6 = vector.broadcast %5 : vector<16x1xf32> to vector<16x32xf32>
    %7 = arith.subf %1, %6 : vector<16x32xf32>
    %8 = arith.mulf %7, %7 : vector<16x32xf32>
    %cst_3 = arith.constant dense<0.000000e+00> : vector<16xf32>
    %9 = vector.multi_reduction <add>, %8, %cst_3 [1] : vector<16x32xf32> to vector<16xf32>
    %10 = vector.shape_cast %9 : vector<16xf32> to vector<16x1xf32>
    %cst_4 = arith.constant 3.200000e+01 : f32
    %11 = vector.broadcast %cst_4 : f32 to vector<16x1xf32>
    %12 = arith.divf %10, %11 : vector<16x1xf32>
    %cst_5 = arith.constant 9.99999974E-6 : f32
    %13 = vector.broadcast %cst_5 : f32 to vector<16x1xf32>
    %14 = arith.addf %12, %13 : vector<16x1xf32>
    %15 = math.rsqrt %14 : vector<16x1xf32>
    %16 = vector.broadcast %15 : vector<16x1xf32> to vector<16x32xf32>
    %17 = arith.mulf %7, %16 : vector<16x32xf32>
    %c0_6 = arith.constant 0 : index
    %c0_7 = arith.constant 0 : index
    %18 = vector.load %arg3[%c0_6, %c0_7] : memref<1x32xf32, #tpu.memory_space<vmem>>, vector<1x32xf32>
    %19 = vector.broadcast %18 : vector<1x32xf32> to vector<16x32xf32>
    %20 = arith.mulf %17, %19 : vector<16x32xf32>
    %c0_8 = arith.constant 0 : index
    %c0_9 = arith.constant 0 : index
    %21 = vector.load %arg4[%c0_8, %c0_9] : memref<1x32xf32, #tpu.memory_space<vmem>>, vector<1x32xf32>
    %22 = vector.broadcast %21 : vector<1x32xf32> to vector<16x32xf32>
    %23 = arith.addf %20, %22 : vector<16x32xf32>
    %c0_10 = arith.constant 0 : index
    %c0_11 = arith.constant 0 : index
    %24 = vector.load %arg5[%c0_10, %c0_11] : memref<32x96xf32, #tpu.memory_space<vmem>>, vector<32x96xf32>
    %cst_12 = arith.constant dense<0.000000e+00> : vector<16x96xf32>
    %25 = tpu.matmul %23, %24, %cst_12 {dimension_numbers = #tpu.dot_dimension_numbers<[1], [0], [0], [1], [0, 0, 1, 1], [], []>} : vector<16x32xf32>, vector<32x96xf32>, vector<16x96xf32> -> vector<16x96xf32>
    %c0_13 = arith.constant 0 : index
    %c0_14 = arith.constant 0 : index
    %26 = vector.load %arg6[%c0_13, %c0_14] : memref<1x96xf32, #tpu.memory_space<vmem>>, vector<1x96xf32>
    %27 = vector.broadcast %26 : vector<1x96xf32> to vector<16x96xf32>
    %28 = arith.addf %25, %27 : vector<16x96xf32>
    %29 = vector.extract_strided_slice %28 {offsets = [0, 0], sizes = [16, 32], strides = [1, 1]} : vector<16x96xf32> to vector<16x32xf32>
    %30 = vector.shape_cast %29 : vector<16x32xf32> to vector<2x8x32xf32>
    %31 = vector.extract_strided_slice %30 {offsets = [0, 0, 0], sizes = [2, 8, 8], strides = [1, 1, 1]} : vector<2x8x32xf32> to vector<2x8x8xf32>
    %32 = vector.extract_strided_slice %30 {offsets = [0, 0, 8], sizes = [2, 8, 8], strides = [1, 1, 1]} : vector<2x8x32xf32> to vector<2x8x8xf32>
    %33 = vector.extract_strided_slice %30 {offsets = [0, 0, 16], sizes = [2, 8, 8], strides = [1, 1, 1]} : vector<2x8x32xf32> to vector<2x8x8xf32>
    %34 = vector.extract_strided_slice %30 {offsets = [0, 0, 24], sizes = [2, 8, 8], strides = [1, 1, 1]} : vector<2x8x32xf32> to vector<2x8x8xf32>
    %35 = vector.shape_cast %31 : vector<2x8x8xf32> to vector<2x1x8x8xf32>
    %36 = vector.shape_cast %32 : vector<2x8x8xf32> to vector<2x1x8x8xf32>
    %37 = vector.shape_cast %33 : vector<2x8x8xf32> to vector<2x1x8x8xf32>
    %38 = vector.shape_cast %34 : vector<2x8x8xf32> to vector<2x1x8x8xf32>
    %39 = tpu.concatenate %35, %36, %37, %38 in 1 : vector<2x1x8x8xf32>, vector<2x1x8x8xf32>, vector<2x1x8x8xf32>, vector<2x1x8x8xf32> -> vector<2x4x8x8xf32>
    %40 = vector.shape_cast %39 : vector<2x4x8x8xf32> to vector<8x8x8xf32>
    %41 = vector.extract_strided_slice %28 {offsets = [0, 32], sizes = [16, 32], strides = [1, 1]} : vector<16x96xf32> to vector<16x32xf32>
    %42 = vector.shape_cast %41 : vector<16x32xf32> to vector<2x8x32xf32>
    %43 = vector.extract_strided_slice %42 {offsets = [0, 0, 0], sizes = [2, 8, 8], strides = [1, 1, 1]} : vector<2x8x32xf32> to vector<2x8x8xf32>
    %44 = vector.extract_strided_slice %42 {offsets = [0, 0, 8], sizes = [2, 8, 8], strides = [1, 1, 1]} : vector<2x8x32xf32> to vector<2x8x8xf32>
    %45 = vector.extract_strided_slice %42 {offsets = [0, 0, 16], sizes = [2, 8, 8], strides = [1, 1, 1]} : vector<2x8x32xf32> to vector<2x8x8xf32>
    %46 = vector.extract_strided_slice %42 {offsets = [0, 0, 24], sizes = [2, 8, 8], strides = [1, 1, 1]} : vector<2x8x32xf32> to vector<2x8x8xf32>
    %47 = vector.shape_cast %43 : vector<2x8x8xf32> to vector<2x1x8x8xf32>
    %48 = vector.shape_cast %44 : vector<2x8x8xf32> to vector<2x1x8x8xf32>
    %49 = vector.shape_cast %45 : vector<2x8x8xf32> to vector<2x1x8x8xf32>
    %50 = vector.shape_cast %46 : vector<2x8x8xf32> to vector<2x1x8x8xf32>
    %51 = tpu.concatenate %47, %48, %49, %50 in 1 : vector<2x1x8x8xf32>, vector<2x1x8x8xf32>, vector<2x1x8x8xf32>, vector<2x1x8x8xf32> -> vector<2x4x8x8xf32>
    %52 = vector.shape_cast %51 : vector<2x4x8x8xf32> to vector<8x8x8xf32>
    %53 = vector.extract_strided_slice %28 {offsets = [0, 64], sizes = [16, 32], strides = [1, 1]} : vector<16x96xf32> to vector<16x32xf32>
    %54 = vector.shape_cast %53 : vector<16x32xf32> to vector<2x8x32xf32>
    %55 = vector.extract_strided_slice %54 {offsets = [0, 0, 0], sizes = [2, 8, 8], strides = [1, 1, 1]} : vector<2x8x32xf32> to vector<2x8x8xf32>
    %56 = vector.extract_strided_slice %54 {offsets = [0, 0, 8], sizes = [2, 8, 8], strides = [1, 1, 1]} : vector<2x8x32xf32> to vector<2x8x8xf32>
    %57 = vector.extract_strided_slice %54 {offsets = [0, 0, 16], sizes = [2, 8, 8], strides = [1, 1, 1]} : vector<2x8x32xf32> to vector<2x8x8xf32>
    %58 = vector.extract_strided_slice %54 {offsets = [0, 0, 24], sizes = [2, 8, 8], strides = [1, 1, 1]} : vector<2x8x32xf32> to vector<2x8x8xf32>
    %59 = vector.shape_cast %55 : vector<2x8x8xf32> to vector<2x1x8x8xf32>
    %60 = vector.shape_cast %56 : vector<2x8x8xf32> to vector<2x1x8x8xf32>
    %61 = vector.shape_cast %57 : vector<2x8x8xf32> to vector<2x1x8x8xf32>
    %62 = vector.shape_cast %58 : vector<2x8x8xf32> to vector<2x1x8x8xf32>
    %63 = tpu.concatenate %59, %60, %61, %62 in 1 : vector<2x1x8x8xf32>, vector<2x1x8x8xf32>, vector<2x1x8x8xf32>, vector<2x1x8x8xf32> -> vector<2x4x8x8xf32>
    %64 = vector.shape_cast %63 : vector<2x4x8x8xf32> to vector<8x8x8xf32>
    "tpu.trace_start"() <{level = 10 : i32, message = "bqd,bkd->bqk"}> : () -> ()
    %cst_15 = arith.constant dense<0.000000e+00> : vector<8x8x8xf32>
    %65 = tpu.matmul %40, %52, %cst_15 {dimension_numbers = #tpu.dot_dimension_numbers<[2], [2], [1], [1], [0, 0, 0, 1, 1, 1], [0], [0]>} : vector<8x8x8xf32>, vector<8x8x8xf32>, vector<8x8x8xf32> -> vector<8x8x8xf32>
    "tpu.trace_stop"() : () -> ()
    %c0_16 = arith.constant 0 : index
    %c0_17 = arith.constant 0 : index
    %66 = vector.load %arg2[%c0_16, %c0_17] : memref<8x8xf32, #tpu.memory_space<vmem>>, vector<8x8xf32>
    %67 = vector.shape_cast %66 : vector<8x8xf32> to vector<1x8x8xf32>
    %68 = vector.broadcast %67 : vector<1x8x8xf32> to vector<8x8x8xf32>
    %69 = arith.addf %65, %68 : vector<8x8x8xf32>
    %cst_18 = arith.constant dense<0xFF800000> : vector<8x8xf32>
    %70 = vector.multi_reduction <maximumf>, %69, %cst_18 [2] : vector<8x8x8xf32> to vector<8x8xf32>
    %71 = vector.shape_cast %70 : vector<8x8xf32> to vector<8x8x1xf32>
    %72 = vector.broadcast %71 : vector<8x8x1xf32> to vector<8x8x8xf32>
    %73 = arith.subf %69, %72 : vector<8x8x8xf32>
    %74 = math.exp %73 : vector<8x8x8xf32>
    %cst_19 = arith.constant dense<0.000000e+00> : vector<8x8xf32>
    %75 = vector.multi_reduction <add>, %74, %cst_19 [2] : vector<8x8x8xf32> to vector<8x8xf32>
    %76 = vector.shape_cast %75 : vector<8x8xf32> to vector<8x8x1xf32>
    %77 = vector.broadcast %76 : vector<8x8x1xf32> to vector<8x8x8xf32>
    %78 = arith.divf %74, %77 : vector<8x8x8xf32>
    "tpu.trace_start"() <{level = 10 : i32, message = "bqk,bkd->bqd"}> : () -> ()
    %cst_20 = arith.constant dense<0.000000e+00> : vector<8x8x8xf32>
    %79 = tpu.matmul %78, %64, %cst_20 {dimension_numbers = #tpu.dot_dimension_numbers<[2], [1], [1], [2], [0, 0, 0, 1, 1, 2], [0], [0]>} : vector<8x8x8xf32>, vector<8x8x8xf32>, vector<8x8x8xf32> -> vector<8x8x8xf32>
    "tpu.trace_stop"() : () -> ()
    %80 = vector.shape_cast %79 : vector<8x8x8xf32> to vector<2x4x8x8xf32>
    %81 = vector.extract_strided_slice %80 {offsets = [0, 0, 0, 0], sizes = [2, 1, 8, 8], strides = [1, 1, 1, 1]} : vector<2x4x8x8xf32> to vector<2x1x8x8xf32>
    %82 = vector.shape_cast %81 : vector<2x1x8x8xf32> to vector<2x8x8xf32>
    %83 = vector.extract_strided_slice %80 {offsets = [0, 1, 0, 0], sizes = [2, 1, 8, 8], strides = [1, 1, 1, 1]} : vector<2x4x8x8xf32> to vector<2x1x8x8xf32>
    %84 = vector.shape_cast %83 : vector<2x1x8x8xf32> to vector<2x8x8xf32>
    %85 = vector.extract_strided_slice %80 {offsets = [0, 2, 0, 0], sizes = [2, 1, 8, 8], strides = [1, 1, 1, 1]} : vector<2x4x8x8xf32> to vector<2x1x8x8xf32>
    %86 = vector.shape_cast %85 : vector<2x1x8x8xf32> to vector<2x8x8xf32>
    %87 = vector.extract_strided_slice %80 {offsets = [0, 3, 0, 0], sizes = [2, 1, 8, 8], strides = [1, 1, 1, 1]} : vector<2x4x8x8xf32> to vector<2x1x8x8xf32>
    %88 = vector.shape_cast %87 : vector<2x1x8x8xf32> to vector<2x8x8xf32>
    %89 = tpu.concatenate %82, %84, %86, %88 in 2 : vector<2x8x8xf32>, vector<2x8x8xf32>, vector<2x8x8xf32>, vector<2x8x8xf32> -> vector<2x8x32xf32>
    %90 = vector.shape_cast %89 : vector<2x8x32xf32> to vector<16x32xf32>
    %c0_21 = arith.constant 0 : index
    %c0_22 = arith.constant 0 : index
    %91 = vector.load %arg7[%c0_21, %c0_22] : memref<32x32xf32, #tpu.memory_space<vmem>>, vector<32x32xf32>
    %cst_23 = arith.constant dense<0.000000e+00> : vector<16x32xf32>
    %92 = tpu.matmul %90, %91, %cst_23 {dimension_numbers = #tpu.dot_dimension_numbers<[1], [0], [0], [1], [0, 0, 1, 1], [], []>} : vector<16x32xf32>, vector<32x32xf32>, vector<16x32xf32> -> vector<16x32xf32>
    %c0_24 = arith.constant 0 : index
    %c0_25 = arith.constant 0 : index
    %93 = vector.load %arg8[%c0_24, %c0_25] : memref<1x32xf32, #tpu.memory_space<vmem>>, vector<1x32xf32>
    %94 = vector.broadcast %93 : vector<1x32xf32> to vector<16x32xf32>
    %95 = arith.addf %92, %94 : vector<16x32xf32>
    %96 = arith.addf %1, %95 : vector<16x32xf32>
    %cst_26 = arith.constant dense<0.000000e+00> : vector<16xf32>
    %97 = vector.multi_reduction <add>, %96, %cst_26 [1] : vector<16x32xf32> to vector<16xf32>
    %98 = vector.shape_cast %97 : vector<16xf32> to vector<16x1xf32>
    %cst_27 = arith.constant 3.200000e+01 : f32
    %99 = vector.broadcast %cst_27 : f32 to vector<16x1xf32>
    %100 = arith.divf %98, %99 : vector<16x1xf32>
    %101 = vector.broadcast %100 : vector<16x1xf32> to vector<16x32xf32>
    %102 = arith.subf %96, %101 : vector<16x32xf32>
    %103 = arith.mulf %102, %102 : vector<16x32xf32>
    %cst_28 = arith.constant dense<0.000000e+00> : vector<16xf32>
    %104 = vector.multi_reduction <add>, %103, %cst_28 [1] : vector<16x32xf32> to vector<16xf32>
    %105 = vector.shape_cast %104 : vector<16xf32> to vector<16x1xf32>
    %cst_29 = arith.constant 3.200000e+01 : f32
    %106 = vector.broadcast %cst_29 : f32 to vector<16x1xf32>
    %107 = arith.divf %105, %106 : vector<16x1xf32>
    %cst_30 = arith.constant 9.99999974E-6 : f32
    %108 = vector.broadcast %cst_30 : f32 to vector<16x1xf32>
    %109 = arith.addf %107, %108 : vector<16x1xf32>
    %110 = math.rsqrt %109 : vector<16x1xf32>
    %111 = vector.broadcast %110 : vector<16x1xf32> to vector<16x32xf32>
    %112 = arith.mulf %102, %111 : vector<16x32xf32>
    %c0_31 = arith.constant 0 : index
    %c0_32 = arith.constant 0 : index
    %113 = vector.load %arg9[%c0_31, %c0_32] : memref<1x32xf32, #tpu.memory_space<vmem>>, vector<1x32xf32>
    %114 = vector.broadcast %113 : vector<1x32xf32> to vector<16x32xf32>
    %115 = arith.mulf %112, %114 : vector<16x32xf32>
    %c0_33 = arith.constant 0 : index
    %c0_34 = arith.constant 0 : index
    %116 = vector.load %arg10[%c0_33, %c0_34] : memref<1x32xf32, #tpu.memory_space<vmem>>, vector<1x32xf32>
    %117 = vector.broadcast %116 : vector<1x32xf32> to vector<16x32xf32>
    %118 = arith.addf %115, %117 : vector<16x32xf32>
    %c0_35 = arith.constant 0 : index
    %c0_36 = arith.constant 0 : index
    %119 = vector.load %arg11[%c0_35, %c0_36] : memref<32x128xf32, #tpu.memory_space<vmem>>, vector<32x128xf32>
    %cst_37 = arith.constant dense<0.000000e+00> : vector<16x128xf32>
    %120 = tpu.matmul %118, %119, %cst_37 {dimension_numbers = #tpu.dot_dimension_numbers<[1], [0], [0], [1], [0, 0, 1, 1], [], []>} : vector<16x32xf32>, vector<32x128xf32>, vector<16x128xf32> -> vector<16x128xf32>
    %c0_38 = arith.constant 0 : index
    %c0_39 = arith.constant 0 : index
    %121 = vector.load %arg12[%c0_38, %c0_39] : memref<1x128xf32, #tpu.memory_space<vmem>>, vector<1x128xf32>
    %122 = vector.broadcast %121 : vector<1x128xf32> to vector<16x128xf32>
    %123 = arith.addf %120, %122 : vector<16x128xf32>
    %cst_40 = arith.constant -1.702000e+00 : f32
    %124 = vector.broadcast %cst_40 : f32 to vector<16x128xf32>
    %125 = arith.mulf %124, %123 : vector<16x128xf32>
    %126 = math.exp %125 : vector<16x128xf32>
    %cst_41 = arith.constant 1.000000e+00 : f32
    %127 = vector.broadcast %cst_41 : f32 to vector<16x128xf32>
    %128 = arith.addf %127, %126 : vector<16x128xf32>
    %cst_42 = arith.constant 1.000000e+00 : f32
    %129 = vector.broadcast %cst_42 : f32 to vector<16x128xf32>
    %130 = arith.divf %129, %128 : vector<16x128xf32>
    %131 = arith.mulf %123, %130 : vector<16x128xf32>
    %c0_43 = arith.constant 0 : index
    %c0_44 = arith.constant 0 : index
    %132 = vector.load %arg13[%c0_43, %c0_44] : memref<128x32xf32, #tpu.memory_space<vmem>>, vector<128x32xf32>
    %cst_45 = arith.constant dense<0.000000e+00> : vector<16x32xf32>
    %133 = tpu.matmul %131, %132, %cst_45 {dimension_numbers = #tpu.dot_dimension_numbers<[1], [0], [0], [1], [0, 0, 1, 1], [], []>} : vector<16x128xf32>, vector<128x32xf32>, vector<16x32xf32> -> vector<16x32xf32>
    %c0_46 = arith.constant 0 : index
    %c0_47 = arith.constant 0 : index
    %134 = vector.load %arg14[%c0_46, %c0_47] : memref<1x32xf32, #tpu.memory_space<vmem>>, vector<1x32xf32>
    %135 = vector.broadcast %134 : vector<1x32xf32> to vector<16x32xf32>
    %136 = arith.addf %133, %135 : vector<16x32xf32>
    %137 = arith.addf %96, %136 : vector<16x32xf32>
    %138 = vector.shape_cast %137 : vector<16x32xf32> to vector<2x8x32xf32>
    %c0_48 = arith.constant 0 : index
    %c0_49 = arith.constant 0 : index
    %c0_50 = arith.constant 0 : index
    %139 = vector.load %arg15[%c0_48, %c0_49, %c0_50] : memref<2x8x32xf32, #tpu.memory_space<vmem>>, vector<2x8x32xf32>
    tpu.vector_store %arg15[%c0_48, %c0_49, %c0_50], %138 {strides = array<i32>} : memref<2x8x32xf32, #tpu.memory_space<vmem>>, vector<2x8x32xf32>,
    return
  }
  func.func @transform_0(%arg0: i32) -> (i32, i32, i32) {
    %c0_i32 = arith.constant 0 : i32
    %c0_i32_0 = arith.constant 0 : i32
    %c0_i32_1 = arith.constant 0 : i32
    return %arg0, %c0_i32, %c0_i32_0 : i32, i32, i32
  }
  func.func @transform_1(%arg0: i32) -> (i32, i32) {
    %c0_i32 = arith.constant 0 : i32
    %c0_i32_0 = arith.constant 0 : i32
    %c0_i32_1 = arith.constant 0 : i32
    return %c0_i32, %c0_i32_0 : i32, i32
  }
  func.func @transform_2(%arg0: i32) -> (i32, i32) {
    %c0_i32 = arith.constant 0 : i32
    %c0_i32_0 = arith.constant 0 : i32
    %c0_i32_1 = arith.constant 0 : i32
    return %c0_i32, %c0_i32_0 : i32, i32
  }
  func.func @transform_3(%arg0: i32) -> (i32, i32) {
    %c0_i32 = arith.constant 0 : i32
    %c0_i32_0 = arith.constant 0 : i32
    %c0_i32_1 = arith.constant 0 : i32
    return %c0_i32, %c0_i32_0 : i32, i32
  }
  func.func @transform_4(%arg0: i32) -> (i32, i32) {
    %c0_i32 = arith.constant 0 : i32
    %c0_i32_0 = arith.constant 0 : i32
    %c0_i32_1 = arith.constant 0 : i32
    return %c0_i32, %c0_i32_0 : i32, i32
  }
  func.func @transform_5(%arg0: i32) -> (i32, i32) {
    %c0_i32 = arith.constant 0 : i32
    %c0_i32_0 = arith.constant 0 : i32
    %c0_i32_1 = arith.constant 0 : i32
    return %c0_i32, %c0_i32_0 : i32, i32
  }
  func.func @transform_6(%arg0: i32) -> (i32, i32) {
    %c0_i32 = arith.constant 0 : i32
    %c0_i32_0 = arith.constant 0 : i32
    %c0_i32_1 = arith.constant 0 : i32
    return %c0_i32, %c0_i32_0 : i32, i32
  }
  func.func @transform_7(%arg0: i32) -> (i32, i32) {
    %c0_i32 = arith.constant 0 : i32
    %c0_i32_0 = arith.constant 0 : i32
    %c0_i32_1 = arith.constant 0 : i32
    return %c0_i32, %c0_i32_0 : i32, i32
  }
  func.func @transform_8(%arg0: i32) -> (i32, i32) {
    %c0_i32 = arith.constant 0 : i32
    %c0_i32_0 = arith.constant 0 : i32
    %c0_i32_1 = arith.constant 0 : i32
    return %c0_i32, %c0_i32_0 : i32, i32
  }
  func.func @transform_9(%arg0: i32) -> (i32, i32) {
    %c0_i32 = arith.constant 0 : i32
    %c0_i32_0 = arith.constant 0 : i32
    %c0_i32_1 = arith.constant 0 : i32
    return %c0_i32, %c0_i32_0 : i32, i32
  }
  func.func @transform_10(%arg0: i32) -> (i32, i32) {
    %c0_i32 = arith.constant 0 : i32
    %c0_i32_0 = arith.constant 0 : i32
    %c0_i32_1 = arith.constant 0 : i32
    return %c0_i32, %c0_i32_0 : i32, i32
  }
  func.func @transform_11(%arg0: i32) -> (i32, i32) {
    %c0_i32 = arith.constant 0 : i32
    %c0_i32_0 = arith.constant 0 : i32
    %c0_i32_1 = arith.constant 0 : i32
    return %c0_i32, %c0_i32_0 : i32, i32
  }
  func.func @transform_12(%arg0: i32) -> (i32, i32) {
    %c0_i32 = arith.constant 0 : i32
    %c0_i32_0 = arith.constant 0 : i32
    %c0_i32_1 = arith.constant 0 : i32
    return %c0_i32, %c0_i32_0 : i32, i32
  }
  func.func @transform_13(%arg0: i32) -> (i32, i32) {
    %c0_i32 = arith.constant 0 : i32
    %c0_i32_0 = arith.constant 0 : i32
    %c0_i32_1 = arith.constant 0 : i32
    return %c0_i32, %c0_i32_0 : i32, i32
  }
  func.func @transform_14(%arg0: i32) -> (i32, i32, i32) {
    %c0_i32 = arith.constant 0 : i32
    %c0_i32_0 = arith.constant 0 : i32
    %c0_i32_1 = arith.constant 0 : i32
    return %arg0, %c0_i32, %c0_i32_0 : i32, i32, i32
  }
}

</mosaic_0001>

<bundles_post_ra>
// kernel: tpu_custom_call.1
= control target key start
LH: loop header
LB: loop body
LE: loop exit
PB: predicated region body
PF: predicated region fallthrough
CT: control target
= control target key end

     0   :  { %vm50_vm0 = vcmask 261120   ;;  %s1608_s0 = inlined_call_operand.vmem [shape: f32[2,8,32], index: 0, kind: input, shape index: {}]   ;;  %s1609_s1 = inlined_call_operand.vmem [shape: f32[8,8], index: 1, kind: input, shape index: {}]   ;;  %s1610_s2 = inlined_call_operand.vmem [shape: f32[1,32], index: 2, kind: input, shape index: {}]   ;;  %s1611_s3 = inlined_call_operand.vmem [shape: f32[1,32], index: 3, kind: input, shape index: {}]   ;;  %s1612_s4 = inlined_call_operand.vmem [shape: f32[32,96], index: 4, kind: input, shape index: {}]   ;;  %s1613_s5 = inlined_call_operand.vmem [shape: f32[1,96], index: 5, kind: input, shape index: {}]   ;;  %s1614_s6 = inlined_call_operand.vmem [shape: f32[32,32], index: 6, kind: input, shape index: {}]   ;;  %s1615_s7 = inlined_call_operand.vmem [shape: f32[1,32], index: 7, kind: input, shape index: {}]   ;;  %s1616_s8 = inlined_call_operand.vmem [shape: f32[1,32], index: 8, kind: input, shape index: {}]   ;;  %s1617_s9 = inlined_call_operand.vmem [shape: f32[1,32], index: 9, kind: input, shape index: {}]   ;;  %s1618_s10 = inlined_call_operand.vmem [shape: f32[32,128], index: 10, kind: input, shape index: {}]   ;;  %s1619_s11 = inlined_call_operand.vmem [shape: f32[1,128], index: 11, kind: input, shape index: {}]   ;;  %s1620_s12 = inlined_call_operand.vmem [shape: f32[128,32], index: 12, kind: input, shape index: {}]   ;;  %s1621_s13 = inlined_call_operand.vmem [shape: f32[1,32], index: 13, kind: input, shape index: {}]   ;;  %s1622_s14 = inlined_call_operand.hbm [shape: f32[2,8,32], index: 14, kind: output, shape index: {}]  }
   0x1   :  { %v1273_v0 = vld [vmem:[%s1608_s0] sm:$0xff] }
   0x2   :  { %v51_v1 = vsel %vm50_vm0, %v1273_v0, 0.0 }
   0x3   :  { %52 = vadd.xlane.f32.xlu0 %v51_v1 }
   0x4   :  { %19 = vsyncpa [#allocation3], 0  ;;  %v1280_v2 = vld [vmem:[%s1608_s0 + $0x8] sm:$0xff]  ;;  %v1184_v4 = vmov 32.0   ;;  %v117_v21 = vld [vmem:[%s1612_s4 + $0x18] sm:$0xff]  ;;  %s1186_s28 = smov 120  }
   0x5   :  { %v54_v3 = vsel %vm50_vm0, %v1280_v2, 0.0  ;;  %1108 = vrcp.f32 %v1184_v4  ;;  %140 = vmatpush.msra.mxu0 %v117_v21  ;;  %v116_v22 = vld [vmem:[%s1612_s4 + $0x10] sm:$0xff]  ;;  %v115_v23 = vld [vmem:[%s1612_s4 + $0x8] sm:$0xff]  ;;  %v114_v24 = vld [vmem:[%s1612_s4] sm:$0xff]  ;;  %s1187_s29 = smov 104   ;;  %vm168_vm8 = vcmask 64512  }
   0x6   :  { %v1100_v39 = vld [vmem:[%s1610_s2] ss:$0 sm:$0xff]  ;;  %s1190_s16 = smov 8   ;;  %s1191_s0 = smov 24  }
   0x7   :  { %141 = vmatpush.msra.mxu0 %v116_v22  ;;  %v1101_v43 = vld [vmem:[%s1611_s3] ss:$0 sm:$0xff]  ;;  %s1185_s3 = smov 112   ;;  %s1192_s17 = smov 16  }
   0x8   :  { %v1102_v53 = vld [vmem:[%s1613_s5] ss:$0 sm:$0xff]  ;;  %s1188_s5 = smov 96   ;;  %s1193_s22 = smov [#allocation2]  }
   0x9   :  { %142 = vmatpush.msra.mxu0 %v115_v23  ;;  %s1030_s23 = sshll.u32 %s1193_s22, 4  ;;  %s1031_s23 = int_to_ptr.vmem [resolvable:$true] %s1030_s23 }
   0xb   :  { %55 = vadd.xlane.f32.xlu0 %v54_v3  ;;  %v1109_v5 = vpop.eup %1108  ;;  %143 = vmatpush.msra.mxu0 %v114_v24 }
   0xc   :  { %v58_v6 = vmul.f32 32.0, %v1109_v5  ;;  %vm62_vm1 = vweird.f32 %v1109_v5 }
   0xe   :  { %v59_v7 = vsub.f32 1.0, %v58_v6 }
  0x10   :  { %v60_v8 = vmul.f32 %v1109_v5, %v59_v7 }
  0x12   :  { %v61_v9 = vadd.f32 %v1109_v5, %v60_v8 }
  0x14   :  { %v1284_v10 = vsel %vm62_vm1, %v1109_v5, %v61_v9 }
  0x76   :  { %v53_v11 = vpop.xlane.xlu0 %52 }
  0x77   :  { %v64_v12 = vmul.f32 %v1284_v10, %v53_v11 }
  0x79   :  { %v66_v13 = vsub.f32 %v1273_v0, %v64_v12  ;;  %v165_v12 = vld [vmem:[%s1609_s1] sm:$0xff]  ;;  %s1189_s1 = smov 64  }
  0x7b   :  { %v68_v14 = vmul.f32 %v66_v13, %v66_v13 }
  0x7d   :  { %v70_v15 = vsel %vm50_vm0, %v68_v14, 0.0 }
  0x7e   :  { %71 = vadd.xlane.f32.xlu1 %v70_v15  ;;  %v56_v16 = vpop.xlane.xlu0 %55 }
  0x7f   :  { %v65_v17 = vmul.f32 %v1284_v10, %v56_v16 }
  0x81   :  { %v67_v18 = vsub.f32 %v1280_v2, %v65_v17 }
  0x83   :  { %v69_v19 = vmul.f32 %v67_v18, %v67_v18 }
  0x85   :  { %v73_v20 = vsel %vm50_vm0, %v69_v19, 0.0 }
  0x86   :  { %74 = vadd.xlane.f32.xlu1 %v73_v20 }
  0xf1   :  { %v72_v25 = vpop.xlane.xlu1 %71 }
  0xf2   :  { %v76_v26 = vmul.f32 %v72_v25, %v1284_v10 }
  0xf4   :  { %v78_v27 = vadd.f32 1e-05, %v76_v26 }
  0xf6   :  { %1110 = vrsqrt.f32 %v78_v27  ;;  %vm86_vm3 = vweird.f32 %v78_v27 }
  0xf9   :  { %v75_v28 = vpop.xlane.xlu1 %74 }
  0xfa   :  { %v77_v29 = vmul.f32 %v75_v28, %v1284_v10 }
  0xfc   :  { %v1111_v30 = vpop.eup %1110  ;;  %v79_v31 = vadd.f32 1e-05, %v77_v29 }
  0xfd   :  { %v81_v32 = vmul.f32 %v1111_v30, %v78_v27  ;;  %vm87_vm2 = vweird.f32 %v1111_v30 }
  0xfe   :  { %1112 = vrsqrt.f32 %v79_v31  ;;  %vm88_vm4 = vmor %vm86_vm3, %vm87_vm2  ;;  %vm96_vm5 = vweird.f32 %v79_v31 }
  0xff   :  { %v82_v33 = vmul.f32 %v1111_v30, %v81_v32 }
 0x101   :  { %v83_v34 = vmul.f32 0.5, %v82_v33 }
 0x103   :  { %v84_v35 = vsub.f32 1.5, %v83_v34 }
 0x104   :  { %v1113_v36 = vpop.eup %1112 }
 0x105   :  { %v85_v37 = vmul.f32 %v1111_v30, %v84_v35  ;;  %v91_v38 = vmul.f32 %v1113_v36, %v79_v31  ;;  %vm97_vm6 = vweird.f32 %v1113_v36 }
 0x106   :  { %vm98_vm7 = vmor %vm96_vm5, %vm97_vm6 }
 0x107   :  { %v89_v40 = vsel %vm88_vm4, %v1111_v30, %v85_v37  ;;  %v92_v41 = vmul.f32 %v1113_v36, %v91_v38 }
 0x108   :  { %v100_v42 = vmul.f32 %v89_v40, %v66_v13 }
 0x109   :  { %v93_v44 = vmul.f32 0.5, %v92_v41 }
 0x10a   :  { %v106_v45 = vmul.f32 %v1100_v39, %v100_v42 }
 0x10b   :  { %v94_v46 = vsub.f32 1.5, %v93_v44 }
 0x10c   :  { %v112_v47 = vadd.f32 %v1101_v43, %v106_v45 }
 0x10d   :  { %v95_v48 = vmul.f32 %v1113_v36, %v94_v46 }
 0x10e   :  { %1044 = vmatmul.msk.f32.vlgmr.msra.gmra.mxu0 %vm50_vm0, %v112_v47 }
 0x10f   :  { %v99_v49 = vsel %vm98_vm7, %v1113_v36, %v95_v48 }
 0x110   :  { %v101_v50 = vmul.f32 %v99_v49, %v67_v18 }
 0x112   :  { %v107_v51 = vmul.f32 %v1100_v39, %v101_v50 }
 0x114   :  { %v113_v52 = vadd.f32 %v1101_v43, %v107_v51 }
 0x116   :  { %1045 = vmatmul.msk.f32.gmra.mxu0 %vm50_vm0, %v113_v52 }
 0x18b   :  { %v145_v54 = vpop.f32.mrf.mxu0 }
 0x18c   :  { %v1317_v55 = vadd.f32 %v1102_v53, %v145_v54 }
 0x18e   :  { %157 = vrot.lane.b32.xlu0 %v1317_v55, %s1185_s3  ;;  %153 = vrot.lane.b32.xlu2 %v1317_v55, %s1186_s28 }
 0x193   :  { %v148_v56 = vpop.f32.mrf.mxu0 }
 0x194   :  { %v1321_v57 = vadd.f32 %v1102_v53, %v148_v56 }
 0x196   :  { %161 = vrot.lane.b32.xlu2 %v1317_v55, %s1187_s29  ;;  %155 = vrot.lane.b32.xlu1 %v1321_v57, %s1186_s28 }
 0x19e   :  { %163 = vrot.lane.b32.xlu2 %v1321_v57, %s1187_s29 }
 0x1a6   :  { %159 = vrot.lane.b32.xlu2 %v1321_v57, %s1185_s3 }
 0x1ae   :  { %166 = vrot.lane.b32.xlu2 %v1317_v55, %s1188_s5 }
 0x1e8   :  { %v1328_v58 = vpop.permute.xlu2 %153 }
 0x1e9   :  { %193 = vrot.lane.b32.xlu0 %v1328_v58, %s1188_s5 }
 0x1f0   :  { %v1331_v59 = vpop.permute.xlu2 %161 }
 0x1f1   :  { %271 = vrot.lane.b32.xlu0 %v1321_v57, %s1188_s5  ;;  %245 = vrot.lane.b32.xlu2 %v1331_v59, %s1188_s5 }
 0x1f8   :  { %v1335_v60 = vpop.permute.xlu2 %163 }
 0x200   :  { %v1337_v61 = vpop.permute.xlu2 %159  ;;  %v1339_v62 = vpop.permute.xlu0 %157 }
 0x201   :  { %323 = vrot.lane.b32.xlu0 %v1337_v61, %s1188_s5  ;;  %219 = vrot.lane.b32.xlu1 %v1339_v62, %s1188_s5 }
 0x208   :  { %v167_v63 = vpop.permute.xlu2 %166  ;;  %v1343_v1 = vpop.permute.xlu1 %155 }
 0x209   :  { %1046 = vmatpush.xpose.msk.msra.mxu2 %vm168_vm8, %v167_v63  ;;  %297 = vrot.lane.b32.xlu2 %v1343_v1, %s1188_s5 }
 0x20a   :  { %349 = vrot.lane.b32.xlu1 %v1335_v60, %s1188_s5 }
 0x20c   :  { %1047 = vmatmul.msk.f32.vlgmr.msra.gmra.mxu2 %vm168_vm8, %v1317_v55 }
 0x24b   :  { %v246_v4 = vpop.permute.xlu2 %245 }
 0x25b   :  { %v194_v3 = vpop.permute.xlu0 %193 }
 0x25c   :  { %1048 = vmatpush.xpose.msk.msrb.mxu2 %vm168_vm8, %v194_v3 }
 0x25f   :  { %1049 = vmatmul.msk.f32.vlgmr.msrb.gmra.mxu2 %vm168_vm8, %v1328_v58 }
 0x260   :  { %1052 = vmatpush.xpose.msk.msra.mxu2 %vm168_vm8, %v246_v4 }
 0x263   :  { %v272_v5 = vpop.permute.xlu0 %271  ;;  %v298_v7 = vpop.permute.xlu2 %297 }
 0x264   :  { %1054 = vmatpush.xpose.msk.msrb.mxu2 %vm168_vm8, %v272_v5 }
 0x267   :  { %1053 = vmatmul.msk.f32.vlgmr.msra.gmra.mxu2 %vm168_vm8, %v1331_v59 }
 0x26f   :  { %1055 = vmatmul.msk.f32.vlgmr.msrb.gmra.mxu2 %vm168_vm8, %v1321_v57 }
 0x273   :  { %v220_v6 = vpop.permute.xlu1 %219  ;;  %v324_v8 = vpop.permute.xlu0 %323 }
 0x274   :  { %1050 = vmatpush.xpose.msk.msra.mxu3 %vm168_vm8, %v220_v6 }
 0x277   :  { %1051 = vmatmul.msk.f32.vlgmr.msra.gmra.mxu3 %vm168_vm8, %v1339_v62 }
 0x278   :  { %1056 = vmatpush.xpose.msk.msrb.mxu3 %vm168_vm8, %v298_v7 }
 0x27c   :  { %1058 = vmatpush.xpose.msk.msra.mxu3 %vm168_vm8, %v324_v8  ;;  %v350_v9 = vpop.permute.xlu1 %349 }
 0x27d   :  { %1060 = vmatpush.xpose.msk.msra.mxu2 %vm168_vm8, %v350_v9 }
 0x27f   :  { %1057 = vmatmul.msk.f32.vlgmr.msrb.gmra.mxu3 %vm168_vm8, %v1343_v1 }
 0x280   :  { %1061 = vmatmul.msk.f32.vlgmr.msra.gmra.mxu2 %vm168_vm8, %v1335_v60 }
 0x287   :  { %1059 = vmatmul.msk.f32.vlgmr.msra.gmra.mxu3 %vm168_vm8, %v1337_v61 }
 0x28f   :  { %v190_v11 = vpop.f32.mrf.mxu2 }
 0x290   :  { %v1381_v30 = vadd.f32 %v190_v11, %v165_v12 }
 0x292   :  { %v375_v35 = vsel %vm168_vm8, %v1381_v30, -inf }
 0x2e2   :  { %v216_v13 = vpop.f32.mrf.mxu2 }
 0x2e3   :  { %v217_v14 = vadd.f32 %v216_v13, %v165_v12  ;;  %v1085_v13 = vpack.i.bf16 %v1328_v58, %v1331_v59 }
 0x2e5   :  { %v378_v15 = vsel %vm168_vm8, %v217_v14, -inf }
 0x2e6   :  { %379 = vmax.xlane.f32.xlu1 %v378_v15  ;;  %v1095_v15 = vpack.i.bf16 %v1337_v61, %v1343_v1 }
 0x2ea   :  { %v268_v16 = vpop.f32.mrf.mxu2 }
 0x2eb   :  { %v269_v17 = vadd.f32 %v268_v16, %v165_v12 }
 0x2ed   :  { %v384_v18 = vsel %vm168_vm8, %v269_v17, -inf }
 0x2ee   :  { %385 = vmax.xlane.f32.xlu2 %v384_v18 }
 0x2f2   :  { %v294_v20 = vpop.f32.mrf.mxu2 }
 0x2f3   :  { %v1379_v29 = vadd.f32 %v294_v20, %v165_v12 }
 0x2f5   :  { %v387_v33 = vsel %vm168_vm8, %v1379_v29, -inf }
 0x2fa   :  { %v242_v19 = vpop.f32.mrf.mxu3 }
 0x2fb   :  { %v243_v21 = vadd.f32 %v242_v19, %v165_v12 }
 0x2fd   :  { %v381_v22 = vsel %vm168_vm8, %v243_v21, -inf }
 0x2fe   :  { %382 = vmax.xlane.f32.xlu0 %v381_v22 }
 0x302   :  { %v320_v23 = vpop.f32.mrf.mxu3 }
 0x303   :  { %v321_v24 = vadd.f32 %v320_v23, %v165_v12  ;;  %v372_v25 = vpop.f32.mrf.mxu2 }
 0x304   :  { %v373_v26 = vadd.f32 %v372_v25, %v165_v12 }
 0x305   :  { %v390_v27 = vsel %vm168_vm8, %v321_v24, -inf }
 0x306   :  { %391 = vmax.xlane.f32.xlu1 %v390_v27  ;;  %v396_v28 = vsel %vm168_vm8, %v373_v26, -inf }
 0x307   :  { %397 = vmax.xlane.f32.xlu2 %v396_v28 }
 0x30a   :  { %v346_v31 = vpop.f32.mrf.mxu3 }
 0x30b   :  { %v347_v32 = vadd.f32 %v346_v31, %v165_v12 }
 0x30d   :  { %v393_v34 = vsel %vm168_vm8, %v347_v32, -inf }
 0x30e   :  { %388 = vmax.xlane.f32.xlu1 %v387_v33  ;;  %394 = vmax.xlane.f32.xlu0 %v393_v34 }
 0x30f   :  { %376 = vmax.xlane.f32.xlu2 %v375_v35 }
 0x359   :  { %v380_v36 = vpop.xlane.xlu1 %379 }
 0x35a   :  { %v400_v37 = vsub.f32 %v217_v14, %v380_v36  ;;  %v1090_v14 = vpack.i.bf16 %v1335_v60, %v1339_v62 }
 0x35c   :  { %v409_v38 = vmul.f32 1.442695, %v400_v37 }
 0x35e   :  { %1114 = vpow2.f32 %v409_v38 }
 0x361   :  { %v386_v39 = vpop.xlane.xlu2 %385 }
 0x362   :  { %v402_v40 = vsub.f32 %v269_v17, %v386_v39 }
 0x364   :  { %v1388_v41 = vpop.eup %1114  ;;  %v413_v42 = vmul.f32 1.442695, %v402_v40 }
 0x365   :  { %v426_v43 = vsel %vm168_vm8, %v1388_v41, 0.0 }
 0x366   :  { %1116 = vpow2.f32 %v413_v42  ;;  %427 = vadd.xlane.f32.xlu2 %v426_v43 }
 0x36c   :  { %v1392_v44 = vpop.eup %1116 }
 0x36d   :  { %v432_v45 = vsel %vm168_vm8, %v1392_v44, 0.0 }
 0x36e   :  { %433 = vadd.xlane.f32.xlu0 %v432_v45 }
 0x371   :  { %v383_v46 = vpop.xlane.xlu0 %382 }
 0x372   :  { %v401_v47 = vsub.f32 %v243_v21, %v383_v46 }
 0x374   :  { %v411_v48 = vmul.f32 1.442695, %v401_v47 }
 0x376   :  { %1118 = vpow2.f32 %v411_v48 }
 0x379   :  { %v392_v49 = vpop.xlane.xlu1 %391 }
 0x37a   :  { %v404_v50 = vsub.f32 %v321_v24, %v392_v49  ;;  %v398_v51 = vpop.xlane.xlu2 %397 }
 0x37b   :  { %v406_v52 = vsub.f32 %v373_v26, %v398_v51 }
 0x37c   :  { %v1396_v53 = vpop.eup %1118  ;;  %v417_v54 = vmul.f32 1.442695, %v404_v50 }
 0x37d   :  { %v421_v56 = vmul.f32 1.442695, %v406_v52  ;;  %v429_v63 = vsel %vm168_vm8, %v1396_v53, 0.0 }
 0x37e   :  { %1120 = vpow2.f32 %v417_v54  ;;  %430 = vadd.xlane.f32.xlu1 %v429_v63 }
 0x37f   :  { %1122 = vpow2.f32 %v421_v56 }
 0x381   :  { %v395_v3 = vpop.xlane.xlu0 %394  ;;  %v389_v17 = vpop.xlane.xlu1 %388 }
 0x382   :  { %v405_v4 = vsub.f32 %v347_v32, %v395_v3  ;;  %v377_v16 = vpop.xlane.xlu2 %376  ;;  %v403_v19 = vsub.f32 %v1379_v29, %v389_v17 }
 0x383   :  { %v399_v18 = vsub.f32 %v1381_v30, %v377_v16 }
 0x384   :  { %v1400_v5 = vpop.eup %1120  ;;  %v419_v6 = vmul.f32 1.442695, %v405_v4  ;;  %v415_v58 = vmul.f32 1.442695, %v403_v19 }
 0x385   :  { %v1402_v7 = vpop.eup %1122  ;;  %v438_v8 = vsel %vm168_vm8, %v1400_v5, 0.0  ;;  %v407_v20 = vmul.f32 1.442695, %v399_v18 }
 0x386   :  { %439 = vadd.xlane.f32.xlu2 %v438_v8  ;;  %v444_v9 = vsel %vm168_vm8, %v1402_v7, 0.0  ;;  %1124 = vpow2.f32 %v419_v6 }
 0x387   :  { %445 = vadd.xlane.f32.xlu0 %v444_v9  ;;  %1126 = vpow2.f32 %v407_v20 }
 0x388   :  { %1128 = vpow2.f32 %v415_v58 }
 0x38c   :  { %v1408_v11 = vpop.eup %1124 }
 0x38d   :  { %v441_v12 = vsel %vm168_vm8, %v1408_v11, 0.0  ;;  %v1422_v59 = vpop.eup %1126 }
 0x38e   :  { %442 = vadd.xlane.f32.xlu1 %v441_v12  ;;  %v1424_v60 = vpop.eup %1128  ;;  %v423_v61 = vsel %vm168_vm8, %v1422_v59, 0.0 }
 0x39b   :  { %1086 = vrot.lane.b32.xlu0 %v1085_v13, %s1189_s1 }
 0x39e   :  { %1091 = vrot.lane.b32.xlu2 %v1090_v14, %s1189_s1 }
 0x3a7   :  { %1096 = vrot.lane.b32.xlu1 %v1095_v15, %s1189_s1 }
 0x3af   :  { %567 = vrot.lane.b32.xlu1 %v1317_v55, %s1189_s1  ;;  %v435_v55 = vsel %vm168_vm8, %v1424_v60, 0.0 }
 0x3b7   :  { %671 = vrot.lane.b32.xlu1 %v1321_v57, %s1189_s1 }
 0x3c5   :  { %424 = vadd.xlane.f32.xlu0 %v423_v61 }
 0x3c7   :  { %436 = vadd.xlane.f32.xlu2 %v435_v55 }
 0x3d9   :  { %v428_v62 = vpop.xlane.xlu2 %427 }
 0x3da   :  { %1130 = vrcp.f32 %v428_v62  ;;  %vm467_vm13 = vweird.f32 %v428_v62  ;;  %v473_v50 = vand.u32 2147483648, %v428_v62  ;;  %v471_v52 = vand.u32 2147483647, %v428_v62 }
 0x3dc   :  { %v474_v8 = vor.u32 1.1754944e-38, %v473_v50  ;;  %vm472_vm4 = vcmp.eq.f32.partialorder %v471_v52, 8.507059e+37 }
 0x3e0   :  { %v1131_v57 = vpop.eup %1130 }
 0x3e1   :  { %v434_v1 = vpop.xlane.xlu0 %433  ;;  %v463_v23 = vmul.f32 %v1131_v57, %v428_v62  ;;  %vm468_vm14 = vweird.f32 %v1131_v57 }
 0x3e2   :  { %1132 = vrcp.f32 %v434_v1  ;;  %v503_v54 = vand.u32 2147483648, %v434_v1  ;;  %vm469_vm1 = vmor %vm467_vm13, %vm468_vm14  ;;  %vm497_vm2 = vweird.f32 %v434_v1  ;;  %v501_v3 = vand.u32 2147483647, %v434_v1 }
 0x3e3   :  { %v464_v29 = vsub.f32 1.0, %v463_v23 }
 0x3e4   :  { %v504_v12 = vor.u32 1.1754944e-38, %v503_v54  ;;  %vm502_vm5 = vcmp.eq.f32.partialorder %v501_v3, 8.507059e+37 }
 0x3e5   :  { %v465_v35 = vmul.f32 %v1131_v57, %v464_v29 }
 0x3e7   :  { %v466_v46 = vadd.f32 %v1131_v57, %v465_v35 }
 0x3e8   :  { %v1133_v22 = vpop.eup %1132 }
 0x3e9   :  { %v493_v25 = vmul.f32 %v1133_v22, %v434_v1  ;;  %vm498_vm15 = vweird.f32 %v1133_v22  ;;  %v470_v6 = vsel %vm469_vm1, %v1131_v57, %v466_v46 }
 0x3ea   :  { %vm499_vm3 = vmor %vm497_vm2, %vm498_vm15  ;;  %v475_v15 = vsel %vm472_vm4, %v474_v8, %v470_v6 }
 0x3eb   :  { %v494_v31 = vsub.f32 1.0, %v493_v25  ;;  %v476_v58 = vmul.f32 %v1388_v41, %v475_v15 }
 0x3ed   :  { %v495_v37 = vmul.f32 %v1133_v22, %v494_v31 }
 0x3ef   :  { %v496_v51 = vadd.f32 %v1133_v22, %v495_v37 }
 0x3f1   :  { %v431_v21 = vpop.xlane.xlu1 %430  ;;  %v500_v9 = vsel %vm499_vm3, %v1133_v22, %v496_v51 }
 0x3f2   :  { %1134 = vrcp.f32 %v431_v21  ;;  %v488_v33 = vand.u32 2147483648, %v431_v21  ;;  %v486_v34 = vand.u32 2147483647, %v431_v21  ;;  %vm482_vm10 = vweird.f32 %v431_v21 }
 0x3f4   :  { %v489_v39 = vor.u32 1.1754944e-38, %v488_v33  ;;  %vm487_vm12 = vcmp.eq.f32.partialorder %v486_v34, 8.507059e+37 }
 0x3f8   :  { %v1135_v24 = vpop.eup %1134 }
 0x3f9   :  { %v478_v26 = vmul.f32 %v1135_v24, %v431_v21  ;;  %v1430_v27 = vpop.xlane.xlu2 %439  ;;  %vm483_vm9 = vweird.f32 %v1135_v24 }
 0x3fa   :  { %v1432_v28 = vpop.xlane.xlu0 %445  ;;  %vm484_vm11 = vmor %vm482_vm10, %vm483_vm9  ;;  %vm527_vm13 = vweird.f32 %v1430_v27  ;;  %v531_v31 = vand.u32 2147483647, %v1430_v27 }
 0x3fb   :  { %v479_v30 = vsub.f32 1.0, %v478_v26  ;;  %1136 = vrcp.f32 %v1432_v28  ;;  %v563_v61 = vand.u32 2147483648, %v1432_v28  ;;  %vm557_vm7 = vweird.f32 %v1432_v28 }
 0x3fc   :  { %1138 = vrcp.f32 %v1430_v27  ;;  %v561_v57 = vand.u32 2147483647, %v1432_v28  ;;  %vm532_vm2 = vcmp.eq.f32.partialorder %v531_v31, 8.507059e+37 }
 0x3fd   :  { %v480_v32 = vmul.f32 %v1135_v24, %v479_v30 }
 0x3ff   :  { %v481_v36 = vadd.f32 %v1135_v24, %v480_v32 }
 0x401   :  { %v1436_v38 = vpop.eup %1136  ;;  %v1092_v40 = vpop.permute.xlu2 %1091  ;;  %v485_v42 = vsel %vm484_vm11, %v1135_v24, %v481_v36  ;;  %vm562_vm11 = vcmp.eq.f32.partialorder %v561_v57, 8.507059e+37 }
 0x402   :  { %v553_v43 = vmul.f32 %v1436_v38, %v1432_v28  ;;  %v1093_v45 = vunpack.i.l.bf16 %v1092_v40  ;;  %v1440_v47 = vpop.xlane.xlu1 %442  ;;  %v490_v48 = vsel %vm487_vm12, %v489_v39, %v485_v42  ;;  %v1442_v49 = vpop.eup %1138  ;;  %vm558_vm6 = vweird.f32 %v1436_v38 }
 0x403   :  { %1140 = vrcp.f32 %v1440_v47  ;;  %v491_v63 = vmul.f32 %v1396_v53, %v490_v48  ;;  %v523_v4 = vmul.f32 %v1442_v49, %v1430_v27  ;;  %v505_v53 = vsel %vm502_vm5, %v504_v12, %v500_v9  ;;  %vm1459_vm9 = vmor %vm557_vm7, %vm558_vm6 }
 0x404   :  { %640 = vmatpush.msra.mxu1 %v1093_v45  ;;  %v554_v56 = vsub.f32 1.0, %v553_v43  ;;  %v506_v1 = vmul.f32 %v1392_v44, %v505_v53  ;;  %v1094_v24 = vunpack.i.h.bf16 %v1092_v40  ;;  %vm528_vm10 = vweird.f32 %v1442_v49 }
 0x405   :  { %1064 = vmatmul.msk.f32.vlgmr.msra.gmra.mxu1 %vm168_vm8, %v491_v63  ;;  %v524_v16 = vsub.f32 1.0, %v523_v4  ;;  %v564_v44 = vor.u32 1.1754944e-38, %v563_v61  ;;  %v533_v28 = vand.u32 2147483648, %v1430_v27  ;;  %v548_v30 = vand.u32 2147483648, %v1440_v47  ;;  %vm529_vm14 = vmor %vm527_vm13, %vm528_vm10 }
 0x406   :  { %v555_v13 = vmul.f32 %v1436_v38, %v554_v56  ;;  %vm542_vm15 = vweird.f32 %v1440_v47  ;;  %v546_v32 = vand.u32 2147483647, %v1440_v47  ;;  %vm801_vm13 = vcmask 130048  }
 0x407   :  { %v525_v21 = vmul.f32 %v1442_v49, %v524_v16  ;;  %v534_v36 = vor.u32 1.1754944e-38, %v533_v28  ;;  %v549_v37 = vor.u32 1.1754944e-38, %v548_v30 }
 0x408   :  { %v556_v18 = vadd.f32 %v1436_v38, %v555_v13  ;;  %vm547_vm3 = vcmp.eq.f32.partialorder %v546_v32, 8.507059e+37 }
 0x409   :  { %v1141_v14 = vpop.eup %1140  ;;  %v526_v25 = vadd.f32 %v1442_v49, %v525_v21  ;;  %v807_v21 = vld [vmem:[%s1614_s6] sm:$0xff] }
 0x40a   :  { %v538_v17 = vmul.f32 %v1141_v14, %v1440_v47  ;;  %v560_v41 = vsel %vm1459_vm9, %v1436_v38, %v556_v18  ;;  %vm543_vm12 = vweird.f32 %v1141_v14 }
 0x40b   :  { %v565_v29 = vsel %vm562_vm11, %v564_v44, %v560_v41  ;;  %vm544_vm1 = vmor %vm542_vm15, %vm543_vm12  ;;  %v530_v33 = vsel %vm529_vm14, %v1442_v49, %v526_v25  ;;  %vm804_vm14 = vcmask 195584  }
 0x40c   :  { %v539_v19 = vsub.f32 1.0, %v538_v17  ;;  %v566_v34 = vmul.f32 %v1402_v7, %v565_v29  ;;  %v535_v38 = vsel %vm532_vm2, %v534_v36, %v530_v33 }
 0x40d   :  { %v1087_v20 = vpop.permute.xlu0 %1086  ;;  %v536_v43 = vmul.f32 %v1400_v5, %v535_v38 }
 0x40e   :  { %v1088_v55 = vunpack.i.l.bf16 %v1087_v20  ;;  %v1089_v62 = vunpack.i.h.bf16 %v1087_v20  ;;  %v540_v22 = vmul.f32 %v1141_v14, %v539_v19 }
 0x410   :  { %614 = vmatpush.msrb.mxu0 %v1089_v62  ;;  %666 = vmatpush.msrb.mxu2 %v1088_v55  ;;  %v541_v26 = vadd.f32 %v1141_v14, %v540_v22  ;;  %v809_v62 = vld [vmem:[%s1614_s6 + $0x10] sm:$0xff] }
 0x411   :  { %1063 = vmatmul.msk.f32.vlgmr.msrb.gmra.mxu0 %vm168_vm8, %v476_v58  ;;  %1065 = vmatmul.msk.f32.vlgmr.msrb.gmra.mxu2 %vm168_vm8, %v506_v1  ;;  %v808_v1 = vld [vmem:[%s1614_s6 + $0x8] sm:$0xff] }
 0x412   :  { %770 = vmatpush.msra.mxu2 %v1094_v24  ;;  %v545_v35 = vsel %vm544_vm1, %v1141_v14, %v541_v26 }
 0x413   :  { %v550_v39 = vsel %vm547_vm3, %v549_v37, %v545_v35 }
 0x414   :  { %v551_v45 = vmul.f32 %v1408_v11, %v550_v39 }
 0x419   :  { %1069 = vmatmul.msk.f32.vlgmr.msra.gmra.mxu2 %vm168_vm8, %v566_v34  ;;  %v1097_v40 = vpop.permute.xlu1 %1096  ;;  %v1103_v34 = vld [vmem:[%s1615_s7] ss:$0 sm:$0xff] }
 0x41a   :  { %v1098_v27 = vunpack.i.l.bf16 %v1097_v40  ;;  %v1099_v42 = vunpack.i.h.bf16 %v1097_v40 }
 0x41c   :  { %718 = vmatpush.msra.mxu0 %v1098_v27  ;;  %744 = vmatpush.msrb.mxu1 %v1099_v42 }
 0x41d   :  { %1067 = vmatmul.msk.f32.vlgmr.msra.gmra.mxu0 %vm168_vm8, %v536_v43  ;;  %1068 = vmatmul.msk.f32.vlgmr.msrb.gmra.mxu1 %vm168_vm8, %v551_v45 }
 0x421   :  { %v568_v7 = vpop.permute.xlu1 %567 }
 0x422   :  { %588 = vmatpush.msrb.mxu3 %v568_v7 }
 0x429   :  { %v672_v46 = vpop.permute.xlu1 %671 }
 0x42a   :  { %692 = vmatpush.msra.mxu3 %v672_v46 }
 0x438   :  { %v425_v47 = vpop.xlane.xlu0 %424 }
 0x439   :  { %1142 = vrcp.f32 %v425_v47  ;;  %v458_v11 = vand.u32 2147483648, %v425_v47  ;;  %v456_v56 = vand.u32 2147483647, %v425_v47  ;;  %vm452_vm5 = vweird.f32 %v425_v47 }
 0x43a   :  { %v437_v48 = vpop.xlane.xlu2 %436 }
 0x43b   :  { %1144 = vrcp.f32 %v437_v48  ;;  %v459_v6 = vor.u32 1.1754944e-38, %v458_v11  ;;  %vm457_vm7 = vcmp.eq.f32.partialorder %v456_v56, 8.507059e+37  ;;  %v518_v13 = vand.u32 2147483648, %v437_v48  ;;  %v902_v11 = vld [vmem:[%s1618_s10] sm:$0xff] }
 0x43c   :  { %vm512_vm10 = vweird.f32 %v437_v48  ;;  %v516_v14 = vand.u32 2147483647, %v437_v48 }
 0x43d   :  { %v519_v16 = vor.u32 1.1754944e-38, %v518_v13 }
 0x43e   :  { %vm517_vm12 = vcmp.eq.f32.partialorder %v516_v14, 8.507059e+37 }
 0x43f   :  { %v1143_v49 = vpop.eup %1142 }
 0x440   :  { %v448_v50 = vmul.f32 %v1143_v49, %v425_v47  ;;  %vm453_vm4 = vweird.f32 %v1143_v49 }
 0x441   :  { %v1145_v51 = vpop.eup %1144  ;;  %vm454_vm6 = vmor %vm452_vm5, %vm453_vm4 }
 0x442   :  { %v449_v5 = vsub.f32 1.0, %v448_v50  ;;  %v508_v52 = vmul.f32 %v1145_v51, %v437_v48  ;;  %vm513_vm9 = vweird.f32 %v1145_v51 }
 0x443   :  { %vm514_vm11 = vmor %vm512_vm10, %vm513_vm9 }
 0x444   :  { %v450_v54 = vmul.f32 %v1143_v49, %v449_v5  ;;  %v509_v63 = vsub.f32 1.0, %v508_v52  ;;  %v904_v5 = vld [vmem:[%s1618_s10 + $0x10] sm:$0xff]  ;;  %v903_v52 = vld [vmem:[%s1618_s10 + $0x8] sm:$0xff] }
 0x446   :  { %v451_v3 = vadd.f32 %v1143_v49, %v450_v54  ;;  %v510_v4 = vmul.f32 %v1145_v51, %v509_v63 }
 0x448   :  { %v455_v8 = vsel %vm454_vm6, %v1143_v49, %v451_v3  ;;  %v511_v9 = vadd.f32 %v1145_v51, %v510_v4 }
 0x449   :  { %v460_v12 = vsel %vm457_vm7, %v459_v6, %v455_v8 }
 0x44a   :  { %v461_v15 = vmul.f32 %v1422_v59, %v460_v12  ;;  %v515_v53 = vsel %vm514_vm11, %v1145_v51, %v511_v9  ;;  %v905_v51 = vld [vmem:[%s1618_s10 + $0x18] sm:$0xff] }
 0x44b   :  { %v520_v17 = vsel %vm517_vm12, %v519_v16, %v515_v53  ;;  %928 = vmatpush.msrb.mxu0 %v905_v51  ;;  %v1104_v53 = vld [vmem:[%s1616_s8] ss:$0 sm:$0xff] }
 0x44c   :  { %1062 = vmatmul.msk.f32.vlgmr.msrb.gmra.mxu3 %vm168_vm8, %v461_v15  ;;  %v521_v18 = vmul.f32 %v1424_v60, %v520_v17  ;;  %v810_v60 = vld [vmem:[%s1614_s6 + $0x18] sm:$0xff]  ;;  %s1032_s6 = sshll.u32 %s1622_s14, 4  ;;  %s1033_s6 = int_to_ptr.hbm [resolvable:$true] %s1032_s6 }
 0x44d   :  { %833 = vmatpush.msrb.mxu3 %v810_v60  ;;  %929 = vmatpush.msrb.mxu0 %v904_v5 }
 0x44f   :  { %834 = vmatpush.msrb.mxu3 %v809_v62  ;;  %930 = vmatpush.msrb.mxu0 %v903_v52 }
 0x451   :  { %835 = vmatpush.msrb.mxu3 %v808_v1  ;;  %931 = vmatpush.msrb.mxu0 %v902_v11 }
 0x453   :  { %836 = vmatpush.msrb.mxu3 %v807_v21 }
 0x454   :  { %1066 = vmatmul.msk.f32.vlgmr.msra.gmra.mxu3 %vm168_vm8, %v521_v18  ;;  %v1105_v18 = vld [vmem:[%s1617_s9] ss:$0 sm:$0xff] }
 0x482   :  { %v642_v20 = vpop.f32.mrf.mxu1 }
 0x48e   :  { %v616_v19 = vpop.f32.mrf.mxu0 }
 0x48f   :  { %777 = vrot.lane.b32.xlu1 %v616_v19, %s1190_s16 }
 0x494   :  { %v668_v58 = vpop.f32.mrf.mxu2 }
 0x495   :  { %793 = vrot.lane.b32.xlu0 %v668_v58, %s1191_s0 }
 0x497   :  { %785 = vrot.lane.b32.xlu1 %v642_v20, %s1192_s17 }
 0x49a   :  { %v746_v59 = vpop.f32.mrf.mxu1  ;;  %v720_v61 = vpop.f32.mrf.mxu0 }
 0x49b   :  { %787 = vrot.lane.b32.xlu2 %v746_v59, %s1192_s17 }
 0x49c   :  { %v772_v55 = vpop.f32.mrf.mxu2 }
 0x49f   :  { %779 = vrot.lane.b32.xlu1 %v720_v61, %s1190_s16 }
 0x4a7   :  { %795 = vrot.lane.b32.xlu1 %v772_v55, %s1191_s0 }
 0x4cf   :  { %v590_v22 = vpop.f32.mrf.mxu3 }
 0x4d7   :  { %v694_v28 = vpop.f32.mrf.mxu3 }
 0x4f5   :  { %v788_v30 = vpop.permute.xlu2 %787 }
 0x501   :  { %v778_v57 = vpop.permute.xlu1 %777 }
 0x502   :  { %v799_v23 = vsel %vm168_vm8, %v590_v22, %v778_v57  ;;  %v994_v22 = vld [vmem:[%s1620_s12 + $0x78] sm:$0xff] }
 0x503   :  { %999 = vmatpush.msra.mxu1 %v994_v22 }
 0x507   :  { %v794_v41 = vpop.permute.xlu0 %793 }
 0x509   :  { %v786_v24 = vpop.permute.xlu1 %785 }
 0x50a   :  { %v802_v44 = vsel %vm801_vm13, %v799_v23, %v786_v24  ;;  %v993_v23 = vld [vmem:[%s1620_s12 + $0x70] sm:$0xff]  ;;  %v992_v24 = vld [vmem:[%s1620_s12 + $0x68] sm:$0xff] }
 0x50b   :  { %v805_v25 = vsel %vm804_vm14, %v802_v44, %v794_v41  ;;  %1000 = vmatpush.msra.mxu1 %v993_v23  ;;  %v991_v41 = vld [vmem:[%s1620_s12 + $0x60] sm:$0xff]  ;;  %v990_v44 = vld [vmem:[%s1620_s12 + $0x58] sm:$0xff] }
 0x50c   :  { %1070 = vmatmul.msk.f32.vlgmr.msrb.gmra.mxu3 %vm50_vm0, %v805_v25  ;;  %v989_v25 = vld [vmem:[%s1620_s12 + $0x50] sm:$0xff] }
 0x50d   :  { %1001 = vmatpush.msra.mxu1 %v992_v24 }
 0x50f   :  { %1002 = vmatpush.msra.mxu1 %v991_v41 }
 0x511   :  { %v780_v26 = vpop.permute.xlu1 %779  ;;  %1003 = vmatpush.msra.mxu1 %v990_v44 }
 0x512   :  { %v800_v29 = vsel %vm168_vm8, %v694_v28, %v780_v26  ;;  %v988_v26 = vld [vmem:[%s1620_s12 + $0x48] sm:$0xff]  ;;  %v987_v28 = vld [vmem:[%s1620_s12 + $0x40] sm:$0xff] }
 0x513   :  { %v803_v32 = vsel %vm801_vm13, %v800_v29, %v788_v30  ;;  %1004 = vmatpush.msra.mxu1 %v989_v25  ;;  %v986_v29 = vld [vmem:[%s1620_s12 + $0x38] sm:$0xff]  ;;  %v985_v30 = vld [vmem:[%s1620_s12 + $0x30] sm:$0xff] }
 0x515   :  { %1005 = vmatpush.msra.mxu1 %v988_v26 }
 0x517   :  { %1006 = vmatpush.msra.mxu1 %v987_v28 }
 0x519   :  { %v796_v31 = vpop.permute.xlu1 %795  ;;  %1007 = vmatpush.msra.mxu1 %v986_v29 }
 0x51a   :  { %v806_v33 = vsel %vm804_vm14, %v803_v32, %v796_v31  ;;  %v984_v31 = vld [vmem:[%s1620_s12 + $0x28] sm:$0xff]  ;;  %v983_v32 = vld [vmem:[%s1620_s12 + $0x20] sm:$0xff] }
 0x51b   :  { %1071 = vmatmul.msk.f32.gmra.mxu3 %vm50_vm0, %v806_v33  ;;  %1008 = vmatpush.msra.mxu1 %v985_v30  ;;  %v1106_v33 = vld [vmem:[%s1619_s11] ss:$0 sm:$0xff] }
 0x51d   :  { %1009 = vmatpush.msra.mxu1 %v984_v31 }
 0x51f   :  { %1010 = vmatpush.msra.mxu1 %v983_v32 }
 0x58f   :  { %v838_v35 = vpop.f32.mrf.mxu3 }
 0x590   :  { %v839_v36 = vadd.f32 %v1103_v34, %v838_v35  ;;  %v981_v35 = vld [vmem:[%s1620_s12 + $0x10] sm:$0xff] }
 0x592   :  { %v1509_v37 = vadd.f32 %v839_v36, %v1273_v0 }
 0x594   :  { %v846_v38 = vsel %vm50_vm0, %v1509_v37, 0.0 }
 0x595   :  { %847 = vadd.xlane.f32.xlu1 %v846_v38 }
 0x59e   :  { %v841_v39 = vpop.f32.mrf.mxu3 }
 0x59f   :  { %v842_v40 = vadd.f32 %v1103_v34, %v841_v39  ;;  %v982_v34 = vld [vmem:[%s1620_s12 + $0x18] sm:$0xff]  ;;  %v980_v39 = vld [vmem:[%s1620_s12 + $0x8] sm:$0xff] }
 0x5a0   :  { %1011 = vmatpush.msra.mxu1 %v982_v34 }
 0x5a1   :  { %v1514_v27 = vadd.f32 %v842_v40, %v1280_v2  ;;  %v979_v40 = vld [vmem:[%s1620_s12] sm:$0xff] }
 0x5a2   :  { %1012 = vmatpush.msra.mxu1 %v981_v35 }
 0x5a3   :  { %v849_v42 = vsel %vm50_vm0, %v1514_v27, 0.0 }
 0x5a4   :  { %850 = vadd.xlane.f32.xlu0 %v849_v42  ;;  %1013 = vmatpush.msra.mxu1 %v980_v39 }
 0x5a6   :  { %1014 = vmatpush.msra.mxu1 %v979_v40 }
 0x608   :  { %v848_v43 = vpop.xlane.xlu1 %847 }
 0x609   :  { %v852_v45 = vmul.f32 %v848_v43, %v1284_v10 }
 0x60b   :  { %v854_v7 = vsub.f32 %v1509_v37, %v852_v45 }
 0x60d   :  { %v856_v0 = vmul.f32 %v854_v7, %v854_v7 }
 0x60f   :  { %v858_v46 = vsel %vm50_vm0, %v856_v0, 0.0 }
 0x610   :  { %859 = vadd.xlane.f32.xlu2 %v858_v46 }
 0x617   :  { %v851_v47 = vpop.xlane.xlu0 %850 }
 0x618   :  { %v853_v48 = vmul.f32 %v851_v47, %v1284_v10 }
 0x61a   :  { %v855_v49 = vsub.f32 %v1514_v27, %v853_v48 }
 0x61c   :  { %v857_v2 = vmul.f32 %v855_v49, %v855_v49 }
 0x61e   :  { %v861_v50 = vsel %vm50_vm0, %v857_v2, 0.0 }
 0x61f   :  { %862 = vadd.xlane.f32.xlu1 %v861_v50 }
 0x683   :  { %v860_v54 = vpop.xlane.xlu2 %859 }
 0x684   :  { %v864_v56 = vmul.f32 %v860_v54, %v1284_v10 }
 0x686   :  { %v866_v63 = vadd.f32 1e-05, %v864_v56 }
 0x688   :  { %1146 = vrsqrt.f32 %v866_v63  ;;  %vm874_vm15 = vweird.f32 %v866_v63 }
 0x68e   :  { %v1147_v3 = vpop.eup %1146 }
 0x68f   :  { %v869_v4 = vmul.f32 %v1147_v3, %v866_v63  ;;  %vm875_vm8 = vweird.f32 %v1147_v3 }
 0x690   :  { %vm876_vm1 = vmor %vm874_vm15, %vm875_vm8 }
 0x691   :  { %v870_v6 = vmul.f32 %v1147_v3, %v869_v4 }
 0x692   :  { %v863_v8 = vpop.xlane.xlu1 %862 }
 0x693   :  { %v871_v9 = vmul.f32 0.5, %v870_v6  ;;  %v865_v12 = vmul.f32 %v863_v8, %v1284_v10 }
 0x695   :  { %v872_v13 = vsub.f32 1.5, %v871_v9  ;;  %v867_v14 = vadd.f32 1e-05, %v865_v12 }
 0x697   :  { %v873_v15 = vmul.f32 %v1147_v3, %v872_v13  ;;  %1148 = vrsqrt.f32 %v867_v14  ;;  %vm884_vm3 = vweird.f32 %v867_v14 }
 0x699   :  { %v877_v16 = vsel %vm876_vm1, %v1147_v3, %v873_v15 }
 0x69a   :  { %v888_v17 = vmul.f32 %v877_v16, %v854_v7 }
 0x69c   :  { %v894_v19 = vmul.f32 %v1104_v53, %v888_v17 }
 0x69d   :  { %v1149_v20 = vpop.eup %1148 }
 0x69e   :  { %v879_v10 = vmul.f32 %v1149_v20, %v867_v14  ;;  %v900_v58 = vadd.f32 %v1105_v18, %v894_v19  ;;  %vm885_vm2 = vweird.f32 %v1149_v20 }
 0x69f   :  { %vm886_vm4 = vmor %vm884_vm3, %vm885_vm2 }
 0x6a0   :  { %v880_v59 = vmul.f32 %v1149_v20, %v879_v10  ;;  %1072 = vmatmul.msk.f32.vlgmr.msrb.gmra.mxu0 %vm50_vm0, %v900_v58 }
 0x6a2   :  { %v881_v61 = vmul.f32 0.5, %v880_v59 }
 0x6a4   :  { %v882_v55 = vsub.f32 1.5, %v881_v61 }
 0x6a6   :  { %v883_v60 = vmul.f32 %v1149_v20, %v882_v55 }
 0x6a8   :  { %v887_v62 = vsel %vm886_vm4, %v1149_v20, %v883_v60  ;;  %v1107_v20 = vld [vmem:[%s1621_s13] ss:$0 sm:$0xff]  ;;  %s1194_s13 = smov 128  }
 0x6a9   :  { %v889_v1 = vmul.f32 %v887_v62, %v855_v49 }
 0x6ab   :  { %v895_v21 = vmul.f32 %v1104_v53, %v889_v1 }
 0x6ad   :  { %v901_v57 = vadd.f32 %v1105_v18, %v895_v21 }
 0x6af   :  { %1073 = vmatmul.msk.f32.gmra.mxu0 %vm50_vm0, %v901_v57 }
 0x71d   :  { %v933_v36 = vpop.f32.mrf.mxu0 }
 0x71e   :  { %v934_v38 = vadd.f32 %v1106_v33, %v933_v36 }
 0x720   :  { %v939_v42 = vmul.f32 -1.702, %v934_v38 }
 0x722   :  { %v941_v43 = vmul.f32 1.442695, %v939_v42 }
 0x724   :  { %1150 = vpow2.f32 %v941_v43 }
 0x72a   :  { %v1151_v45 = vpop.eup %1150 }
 0x72b   :  { %v945_v7 = vadd.f32 1.0, %v1151_v45 }
 0x72c   :  { %v936_v0 = vpop.f32.mrf.mxu0 }
 0x72d   :  { %1152 = vrcp.f32 %v945_v7  ;;  %v937_v46 = vadd.f32 %v1106_v33, %v936_v0  ;;  %v958_v51 = vand.u32 2147483648, %v945_v7  ;;  %v956_v52 = vand.u32 2147483647, %v945_v7 }
 0x72e   :  { %vm952_vm6 = vweird.f32 %v945_v7 }
 0x72f   :  { %v940_v47 = vmul.f32 -1.702, %v937_v46  ;;  %v959_v56 = vor.u32 1.1754944e-38, %v958_v51  ;;  %vm957_vm9 = vcmp.eq.f32.partialorder %v956_v52, 8.507059e+37 }
 0x731   :  { %v943_v48 = vmul.f32 1.442695, %v940_v47 }
 0x733   :  { %v1153_v49 = vpop.eup %1152  ;;  %1154 = vpow2.f32 %v943_v48 }
 0x734   :  { %v948_v2 = vmul.f32 %v1153_v49, %v945_v7  ;;  %vm953_vm5 = vweird.f32 %v1153_v49 }
 0x735   :  { %vm954_vm7 = vmor %vm952_vm6, %vm953_vm5 }
 0x736   :  { %v949_v50 = vsub.f32 1.0, %v948_v2 }
 0x738   :  { %v950_v5 = vmul.f32 %v1153_v49, %v949_v50 }
 0x739   :  { %v1155_v11 = vpop.eup %1154 }
 0x73a   :  { %v951_v54 = vadd.f32 %v1153_v49, %v950_v5  ;;  %v946_v63 = vadd.f32 1.0, %v1155_v11 }
 0x73c   :  { %v955_v3 = vsel %vm954_vm7, %v1153_v49, %v951_v54  ;;  %1156 = vrcp.f32 %v946_v63  ;;  %v973_v13 = vand.u32 2147483648, %v946_v63  ;;  %v971_v15 = vand.u32 2147483647, %v946_v63 }
 0x73d   :  { %v960_v4 = vsel %vm957_vm9, %v959_v56, %v955_v3  ;;  %vm967_vm11 = vweird.f32 %v946_v63 }
 0x73e   :  { %v977_v6 = vmul.f32 %v960_v4, %v934_v38  ;;  %v974_v16 = vor.u32 1.1754944e-38, %v973_v13  ;;  %vm972_vm13 = vcmp.eq.f32.partialorder %v971_v15, 8.507059e+37 }
 0x740   :  { %1015 = vmatmul.f32.vlgmr.msra.gmra.mxu1 %v977_v6 }
 0x742   :  { %v1157_v8 = vpop.eup %1156 }
 0x743   :  { %v963_v9 = vmul.f32 %v1157_v8, %v946_v63  ;;  %vm968_vm10 = vweird.f32 %v1157_v8 }
 0x744   :  { %vm969_vm12 = vmor %vm967_vm11, %vm968_vm10 }
 0x745   :  { %v964_v12 = vsub.f32 1.0, %v963_v9 }
 0x747   :  { %v965_v14 = vmul.f32 %v1157_v8, %v964_v12 }
 0x749   :  { %v966_v53 = vadd.f32 %v1157_v8, %v965_v14 }
 0x74b   :  { %v970_v17 = vsel %vm969_vm12, %v1157_v8, %v966_v53 }
 0x74c   :  { %v975_v18 = vsel %vm972_vm13, %v974_v16, %v970_v17 }
 0x74d   :  { %v978_v19 = vmul.f32 %v975_v18, %v937_v46 }
 0x74f   :  { %1018 = vmatmul.f32.gmra.mxu1 %v978_v19 }
 0x7bd   :  { %v1016_v10 = vpop.f32.mrf.mxu1 }
 0x7be   :  { %v1017_v58 = vadd.f32 %v1107_v20, %v1016_v10 }
 0x7c0   :  { %v1022_v59 = vadd.f32 %v1017_v58, %v1509_v37 }
 0x7c2   :  { %1024 = vst.msk [vmem:[#allocation2] sm:$0xff] %vm50_vm0, %v1022_v59 }
 0x7cc   :  { %v1019_v61 = vpop.f32.mrf.mxu1 }
 0x7cd   :  { %v1020_v55 = vadd.f32 %v1107_v20, %v1019_v61 }
 0x7cf   :  { %v1023_v60 = vadd.f32 %v1020_v55, %v1514_v27 }
 0x7d1   :  { %1025 = vst.msk [vmem:[#allocation2 + $0x8] sm:$0xff] %vm50_vm0, %v1023_v60 }
 0x7d2   :  { %1038 = dma.vmem_to_hbm [thread:$0]  %s1031_s23, 256, %s1033_s6, [#allocation3], %s1194_s13, %s1194_s13, %s1190_s16  }
 0x7d3   :  { %1182 = dma.done.wait [#allocation3], 256  }
 0x7d4   :  { %1183 = vsyncadd [#allocation3], 4294967040 }
 0x7d5   :  { %1043 = vsyncpa [#allocation3], 1 }

// kernel: tpu_custom_call.1
= control target key start
LH: loop header
LB: loop body
LE: loop exit
PB: predicated region body
PF: predicated region fallthrough
CT: control target
= control target key end

     0   :  { %vm50_vm0 = vcmask 261120   ;;  %s2857_s0 = inlined_call_operand.vmem [shape: f32[2,8,32], index: 0, kind: input, shape index: {}]   ;;  %s2858_s1 = inlined_call_operand.vmem [shape: f32[8,8], index: 1, kind: input, shape index: {}]   ;;  %s2859_s2 = inlined_call_operand.vmem [shape: f32[1,32], index: 2, kind: input, shape index: {}]   ;;  %s2860_s3 = inlined_call_operand.vmem [shape: f32[1,32], index: 3, kind: input, shape index: {}]   ;;  %s2861_s4 = inlined_call_operand.vmem [shape: f32[32,96], index: 4, kind: input, shape index: {}]   ;;  %s2862_s5 = inlined_call_operand.vmem [shape: f32[1,96], index: 5, kind: input, shape index: {}]   ;;  %s2863_s6 = inlined_call_operand.vmem [shape: f32[32,32], index: 6, kind: input, shape index: {}]   ;;  %s2864_s7 = inlined_call_operand.vmem [shape: f32[1,32], index: 7, kind: input, shape index: {}]   ;;  %s2865_s8 = inlined_call_operand.vmem [shape: f32[1,32], index: 8, kind: input, shape index: {}]   ;;  %s2866_s9 = inlined_call_operand.vmem [shape: f32[1,32], index: 9, kind: input, shape index: {}]   ;;  %s2867_s10 = inlined_call_operand.vmem [shape: f32[32,128], index: 10, kind: input, shape index: {}]   ;;  %s2868_s11 = inlined_call_operand.vmem [shape: f32[1,128], index: 11, kind: input, shape index: {}]   ;;  %s2869_s12 = inlined_call_operand.vmem [shape: f32[128,32], index: 12, kind: input, shape index: {}]   ;;  %s2870_s13 = inlined_call_operand.vmem [shape: f32[1,32], index: 13, kind: input, shape index: {}]   ;;  %s2871_s14 = inlined_call_operand.hbm [shape: f32[2,8,32], index: 14, kind: output, shape index: {}]  }
   0x1   :  { %v48_v0 = vld [vmem:[%s2857_s0] sm:$0xff] }
   0x2   :  { %v51_v1 = vsel %vm50_vm0, %v48_v0, 0.0 }
   0x3   :  { %52 = vadd.xlane.f32.xlu0 %v51_v1 }
   0x4   :  { %19 = vsyncpa [#allocation3], 0  ;;  %v49_v2 = vld [vmem:[%s2857_s0 + $0x8] sm:$0xff]  ;;  %v2104_v4 = vmov 32.0   ;;  %v117_v21 = vld [vmem:[%s2861_s4 + $0x18] sm:$0xff]  ;;  %s2106_s29 = smov 120  }
   0x5   :  { %v54_v3 = vsel %vm50_vm0, %v49_v2, 0.0  ;;  %2026 = vrcp.f32 %v2104_v4  ;;  %140 = vmatpush.msra.mxu0 %v117_v21  ;;  %v116_v22 = vld [vmem:[%s2861_s4 + $0x10] sm:$0xff]  ;;  %v115_v23 = vld [vmem:[%s2861_s4 + $0x8] sm:$0xff]  ;;  %v114_v24 = vld [vmem:[%s2861_s4] sm:$0xff]  ;;  %s2107_s30 = smov 112   ;;  %vm172_vm8 = vcmask 1047556  }
   0x6   :  { %v2018_v39 = vld [vmem:[%s2859_s2] ss:$0 sm:$0xff]  ;;  %v2109_v60 = vmov 1983009808   ;;  %v2110_v4 = vmov 1934713408  }
   0x7   :  { %141 = vmatpush.msra.mxu0 %v116_v22  ;;  %v2019_v43 = vld [vmem:[%s2860_s3] ss:$0 sm:$0xff]  ;;  %s2105_s3 = smov 104   ;;  %v177_v61 = vunpack.c.l.s4 %v2109_v60  ;;  %s2111_s15 = smov 64   ;;  %vm881_vm9 = vcmask 64512  }
   0x8   :  { %v2020_v53 = vld [vmem:[%s2862_s5] ss:$0 sm:$0xff]  ;;  %s2108_s5 = smov 96   ;;  %s2113_s18 = smov 24  }
   0x9   :  { %142 = vmatpush.msra.mxu0 %v115_v23  ;;  %v2254_v1 = vunpack.c.0.s8 %v177_v61  ;;  %s2114_s19 = smov 8   ;;  %s1943_s2 = sshll.u32 %s2871_s14, 4  ;;  %s1944_s2 = int_to_ptr.hbm [resolvable:$true] %s1943_s2 }
   0xa   :  { %s2115_s28 = smov [#allocation2]  }
   0xb   :  { %55 = vadd.xlane.f32.xlu0 %v54_v3  ;;  %v2027_v5 = vpop.eup %2026  ;;  %143 = vmatpush.msra.mxu0 %v114_v24 }
   0xc   :  { %v58_v6 = vmul.f32 32.0, %v2027_v5  ;;  %vm62_vm1 = vweird.f32 %v2027_v5 }
   0xe   :  { %v59_v7 = vsub.f32 1.0, %v58_v6 }
  0x10   :  { %v60_v8 = vmul.f32 %v2027_v5, %v59_v7 }
  0x12   :  { %v61_v9 = vadd.f32 %v2027_v5, %v60_v8 }
  0x14   :  { %v2200_v10 = vsel %vm62_vm1, %v2027_v5, %v61_v9  ;;  %v201_v5 = vunpack.c.l.s4 %v2110_v4 }
  0x76   :  { %v53_v11 = vpop.xlane.xlu0 %52 }
  0x77   :  { %v64_v12 = vmul.f32 %v2200_v10, %v53_v11 }
  0x79   :  { %v66_v13 = vsub.f32 %v48_v0, %v64_v12 }
  0x7b   :  { %v68_v14 = vmul.f32 %v66_v13, %v66_v13 }
  0x7d   :  { %v70_v15 = vsel %vm50_vm0, %v68_v14, 0.0 }
  0x7e   :  { %71 = vadd.xlane.f32.xlu1 %v70_v15  ;;  %v56_v16 = vpop.xlane.xlu0 %55  ;;  %v2270_v15 = vunpack.c.0.s8 %v201_v5 }
  0x7f   :  { %v65_v17 = vmul.f32 %v2200_v10, %v56_v16 }
  0x81   :  { %v67_v18 = vsub.f32 %v49_v2, %v65_v17 }
  0x83   :  { %v69_v19 = vmul.f32 %v67_v18, %v67_v18 }
  0x85   :  { %v73_v20 = vsel %vm50_vm0, %v69_v19, 0.0 }
  0x86   :  { %74 = vadd.xlane.f32.xlu1 %v73_v20 }
  0xf1   :  { %v72_v25 = vpop.xlane.xlu1 %71 }
  0xf2   :  { %v76_v26 = vmul.f32 %v72_v25, %v2200_v10 }
  0xf4   :  { %v78_v27 = vadd.f32 1e-05, %v76_v26 }
  0xf6   :  { %2028 = vrsqrt.f32 %v78_v27  ;;  %vm86_vm3 = vweird.f32 %v78_v27 }
  0xf9   :  { %v75_v28 = vpop.xlane.xlu1 %74 }
  0xfa   :  { %v77_v29 = vmul.f32 %v75_v28, %v2200_v10 }
  0xfc   :  { %v2029_v30 = vpop.eup %2028  ;;  %v79_v31 = vadd.f32 1e-05, %v77_v29 }
  0xfd   :  { %v81_v32 = vmul.f32 %v2029_v30, %v78_v27  ;;  %vm87_vm2 = vweird.f32 %v2029_v30 }
  0xfe   :  { %2030 = vrsqrt.f32 %v79_v31  ;;  %vm88_vm4 = vmor %vm86_vm3, %vm87_vm2  ;;  %vm96_vm5 = vweird.f32 %v79_v31 }
  0xff   :  { %v82_v33 = vmul.f32 %v2029_v30, %v81_v32 }
 0x101   :  { %v83_v34 = vmul.f32 0.5, %v82_v33 }
 0x103   :  { %v84_v35 = vsub.f32 1.5, %v83_v34 }
 0x104   :  { %v2031_v36 = vpop.eup %2030 }
 0x105   :  { %v85_v37 = vmul.f32 %v2029_v30, %v84_v35  ;;  %v91_v38 = vmul.f32 %v2031_v36, %v79_v31  ;;  %vm97_vm6 = vweird.f32 %v2031_v36 }
 0x106   :  { %vm98_vm7 = vmor %vm96_vm5, %vm97_vm6 }
 0x107   :  { %v89_v40 = vsel %vm88_vm4, %v2029_v30, %v85_v37  ;;  %v92_v41 = vmul.f32 %v2031_v36, %v91_v38 }
 0x108   :  { %v100_v42 = vmul.f32 %v89_v40, %v66_v13 }
 0x109   :  { %v93_v44 = vmul.f32 0.5, %v92_v41 }
 0x10a   :  { %v106_v45 = vmul.f32 %v2018_v39, %v100_v42 }
 0x10b   :  { %v94_v46 = vsub.f32 1.5, %v93_v44 }
 0x10c   :  { %v112_v47 = vadd.f32 %v2019_v43, %v106_v45 }
 0x10d   :  { %v95_v48 = vmul.f32 %v2031_v36, %v94_v46 }
 0x10e   :  { %1955 = vmatmul.msk.f32.vlgmr.msra.gmra.mxu0 %vm50_vm0, %v112_v47 }
 0x10f   :  { %v99_v49 = vsel %vm98_vm7, %v2031_v36, %v95_v48 }
 0x110   :  { %v101_v50 = vmul.f32 %v99_v49, %v67_v18 }
 0x112   :  { %v107_v51 = vmul.f32 %v2018_v39, %v101_v50 }
 0x114   :  { %v113_v52 = vadd.f32 %v2019_v43, %v107_v51 }
 0x116   :  { %1956 = vmatmul.msk.f32.gmra.mxu0 %vm50_vm0, %v113_v52 }
 0x18b   :  { %v145_v54 = vpop.f32.mrf.mxu0 }
 0x18c   :  { %v2231_v55 = vadd.f32 %v2020_v53, %v145_v54 }
 0x18e   :  { %165 = vrot.lane.b32.xlu0 %v2231_v55, %s2105_s3  ;;  %153 = vrot.lane.b32.xlu2 %v2231_v55, %s2106_s29  ;;  %v174_v0 = vrot.slane %v2231_v55, 4 }
 0x193   :  { %v148_v56 = vpop.f32.mrf.mxu0 }
 0x194   :  { %v2235_v57 = vadd.f32 %v2020_v53, %v148_v56 }
 0x196   :  { %159 = vrot.lane.b32.xlu2 %v2231_v55, %s2107_s30  ;;  %155 = vrot.lane.b32.xlu1 %v2235_v57, %s2106_s29  ;;  %v230_v11 = vrot.slane %v2235_v57, 4 }
 0x19e   :  { %161 = vrot.lane.b32.xlu2 %v2235_v57, %s2107_s30 }
 0x1a6   :  { %167 = vrot.lane.b32.xlu2 %v2235_v57, %s2105_s3  ;;  %s1941_s3 = sshll.u32 %s2115_s28, 4  ;;  %s1942_s3 = int_to_ptr.vmem [resolvable:$true] %s1941_s3 }
 0x1ae   :  { %392 = vrot.lane.b32.xlu2 %v2231_v55, %s2108_s5 }
 0x1e8   :  { %v154_v58 = vpop.permute.xlu2 %153 }
 0x1e9   :  { %396 = vrot.lane.b32.xlu0 %v154_v58, %s2108_s5  ;;  %v186_v7 = vrot.slane %v154_v58, 4  ;;  %v1998_v36 = vpack.i.bf16 %v154_v58, %v2231_v55 }
 0x1f0   :  { %v2244_v59 = vpop.permute.xlu2 %159 }
 0x1f1   :  { %394 = vrot.lane.b32.xlu0 %v2235_v57, %s2108_s5  ;;  %400 = vrot.lane.b32.xlu2 %v2244_v59, %s2108_s5  ;;  %v171_v62 = vrot.slane %v2244_v59, 4  ;;  %v175_v2 = vsel %vm172_vm8, %v2244_v59, %v174_v0 }
 0x1f2   :  { %v183_v6 = vperm.slane %v175_v2, %v2254_v1 }
 0x1f3   :  { %v173_v3 = vsel %vm172_vm8, %v171_v62, %v2231_v55 }
 0x1f4   :  { %v179_v8 = vperm.slane %v173_v3, %v2254_v1  ;;  %v210_v18 = vrot.slane %v183_v6, 4 }
 0x1f6   :  { %v198_v21 = vrot.slane %v179_v8, 4 }
 0x1f8   :  { %v2251_v63 = vpop.permute.xlu2 %161 }
 0x1f9   :  { %v228_v9 = vrot.slane %v2251_v63, 4  ;;  %v231_v14 = vsel %vm172_vm8, %v2251_v63, %v230_v11 }
 0x1fa   :  { %v239_v24 = vperm.slane %v231_v14, %v2254_v1 }
 0x1fb   :  { %v229_v22 = vsel %vm172_vm8, %v228_v9, %v2235_v57 }
 0x1fc   :  { %v235_v29 = vperm.slane %v229_v22, %v2254_v1  ;;  %v266_v37 = vrot.slane %v239_v24, 4 }
 0x1fe   :  { %v254_v45 = vrot.slane %v235_v29, 4 }
 0x200   :  { %v2264_v12 = vpop.permute.xlu2 %167  ;;  %v2266_v13 = vpop.permute.xlu0 %165 }
 0x201   :  { %v184_v16 = vrot.slane %v2266_v13, 4  ;;  %v187_v17 = vsel %vm172_vm8, %v2266_v13, %v186_v7  ;;  %406 = vrot.lane.b32.xlu0 %v2264_v12, %s2108_s5  ;;  %404 = vrot.lane.b32.xlu1 %v2266_v13, %s2108_s5  ;;  %v2013_v20 = vpack.i.bf16 %v2264_v12, %v2251_v63  ;;  %v240_v38 = vrot.slane %v2264_v12, 4 }
 0x202   :  { %v195_v19 = vperm.slane %v187_v17, %v2254_v1 }
 0x203   :  { %v185_v23 = vsel %vm172_vm8, %v184_v16, %v154_v58 }
 0x204   :  { %v191_v25 = vperm.slane %v185_v23, %v2254_v1  ;;  %v208_v26 = vrot.slane %v195_v19, 4  ;;  %v211_v27 = vsel %vm172_vm8, %v195_v19, %v210_v18 }
 0x205   :  { %v219_v28 = vperm.slane %v211_v27, %v2270_v15 }
 0x206   :  { %v196_v30 = vrot.slane %v191_v25, 4  ;;  %v199_v31 = vsel %vm172_vm8, %v191_v25, %v198_v21  ;;  %v209_v32 = vsel %vm172_vm8, %v208_v26, %v183_v6 }
 0x207   :  { %v207_v33 = vperm.slane %v199_v31, %v2270_v15  ;;  %v215_v34 = vperm.slane %v209_v32, %v2270_v15  ;;  %v226_v35 = vrot.slane %v219_v28, 4 }
 0x208   :  { %v197_v39 = vsel %vm172_vm8, %v196_v30, %v179_v8  ;;  %v2297_v40 = vpop.permute.xlu1 %155 }
 0x209   :  { %v203_v41 = vperm.slane %v197_v39, %v2270_v15  ;;  %v222_v42 = vrot.slane %v207_v33, 4  ;;  %v224_v43 = vrot.slane %v215_v34, 4  ;;  %v227_v44 = vsel %vm172_vm8, 0.0, %v226_v35  ;;  %1999 = vrot.lane.b32.xlu0 %v1998_v36, %s2111_s15  ;;  %398 = vrot.lane.b32.xlu2 %v2297_v40, %s2108_s5 }
 0x20a   :  { %v300_v46 = vrot.slane %v227_v44, 4  ;;  %v241_v47 = vsel %vm172_vm8, %v240_v38, %v2297_v40  ;;  %v242_v48 = vrot.slane %v2297_v40, 4  ;;  %402 = vrot.lane.b32.xlu1 %v2251_v63, %s2108_s5  ;;  %v295_v56 = vsel %vm172_vm8, %v226_v35, %v215_v34 }
 0x20b   :  { %v247_v49 = vperm.slane %v241_v47, %v2254_v1  ;;  %v220_v50 = vrot.slane %v203_v41, 4  ;;  %v223_v51 = vsel %vm172_vm8, 0.0, %v222_v42  ;;  %v225_v52 = vsel %vm172_vm8, 0.0, %v224_v43 }
 0x20c   :  { %v243_v53 = vsel %vm172_vm8, %v2264_v12, %v242_v48  ;;  %v284_v54 = vsel %vm172_vm8, %v222_v42, %v203_v41  ;;  %v289_v55 = vrot.slane %v223_v51, 4  ;;  %v299_v4 = vperm.slane %v295_v56, %v2254_v1 }
 0x20d   :  { %v251_v58 = vperm.slane %v243_v53, %v2254_v1  ;;  %v252_v60 = vrot.slane %v247_v49, 4  ;;  %v255_v61 = vsel %vm172_vm8, %v247_v49, %v254_v45  ;;  %v221_v62 = vsel %vm172_vm8, 0.0, %v220_v50 }
 0x20e   :  { %v263_v0 = vperm.slane %v255_v61, %v2270_v15  ;;  %v288_v2 = vperm.slane %v284_v54, %v2254_v1  ;;  %v290_v3 = vsel %vm172_vm8, %v289_v55, %v221_v62  ;;  %v301_v16 = vsel %vm172_vm8, %v300_v46, %v225_v52 }
 0x20f   :  { %v253_v5 = vsel %vm172_vm8, %v252_v60, %v235_v29  ;;  %v264_v6 = vrot.slane %v251_v58, 4  ;;  %v267_v7 = vsel %vm172_vm8, %v251_v58, %v266_v37  ;;  %v294_v8 = vperm.slane %v290_v3, %v2254_v1 }
 0x210   :  { %v259_v9 = vperm.slane %v253_v5, %v2270_v15  ;;  %v275_v11 = vperm.slane %v267_v7, %v2270_v15  ;;  %v278_v14 = vrot.slane %v263_v0, 4  ;;  %v305_v18 = vperm.slane %v301_v16, %v2254_v1 }
 0x211   :  { %v265_v17 = vsel %vm172_vm8, %v264_v6, %v239_v24  ;;  %v308_v19 = vrot.slane %v288_v2, 4  ;;  %v320_v21 = vrot.slane %v299_v4, 4  ;;  %v306_v30 = vrot.slane %v294_v8, 4 }
 0x212   :  { %v271_v22 = vperm.slane %v265_v17, %v2270_v15  ;;  %v276_v23 = vrot.slane %v259_v9, 4  ;;  %v279_v25 = vsel %vm172_vm8, 0.0, %v278_v14  ;;  %v282_v26 = vrot.slane %v275_v11, 4 }
 0x213   :  { %v343_v27 = vrot.slane %v279_v25, 4  ;;  %v309_v28 = vsel %vm172_vm8, %v294_v8, %v308_v19  ;;  %v321_v29 = vsel %vm172_vm8, %v305_v18, %v320_v21  ;;  %v307_v35 = vsel %vm172_vm8, %v306_v30, %v288_v2  ;;  %v393_v25 = vpop.permute.xlu2 %392 }
 0x214   :  { %v277_v31 = vsel %vm172_vm8, 0.0, %v276_v23  ;;  %v283_v24 = vsel %vm172_vm8, 0.0, %v282_v26  ;;  %v317_v32 = vperm.slane %v309_v28, %v2270_v15  ;;  %v329_v33 = vperm.slane %v321_v29, %v2270_v15 }
 0x215   :  { %v354_v34 = vrot.slane %v283_v24, 4  ;;  %v318_v36 = vrot.slane %v305_v18, 4  ;;  %v280_v37 = vrot.slane %v271_v22, 4  ;;  %v313_v41 = vperm.slane %v307_v35, %v2270_v15 }
 0x216   :  { %v334_v38 = vrot.slane %v329_v33, 4  ;;  %v336_v39 = vrot.slane %v317_v32, 4  ;;  %v338_v42 = vsel %vm172_vm8, %v278_v14, %v259_v9  ;;  %v344_v46 = vsel %vm172_vm8, %v343_v27, %v277_v31 }
 0x217   :  { %v319_v43 = vsel %vm172_vm8, %v318_v36, %v299_v4  ;;  %v281_v44 = vsel %vm172_vm8, 0.0, %v280_v37  ;;  %v342_v45 = vperm.slane %v338_v42, %v2254_v1  ;;  %v332_v49 = vrot.slane %v313_v41, 4 }
 0x218   :  { %v2347_v47 = vsel %vm172_vm8, %v334_v38, %v317_v32  ;;  %v325_v48 = vperm.slane %v319_v43, %v2270_v15  ;;  %v348_v50 = vperm.slane %v344_v46, %v2254_v1  ;;  %v349_v51 = vsel %vm172_vm8, %v282_v26, %v271_v22 }
 0x219   :  { %v355_v52 = vsel %vm172_vm8, %v354_v34, %v281_v44  ;;  %v2354_v53 = vsel %vm172_vm8, %v329_v33, %v336_v39  ;;  %v362_v54 = vrot.slane %v342_v45, 4  ;;  %v353_v58 = vperm.slane %v349_v51, %v2254_v1 }
 0x21a   :  { %v330_v55 = vrot.slane %v325_v48, 4  ;;  %v2357_v56 = vsel %vm172_vm8, %v325_v48, %v332_v49  ;;  %v359_v60 = vperm.slane %v355_v52, %v2254_v1  ;;  %v360_v61 = vrot.slane %v348_v50, 4 }
 0x21b   :  { %v363_v62 = vsel %vm172_vm8, %v348_v50, %v362_v54  ;;  %v374_v3 = vrot.slane %v353_v58, 4  ;;  %v418_v30 = vrot.slane %v393_v25, 4 }
 0x21c   :  { %v2363_v0 = vsel %vm172_vm8, %v330_v55, %v313_v41  ;;  %v372_v2 = vrot.slane %v359_v60, 4  ;;  %v371_v4 = vperm.slane %v363_v62, %v2270_v15  ;;  %v361_v5 = vsel %vm172_vm8, %v360_v61, %v342_v45 }
 0x21d   :  { %v367_v6 = vperm.slane %v361_v5, %v2270_v15  ;;  %v375_v8 = vsel %vm172_vm8, %v359_v60, %v374_v3 }
 0x21e   :  { %v373_v7 = vsel %vm172_vm8, %v372_v2, %v353_v58  ;;  %v390_v9 = vrot.slane %v371_v4, 4  ;;  %v383_v14 = vperm.slane %v375_v8, %v2270_v15 }
 0x21f   :  { %v379_v11 = vperm.slane %v373_v7, %v2270_v15  ;;  %v386_v16 = vrot.slane %v367_v6, 4 }
 0x220   :  { %v388_v18 = vrot.slane %v383_v14, 4  ;;  %v2373_v19 = vsel %vm172_vm8, %v383_v14, %v390_v9 }
 0x221   :  { %v384_v17 = vrot.slane %v379_v11, 4  ;;  %v2376_v21 = vsel %vm172_vm8, %v379_v11, %v386_v16 }
 0x222   :  { %v2379_v22 = vsel %vm172_vm8, %v388_v18, %v371_v4 }
 0x223   :  { %v2382_v23 = vsel %vm172_vm8, %v384_v17, %v367_v6 }
 0x24b   :  { %v401_v27 = vpop.permute.xlu2 %400 }
 0x24c   :  { %v416_v28 = vrot.slane %v401_v27, 4  ;;  %v419_v31 = vsel %vm172_vm8, %v401_v27, %v418_v30 }
 0x24d   :  { %v427_v32 = vperm.slane %v419_v31, %v2254_v1 }
 0x24e   :  { %v417_v24 = vsel %vm172_vm8, %v416_v28, %v393_v25 }
 0x24f   :  { %v423_v34 = vperm.slane %v417_v24, %v2254_v1  ;;  %v454_v43 = vrot.slane %v427_v32, 4 }
 0x251   :  { %v442_v45 = vrot.slane %v423_v34, 4 }
 0x25b   :  { %v397_v26 = vpop.permute.xlu0 %396 }
 0x25c   :  { %v430_v35 = vrot.slane %v397_v26, 4 }
 0x263   :  { %v395_v29 = vpop.permute.xlu0 %394  ;;  %v399_v33 = vpop.permute.xlu2 %398 }
 0x264   :  { %v486_v38 = vrot.slane %v399_v33, 4  ;;  %v474_v5 = vrot.slane %v395_v29, 4 }
 0x273   :  { %v405_v36 = vpop.permute.xlu1 %404  ;;  %v407_v37 = vpop.permute.xlu0 %406 }
 0x274   :  { %v428_v39 = vrot.slane %v405_v36, 4  ;;  %v431_v41 = vsel %vm172_vm8, %v405_v36, %v430_v35  ;;  %v484_v42 = vrot.slane %v407_v37, 4  ;;  %v487_v48 = vsel %vm172_vm8, %v407_v37, %v486_v38 }
 0x275   :  { %v439_v44 = vperm.slane %v431_v41, %v2254_v1  ;;  %v495_v61 = vperm.slane %v487_v48, %v2254_v1 }
 0x276   :  { %v429_v46 = vsel %vm172_vm8, %v428_v39, %v397_v26  ;;  %v485_v52 = vsel %vm172_vm8, %v484_v42, %v399_v33 }
 0x277   :  { %v435_v49 = vperm.slane %v429_v46, %v2254_v1  ;;  %v452_v50 = vrot.slane %v439_v44, 4  ;;  %v455_v51 = vsel %vm172_vm8, %v439_v44, %v454_v43  ;;  %v491_v4 = vperm.slane %v485_v52, %v2254_v1 }
 0x278   :  { %v463_v54 = vperm.slane %v455_v51, %v2270_v15  ;;  %v508_v27 = vrot.slane %v495_v61, 4 }
 0x279   :  { %v440_v55 = vrot.slane %v435_v49, 4  ;;  %v443_v58 = vsel %vm172_vm8, %v435_v49, %v442_v45  ;;  %v453_v60 = vsel %vm172_vm8, %v452_v50, %v427_v32  ;;  %v496_v26 = vrot.slane %v491_v4, 4 }
 0x27a   :  { %v451_v62 = vperm.slane %v443_v58, %v2270_v15  ;;  %v459_v2 = vperm.slane %v453_v60, %v2270_v15  ;;  %v470_v3 = vrot.slane %v463_v54, 4 }
 0x27b   :  { %v441_v6 = vsel %vm172_vm8, %v440_v55, %v423_v34 }
 0x27c   :  { %v447_v7 = vperm.slane %v441_v6, %v2270_v15  ;;  %v466_v8 = vrot.slane %v451_v62, 4  ;;  %v471_v9 = vsel %vm172_vm8, 0.0, %v470_v3  ;;  %v403_v11 = vpop.permute.xlu1 %402  ;;  %v468_v14 = vrot.slane %v459_v2, 4 }
 0x27d   :  { %v539_v16 = vsel %vm172_vm8, %v470_v3, %v459_v2  ;;  %v472_v17 = vrot.slane %v403_v11, 4  ;;  %v475_v18 = vsel %vm172_vm8, %v403_v11, %v474_v5  ;;  %v544_v24 = vrot.slane %v471_v9, 4 }
 0x27e   :  { %v467_v25 = vsel %vm172_vm8, 0.0, %v466_v8  ;;  %v483_v28 = vperm.slane %v475_v18, %v2254_v1  ;;  %v543_v31 = vperm.slane %v539_v16, %v2254_v1  ;;  %v464_v36 = vrot.slane %v447_v7, 4 }
 0x27f   :  { %v533_v30 = vrot.slane %v467_v25, 4  ;;  %v473_v32 = vsel %vm172_vm8, %v472_v17, %v395_v29  ;;  %v469_v37 = vsel %vm172_vm8, 0.0, %v468_v14  ;;  %v528_v39 = vsel %vm172_vm8, %v466_v8, %v447_v7 }
 0x280   :  { %v479_v33 = vperm.slane %v473_v32, %v2254_v1  ;;  %v509_v34 = vsel %vm172_vm8, %v508_v27, %v483_v28  ;;  %v510_v35 = vrot.slane %v483_v28, 4  ;;  %v465_v44 = vsel %vm172_vm8, 0.0, %v464_v36 }
 0x281   :  { %v515_v38 = vperm.slane %v509_v34, %v2270_v15  ;;  %v532_v48 = vperm.slane %v528_v39, %v2254_v1  ;;  %v534_v50 = vsel %vm172_vm8, %v533_v30, %v465_v44  ;;  %v545_v51 = vsel %vm172_vm8, %v544_v24, %v469_v37 }
 0x282   :  { %v497_v41 = vsel %vm172_vm8, %v496_v26, %v479_v33  ;;  %v498_v42 = vrot.slane %v479_v33, 4  ;;  %v511_v43 = vsel %vm172_vm8, %v495_v61, %v510_v35  ;;  %v564_v52 = vrot.slane %v543_v31, 4 }
 0x283   :  { %v503_v29 = vperm.slane %v497_v41, %v2270_v15  ;;  %v519_v45 = vperm.slane %v511_v43, %v2270_v15  ;;  %v524_v46 = vrot.slane %v515_v38, 4  ;;  %v538_v60 = vperm.slane %v534_v50, %v2254_v1 }
 0x284   :  { %v499_v49 = vsel %vm172_vm8, %v491_v4, %v498_v42  ;;  %v549_v61 = vperm.slane %v545_v51, %v2254_v1  ;;  %v552_v62 = vrot.slane %v532_v48, 4 }
 0x285   :  { %v507_v54 = vperm.slane %v499_v49, %v2270_v15  ;;  %v526_v55 = vrot.slane %v519_v45, 4  ;;  %v520_v58 = vrot.slane %v503_v29, 4  ;;  %v525_v3 = vsel %vm172_vm8, 0.0, %v524_v46 }
 0x286   :  { %v553_v8 = vsel %vm172_vm8, %v538_v60, %v552_v62  ;;  %v565_v9 = vsel %vm172_vm8, %v549_v61, %v564_v52  ;;  %v550_v17 = vrot.slane %v538_v60, 4  ;;  %v562_v27 = vrot.slane %v549_v61, 4 }
 0x287   :  { %v522_v2 = vrot.slane %v507_v54, 4  ;;  %v527_v4 = vsel %vm172_vm8, 0.0, %v526_v55  ;;  %v593_v5 = vsel %vm172_vm8, %v526_v55, %v515_v38  ;;  %v561_v14 = vperm.slane %v553_v8, %v2270_v15 }
 0x288   :  { %v597_v6 = vperm.slane %v593_v5, %v2254_v1  ;;  %v598_v7 = vrot.slane %v527_v4, 4  ;;  %v573_v16 = vperm.slane %v565_v9, %v2270_v15  ;;  %v521_v28 = vsel %vm172_vm8, 0.0, %v520_v58 }
 0x289   :  { %v523_v11 = vsel %vm172_vm8, 0.0, %v522_v2  ;;  %v551_v32 = vsel %vm172_vm8, %v550_v17, %v532_v48  ;;  %v563_v34 = vsel %vm172_vm8, %v562_v27, %v543_v31  ;;  %v582_v35 = vsel %vm172_vm8, %v522_v2, %v503_v29 }
 0x28a   :  { %v587_v18 = vrot.slane %v523_v11, 4  ;;  %v599_v25 = vsel %vm172_vm8, %v598_v7, %v525_v3  ;;  %v618_v26 = vrot.slane %v597_v6, 4  ;;  %v578_v24 = vrot.slane %v573_v16, 4 }
 0x28b   :  { %v603_v30 = vperm.slane %v599_v25, %v2254_v1  ;;  %v557_v33 = vperm.slane %v551_v32, %v2270_v15  ;;  %v569_v39 = vperm.slane %v563_v34, %v2270_v15  ;;  %v586_v42 = vperm.slane %v582_v35, %v2254_v1 }
 0x28c   :  { %v588_v36 = vsel %vm172_vm8, %v587_v18, %v521_v28  ;;  %v579_v38 = vsel %vm172_vm8, %v578_v24, %v561_v14  ;;  %v580_v50 = vrot.slane %v561_v14, 4 }
 0x28d   :  { %v616_v37 = vrot.slane %v603_v30, 4  ;;  %1961 = vmatpush.xpose.msk.msra.mxu3 %vm881_vm9, %v579_v38  ;;  %v576_v41 = vrot.slane %v557_v33, 4  ;;  %v592_v43 = vperm.slane %v588_v36, %v2254_v1  ;;  %v619_v44 = vsel %vm172_vm8, %v603_v30, %v618_v26 }
 0x28e   :  { %v574_v45 = vrot.slane %v569_v39, 4  ;;  %v606_v48 = vrot.slane %v586_v42, 4  ;;  %v627_v49 = vperm.slane %v619_v44, %v2270_v15  ;;  %v2008_v38 = vpack.i.bf16 %v2297_v40, %v2235_v57 }
 0x28f   :  { %v617_v31 = vsel %vm172_vm8, %v616_v37, %v597_v6  ;;  %v577_v29 = vsel %vm172_vm8, %v569_v39, %v576_v41  ;;  %v604_v46 = vrot.slane %v592_v43, 4  ;;  %v2003_v37 = vpack.i.bf16 %v2266_v13, %v2244_v59  ;;  %v2000_v39 = vpop.permute.xlu0 %1999 }
 0x290   :  { %v575_v51 = vsel %vm172_vm8, %v574_v45, %v557_v33  ;;  %1962 = vmatmul.msk.f32.vlgmr.msra.gmra.mxu3 %vm881_vm9, %v2347_v47  ;;  %v607_v54 = vsel %vm172_vm8, %v592_v43, %v606_v48  ;;  %v623_v58 = vperm.slane %v617_v31, %v2270_v15  ;;  %v632_v61 = vrot.slane %v627_v49, 4 }
 0x291   :  { %1957 = vmatpush.xpose.msk.msra.mxu2 %vm881_vm9, %v575_v51  ;;  %v605_v52 = vsel %vm172_vm8, %v604_v46, %v586_v42  ;;  %v615_v60 = vperm.slane %v607_v54, %v2270_v15  ;;  %v581_v47 = vsel %vm172_vm8, %v573_v16, %v580_v50 }
 0x292   :  { %v611_v55 = vperm.slane %v605_v52, %v2270_v15  ;;  %v628_v2 = vrot.slane %v623_v58, 4 }
 0x293   :  { %v633_v4 = vsel %vm172_vm8, %v632_v61, %v615_v60 }
 0x294   :  { %1958 = vmatmul.msk.f32.vlgmr.msra.gmra.mxu2 %vm881_vm9, %v2363_v0  ;;  %v630_v62 = vrot.slane %v611_v55, 4  ;;  %v629_v5 = vsel %vm172_vm8, %v628_v2, %v611_v55  ;;  %v634_v0 = vrot.slane %v615_v60, 4  ;;  %v2002_v55 = vunpack.i.h.bf16 %v2000_v39 }
 0x295   :  { %1959 = vmatpush.xpose.msk.msrb.mxu2 %vm881_vm9, %v577_v29  ;;  %v2001_v60 = vunpack.i.l.bf16 %v2000_v39 }
 0x296   :  { %v631_v3 = vsel %vm172_vm8, %v623_v58, %v630_v62  ;;  %v635_v6 = vsel %vm172_vm8, %v627_v49, %v634_v0  ;;  %v674_v61 = vrot.slane %v2002_v55, 4 }
 0x297   :  { %1967 = vmatpush.xpose.msk.msrb.mxu3 %vm881_vm9, %v631_v3  ;;  %v662_v2 = vrot.slane %v2001_v60, 4 }
 0x299   :  { %1963 = vmatpush.xpose.msk.msra.mxu2 %vm881_vm9, %v581_v47 }
 0x29a   :  { %1968 = vmatmul.msk.f32.vlgmr.msrb.gmra.mxu3 %vm881_vm9, %v2376_v21 }
 0x29b   :  { %1969 = vmatpush.xpose.msk.msra.mxu3 %vm881_vm9, %v633_v4 }
 0x29c   :  { %1960 = vmatmul.msk.f32.vlgmr.msrb.gmra.mxu2 %vm881_vm9, %v2357_v56  ;;  %v880_v56 = vld [vmem:[%s2858_s1] sm:$0xff]  ;;  %s2112_s1 = smov 16  }
 0x29d   :  { %1965 = vmatpush.xpose.msk.msrb.mxu2 %vm881_vm9, %v629_v5 }
 0x2a2   :  { %1970 = vmatmul.msk.f32.vlgmr.msra.gmra.mxu3 %vm881_vm9, %v2379_v22 }
 0x2a4   :  { %1964 = vmatmul.msk.f32.vlgmr.msra.gmra.mxu2 %vm881_vm9, %v2354_v53 }
 0x2a5   :  { %1971 = vmatpush.xpose.msk.msra.mxu2 %vm881_vm9, %v635_v6 }
 0x2ac   :  { %1966 = vmatmul.msk.f32.vlgmr.msrb.gmra.mxu2 %vm881_vm9, %v2382_v23 }
 0x2b4   :  { %1972 = vmatmul.msk.f32.vlgmr.msra.gmra.mxu2 %vm881_vm9, %v2373_v19 }
 0x313   :  { %v957_v21 = vpop.f32.mrf.mxu3 }
 0x314   :  { %v958_v7 = vadd.f32 %v957_v21, %v880_v56 }
 0x316   :  { %v1096_v22 = vsel %vm881_vm9, %v958_v7, -inf }
 0x317   :  { %v905_v8 = vpop.f32.mrf.mxu2  ;;  %1097 = vmax.xlane.f32.xlu0 %v1096_v22 }
 0x318   :  { %v906_v53 = vadd.f32 %v905_v8, %v880_v56 }
 0x31a   :  { %v1090_v9 = vsel %vm881_vm9, %v906_v53, -inf }
 0x31b   :  { %1091 = vmax.xlane.f32.xlu2 %v1090_v9 }
 0x31d   :  { %v1035_v11 = vpop.f32.mrf.mxu3 }
 0x31e   :  { %v2493_v14 = vadd.f32 %v1035_v11, %v880_v56 }
 0x31f   :  { %v931_v23 = vpop.f32.mrf.mxu2 }
 0x320   :  { %v932_v16 = vadd.f32 %v931_v23, %v880_v56  ;;  %v1105_v19 = vsel %vm881_vm9, %v2493_v14, -inf }
 0x321   :  { %1106 = vmax.xlane.f32.xlu1 %v1105_v19 }
 0x322   :  { %v1093_v17 = vsel %vm881_vm9, %v932_v16, -inf }
 0x323   :  { %1094 = vmax.xlane.f32.xlu2 %v1093_v17 }
 0x325   :  { %v1061_v18 = vpop.f32.mrf.mxu3 }
 0x326   :  { %v1062_v25 = vadd.f32 %v1061_v18, %v880_v56 }
 0x327   :  { %v983_v26 = vpop.f32.mrf.mxu2 }
 0x328   :  { %v984_v27 = vadd.f32 %v983_v26, %v880_v56  ;;  %v1108_v28 = vsel %vm881_vm9, %v1062_v25, -inf }
 0x32a   :  { %v1099_v30 = vsel %vm881_vm9, %v984_v27, -inf }
 0x32b   :  { %1109 = vmax.xlane.f32.xlu2 %v1108_v28  ;;  %1100 = vmax.xlane.f32.xlu1 %v1099_v30 }
 0x32f   :  { %v1009_v24 = vpop.f32.mrf.mxu2 }
 0x330   :  { %v1010_v32 = vadd.f32 %v1009_v24, %v880_v56 }
 0x332   :  { %v1102_v33 = vsel %vm881_vm9, %v1010_v32, -inf }
 0x333   :  { %1103 = vmax.xlane.f32.xlu1 %v1102_v33 }
 0x337   :  { %v1087_v34 = vpop.f32.mrf.mxu2 }
 0x338   :  { %v2501_v35 = vadd.f32 %v1087_v34, %v880_v56 }
 0x33a   :  { %v1111_v36 = vsel %vm881_vm9, %v2501_v35, -inf }
 0x33b   :  { %1112 = vmax.xlane.f32.xlu0 %v1111_v36 }
 0x343   :  { %2004 = vrot.lane.b32.xlu2 %v2003_v37, %s2111_s15 }
 0x34c   :  { %2014 = vrot.lane.b32.xlu1 %v2013_v20, %s2111_s15 }
 0x34f   :  { %2009 = vrot.lane.b32.xlu0 %v2008_v38, %s2111_s15 }
 0x38a   :  { %v1098_v41 = vpop.xlane.xlu0 %1097 }
 0x38b   :  { %v1116_v42 = vsub.f32 %v958_v7, %v1098_v41 }
 0x38d   :  { %v1126_v43 = vmul.f32 1.442695, %v1116_v42 }
 0x38e   :  { %v1092_v44 = vpop.xlane.xlu2 %1091 }
 0x38f   :  { %2032 = vpow2.f32 %v1126_v43  ;;  %v1114_v45 = vsub.f32 %v906_v53, %v1092_v44 }
 0x391   :  { %v1122_v59 = vmul.f32 1.442695, %v1114_v45 }
 0x393   :  { %2034 = vpow2.f32 %v1122_v59 }
 0x394   :  { %v2515_v13 = vpop.xlane.xlu1 %1106 }
 0x395   :  { %v2517_v31 = vpop.eup %2032  ;;  %v1119_v44 = vsub.f32 %v2493_v14, %v2515_v13 }
 0x396   :  { %v1095_v63 = vpop.xlane.xlu2 %1094  ;;  %v1144_v12 = vsel %vm881_vm9, %v2517_v31, 0.0 }
 0x397   :  { %v1115_v57 = vsub.f32 %v932_v16, %v1095_v63  ;;  %1145 = vadd.xlane.f32.xlu2 %v1144_v12 }
 0x399   :  { %v2521_v20 = vpop.eup %2034  ;;  %v1124_v40 = vmul.f32 1.442695, %v1115_v57 }
 0x39a   :  { %v1138_v29 = vsel %vm881_vm9, %v2521_v20, 0.0 }
 0x39b   :  { %2036 = vpow2.f32 %v1124_v40  ;;  %1139 = vadd.xlane.f32.xlu1 %v1138_v29 }
 0x39e   :  { %v1110_v46 = vpop.xlane.xlu2 %1109  ;;  %v1101_v48 = vpop.xlane.xlu1 %1100 }
 0x39f   :  { %v1120_v49 = vsub.f32 %v1062_v25, %v1110_v46  ;;  %v1117_v50 = vsub.f32 %v984_v27, %v1101_v48 }
 0x3a1   :  { %v2525_v51 = vpop.eup %2036  ;;  %v1134_v52 = vmul.f32 1.442695, %v1120_v49  ;;  %v1128_v54 = vmul.f32 1.442695, %v1117_v50  ;;  %v1132_v49 = vmul.f32 1.442695, %v1119_v44 }
 0x3a2   :  { %v1141_v58 = vsel %vm881_vm9, %v2525_v51, 0.0 }
 0x3a3   :  { %2038 = vpow2.f32 %v1134_v52  ;;  %1142 = vadd.xlane.f32.xlu0 %v1141_v58 }
 0x3a4   :  { %2040 = vpow2.f32 %v1128_v54 }
 0x3a6   :  { %v2005_v47 = vpop.permute.xlu2 %2004  ;;  %v1104_v62 = vpop.xlane.xlu1 %1103 }
 0x3a7   :  { %v2007_v3 = vunpack.i.h.bf16 %v2005_v47  ;;  %v2006_v4 = vunpack.i.l.bf16 %v2005_v47  ;;  %v1118_v5 = vsub.f32 %v1010_v32, %v1104_v62 }
 0x3a9   :  { %v2529_v0 = vpop.eup %2038  ;;  %v672_v6 = vrot.slane %v2007_v3, 4  ;;  %v660_v56 = vrot.slane %v2006_v4, 4  ;;  %v663_v21 = vsel %vm172_vm8, %v2006_v4, %v662_v2  ;;  %v675_v7 = vsel %vm172_vm8, %v2007_v3, %v674_v61 }
 0x3aa   :  { %v2533_v22 = vpop.eup %2040  ;;  %v671_v8 = vperm.slane %v663_v21, %v2254_v1  ;;  %v683_v53 = vperm.slane %v675_v7, %v2254_v1  ;;  %v1130_v9 = vmul.f32 1.442695, %v1118_v5  ;;  %v1156_v11 = vsel %vm881_vm9, %v2529_v0, 0.0 }
 0x3ab   :  { %v661_v23 = vsel %vm172_vm8, %v660_v56, %v2001_v60  ;;  %v673_v16 = vsel %vm172_vm8, %v672_v6, %v2002_v55  ;;  %1157 = vadd.xlane.f32.xlu0 %v1156_v11  ;;  %v1147_v19 = vsel %vm881_vm9, %v2533_v22, 0.0 }
 0x3ac   :  { %v667_v17 = vperm.slane %v661_v23, %v2254_v1  ;;  %v679_v18 = vperm.slane %v673_v16, %v2254_v1  ;;  %v696_v25 = vrot.slane %v683_v53, 4  ;;  %v698_v26 = vrot.slane %v671_v8, 4  ;;  %1148 = vadd.xlane.f32.xlu1 %v1147_v19 }
 0x3ad   :  { %2042 = vpow2.f32 %v1130_v9 }
 0x3ae   :  { %v684_v27 = vrot.slane %v679_v18, 4  ;;  %v686_v28 = vrot.slane %v667_v17, 4  ;;  %v697_v30 = vsel %vm172_vm8, %v696_v25, %v671_v8  ;;  %v699_v24 = vsel %vm172_vm8, %v683_v53, %v698_v26  ;;  %v1113_v32 = vpop.xlane.xlu0 %1112 }
 0x3af   :  { %v703_v33 = vperm.slane %v697_v30, %v2270_v15  ;;  %v707_v34 = vperm.slane %v699_v24, %v2270_v15  ;;  %v1121_v36 = vsub.f32 %v2501_v35, %v1113_v32 }
 0x3b0   :  { %v685_v37 = vsel %vm172_vm8, %v684_v27, %v667_v17  ;;  %v687_v38 = vsel %vm172_vm8, %v679_v18, %v686_v28 }
 0x3b1   :  { %v691_v39 = vperm.slane %v685_v37, %v2270_v15  ;;  %v695_v41 = vperm.slane %v687_v38, %v2270_v15  ;;  %v712_v42 = vrot.slane %v703_v33, 4  ;;  %v714_v43 = vrot.slane %v707_v34, 4 }
 0x3b2   :  { %v1136_v45 = vmul.f32 1.442695, %v1121_v36 }
 0x3b3   :  { %v2556_v59 = vpop.eup %2042  ;;  %v710_v63 = vrot.slane %v695_v41, 4  ;;  %v715_v12 = vsel %vm172_vm8, 0.0, %v714_v43  ;;  %v708_v35 = vrot.slane %v691_v39, 4  ;;  %v783_v29 = vsel %vm172_vm8, %v714_v43, %v703_v33 }
 0x3b4   :  { %v788_v57 = vrot.slane %v715_v12, 4  ;;  %2044 = vpow2.f32 %v1136_v45  ;;  %v1150_v40 = vsel %vm881_vm9, %v2556_v59, 0.0  ;;  %v713_v48 = vsel %vm172_vm8, 0.0, %v712_v42 }
 0x3b5   :  { %1151 = vadd.xlane.f32.xlu1 %v1150_v40  ;;  %v711_v46 = vsel %vm172_vm8, 0.0, %v710_v63  ;;  %v772_v14 = vsel %vm172_vm8, %v710_v63, %v691_v39  ;;  %v787_v13 = vperm.slane %v783_v29, %v2254_v1  ;;  %v709_v55 = vsel %vm172_vm8, 0.0, %v708_v35 }
 0x3b6   :  { %v776_v50 = vperm.slane %v772_v14, %v2254_v1  ;;  %v777_v52 = vrot.slane %v711_v46, 4  ;;  %v789_v54 = vsel %vm172_vm8, %v788_v57, %v713_v48  ;;  %2046 = vpow2.f32 %v1132_v49 }
 0x3b7   :  { %v793_v58 = vperm.slane %v789_v54, %v2254_v1  ;;  %v808_v60 = vrot.slane %v787_v13, 4 }
 0x3b8   :  { %v778_v61 = vsel %vm172_vm8, %v777_v52, %v709_v55  ;;  %v796_v47 = vrot.slane %v776_v50, 4 }
 0x3b9   :  { %v782_v62 = vperm.slane %v778_v61, %v2254_v1  ;;  %v806_v2 = vrot.slane %v793_v58, 4  ;;  %v809_v3 = vsel %vm172_vm8, %v793_v58, %v808_v60 }
 0x3ba   :  { %v2573_v4 = vpop.eup %2044  ;;  %v817_v5 = vperm.slane %v809_v3, %v2270_v15 }
 0x3bb   :  { %v1159_v6 = vsel %vm881_vm9, %v2573_v4, 0.0  ;;  %v794_v56 = vrot.slane %v782_v62, 4  ;;  %v797_v21 = vsel %vm172_vm8, %v782_v62, %v796_v47  ;;  %v807_v7 = vsel %vm172_vm8, %v806_v2, %v787_v13 }
 0x3bc   :  { %1160 = vadd.xlane.f32.xlu2 %v1159_v6  ;;  %v805_v8 = vperm.slane %v797_v21, %v2270_v15  ;;  %v822_v53 = vrot.slane %v817_v5, 4  ;;  %v813_v9 = vperm.slane %v807_v7, %v2270_v15  ;;  %v2585_v27 = vpop.eup %2046 }
 0x3bd   :  { %v795_v11 = vsel %vm172_vm8, %v794_v56, %v776_v50  ;;  %v1153_v39 = vsel %vm881_vm9, %v2585_v27, 0.0 }
 0x3be   :  { %v2015_v23 = vpop.permute.xlu1 %2014  ;;  %v823_v16 = vsel %vm172_vm8, %v822_v53, %v805_v8  ;;  %v824_v19 = vrot.slane %v805_v8, 4  ;;  %v801_v17 = vperm.slane %v795_v11, %v2270_v15  ;;  %v818_v18 = vrot.slane %v813_v9, 4 }
 0x3bf   :  { %v2017_v25 = vunpack.i.h.bf16 %v2015_v23  ;;  %v2016_v26 = vunpack.i.l.bf16 %v2015_v23  ;;  %1346 = vmatpush.msra.mxu1 %v823_v16 }
 0x3c0   :  { %v819_v28 = vsel %vm172_vm8, %v818_v18, %v801_v17  ;;  %v825_v30 = vsel %vm172_vm8, %v817_v5, %v824_v19  ;;  %v820_v24 = vrot.slane %v801_v17, 4 }
 0x3c1   :  { %v2010_v32 = vpop.permute.xlu0 %2009  ;;  %v728_v33 = vrot.slane %v2017_v25, 4  ;;  %v716_v34 = vrot.slane %v2016_v26, 4  ;;  %1300 = vmatpush.msrb.mxu3 %v819_v28  ;;  %1369 = vmatpush.msrb.mxu2 %v825_v30 }
 0x3c2   :  { %v2012_v36 = vunpack.i.h.bf16 %v2010_v32  ;;  %v2011_v37 = vunpack.i.l.bf16 %v2010_v32  ;;  %v821_v38 = vsel %vm172_vm8, %v813_v9, %v820_v24 }
 0x3c3   :  { %1323 = vmatpush.msrb.mxu0 %v821_v38 }
 0x3c4   :  { %v730_v41 = vrot.slane %v2012_v36, 4  ;;  %v718_v42 = vrot.slane %v2011_v37, 4  ;;  %v717_v43 = vsel %vm172_vm8, %v716_v34, %v2011_v37  ;;  %v729_v44 = vsel %vm172_vm8, %v728_v33, %v2012_v36  ;;  %1154 = vadd.xlane.f32.xlu2 %v1153_v39 }
 0x3c5   :  { %v723_v45 = vperm.slane %v717_v43, %v2254_v1  ;;  %v735_v63 = vperm.slane %v729_v44, %v2254_v1 }
 0x3c6   :  { %v719_v12 = vsel %vm172_vm8, %v2016_v26, %v718_v42  ;;  %v731_v35 = vsel %vm172_vm8, %v2017_v25, %v730_v41 }
 0x3c7   :  { %v727_v57 = vperm.slane %v719_v12, %v2254_v1  ;;  %v739_v40 = vperm.slane %v731_v35, %v2254_v1  ;;  %v740_v29 = vrot.slane %v735_v63, 4  ;;  %v742_v46 = vrot.slane %v723_v45, 4 }
 0x3c9   :  { %v741_v48 = vsel %vm172_vm8, %v740_v29, %v723_v45  ;;  %v743_v14 = vsel %vm172_vm8, %v735_v63, %v742_v46  ;;  %v752_v13 = vrot.slane %v739_v40, 4  ;;  %v754_v49 = vrot.slane %v727_v57, 4 }
 0x3ca   :  { %v747_v50 = vperm.slane %v741_v48, %v2270_v15  ;;  %v751_v52 = vperm.slane %v743_v14, %v2270_v15 }
 0x3cb   :  { %v753_v54 = vsel %vm172_vm8, %v752_v13, %v727_v57  ;;  %v755_v55 = vsel %vm172_vm8, %v739_v40, %v754_v49 }
 0x3cc   :  { %v759_v58 = vperm.slane %v753_v54, %v2270_v15  ;;  %v763_v60 = vperm.slane %v755_v55, %v2270_v15  ;;  %v766_v61 = vrot.slane %v751_v52, 4  ;;  %v764_v47 = vrot.slane %v747_v50, 4 }
 0x3ce   :  { %v768_v62 = vrot.slane %v759_v58, 4  ;;  %v770_v2 = vrot.slane %v763_v60, 4  ;;  %v767_v3 = vsel %vm172_vm8, 0.0, %v766_v61  ;;  %v826_v5 = vsel %vm172_vm8, %v766_v61, %v747_v50 }
 0x3cf   :  { %v831_v6 = vrot.slane %v767_v3, 4  ;;  %v765_v21 = vsel %vm172_vm8, 0.0, %v764_v47  ;;  %v830_v7 = vperm.slane %v826_v5, %v2254_v1 }
 0x3d0   :  { %v771_v56 = vsel %vm172_vm8, 0.0, %v770_v2  ;;  %v837_v8 = vsel %vm172_vm8, %v770_v2, %v759_v58  ;;  %v769_v23 = vsel %vm172_vm8, 0.0, %v768_v62 }
 0x3d1   :  { %v842_v53 = vrot.slane %v771_v56, 4  ;;  %v832_v9 = vsel %vm172_vm8, %v831_v6, %v765_v21  ;;  %v841_v11 = vperm.slane %v837_v8, %v2254_v1  ;;  %v850_v19 = vrot.slane %v830_v7, 4 }
 0x3d2   :  { %v836_v16 = vperm.slane %v832_v9, %v2254_v1 }
 0x3d3   :  { %v843_v17 = vsel %vm172_vm8, %v842_v53, %v769_v23  ;;  %v862_v18 = vrot.slane %v841_v11, 4 }
 0x3d4   :  { %v847_v25 = vperm.slane %v843_v17, %v2254_v1  ;;  %v848_v26 = vrot.slane %v836_v16, 4  ;;  %v851_v28 = vsel %vm172_vm8, %v836_v16, %v850_v19 }
 0x3d5   :  { %v859_v30 = vperm.slane %v851_v28, %v2270_v15 }
 0x3d6   :  { %v860_v24 = vrot.slane %v847_v25, 4  ;;  %v863_v32 = vsel %vm172_vm8, %v847_v25, %v862_v18  ;;  %v849_v33 = vsel %vm172_vm8, %v848_v26, %v830_v7 }
 0x3d7   :  { %v871_v34 = vperm.slane %v863_v32, %v2270_v15  ;;  %v878_v36 = vrot.slane %v859_v30, 4  ;;  %v855_v37 = vperm.slane %v849_v33, %v2270_v15 }
 0x3d8   :  { %v861_v38 = vsel %vm172_vm8, %v860_v24, %v841_v11 }
 0x3d9   :  { %v876_v39 = vrot.slane %v871_v34, 4  ;;  %v879_v41 = vsel %vm172_vm8, %v871_v34, %v878_v36  ;;  %v867_v42 = vperm.slane %v861_v38, %v2270_v15  ;;  %v874_v43 = vrot.slane %v855_v37, 4 }
 0x3da   :  { %1461 = vmatpush.msra.mxu2 %v879_v41 }
 0x3db   :  { %v877_v44 = vsel %vm172_vm8, %v876_v39, %v859_v30  ;;  %v872_v45 = vrot.slane %v867_v42, 4  ;;  %v875_v63 = vsel %vm172_vm8, %v867_v42, %v874_v43 }
 0x3dc   :  { %1438 = vmatpush.msrb.mxu1 %v877_v44  ;;  %1415 = vmatpush.msra.mxu0 %v875_v63 }
 0x3dd   :  { %v873_v12 = vsel %vm172_vm8, %v872_v45, %v855_v37 }
 0x3de   :  { %1392 = vmatpush.msra.mxu3 %v873_v12 }
 0x40a   :  { %v1146_v35 = vpop.xlane.xlu2 %1145 }
 0x40b   :  { %2048 = vrcp.f32 %v1146_v35  ;;  %v1203_v14 = vand.u32 2147483648, %v1146_v35  ;;  %v1201_v13 = vand.u32 2147483647, %v1146_v35  ;;  %vm1197_vm11 = vweird.f32 %v1146_v35 }
 0x40d   :  { %v1204_v58 = vor.u32 1.1754944e-38, %v1203_v14  ;;  %vm1202_vm13 = vcmp.eq.f32.partialorder %v1201_v13, 8.507059e+37 }
 0x40e   :  { %v1140_v57 = vpop.xlane.xlu1 %1139 }
 0x40f   :  { %2050 = vrcp.f32 %v1140_v57  ;;  %v1173_v60 = vand.u32 2147483648, %v1140_v57  ;;  %v1171_v47 = vand.u32 2147483647, %v1140_v57  ;;  %vm1167_vm15 = vweird.f32 %v1140_v57 }
 0x411   :  { %v2049_v40 = vpop.eup %2048  ;;  %v1174_v56 = vor.u32 1.1754944e-38, %v1173_v60  ;;  %vm1172_vm2 = vcmp.eq.f32.partialorder %v1171_v47, 8.507059e+37 }
 0x412   :  { %v1193_v29 = vmul.f32 %v2049_v40, %v1146_v35  ;;  %vm1198_vm10 = vweird.f32 %v2049_v40 }
 0x413   :  { %vm1199_vm12 = vmor %vm1197_vm11, %vm1198_vm10 }
 0x414   :  { %v1194_v46 = vsub.f32 1.0, %v1193_v29 }
 0x415   :  { %v2051_v48 = vpop.eup %2050 }
 0x416   :  { %v1195_v49 = vmul.f32 %v2049_v40, %v1194_v46  ;;  %v1163_v50 = vmul.f32 %v2051_v48, %v1140_v57  ;;  %v1143_v52 = vpop.xlane.xlu0 %1142  ;;  %vm1168_vm14 = vweird.f32 %v2051_v48 }
 0x417   :  { %2052 = vrcp.f32 %v1143_v52  ;;  %vm1169_vm1 = vmor %vm1167_vm15, %vm1168_vm14  ;;  %v1188_v23 = vand.u32 2147483648, %v1143_v52  ;;  %vm1182_vm4 = vweird.f32 %v1143_v52 }
 0x418   :  { %v1164_v54 = vsub.f32 1.0, %v1163_v50  ;;  %v1196_v55 = vadd.f32 %v2049_v40, %v1195_v49 }
 0x419   :  { %v1189_v25 = vor.u32 1.1754944e-38, %v1188_v23 }
 0x41a   :  { %v1165_v61 = vmul.f32 %v2051_v48, %v1164_v54  ;;  %v1200_v62 = vsel %vm1199_vm12, %v2049_v40, %v1196_v55 }
 0x41b   :  { %v1205_v2 = vsel %vm1202_vm13, %v1204_v58, %v1200_v62 }
 0x41c   :  { %v1166_v3 = vadd.f32 %v2051_v48, %v1165_v61  ;;  %v1206_v5 = vmul.f32 %v2517_v31, %v1205_v2  ;;  %v1186_v31 = vand.u32 2147483647, %v1143_v52 }
 0x41d   :  { %v2053_v6 = vpop.eup %2052 }
 0x41e   :  { %v1170_v21 = vsel %vm1169_vm1, %v2051_v48, %v1166_v3  ;;  %v1178_v7 = vmul.f32 %v2053_v6, %v1143_v52  ;;  %1975 = vmatmul.msk.f32.vlgmr.msra.gmra.mxu1 %vm881_vm9, %v1206_v5  ;;  %v1158_v8 = vpop.xlane.xlu0 %1157  ;;  %vm1183_vm3 = vweird.f32 %v2053_v6  ;;  %vm1187_vm6 = vcmp.eq.f32.partialorder %v1186_v31, 8.507059e+37 }
 0x41f   :  { %v1175_v53 = vsel %vm1172_vm2, %v1174_v56, %v1170_v21  ;;  %v1149_v9 = vpop.xlane.xlu1 %1148  ;;  %2054 = vrcp.f32 %v1158_v8  ;;  %vm1184_vm5 = vmor %vm1182_vm4, %vm1183_vm3  ;;  %v1263_v37 = vand.u32 2147483648, %v1158_v8  ;;  %v1261_v41 = vand.u32 2147483647, %v1158_v8 }
 0x420   :  { %v1179_v11 = vsub.f32 1.0, %v1178_v7  ;;  %2056 = vrcp.f32 %v1149_v9  ;;  %v1176_v16 = vmul.f32 %v2521_v20, %v1175_v53  ;;  %v1218_v38 = vand.u32 2147483648, %v1149_v9 }
 0x421   :  { %v1216_v43 = vand.u32 2147483647, %v1149_v9  ;;  %vm1257_vm11 = vweird.f32 %v1158_v8  ;;  %vm1212_vm12 = vweird.f32 %v1149_v9  ;;  %v1264_v63 = vor.u32 1.1754944e-38, %v1263_v37 }
 0x422   :  { %v1180_v19 = vmul.f32 %v2053_v6, %v1179_v11  ;;  %1973 = vmatmul.msk.f32.vlgmr.msrb.gmra.mxu3 %vm881_vm9, %v1176_v16  ;;  %vm1262_vm15 = vcmp.eq.f32.partialorder %v1261_v41, 8.507059e+37 }
 0x423   :  { %vm1217_vm1 = vcmp.eq.f32.partialorder %v1216_v43, 8.507059e+37 }
 0x424   :  { %v1181_v17 = vadd.f32 %v2053_v6, %v1180_v19 }
 0x425   :  { %v2055_v18 = vpop.eup %2054 }
 0x426   :  { %v2057_v26 = vpop.eup %2056  ;;  %v1253_v28 = vmul.f32 %v2055_v18, %v1158_v8  ;;  %v1185_v30 = vsel %vm1184_vm5, %v2053_v6, %v1181_v17  ;;  %vm1258_vm7 = vweird.f32 %v2055_v18 }
 0x427   :  { %v1208_v24 = vmul.f32 %v2057_v26, %v1149_v9  ;;  %v1190_v32 = vsel %vm1187_vm6, %v1189_v25, %v1185_v30  ;;  %vm1213_vm10 = vweird.f32 %v2057_v26  ;;  %vm1259_vm13 = vmor %vm1257_vm11, %vm1258_vm7 }
 0x428   :  { %v1254_v33 = vsub.f32 1.0, %v1253_v28  ;;  %v1152_v34 = vpop.xlane.xlu1 %1151  ;;  %v1191_v20 = vmul.f32 %v2525_v51, %v1190_v32  ;;  %vm1214_vm14 = vmor %vm1212_vm12, %vm1213_vm10  ;;  %v1219_v51 = vor.u32 1.1754944e-38, %v1218_v38 }
 0x429   :  { %v1209_v36 = vsub.f32 1.0, %v1208_v24  ;;  %2058 = vrcp.f32 %v1152_v34  ;;  %v1233_v50 = vand.u32 2147483648, %v1152_v34  ;;  %v1231_v54 = vand.u32 2147483647, %v1152_v34 }
 0x42a   :  { %v1255_v39 = vmul.f32 %v2055_v18, %v1254_v33  ;;  %1974 = vmatmul.msk.f32.vlgmr.msrb.gmra.mxu0 %vm881_vm9, %v1191_v20  ;;  %vm1227_vm3 = vweird.f32 %v1152_v34 }
 0x42b   :  { %v1210_v42 = vmul.f32 %v2057_v26, %v1209_v36  ;;  %v1234_v60 = vor.u32 1.1754944e-38, %v1233_v50  ;;  %vm1232_vm5 = vcmp.eq.f32.partialorder %v1231_v54, 8.507059e+37 }
 0x42c   :  { %v1256_v44 = vadd.f32 %v2055_v18, %v1255_v39 }
 0x42d   :  { %v1211_v45 = vadd.f32 %v2057_v26, %v1210_v42 }
 0x42e   :  { %v1260_v12 = vsel %vm1259_vm13, %v2055_v18, %v1256_v44 }
 0x42f   :  { %v2059_v35 = vpop.eup %2058  ;;  %v1215_v57 = vsel %vm1214_vm14, %v2057_v26, %v1211_v45  ;;  %v1161_v40 = vpop.xlane.xlu2 %1160  ;;  %v1265_v29 = vsel %vm1262_vm15, %v1264_v63, %v1260_v12 }
 0x430   :  { %v1220_v46 = vsel %vm1217_vm1, %v1219_v51, %v1215_v57  ;;  %v1223_v48 = vmul.f32 %v2059_v35, %v1152_v34  ;;  %2060 = vrcp.f32 %v1161_v40  ;;  %v1266_v49 = vmul.f32 %v2529_v0, %v1265_v29 }
 0x431   :  { %v1221_v14 = vmul.f32 %v2533_v22, %v1220_v46  ;;  %vm1228_vm2 = vweird.f32 %v2059_v35  ;;  %v1278_v2 = vand.u32 2147483648, %v1161_v40  ;;  %v1276_v6 = vand.u32 2147483647, %v1161_v40 }
 0x432   :  { %v1224_v13 = vsub.f32 1.0, %v1223_v48  ;;  %1979 = vmatmul.msk.f32.vlgmr.msrb.gmra.mxu1 %vm881_vm9, %v1266_v49  ;;  %vm1229_vm4 = vmor %vm1227_vm3, %vm1228_vm2  ;;  %vm1272_vm7 = vweird.f32 %v1161_v40  ;;  %vm1715_vm1 = vcmask 195584  }
 0x433   :  { %1976 = vmatmul.msk.f32.vlgmr.msrb.gmra.mxu2 %vm881_vm9, %v1221_v14  ;;  %v1279_v7 = vor.u32 1.1754944e-38, %v1278_v2  ;;  %vm1277_vm11 = vcmp.eq.f32.partialorder %v1276_v6, 8.507059e+37 }
 0x434   :  { %v1225_v52 = vmul.f32 %v2059_v35, %v1224_v13 }
 0x436   :  { %v2061_v55 = vpop.eup %2060  ;;  %v1226_v58 = vadd.f32 %v2059_v35, %v1225_v52 }
 0x437   :  { %v1268_v61 = vmul.f32 %v2061_v55, %v1161_v40  ;;  %v1155_v47 = vpop.xlane.xlu2 %1154  ;;  %vm1273_vm6 = vweird.f32 %v2061_v55 }
 0x438   :  { %v1230_v62 = vsel %vm1229_vm4, %v2059_v35, %v1226_v58  ;;  %2062 = vrcp.f32 %v1155_v47  ;;  %vm1274_vm10 = vmor %vm1272_vm7, %vm1273_vm6  ;;  %v1248_v16 = vand.u32 2147483648, %v1155_v47  ;;  %vm1242_vm13 = vweird.f32 %v1155_v47 }
 0x439   :  { %v1235_v22 = vsel %vm1232_vm5, %v1234_v60, %v1230_v62  ;;  %v1269_v0 = vsub.f32 1.0, %v1268_v61 }
 0x43a   :  { %v1236_v3 = vmul.f32 %v2556_v59, %v1235_v22  ;;  %v1246_v59 = vand.u32 2147483647, %v1155_v47  ;;  %v1249_v17 = vor.u32 1.1754944e-38, %v1248_v16 }
 0x43b   :  { %v1270_v5 = vmul.f32 %v2061_v55, %v1269_v0 }
 0x43c   :  { %1977 = vmatmul.msk.f32.vlgmr.msra.gmra.mxu3 %vm881_vm9, %v1236_v3  ;;  %vm1247_vm15 = vcmp.eq.f32.partialorder %v1246_v59, 8.507059e+37 }
 0x43d   :  { %v1271_v56 = vadd.f32 %v2061_v55, %v1270_v5 }
 0x43e   :  { %v2063_v21 = vpop.eup %2062 }
 0x43f   :  { %v1275_v8 = vsel %vm1274_vm10, %v2061_v55, %v1271_v56  ;;  %v1238_v53 = vmul.f32 %v2063_v21, %v1155_v47  ;;  %vm1243_vm12 = vweird.f32 %v2063_v21 }
 0x440   :  { %v1280_v9 = vsel %vm1277_vm11, %v1279_v7, %v1275_v8  ;;  %vm1244_vm14 = vmor %vm1242_vm13, %vm1243_vm12 }
 0x441   :  { %v1239_v11 = vsub.f32 1.0, %v1238_v53  ;;  %v1281_v23 = vmul.f32 %v2573_v4, %v1280_v9 }
 0x443   :  { %v1240_v19 = vmul.f32 %v2063_v21, %v1239_v11  ;;  %1980 = vmatmul.msk.f32.vlgmr.msra.gmra.mxu2 %vm881_vm9, %v1281_v23 }
 0x445   :  { %v1241_v31 = vadd.f32 %v2063_v21, %v1240_v19 }
 0x447   :  { %v1245_v18 = vsel %vm1244_vm14, %v2063_v21, %v1241_v31 }
 0x448   :  { %v1250_v25 = vsel %vm1247_vm15, %v1249_v17, %v1245_v18 }
 0x449   :  { %v1251_v26 = vmul.f32 %v2585_v27, %v1250_v25 }
 0x44b   :  { %1978 = vmatmul.msk.f32.vlgmr.msra.gmra.mxu0 %vm881_vm9, %v1251_v26 }
 0x49b   :  { %v1348_v4 = vpop.f32.mrf.mxu1 }
 0x49c   :  { %v1466_v24 = vrot.slane %v1348_v4, 4 }
 0x4a5   :  { %v1302_v28 = vpop.f32.mrf.mxu3 }
 0x4a6   :  { %v1468_v30 = vrot.slane %v1302_v28, 4  ;;  %v1467_v34 = vsel %vm172_vm8, %v1466_v24, %v1302_v28 }
 0x4a7   :  { %v1325_v33 = vpop.f32.mrf.mxu0  ;;  %v1473_v37 = vperm.slane %v1467_v34, %v2254_v1 }
 0x4a8   :  { %v1469_v32 = vsel %vm172_vm8, %v1348_v4, %v1468_v30  ;;  %v1480_v36 = vrot.slane %v1325_v33, 4 }
 0x4a9   :  { %v1477_v20 = vperm.slane %v1469_v32, %v2254_v1  ;;  %v1492_v44 = vrot.slane %v1473_v37, 4 }
 0x4ab   :  { %v1504_v41 = vrot.slane %v1477_v20, 4 }
 0x4af   :  { %v1440_v12 = vpop.f32.mrf.mxu1 }
 0x4b0   :  { %v1522_v13 = vrot.slane %v1440_v12, 4 }
 0x4b6   :  { %v1371_v38 = vpop.f32.mrf.mxu2 }
 0x4b7   :  { %v1478_v39 = vrot.slane %v1371_v38, 4  ;;  %v1481_v27 = vsel %vm172_vm8, %v1371_v38, %v1480_v36 }
 0x4b8   :  { %v1489_v42 = vperm.slane %v1481_v27, %v2254_v1 }
 0x4b9   :  { %v1479_v43 = vsel %vm172_vm8, %v1478_v39, %v1325_v33 }
 0x4ba   :  { %v1485_v45 = vperm.slane %v1479_v43, %v2254_v1  ;;  %v1502_v63 = vrot.slane %v1489_v42, 4  ;;  %v1505_v51 = vsel %vm172_vm8, %v1489_v42, %v1504_v41 }
 0x4bb   :  { %v1513_v35 = vperm.slane %v1505_v51, %v2270_v15 }
 0x4bc   :  { %v1490_v57 = vrot.slane %v1485_v45, 4  ;;  %v1493_v40 = vsel %vm172_vm8, %v1485_v45, %v1492_v44  ;;  %v1503_v29 = vsel %vm172_vm8, %v1502_v63, %v1477_v20 }
 0x4bd   :  { %v1501_v46 = vperm.slane %v1493_v40, %v2270_v15  ;;  %v1509_v48 = vperm.slane %v1503_v29, %v2270_v15  ;;  %v1520_v14 = vrot.slane %v1513_v35, 4 }
 0x4be   :  { %v1491_v49 = vsel %vm172_vm8, %v1490_v57, %v1473_v37 }
 0x4bf   :  { %v1497_v50 = vperm.slane %v1491_v49, %v2270_v15  ;;  %v1516_v52 = vrot.slane %v1501_v46, 4  ;;  %v1518_v54 = vrot.slane %v1509_v48, 4  ;;  %v1521_v55 = vsel %vm172_vm8, 0.0, %v1520_v14  ;;  %v1394_v58 = vpop.f32.mrf.mxu3 }
 0x4c0   :  { %v1589_v60 = vsel %vm172_vm8, %v1520_v14, %v1509_v48  ;;  %v1594_v61 = vrot.slane %v1521_v55, 4  ;;  %v1523_v47 = vsel %vm172_vm8, %v1522_v13, %v1394_v58  ;;  %v1524_v62 = vrot.slane %v1394_v58, 4 }
 0x4c1   :  { %v1514_v22 = vrot.slane %v1497_v50, 4  ;;  %v1517_v0 = vsel %vm172_vm8, 0.0, %v1516_v52  ;;  %v1519_v2 = vsel %vm172_vm8, 0.0, %v1518_v54  ;;  %v1593_v3 = vperm.slane %v1589_v60, %v2254_v1 }
 0x4c2   :  { %v1583_v5 = vrot.slane %v1517_v0, 4  ;;  %v1578_v6 = vsel %vm172_vm8, %v1516_v52, %v1497_v50  ;;  %v1525_v56 = vsel %vm172_vm8, %v1440_v12, %v1524_v62  ;;  %v1595_v8 = vsel %vm172_vm8, %v1594_v61, %v1519_v2 }
 0x4c3   :  { %v1515_v21 = vsel %vm172_vm8, 0.0, %v1514_v22  ;;  %v1582_v7 = vperm.slane %v1578_v6, %v2254_v1  ;;  %v1529_v53 = vperm.slane %v1523_v47, %v2254_v1  ;;  %v1599_v11 = vperm.slane %v1595_v8, %v2254_v1 }
 0x4c4   :  { %v1584_v9 = vsel %vm172_vm8, %v1583_v5, %v1515_v21  ;;  %v1614_v23 = vrot.slane %v1593_v3, 4  ;;  %v1533_v59 = vperm.slane %v1525_v56, %v2254_v1 }
 0x4c5   :  { %v1588_v16 = vperm.slane %v1584_v9, %v2254_v1  ;;  %v1602_v19 = vrot.slane %v1582_v7, 4  ;;  %v1612_v18 = vrot.slane %v1599_v11, 4  ;;  %v1548_v4 = vrot.slane %v1529_v53, 4 }
 0x4c6   :  { %v1463_v31 = vpop.f32.mrf.mxu2  ;;  %v1615_v17 = vsel %vm172_vm8, %v1599_v11, %v1614_v23  ;;  %v1560_v42 = vrot.slane %v1533_v59, 4 }
 0x4c7   :  { %v1534_v25 = vrot.slane %v1463_v31, 4  ;;  %v1603_v26 = vsel %vm172_vm8, %v1588_v16, %v1602_v19  ;;  %v1623_v28 = vperm.slane %v1615_v17, %v2270_v15  ;;  %v1600_v30 = vrot.slane %v1588_v16, 4 }
 0x4c8   :  { %v1417_v24 = vpop.f32.mrf.mxu0  ;;  %v1611_v32 = vperm.slane %v1603_v26, %v2270_v15  ;;  %v1613_v33 = vsel %vm172_vm8, %v1612_v18, %v1593_v3 }
 0x4c9   :  { %v1535_v34 = vsel %vm172_vm8, %v1534_v25, %v1417_v24  ;;  %v1536_v20 = vrot.slane %v1417_v24, 4  ;;  %v1628_v36 = vrot.slane %v1623_v28, 4  ;;  %v1601_v37 = vsel %vm172_vm8, %v1600_v30, %v1582_v7 }
 0x4ca   :  { %v1541_v38 = vperm.slane %v1535_v34, %v2254_v1  ;;  %v1630_v39 = vrot.slane %v1611_v32, 4  ;;  %v1607_v27 = vperm.slane %v1601_v37, %v2270_v15  ;;  %v1619_v41 = vperm.slane %v1613_v33, %v2270_v15  ;;  %v1721_v37 = vld [vmem:[%s2863_s6 + $0x18] sm:$0xff] }
 0x4cb   :  { %v1537_v43 = vsel %vm172_vm8, %v1463_v31, %v1536_v20  ;;  %v1629_v44 = vsel %vm172_vm8, %v1628_v36, %v1611_v32  ;;  %1744 = vmatpush.msrb.mxu3 %v1721_v37 }
 0x4cc   :  { %v1545_v45 = vperm.slane %v1537_v43, %v2254_v1  ;;  %v1546_v63 = vrot.slane %v1541_v38, 4  ;;  %v1549_v51 = vsel %vm172_vm8, %v1541_v38, %v1548_v4  ;;  %1696 = vrot.lane.b32.xlu2 %v1629_v44, %s2112_s1  ;;  %v1631_v12 = vsel %vm172_vm8, %v1623_v28, %v1630_v39  ;;  %v1719_v38 = vld [vmem:[%s2863_s6 + $0x8] sm:$0xff]  ;;  %v1718_v39 = vld [vmem:[%s2863_s6] sm:$0xff] }
 0x4cd   :  { %v1557_v35 = vperm.slane %v1549_v51, %v2270_v15  ;;  %1704 = vrot.lane.b32.xlu1 %v1631_v12, %s2113_s18  ;;  %v1624_v57 = vrot.slane %v1619_v41, 4  ;;  %v1626_v40 = vrot.slane %v1607_v27, 4 }
 0x4ce   :  { %v1547_v29 = vsel %vm172_vm8, %v1546_v63, %v1529_v53  ;;  %v1558_v46 = vrot.slane %v1545_v45, 4  ;;  %v1561_v48 = vsel %vm172_vm8, %v1545_v45, %v1560_v42 }
 0x4cf   :  { %v1553_v14 = vperm.slane %v1547_v29, %v2270_v15  ;;  %v1569_v13 = vperm.slane %v1561_v48, %v2270_v15  ;;  %v1572_v49 = vrot.slane %v1557_v35, 4  ;;  %v1627_v50 = vsel %vm172_vm8, %v1619_v41, %v1626_v40  ;;  %v2021_v29 = vld [vmem:[%s2864_s7] ss:$0 sm:$0xff] }
 0x4d0   :  { %v1559_v52 = vsel %vm172_vm8, %v1558_v46, %v1533_v59  ;;  %1688 = vrot.lane.b32.xlu0 %v1627_v50, %s2114_s19  ;;  %v1625_v54 = vsel %vm172_vm8, %v1624_v57, %v1607_v27 }
 0x4d1   :  { %v1565_v55 = vperm.slane %v1559_v52, %v2270_v15  ;;  %v1570_v58 = vrot.slane %v1553_v14, 4  ;;  %v1573_v60 = vsel %vm172_vm8, 0.0, %v1572_v49  ;;  %v1576_v61 = vrot.slane %v1569_v13, 4 }
 0x4d2   :  { %v1632_v47 = vsel %vm172_vm8, %v1572_v49, %v1553_v14  ;;  %v1637_v62 = vrot.slane %v1573_v60, 4  ;;  %v2076_v14 = vld [vmem:[%s2857_s0] sm:$0xff] }
 0x4d3   :  { %v1571_v22 = vsel %vm172_vm8, 0.0, %v1570_v58  ;;  %v1574_v0 = vrot.slane %v1565_v55, 4  ;;  %v1577_v2 = vsel %vm172_vm8, 0.0, %v1576_v61  ;;  %v1636_v3 = vperm.slane %v1632_v47, %v2254_v1 }
 0x4d4   :  { %v1648_v5 = vrot.slane %v1577_v2, 4  ;;  %v1638_v6 = vsel %vm172_vm8, %v1637_v62, %v1571_v22  ;;  %v1643_v56 = vsel %vm172_vm8, %v1576_v61, %v1565_v55 }
 0x4d5   :  { %v1575_v21 = vsel %vm172_vm8, 0.0, %v1574_v0  ;;  %v1642_v7 = vperm.slane %v1638_v6, %v2254_v1  ;;  %v1647_v8 = vperm.slane %v1643_v56, %v2254_v1  ;;  %v1656_v53 = vrot.slane %v1636_v3, 4 }
 0x4d6   :  { %v1649_v9 = vsel %vm172_vm8, %v1648_v5, %v1575_v21 }
 0x4d7   :  { %v1653_v11 = vperm.slane %v1649_v9, %v2254_v1  ;;  %v1657_v23 = vsel %vm172_vm8, %v1642_v7, %v1656_v53  ;;  %v1668_v16 = vrot.slane %v1647_v8, 4  ;;  %v1654_v19 = vrot.slane %v1642_v7, 4  ;;  %v1816_v7 = vld [vmem:[%s2867_s10 + $0x18] sm:$0xff]  ;;  %v1815_v53 = vld [vmem:[%s2867_s10 + $0x10] sm:$0xff]  ;;  %v1814_v9 = vld [vmem:[%s2867_s10 + $0x8] sm:$0xff] }
 0x4d8   :  { %v1665_v59 = vperm.slane %v1657_v23, %v2270_v15  ;;  %1839 = vmatpush.msrb.mxu0 %v1816_v7 }
 0x4d9   :  { %v1669_v31 = vsel %vm172_vm8, %v1653_v11, %v1668_v16  ;;  %v1655_v17 = vsel %vm172_vm8, %v1654_v19, %v1636_v3  ;;  %v1666_v18 = vrot.slane %v1653_v11, 4  ;;  %v1813_v11 = vld [vmem:[%s2867_s10] sm:$0xff] }
 0x4da   :  { %v1677_v25 = vperm.slane %v1669_v31, %v2270_v15  ;;  %v1684_v26 = vrot.slane %v1665_v59, 4  ;;  %v1661_v28 = vperm.slane %v1655_v17, %v2270_v15  ;;  %1840 = vmatpush.msrb.mxu0 %v1815_v53 }
 0x4db   :  { %v1667_v30 = vsel %vm172_vm8, %v1666_v18, %v1647_v8  ;;  %v2022_v18 = vld [vmem:[%s2865_s8] ss:$0 sm:$0xff] }
 0x4dc   :  { %v1685_v1 = vsel %vm172_vm8, %v1677_v25, %v1684_v26  ;;  %v1673_v4 = vperm.slane %v1667_v30, %v2270_v15  ;;  %v1680_v24 = vrot.slane %v1661_v28, 4  ;;  %v1682_v20 = vrot.slane %v1677_v25, 4  ;;  %v1720_v15 = vld [vmem:[%s2863_s6 + $0x10] sm:$0xff]  ;;  %1841 = vmatpush.msrb.mxu0 %v1814_v9 }
 0x4dd   :  { %1706 = vrot.lane.b32.xlu2 %v1685_v1, %s2113_s18  ;;  %1745 = vmatpush.msrb.mxu3 %v1720_v15  ;;  %v2023_v1 = vld [vmem:[%s2866_s9] ss:$0 sm:$0xff] }
 0x4de   :  { %v1678_v32 = vrot.slane %v1673_v4, 4  ;;  %v1681_v33 = vsel %vm172_vm8, %v1673_v4, %v1680_v24  ;;  %v1683_v36 = vsel %vm172_vm8, %v1682_v20, %v1665_v59  ;;  %1842 = vmatpush.msrb.mxu0 %v1813_v11 }
 0x4df   :  { %1690 = vrot.lane.b32.xlu0 %v1681_v33, %s2114_s19  ;;  %1746 = vmatpush.msrb.mxu3 %v1719_v38 }
 0x4e0   :  { %v1679_v34 = vsel %vm172_vm8, %v1678_v32, %v1661_v28  ;;  %vm1712_vm8 = vcmask 130048  }
 0x4e1   :  { %1747 = vmatpush.msrb.mxu3 %v1718_v39 }
 0x4e7   :  { %1698 = vrot.lane.b32.xlu0 %v1683_v36, %s2112_s1 }
 0x526   :  { %v1697_v41 = vpop.permute.xlu2 %1696 }
 0x537   :  { %v1707_v35 = vpop.permute.xlu2 %1706 }
 0x53f   :  { %v1705_v43 = vpop.permute.xlu1 %1704 }
 0x542   :  { %v1689_v27 = vpop.permute.xlu0 %1688 }
 0x543   :  { %v1710_v42 = vsel %vm881_vm9, %v1625_v54, %v1689_v27  ;;  %v2077_v54 = vld [vmem:[%s2857_s0 + $0x8] sm:$0xff] }
 0x544   :  { %v1713_v44 = vsel %vm1712_vm8, %v1710_v42, %v1697_v41  ;;  %v1905_v41 = vld [vmem:[%s2869_s12 + $0x78] sm:$0xff]  ;;  %v1904_v42 = vld [vmem:[%s2869_s12 + $0x70] sm:$0xff] }
 0x545   :  { %v1716_v45 = vsel %vm1715_vm1, %v1713_v44, %v1705_v43  ;;  %1910 = vmatpush.msra.mxu1 %v1905_v41  ;;  %v1903_v43 = vld [vmem:[%s2869_s12 + $0x68] sm:$0xff]  ;;  %v1902_v44 = vld [vmem:[%s2869_s12 + $0x60] sm:$0xff] }
 0x546   :  { %1981 = vmatmul.msk.f32.vlgmr.msrb.gmra.mxu3 %vm50_vm0, %v1716_v45  ;;  %v1901_v45 = vld [vmem:[%s2869_s12 + $0x58] sm:$0xff] }
 0x547   :  { %1911 = vmatpush.msra.mxu1 %v1904_v42 }
 0x549   :  { %1912 = vmatpush.msra.mxu1 %v1903_v43 }
 0x54b   :  { %1913 = vmatpush.msra.mxu1 %v1902_v44 }
 0x54d   :  { %1914 = vmatpush.msra.mxu1 %v1901_v45 }
 0x551   :  { %v1691_v63 = vpop.permute.xlu0 %1690 }
 0x552   :  { %v1711_v51 = vsel %vm881_vm9, %v1679_v34, %v1691_v63  ;;  %v1900_v63 = vld [vmem:[%s2869_s12 + $0x50] sm:$0xff] }
 0x553   :  { %1915 = vmatpush.msra.mxu1 %v1900_v63 }
 0x559   :  { %v1699_v12 = vpop.permute.xlu0 %1698 }
 0x55a   :  { %v1714_v57 = vsel %vm1712_vm8, %v1711_v51, %v1699_v12  ;;  %v1899_v51 = vld [vmem:[%s2869_s12 + $0x48] sm:$0xff]  ;;  %v2024_v12 = vld [vmem:[%s2868_s11] ss:$0 sm:$0xff] }
 0x55b   :  { %v1717_v40 = vsel %vm1715_vm1, %v1714_v57, %v1707_v35  ;;  %1916 = vmatpush.msra.mxu1 %v1899_v51  ;;  %v1898_v35 = vld [vmem:[%s2869_s12 + $0x40] sm:$0xff]  ;;  %v1897_v57 = vld [vmem:[%s2869_s12 + $0x38] sm:$0xff] }
 0x55c   :  { %1982 = vmatmul.msk.f32.gmra.mxu3 %vm50_vm0, %v1717_v40 }
 0x55d   :  { %1917 = vmatpush.msra.mxu1 %v1898_v35 }
 0x55f   :  { %1918 = vmatpush.msra.mxu1 %v1897_v57 }
 0x5c9   :  { %v1749_v46 = vpop.f32.mrf.mxu3 }
 0x5ca   :  { %v1750_v48 = vadd.f32 %v2021_v29, %v1749_v46  ;;  %v1896_v46 = vld [vmem:[%s2869_s12 + $0x30] sm:$0xff] }
 0x5cb   :  { %1919 = vmatpush.msra.mxu1 %v1896_v46 }
 0x5cc   :  { %v2756_v13 = vadd.f32 %v2076_v14, %v1750_v48  ;;  %v1895_v14 = vld [vmem:[%s2869_s12 + $0x28] sm:$0xff] }
 0x5cd   :  { %1920 = vmatpush.msra.mxu1 %v1895_v14 }
 0x5ce   :  { %v1757_v49 = vsel %vm50_vm0, %v2756_v13, 0.0 }
 0x5cf   :  { %1758 = vadd.xlane.f32.xlu1 %v1757_v49 }
 0x5df   :  { %v1752_v50 = vpop.f32.mrf.mxu3 }
 0x5e0   :  { %v1753_v52 = vadd.f32 %v2021_v29, %v1752_v50  ;;  %v1894_v50 = vld [vmem:[%s2869_s12 + $0x20] sm:$0xff] }
 0x5e1   :  { %1921 = vmatpush.msra.mxu1 %v1894_v50 }
 0x5e2   :  { %v2763_v55 = vadd.f32 %v2077_v54, %v1753_v52  ;;  %v1893_v52 = vld [vmem:[%s2869_s12 + $0x18] sm:$0xff]  ;;  %v1892_v54 = vld [vmem:[%s2869_s12 + $0x10] sm:$0xff] }
 0x5e3   :  { %1922 = vmatpush.msra.mxu1 %v1893_v52 }
 0x5e4   :  { %v1760_v58 = vsel %vm50_vm0, %v2763_v55, 0.0 }
 0x5e5   :  { %1761 = vadd.xlane.f32.xlu0 %v1760_v58  ;;  %v1891_v58 = vld [vmem:[%s2869_s12 + $0x8] sm:$0xff]  ;;  %1923 = vmatpush.msra.mxu1 %v1892_v54 }
 0x5e7   :  { %1924 = vmatpush.msra.mxu1 %v1891_v58 }
 0x642   :  { %v1759_v60 = vpop.xlane.xlu1 %1758 }
 0x643   :  { %v1763_v61 = vmul.f32 %v1759_v60, %v2200_v10  ;;  %v1890_v60 = vld [vmem:[%s2869_s12] sm:$0xff] }
 0x644   :  { %1925 = vmatpush.msra.mxu1 %v1890_v60 }
 0x645   :  { %v1765_v47 = vsub.f32 %v2756_v13, %v1763_v61 }
 0x647   :  { %v1767_v62 = vmul.f32 %v1765_v47, %v1765_v47 }
 0x649   :  { %v1769_v22 = vsel %vm50_vm0, %v1767_v62, 0.0 }
 0x64a   :  { %1770 = vadd.xlane.f32.xlu2 %v1769_v22 }
 0x658   :  { %v1762_v0 = vpop.xlane.xlu0 %1761 }
 0x659   :  { %v1764_v2 = vmul.f32 %v1762_v0, %v2200_v10 }
 0x65b   :  { %v1766_v3 = vsub.f32 %v2763_v55, %v1764_v2 }
 0x65d   :  { %v1768_v5 = vmul.f32 %v1766_v3, %v1766_v3 }
 0x65f   :  { %v1772_v6 = vsel %vm50_vm0, %v1768_v5, 0.0 }
 0x660   :  { %1773 = vadd.xlane.f32.xlu1 %v1772_v6 }
 0x6bd   :  { %v1771_v56 = vpop.xlane.xlu2 %1770 }
 0x6be   :  { %v1775_v21 = vmul.f32 %v1771_v56, %v2200_v10 }
 0x6c0   :  { %v1777_v8 = vadd.f32 1e-05, %v1775_v21 }
 0x6c2   :  { %2064 = vrsqrt.f32 %v1777_v8  ;;  %vm1785_vm2 = vweird.f32 %v1777_v8 }
 0x6c8   :  { %v2065_v23 = vpop.eup %2064 }
 0x6c9   :  { %v1780_v16 = vmul.f32 %v2065_v23, %v1777_v8  ;;  %vm1786_vm9 = vweird.f32 %v2065_v23 }
 0x6ca   :  { %vm1787_vm3 = vmor %vm1785_vm2, %vm1786_vm9 }
 0x6cb   :  { %v1781_v19 = vmul.f32 %v2065_v23, %v1780_v16 }
 0x6cd   :  { %v1782_v59 = vmul.f32 0.5, %v1781_v19 }
 0x6cf   :  { %v1783_v31 = vsub.f32 1.5, %v1782_v59 }
 0x6d1   :  { %v1784_v17 = vmul.f32 %v2065_v23, %v1783_v31 }
 0x6d3   :  { %v1788_v25 = vsel %vm1787_vm3, %v2065_v23, %v1784_v17  ;;  %v1774_v26 = vpop.xlane.xlu1 %1773 }
 0x6d4   :  { %v1799_v28 = vmul.f32 %v1788_v25, %v1765_v47  ;;  %v1776_v30 = vmul.f32 %v1774_v26, %v2200_v10 }
 0x6d6   :  { %v1805_v4 = vmul.f32 %v2022_v18, %v1799_v28  ;;  %v1778_v24 = vadd.f32 1e-05, %v1776_v30 }
 0x6d8   :  { %2066 = vrsqrt.f32 %v1778_v24  ;;  %v1811_v32 = vadd.f32 %v2023_v1, %v1805_v4  ;;  %vm1795_vm5 = vweird.f32 %v1778_v24 }
 0x6da   :  { %1983 = vmatmul.msk.f32.vlgmr.msrb.gmra.mxu0 %vm50_vm0, %v1811_v32  ;;  %v2025_v32 = vld [vmem:[%s2870_s13] ss:$0 sm:$0xff]  ;;  %s2116_s13 = smov 128  }
 0x6de   :  { %v2067_v33 = vpop.eup %2066 }
 0x6df   :  { %v1790_v34 = vmul.f32 %v2067_v33, %v1778_v24  ;;  %vm1796_vm4 = vweird.f32 %v2067_v33 }
 0x6e0   :  { %vm1797_vm6 = vmor %vm1795_vm5, %vm1796_vm4 }
 0x6e1   :  { %v1791_v20 = vmul.f32 %v2067_v33, %v1790_v34 }
 0x6e3   :  { %v1792_v36 = vmul.f32 0.5, %v1791_v20 }
 0x6e5   :  { %v1793_v37 = vsub.f32 1.5, %v1792_v36 }
 0x6e7   :  { %v1794_v15 = vmul.f32 %v2067_v33, %v1793_v37 }
 0x6e9   :  { %v1798_v10 = vsel %vm1797_vm6, %v2067_v33, %v1794_v15 }
 0x6ea   :  { %v1800_v38 = vmul.f32 %v1798_v10, %v1766_v3 }
 0x6ec   :  { %v1806_v39 = vmul.f32 %v2022_v18, %v1800_v38 }
 0x6ee   :  { %v1812_v27 = vadd.f32 %v2023_v1, %v1806_v39 }
 0x6f0   :  { %1984 = vmatmul.msk.f32.gmra.mxu0 %vm50_vm0, %v1812_v27 }
 0x757   :  { %v1844_v40 = vpop.f32.mrf.mxu0 }
 0x758   :  { %v1845_v29 = vadd.f32 %v2024_v12, %v1844_v40 }
 0x75a   :  { %v1850_v48 = vmul.f32 -1.702, %v1845_v29 }
 0x75c   :  { %v1852_v49 = vmul.f32 1.442695, %v1850_v48 }
 0x75e   :  { %2068 = vpow2.f32 %v1852_v49 }
 0x764   :  { %v2069_v61 = vpop.eup %2068 }
 0x765   :  { %v1856_v47 = vadd.f32 1.0, %v2069_v61 }
 0x767   :  { %2070 = vrcp.f32 %v1856_v47  ;;  %v1869_v6 = vand.u32 2147483648, %v1856_v47  ;;  %v1867_v21 = vand.u32 2147483647, %v1856_v47  ;;  %vm1863_vm10 = vweird.f32 %v1856_v47 }
 0x769   :  { %v1870_v53 = vor.u32 1.1754944e-38, %v1869_v6  ;;  %vm1868_vm12 = vcmp.eq.f32.partialorder %v1867_v21, 8.507059e+37 }
 0x76d   :  { %v2071_v62 = vpop.eup %2070  ;;  %v1847_v22 = vpop.f32.mrf.mxu0 }
 0x76e   :  { %v1859_v0 = vmul.f32 %v2071_v62, %v1856_v47  ;;  %v1848_v2 = vadd.f32 %v2024_v12, %v1847_v22  ;;  %vm1864_vm7 = vweird.f32 %v2071_v62 }
 0x76f   :  { %vm1865_vm11 = vmor %vm1863_vm10, %vm1864_vm7 }
 0x770   :  { %v1860_v3 = vsub.f32 1.0, %v1859_v0  ;;  %v1851_v5 = vmul.f32 -1.702, %v1848_v2 }
 0x772   :  { %v1861_v56 = vmul.f32 %v2071_v62, %v1860_v3  ;;  %v1854_v7 = vmul.f32 1.442695, %v1851_v5 }
 0x774   :  { %v1862_v8 = vadd.f32 %v2071_v62, %v1861_v56  ;;  %2072 = vpow2.f32 %v1854_v7 }
 0x776   :  { %v1866_v9 = vsel %vm1865_vm11, %v2071_v62, %v1862_v8 }
 0x777   :  { %v1871_v11 = vsel %vm1868_vm12, %v1870_v53, %v1866_v9 }
 0x778   :  { %v1888_v23 = vmul.f32 %v1871_v11, %v1845_v29 }
 0x77a   :  { %v2073_v16 = vpop.eup %2072  ;;  %1926 = vmatmul.f32.vlgmr.msra.gmra.mxu1 %v1888_v23 }
 0x77b   :  { %v1857_v19 = vadd.f32 1.0, %v2073_v16 }
 0x77d   :  { %2074 = vrcp.f32 %v1857_v19  ;;  %v1884_v18 = vand.u32 2147483648, %v1857_v19  ;;  %v1882_v26 = vand.u32 2147483647, %v1857_v19  ;;  %vm1878_vm14 = vweird.f32 %v1857_v19 }
 0x77f   :  { %v1885_v30 = vor.u32 1.1754944e-38, %v1884_v18  ;;  %vm1883_vm8 = vcmp.eq.f32.partialorder %v1882_v26, 8.507059e+37 }
 0x783   :  { %v2075_v59 = vpop.eup %2074 }
 0x784   :  { %v1874_v31 = vmul.f32 %v2075_v59, %v1857_v19  ;;  %vm1879_vm13 = vweird.f32 %v2075_v59 }
 0x785   :  { %vm1880_vm15 = vmor %vm1878_vm14, %vm1879_vm13 }
 0x786   :  { %v1875_v17 = vsub.f32 1.0, %v1874_v31 }
 0x788   :  { %v1876_v25 = vmul.f32 %v2075_v59, %v1875_v17 }
 0x78a   :  { %v1877_v28 = vadd.f32 %v2075_v59, %v1876_v25 }
 0x78c   :  { %v1881_v1 = vsel %vm1880_vm15, %v2075_v59, %v1877_v28 }
 0x78d   :  { %v1886_v4 = vsel %vm1883_vm8, %v1885_v30, %v1881_v1 }
 0x78e   :  { %v1889_v24 = vmul.f32 %v1886_v4, %v1848_v2 }
 0x790   :  { %1929 = vmatmul.f32.gmra.mxu1 %v1889_v24 }
 0x7f7   :  { %v1927_v33 = vpop.f32.mrf.mxu1 }
 0x7f8   :  { %v1928_v34 = vadd.f32 %v2025_v32, %v1927_v33 }
 0x7fa   :  { %v1933_v20 = vadd.f32 %v1928_v34, %v2756_v13 }
 0x7fc   :  { %1935 = vst.msk [vmem:[#allocation2] sm:$0xff] %vm50_vm0, %v1933_v20 }
 0x80d   :  { %v1930_v36 = vpop.f32.mrf.mxu1 }
 0x80e   :  { %v1931_v37 = vadd.f32 %v2025_v32, %v1930_v36 }
 0x810   :  { %v1934_v15 = vadd.f32 %v1931_v37, %v2763_v55 }
 0x812   :  { %1936 = vst.msk [vmem:[#allocation2 + $0x8] sm:$0xff] %vm50_vm0, %v1934_v15 }
 0x813   :  { %1949 = dma.vmem_to_hbm [thread:$0]  %s1942_s3, 256, %s1944_s2, [#allocation3], %s2116_s13, %s2116_s13, %s2114_s19  }
 0x814   :  { %2102 = dma.done.wait [#allocation3], 256  }
 0x815   :  { %2103 = vsyncadd [#allocation3], 4294967040 }
 0x816   :  { %1954 = vsyncpa [#allocation3], 1 }

// kernel: tpu_custom_call.1
= control target key start
LH: loop header
LB: loop body
LE: loop exit
PB: predicated region body
PF: predicated region fallthrough
CT: control target
= control target key end

     0   :  { %vm50_vm0 = vcmask 261120   ;;  %s2857_s0 = inlined_call_operand.vmem [shape: f32[2,8,32], index: 0, kind: input, shape index: {}]   ;;  %s2858_s1 = inlined_call_operand.vmem [shape: f32[8,8], index: 1, kind: input, shape index: {}]   ;;  %s2859_s2 = inlined_call_operand.vmem [shape: f32[1,32], index: 2, kind: input, shape index: {}]   ;;  %s2860_s3 = inlined_call_operand.vmem [shape: f32[1,32], index: 3, kind: input, shape index: {}]   ;;  %s2861_s4 = inlined_call_operand.vmem [shape: f32[32,96], index: 4, kind: input, shape index: {}]   ;;  %s2862_s5 = inlined_call_operand.vmem [shape: f32[1,96], index: 5, kind: input, shape index: {}]   ;;  %s2863_s6 = inlined_call_operand.vmem [shape: f32[32,32], index: 6, kind: input, shape index: {}]   ;;  %s2864_s7 = inlined_call_operand.vmem [shape: f32[1,32], index: 7, kind: input, shape index: {}]   ;;  %s2865_s8 = inlined_call_operand.vmem [shape: f32[1,32], index: 8, kind: input, shape index: {}]   ;;  %s2866_s9 = inlined_call_operand.vmem [shape: f32[1,32], index: 9, kind: input, shape index: {}]   ;;  %s2867_s10 = inlined_call_operand.vmem [shape: f32[32,128], index: 10, kind: input, shape index: {}]   ;;  %s2868_s11 = inlined_call_operand.vmem [shape: f32[1,128], index: 11, kind: input, shape index: {}]   ;;  %s2869_s12 = inlined_call_operand.vmem [shape: f32[128,32], index: 12, kind: input, shape index: {}]   ;;  %s2870_s13 = inlined_call_operand.vmem [shape: f32[1,32], index: 13, kind: input, shape index: {}]   ;;  %s2871_s14 = inlined_call_operand.hbm [shape: f32[2,8,32], index: 14, kind: output, shape index: {}]  }
   0x1   :  { %v48_v0 = vld [vmem:[%s2857_s0] sm:$0xff] }
   0x2   :  { %v51_v1 = vsel %vm50_vm0, %v48_v0, 0.0 }
   0x3   :  { %52 = vadd.xlane.f32.xlu0 %v51_v1 }
   0x4   :  { %19 = vsyncpa [#allocation3], 0  ;;  %v49_v2 = vld [vmem:[%s2857_s0 + $0x8] sm:$0xff]  ;;  %v2104_v4 = vmov 32.0   ;;  %v117_v21 = vld [vmem:[%s2861_s4 + $0x18] sm:$0xff]  ;;  %s2106_s29 = smov 120  }
   0x5   :  { %v54_v3 = vsel %vm50_vm0, %v49_v2, 0.0  ;;  %2026 = vrcp.f32 %v2104_v4  ;;  %140 = vmatpush.msra.mxu0 %v117_v21  ;;  %v116_v22 = vld [vmem:[%s2861_s4 + $0x10] sm:$0xff]  ;;  %v115_v23 = vld [vmem:[%s2861_s4 + $0x8] sm:$0xff]  ;;  %v114_v24 = vld [vmem:[%s2861_s4] sm:$0xff]  ;;  %s2107_s30 = smov 112   ;;  %vm172_vm8 = vcmask 1047556  }
   0x6   :  { %v2018_v39 = vld [vmem:[%s2859_s2] ss:$0 sm:$0xff]  ;;  %v2109_v60 = vmov 1983009808   ;;  %v2110_v4 = vmov 1934713408  }
   0x7   :  { %141 = vmatpush.msra.mxu0 %v116_v22  ;;  %v2019_v43 = vld [vmem:[%s2860_s3] ss:$0 sm:$0xff]  ;;  %s2105_s3 = smov 104   ;;  %v177_v61 = vunpack.c.l.s4 %v2109_v60  ;;  %s2111_s15 = smov 64   ;;  %vm881_vm9 = vcmask 64512  }
   0x8   :  { %v2020_v53 = vld [vmem:[%s2862_s5] ss:$0 sm:$0xff]  ;;  %s2108_s5 = smov 96   ;;  %s2113_s18 = smov 24  }
   0x9   :  { %142 = vmatpush.msra.mxu0 %v115_v23  ;;  %v2254_v1 = vunpack.c.0.s8 %v177_v61  ;;  %s2114_s19 = smov 8   ;;  %s1943_s2 = sshll.u32 %s2871_s14, 4  ;;  %s1944_s2 = int_to_ptr.hbm [resolvable:$true] %s1943_s2 }
   0xa   :  { %s2115_s28 = smov [#allocation2]  }
   0xb   :  { %55 = vadd.xlane.f32.xlu0 %v54_v3  ;;  %v2027_v5 = vpop.eup %2026  ;;  %143 = vmatpush.msra.mxu0 %v114_v24 }
   0xc   :  { %v58_v6 = vmul.f32 32.0, %v2027_v5  ;;  %vm62_vm1 = vweird.f32 %v2027_v5 }
   0xe   :  { %v59_v7 = vsub.f32 1.0, %v58_v6 }
  0x10   :  { %v60_v8 = vmul.f32 %v2027_v5, %v59_v7 }
  0x12   :  { %v61_v9 = vadd.f32 %v2027_v5, %v60_v8 }
  0x14   :  { %v2200_v10 = vsel %vm62_vm1, %v2027_v5, %v61_v9  ;;  %v201_v5 = vunpack.c.l.s4 %v2110_v4 }
  0x76   :  { %v53_v11 = vpop.xlane.xlu0 %52 }
  0x77   :  { %v64_v12 = vmul.f32 %v2200_v10, %v53_v11 }
  0x79   :  { %v66_v13 = vsub.f32 %v48_v0, %v64_v12 }
  0x7b   :  { %v68_v14 = vmul.f32 %v66_v13, %v66_v13 }
  0x7d   :  { %v70_v15 = vsel %vm50_vm0, %v68_v14, 0.0 }
  0x7e   :  { %71 = vadd.xlane.f32.xlu1 %v70_v15  ;;  %v56_v16 = vpop.xlane.xlu0 %55  ;;  %v2270_v15 = vunpack.c.0.s8 %v201_v5 }
  0x7f   :  { %v65_v17 = vmul.f32 %v2200_v10, %v56_v16 }
  0x81   :  { %v67_v18 = vsub.f32 %v49_v2, %v65_v17 }
  0x83   :  { %v69_v19 = vmul.f32 %v67_v18, %v67_v18 }
  0x85   :  { %v73_v20 = vsel %vm50_vm0, %v69_v19, 0.0 }
  0x86   :  { %74 = vadd.xlane.f32.xlu1 %v73_v20 }
  0xf1   :  { %v72_v25 = vpop.xlane.xlu1 %71 }
  0xf2   :  { %v76_v26 = vmul.f32 %v72_v25, %v2200_v10 }
  0xf4   :  { %v78_v27 = vadd.f32 1e-05, %v76_v26 }
  0xf6   :  { %2028 = vrsqrt.f32 %v78_v27  ;;  %vm86_vm3 = vweird.f32 %v78_v27 }
  0xf9   :  { %v75_v28 = vpop.xlane.xlu1 %74 }
  0xfa   :  { %v77_v29 = vmul.f32 %v75_v28, %v2200_v10 }
  0xfc   :  { %v2029_v30 = vpop.eup %2028  ;;  %v79_v31 = vadd.f32 1e-05, %v77_v29 }
  0xfd   :  { %v81_v32 = vmul.f32 %v2029_v30, %v78_v27  ;;  %vm87_vm2 = vweird.f32 %v2029_v30 }
  0xfe   :  { %2030 = vrsqrt.f32 %v79_v31  ;;  %vm88_vm4 = vmor %vm86_vm3, %vm87_vm2  ;;  %vm96_vm5 = vweird.f32 %v79_v31 }
  0xff   :  { %v82_v33 = vmul.f32 %v2029_v30, %v81_v32 }
 0x101   :  { %v83_v34 = vmul.f32 0.5, %v82_v33 }
 0x103   :  { %v84_v35 = vsub.f32 1.5, %v83_v34 }
 0x104   :  { %v2031_v36 = vpop.eup %2030 }
 0x105   :  { %v85_v37 = vmul.f32 %v2029_v30, %v84_v35  ;;  %v91_v38 = vmul.f32 %v2031_v36, %v79_v31  ;;  %vm97_vm6 = vweird.f32 %v2031_v36 }
 0x106   :  { %vm98_vm7 = vmor %vm96_vm5, %vm97_vm6 }
 0x107   :  { %v89_v40 = vsel %vm88_vm4, %v2029_v30, %v85_v37  ;;  %v92_v41 = vmul.f32 %v2031_v36, %v91_v38 }
 0x108   :  { %v100_v42 = vmul.f32 %v89_v40, %v66_v13 }
 0x109   :  { %v93_v44 = vmul.f32 0.5, %v92_v41 }
 0x10a   :  { %v106_v45 = vmul.f32 %v2018_v39, %v100_v42 }
 0x10b   :  { %v94_v46 = vsub.f32 1.5, %v93_v44 }
 0x10c   :  { %v112_v47 = vadd.f32 %v2019_v43, %v106_v45 }
 0x10d   :  { %v95_v48 = vmul.f32 %v2031_v36, %v94_v46 }
 0x10e   :  { %1955 = vmatmul.msk.f32.vlgmr.msra.gmra.mxu0 %vm50_vm0, %v112_v47 }
 0x10f   :  { %v99_v49 = vsel %vm98_vm7, %v2031_v36, %v95_v48 }
 0x110   :  { %v101_v50 = vmul.f32 %v99_v49, %v67_v18 }
 0x112   :  { %v107_v51 = vmul.f32 %v2018_v39, %v101_v50 }
 0x114   :  { %v113_v52 = vadd.f32 %v2019_v43, %v107_v51 }
 0x116   :  { %1956 = vmatmul.msk.f32.gmra.mxu0 %vm50_vm0, %v113_v52 }
 0x18b   :  { %v145_v54 = vpop.f32.mrf.mxu0 }
 0x18c   :  { %v2231_v55 = vadd.f32 %v2020_v53, %v145_v54 }
 0x18e   :  { %165 = vrot.lane.b32.xlu0 %v2231_v55, %s2105_s3  ;;  %153 = vrot.lane.b32.xlu2 %v2231_v55, %s2106_s29  ;;  %v174_v0 = vrot.slane %v2231_v55, 4 }
 0x193   :  { %v148_v56 = vpop.f32.mrf.mxu0 }
 0x194   :  { %v2235_v57 = vadd.f32 %v2020_v53, %v148_v56 }
 0x196   :  { %159 = vrot.lane.b32.xlu2 %v2231_v55, %s2107_s30  ;;  %155 = vrot.lane.b32.xlu1 %v2235_v57, %s2106_s29  ;;  %v230_v11 = vrot.slane %v2235_v57, 4 }
 0x19e   :  { %161 = vrot.lane.b32.xlu2 %v2235_v57, %s2107_s30 }
 0x1a6   :  { %167 = vrot.lane.b32.xlu2 %v2235_v57, %s2105_s3  ;;  %s1941_s3 = sshll.u32 %s2115_s28, 4  ;;  %s1942_s3 = int_to_ptr.vmem [resolvable:$true] %s1941_s3 }
 0x1ae   :  { %392 = vrot.lane.b32.xlu2 %v2231_v55, %s2108_s5 }
 0x1e8   :  { %v154_v58 = vpop.permute.xlu2 %153 }
 0x1e9   :  { %396 = vrot.lane.b32.xlu0 %v154_v58, %s2108_s5  ;;  %v186_v7 = vrot.slane %v154_v58, 4  ;;  %v1998_v36 = vpack.i.bf16 %v154_v58, %v2231_v55 }
 0x1f0   :  { %v2244_v59 = vpop.permute.xlu2 %159 }
 0x1f1   :  { %394 = vrot.lane.b32.xlu0 %v2235_v57, %s2108_s5  ;;  %400 = vrot.lane.b32.xlu2 %v2244_v59, %s2108_s5  ;;  %v171_v62 = vrot.slane %v2244_v59, 4  ;;  %v175_v2 = vsel %vm172_vm8, %v2244_v59, %v174_v0 }
 0x1f2   :  { %v183_v6 = vperm.slane %v175_v2, %v2254_v1 }
 0x1f3   :  { %v173_v3 = vsel %vm172_vm8, %v171_v62, %v2231_v55 }
 0x1f4   :  { %v179_v8 = vperm.slane %v173_v3, %v2254_v1  ;;  %v210_v18 = vrot.slane %v183_v6, 4 }
 0x1f6   :  { %v198_v21 = vrot.slane %v179_v8, 4 }
 0x1f8   :  { %v2251_v63 = vpop.permute.xlu2 %161 }
 0x1f9   :  { %v228_v9 = vrot.slane %v2251_v63, 4  ;;  %v231_v14 = vsel %vm172_vm8, %v2251_v63, %v230_v11 }
 0x1fa   :  { %v239_v24 = vperm.slane %v231_v14, %v2254_v1 }
 0x1fb   :  { %v229_v22 = vsel %vm172_vm8, %v228_v9, %v2235_v57 }
 0x1fc   :  { %v235_v29 = vperm.slane %v229_v22, %v2254_v1  ;;  %v266_v37 = vrot.slane %v239_v24, 4 }
 0x1fe   :  { %v254_v45 = vrot.slane %v235_v29, 4 }
 0x200   :  { %v2264_v12 = vpop.permute.xlu2 %167  ;;  %v2266_v13 = vpop.permute.xlu0 %165 }
 0x201   :  { %v184_v16 = vrot.slane %v2266_v13, 4  ;;  %v187_v17 = vsel %vm172_vm8, %v2266_v13, %v186_v7  ;;  %406 = vrot.lane.b32.xlu0 %v2264_v12, %s2108_s5  ;;  %404 = vrot.lane.b32.xlu1 %v2266_v13, %s2108_s5  ;;  %v2013_v20 = vpack.i.bf16 %v2264_v12, %v2251_v63  ;;  %v240_v38 = vrot.slane %v2264_v12, 4 }
 0x202   :  { %v195_v19 = vperm.slane %v187_v17, %v2254_v1 }
 0x203   :  { %v185_v23 = vsel %vm172_vm8, %v184_v16, %v154_v58 }
 0x204   :  { %v191_v25 = vperm.slane %v185_v23, %v2254_v1  ;;  %v208_v26 = vrot.slane %v195_v19, 4  ;;  %v211_v27 = vsel %vm172_vm8, %v195_v19, %v210_v18 }
 0x205   :  { %v219_v28 = vperm.slane %v211_v27, %v2270_v15 }
 0x206   :  { %v196_v30 = vrot.slane %v191_v25, 4  ;;  %v199_v31 = vsel %vm172_vm8, %v191_v25, %v198_v21  ;;  %v209_v32 = vsel %vm172_vm8, %v208_v26, %v183_v6 }
 0x207   :  { %v207_v33 = vperm.slane %v199_v31, %v2270_v15  ;;  %v215_v34 = vperm.slane %v209_v32, %v2270_v15  ;;  %v226_v35 = vrot.slane %v219_v28, 4 }
 0x208   :  { %v197_v39 = vsel %vm172_vm8, %v196_v30, %v179_v8  ;;  %v2297_v40 = vpop.permute.xlu1 %155 }
 0x209   :  { %v203_v41 = vperm.slane %v197_v39, %v2270_v15  ;;  %v222_v42 = vrot.slane %v207_v33, 4  ;;  %v224_v43 = vrot.slane %v215_v34, 4  ;;  %v227_v44 = vsel %vm172_vm8, 0.0, %v226_v35  ;;  %1999 = vrot.lane.b32.xlu0 %v1998_v36, %s2111_s15  ;;  %398 = vrot.lane.b32.xlu2 %v2297_v40, %s2108_s5 }
 0x20a   :  { %v300_v46 = vrot.slane %v227_v44, 4  ;;  %v241_v47 = vsel %vm172_vm8, %v240_v38, %v2297_v40  ;;  %v242_v48 = vrot.slane %v2297_v40, 4  ;;  %402 = vrot.lane.b32.xlu1 %v2251_v63, %s2108_s5  ;;  %v295_v56 = vsel %vm172_vm8, %v226_v35, %v215_v34 }
 0x20b   :  { %v247_v49 = vperm.slane %v241_v47, %v2254_v1  ;;  %v220_v50 = vrot.slane %v203_v41, 4  ;;  %v223_v51 = vsel %vm172_vm8, 0.0, %v222_v42  ;;  %v225_v52 = vsel %vm172_vm8, 0.0, %v224_v43 }
 0x20c   :  { %v243_v53 = vsel %vm172_vm8, %v2264_v12, %v242_v48  ;;  %v284_v54 = vsel %vm172_vm8, %v222_v42, %v203_v41  ;;  %v289_v55 = vrot.slane %v223_v51, 4  ;;  %v299_v4 = vperm.slane %v295_v56, %v2254_v1 }
 0x20d   :  { %v251_v58 = vperm.slane %v243_v53, %v2254_v1  ;;  %v252_v60 = vrot.slane %v247_v49, 4  ;;  %v255_v61 = vsel %vm172_vm8, %v247_v49, %v254_v45  ;;  %v221_v62 = vsel %vm172_vm8, 0.0, %v220_v50 }
 0x20e   :  { %v263_v0 = vperm.slane %v255_v61, %v2270_v15  ;;  %v288_v2 = vperm.slane %v284_v54, %v2254_v1  ;;  %v290_v3 = vsel %vm172_vm8, %v289_v55, %v221_v62  ;;  %v301_v16 = vsel %vm172_vm8, %v300_v46, %v225_v52 }
 0x20f   :  { %v253_v5 = vsel %vm172_vm8, %v252_v60, %v235_v29  ;;  %v264_v6 = vrot.slane %v251_v58, 4  ;;  %v267_v7 = vsel %vm172_vm8, %v251_v58, %v266_v37  ;;  %v294_v8 = vperm.slane %v290_v3, %v2254_v1 }
 0x210   :  { %v259_v9 = vperm.slane %v253_v5, %v2270_v15  ;;  %v275_v11 = vperm.slane %v267_v7, %v2270_v15  ;;  %v278_v14 = vrot.slane %v263_v0, 4  ;;  %v305_v18 = vperm.slane %v301_v16, %v2254_v1 }
 0x211   :  { %v265_v17 = vsel %vm172_vm8, %v264_v6, %v239_v24  ;;  %v308_v19 = vrot.slane %v288_v2, 4  ;;  %v320_v21 = vrot.slane %v299_v4, 4  ;;  %v306_v30 = vrot.slane %v294_v8, 4 }
 0x212   :  { %v271_v22 = vperm.slane %v265_v17, %v2270_v15  ;;  %v276_v23 = vrot.slane %v259_v9, 4  ;;  %v279_v25 = vsel %vm172_vm8, 0.0, %v278_v14  ;;  %v282_v26 = vrot.slane %v275_v11, 4 }
 0x213   :  { %v343_v27 = vrot.slane %v279_v25, 4  ;;  %v309_v28 = vsel %vm172_vm8, %v294_v8, %v308_v19  ;;  %v321_v29 = vsel %vm172_vm8, %v305_v18, %v320_v21  ;;  %v307_v35 = vsel %vm172_vm8, %v306_v30, %v288_v2  ;;  %v393_v25 = vpop.permute.xlu2 %392 }
 0x214   :  { %v277_v31 = vsel %vm172_vm8, 0.0, %v276_v23  ;;  %v283_v24 = vsel %vm172_vm8, 0.0, %v282_v26  ;;  %v317_v32 = vperm.slane %v309_v28, %v2270_v15  ;;  %v329_v33 = vperm.slane %v321_v29, %v2270_v15 }
 0x215   :  { %v354_v34 = vrot.slane %v283_v24, 4  ;;  %v318_v36 = vrot.slane %v305_v18, 4  ;;  %v280_v37 = vrot.slane %v271_v22, 4  ;;  %v313_v41 = vperm.slane %v307_v35, %v2270_v15 }
 0x216   :  { %v334_v38 = vrot.slane %v329_v33, 4  ;;  %v336_v39 = vrot.slane %v317_v32, 4  ;;  %v338_v42 = vsel %vm172_vm8, %v278_v14, %v259_v9  ;;  %v344_v46 = vsel %vm172_vm8, %v343_v27, %v277_v31 }
 0x217   :  { %v319_v43 = vsel %vm172_vm8, %v318_v36, %v299_v4  ;;  %v281_v44 = vsel %vm172_vm8, 0.0, %v280_v37  ;;  %v342_v45 = vperm.slane %v338_v42, %v2254_v1  ;;  %v332_v49 = vrot.slane %v313_v41, 4 }
 0x218   :  { %v2347_v47 = vsel %vm172_vm8, %v334_v38, %v317_v32  ;;  %v325_v48 = vperm.slane %v319_v43, %v2270_v15  ;;  %v348_v50 = vperm.slane %v344_v46, %v2254_v1  ;;  %v349_v51 = vsel %vm172_vm8, %v282_v26, %v271_v22 }
 0x219   :  { %v355_v52 = vsel %vm172_vm8, %v354_v34, %v281_v44  ;;  %v2354_v53 = vsel %vm172_vm8, %v329_v33, %v336_v39  ;;  %v362_v54 = vrot.slane %v342_v45, 4  ;;  %v353_v58 = vperm.slane %v349_v51, %v2254_v1 }
 0x21a   :  { %v330_v55 = vrot.slane %v325_v48, 4  ;;  %v2357_v56 = vsel %vm172_vm8, %v325_v48, %v332_v49  ;;  %v359_v60 = vperm.slane %v355_v52, %v2254_v1  ;;  %v360_v61 = vrot.slane %v348_v50, 4 }
 0x21b   :  { %v363_v62 = vsel %vm172_vm8, %v348_v50, %v362_v54  ;;  %v374_v3 = vrot.slane %v353_v58, 4  ;;  %v418_v30 = vrot.slane %v393_v25, 4 }
 0x21c   :  { %v2363_v0 = vsel %vm172_vm8, %v330_v55, %v313_v41  ;;  %v372_v2 = vrot.slane %v359_v60, 4  ;;  %v371_v4 = vperm.slane %v363_v62, %v2270_v15  ;;  %v361_v5 = vsel %vm172_vm8, %v360_v61, %v342_v45 }
 0x21d   :  { %v367_v6 = vperm.slane %v361_v5, %v2270_v15  ;;  %v375_v8 = vsel %vm172_vm8, %v359_v60, %v374_v3 }
 0x21e   :  { %v373_v7 = vsel %vm172_vm8, %v372_v2, %v353_v58  ;;  %v390_v9 = vrot.slane %v371_v4, 4  ;;  %v383_v14 = vperm.slane %v375_v8, %v2270_v15 }
 0x21f   :  { %v379_v11 = vperm.slane %v373_v7, %v2270_v15  ;;  %v386_v16 = vrot.slane %v367_v6, 4 }
 0x220   :  { %v388_v18 = vrot.slane %v383_v14, 4  ;;  %v2373_v19 = vsel %vm172_vm8, %v383_v14, %v390_v9 }
 0x221   :  { %v384_v17 = vrot.slane %v379_v11, 4  ;;  %v2376_v21 = vsel %vm172_vm8, %v379_v11, %v386_v16 }
 0x222   :  { %v2379_v22 = vsel %vm172_vm8, %v388_v18, %v371_v4 }
 0x223   :  { %v2382_v23 = vsel %vm172_vm8, %v384_v17, %v367_v6 }
 0x24b   :  { %v401_v27 = vpop.permute.xlu2 %400 }
 0x24c   :  { %v416_v28 = vrot.slane %v401_v27, 4  ;;  %v419_v31 = vsel %vm172_vm8, %v401_v27, %v418_v30 }
 0x24d   :  { %v427_v32 = vperm.slane %v419_v31, %v2254_v1 }
 0x24e   :  { %v417_v24 = vsel %vm172_vm8, %v416_v28, %v393_v25 }
 0x24f   :  { %v423_v34 = vperm.slane %v417_v24, %v2254_v1  ;;  %v454_v43 = vrot.slane %v427_v32, 4 }
 0x251   :  { %v442_v45 = vrot.slane %v423_v34, 4 }
 0x25b   :  { %v397_v26 = vpop.permute.xlu0 %396 }
 0x25c   :  { %v430_v35 = vrot.slane %v397_v26, 4 }
 0x263   :  { %v395_v29 = vpop.permute.xlu0 %394  ;;  %v399_v33 = vpop.permute.xlu2 %398 }
 0x264   :  { %v486_v38 = vrot.slane %v399_v33, 4  ;;  %v474_v5 = vrot.slane %v395_v29, 4 }
 0x273   :  { %v405_v36 = vpop.permute.xlu1 %404  ;;  %v407_v37 = vpop.permute.xlu0 %406 }
 0x274   :  { %v428_v39 = vrot.slane %v405_v36, 4  ;;  %v431_v41 = vsel %vm172_vm8, %v405_v36, %v430_v35  ;;  %v484_v42 = vrot.slane %v407_v37, 4  ;;  %v487_v48 = vsel %vm172_vm8, %v407_v37, %v486_v38 }
 0x275   :  { %v439_v44 = vperm.slane %v431_v41, %v2254_v1  ;;  %v495_v61 = vperm.slane %v487_v48, %v2254_v1 }
 0x276   :  { %v429_v46 = vsel %vm172_vm8, %v428_v39, %v397_v26  ;;  %v485_v52 = vsel %vm172_vm8, %v484_v42, %v399_v33 }
 0x277   :  { %v435_v49 = vperm.slane %v429_v46, %v2254_v1  ;;  %v452_v50 = vrot.slane %v439_v44, 4  ;;  %v455_v51 = vsel %vm172_vm8, %v439_v44, %v454_v43  ;;  %v491_v4 = vperm.slane %v485_v52, %v2254_v1 }
 0x278   :  { %v463_v54 = vperm.slane %v455_v51, %v2270_v15  ;;  %v508_v27 = vrot.slane %v495_v61, 4 }
 0x279   :  { %v440_v55 = vrot.slane %v435_v49, 4  ;;  %v443_v58 = vsel %vm172_vm8, %v435_v49, %v442_v45  ;;  %v453_v60 = vsel %vm172_vm8, %v452_v50, %v427_v32  ;;  %v496_v26 = vrot.slane %v491_v4, 4 }
 0x27a   :  { %v451_v62 = vperm.slane %v443_v58, %v2270_v15  ;;  %v459_v2 = vperm.slane %v453_v60, %v2270_v15  ;;  %v470_v3 = vrot.slane %v463_v54, 4 }
 0x27b   :  { %v441_v6 = vsel %vm172_vm8, %v440_v55, %v423_v34 }
 0x27c   :  { %v447_v7 = vperm.slane %v441_v6, %v2270_v15  ;;  %v466_v8 = vrot.slane %v451_v62, 4  ;;  %v471_v9 = vsel %vm172_vm8, 0.0, %v470_v3  ;;  %v403_v11 = vpop.permute.xlu1 %402  ;;  %v468_v14 = vrot.slane %v459_v2, 4 }
 0x27d   :  { %v539_v16 = vsel %vm172_vm8, %v470_v3, %v459_v2  ;;  %v472_v17 = vrot.slane %v403_v11, 4  ;;  %v475_v18 = vsel %vm172_vm8, %v403_v11, %v474_v5  ;;  %v544_v24 = vrot.slane %v471_v9, 4 }
 0x27e   :  { %v467_v25 = vsel %vm172_vm8, 0.0, %v466_v8  ;;  %v483_v28 = vperm.slane %v475_v18, %v2254_v1  ;;  %v543_v31 = vperm.slane %v539_v16, %v2254_v1  ;;  %v464_v36 = vrot.slane %v447_v7, 4 }
 0x27f   :  { %v533_v30 = vrot.slane %v467_v25, 4  ;;  %v473_v32 = vsel %vm172_vm8, %v472_v17, %v395_v29  ;;  %v469_v37 = vsel %vm172_vm8, 0.0, %v468_v14  ;;  %v528_v39 = vsel %vm172_vm8, %v466_v8, %v447_v7 }
 0x280   :  { %v479_v33 = vperm.slane %v473_v32, %v2254_v1  ;;  %v509_v34 = vsel %vm172_vm8, %v508_v27, %v483_v28  ;;  %v510_v35 = vrot.slane %v483_v28, 4  ;;  %v465_v44 = vsel %vm172_vm8, 0.0, %v464_v36 }
 0x281   :  { %v515_v38 = vperm.slane %v509_v34, %v2270_v15  ;;  %v532_v48 = vperm.slane %v528_v39, %v2254_v1  ;;  %v534_v50 = vsel %vm172_vm8, %v533_v30, %v465_v44  ;;  %v545_v51 = vsel %vm172_vm8, %v544_v24, %v469_v37 }
 0x282   :  { %v497_v41 = vsel %vm172_vm8, %v496_v26, %v479_v33  ;;  %v498_v42 = vrot.slane %v479_v33, 4  ;;  %v511_v43 = vsel %vm172_vm8, %v495_v61, %v510_v35  ;;  %v564_v52 = vrot.slane %v543_v31, 4 }
 0x283   :  { %v503_v29 = vperm.slane %v497_v41, %v2270_v15  ;;  %v519_v45 = vperm.slane %v511_v43, %v2270_v15  ;;  %v524_v46 = vrot.slane %v515_v38, 4  ;;  %v538_v60 = vperm.slane %v534_v50, %v2254_v1 }
 0x284   :  { %v499_v49 = vsel %vm172_vm8, %v491_v4, %v498_v42  ;;  %v549_v61 = vperm.slane %v545_v51, %v2254_v1  ;;  %v552_v62 = vrot.slane %v532_v48, 4 }
 0x285   :  { %v507_v54 = vperm.slane %v499_v49, %v2270_v15  ;;  %v526_v55 = vrot.slane %v519_v45, 4  ;;  %v520_v58 = vrot.slane %v503_v29, 4  ;;  %v525_v3 = vsel %vm172_vm8, 0.0, %v524_v46 }
 0x286   :  { %v553_v8 = vsel %vm172_vm8, %v538_v60, %v552_v62  ;;  %v565_v9 = vsel %vm172_vm8, %v549_v61, %v564_v52  ;;  %v550_v17 = vrot.slane %v538_v60, 4  ;;  %v562_v27 = vrot.slane %v549_v61, 4 }
 0x287   :  { %v522_v2 = vrot.slane %v507_v54, 4  ;;  %v527_v4 = vsel %vm172_vm8, 0.0, %v526_v55  ;;  %v593_v5 = vsel %vm172_vm8, %v526_v55, %v515_v38  ;;  %v561_v14 = vperm.slane %v553_v8, %v2270_v15 }
 0x288   :  { %v597_v6 = vperm.slane %v593_v5, %v2254_v1  ;;  %v598_v7 = vrot.slane %v527_v4, 4  ;;  %v573_v16 = vperm.slane %v565_v9, %v2270_v15  ;;  %v521_v28 = vsel %vm172_vm8, 0.0, %v520_v58 }
 0x289   :  { %v523_v11 = vsel %vm172_vm8, 0.0, %v522_v2  ;;  %v551_v32 = vsel %vm172_vm8, %v550_v17, %v532_v48  ;;  %v563_v34 = vsel %vm172_vm8, %v562_v27, %v543_v31  ;;  %v582_v35 = vsel %vm172_vm8, %v522_v2, %v503_v29 }
 0x28a   :  { %v587_v18 = vrot.slane %v523_v11, 4  ;;  %v599_v25 = vsel %vm172_vm8, %v598_v7, %v525_v3  ;;  %v618_v26 = vrot.slane %v597_v6, 4  ;;  %v578_v24 = vrot.slane %v573_v16, 4 }
 0x28b   :  { %v603_v30 = vperm.slane %v599_v25, %v2254_v1  ;;  %v557_v33 = vperm.slane %v551_v32, %v2270_v15  ;;  %v569_v39 = vperm.slane %v563_v34, %v2270_v15  ;;  %v586_v42 = vperm.slane %v582_v35, %v2254_v1 }
 0x28c   :  { %v588_v36 = vsel %vm172_vm8, %v587_v18, %v521_v28  ;;  %v579_v38 = vsel %vm172_vm8, %v578_v24, %v561_v14  ;;  %v580_v50 = vrot.slane %v561_v14, 4 }
 0x28d   :  { %v616_v37 = vrot.slane %v603_v30, 4  ;;  %1961 = vmatpush.xpose.msk.msra.mxu3 %vm881_vm9, %v579_v38  ;;  %v576_v41 = vrot.slane %v557_v33, 4  ;;  %v592_v43 = vperm.slane %v588_v36, %v2254_v1  ;;  %v619_v44 = vsel %vm172_vm8, %v603_v30, %v618_v26 }
 0x28e   :  { %v574_v45 = vrot.slane %v569_v39, 4  ;;  %v606_v48 = vrot.slane %v586_v42, 4  ;;  %v627_v49 = vperm.slane %v619_v44, %v2270_v15  ;;  %v2008_v38 = vpack.i.bf16 %v2297_v40, %v2235_v57 }
 0x28f   :  { %v617_v31 = vsel %vm172_vm8, %v616_v37, %v597_v6  ;;  %v577_v29 = vsel %vm172_vm8, %v569_v39, %v576_v41  ;;  %v604_v46 = vrot.slane %v592_v43, 4  ;;  %v2003_v37 = vpack.i.bf16 %v2266_v13, %v2244_v59  ;;  %v2000_v39 = vpop.permute.xlu0 %1999 }
 0x290   :  { %v575_v51 = vsel %vm172_vm8, %v574_v45, %v557_v33  ;;  %1962 = vmatmul.msk.f32.vlgmr.msra.gmra.mxu3 %vm881_vm9, %v2347_v47  ;;  %v607_v54 = vsel %vm172_vm8, %v592_v43, %v606_v48  ;;  %v623_v58 = vperm.slane %v617_v31, %v2270_v15  ;;  %v632_v61 = vrot.slane %v627_v49, 4 }
 0x291   :  { %1957 = vmatpush.xpose.msk.msra.mxu2 %vm881_vm9, %v575_v51  ;;  %v605_v52 = vsel %vm172_vm8, %v604_v46, %v586_v42  ;;  %v615_v60 = vperm.slane %v607_v54, %v2270_v15  ;;  %v581_v47 = vsel %vm172_vm8, %v573_v16, %v580_v50 }
 0x292   :  { %v611_v55 = vperm.slane %v605_v52, %v2270_v15  ;;  %v628_v2 = vrot.slane %v623_v58, 4 }
 0x293   :  { %v633_v4 = vsel %vm172_vm8, %v632_v61, %v615_v60 }
 0x294   :  { %1958 = vmatmul.msk.f32.vlgmr.msra.gmra.mxu2 %vm881_vm9, %v2363_v0  ;;  %v630_v62 = vrot.slane %v611_v55, 4  ;;  %v629_v5 = vsel %vm172_vm8, %v628_v2, %v611_v55  ;;  %v634_v0 = vrot.slane %v615_v60, 4  ;;  %v2002_v55 = vunpack.i.h.bf16 %v2000_v39 }
 0x295   :  { %1959 = vmatpush.xpose.msk.msrb.mxu2 %vm881_vm9, %v577_v29  ;;  %v2001_v60 = vunpack.i.l.bf16 %v2000_v39 }
 0x296   :  { %v631_v3 = vsel %vm172_vm8, %v623_v58, %v630_v62  ;;  %v635_v6 = vsel %vm172_vm8, %v627_v49, %v634_v0  ;;  %v674_v61 = vrot.slane %v2002_v55, 4 }
 0x297   :  { %1967 = vmatpush.xpose.msk.msrb.mxu3 %vm881_vm9, %v631_v3  ;;  %v662_v2 = vrot.slane %v2001_v60, 4 }
 0x299   :  { %1963 = vmatpush.xpose.msk.msra.mxu2 %vm881_vm9, %v581_v47 }
 0x29a   :  { %1968 = vmatmul.msk.f32.vlgmr.msrb.gmra.mxu3 %vm881_vm9, %v2376_v21 }
 0x29b   :  { %1969 = vmatpush.xpose.msk.msra.mxu3 %vm881_vm9, %v633_v4 }
 0x29c   :  { %1960 = vmatmul.msk.f32.vlgmr.msrb.gmra.mxu2 %vm881_vm9, %v2357_v56  ;;  %v880_v56 = vld [vmem:[%s2858_s1] sm:$0xff]  ;;  %s2112_s1 = smov 16  }
 0x29d   :  { %1965 = vmatpush.xpose.msk.msrb.mxu2 %vm881_vm9, %v629_v5 }
 0x2a2   :  { %1970 = vmatmul.msk.f32.vlgmr.msra.gmra.mxu3 %vm881_vm9, %v2379_v22 }
 0x2a4   :  { %1964 = vmatmul.msk.f32.vlgmr.msra.gmra.mxu2 %vm881_vm9, %v2354_v53 }
 0x2a5   :  { %1971 = vmatpush.xpose.msk.msra.mxu2 %vm881_vm9, %v635_v6 }
 0x2ac   :  { %1966 = vmatmul.msk.f32.vlgmr.msrb.gmra.mxu2 %vm881_vm9, %v2382_v23 }
 0x2b4   :  { %1972 = vmatmul.msk.f32.vlgmr.msra.gmra.mxu2 %vm881_vm9, %v2373_v19 }
 0x313   :  { %v957_v21 = vpop.f32.mrf.mxu3 }
 0x314   :  { %v958_v7 = vadd.f32 %v957_v21, %v880_v56 }
 0x316   :  { %v1096_v22 = vsel %vm881_vm9, %v958_v7, -inf }
 0x317   :  { %v905_v8 = vpop.f32.mrf.mxu2  ;;  %1097 = vmax.xlane.f32.xlu0 %v1096_v22 }
 0x318   :  { %v906_v53 = vadd.f32 %v905_v8, %v880_v56 }
 0x31a   :  { %v1090_v9 = vsel %vm881_vm9, %v906_v53, -inf }
 0x31b   :  { %1091 = vmax.xlane.f32.xlu2 %v1090_v9 }
 0x31d   :  { %v1035_v11 = vpop.f32.mrf.mxu3 }
 0x31e   :  { %v2493_v14 = vadd.f32 %v1035_v11, %v880_v56 }
 0x31f   :  { %v931_v23 = vpop.f32.mrf.mxu2 }
 0x320   :  { %v932_v16 = vadd.f32 %v931_v23, %v880_v56  ;;  %v1105_v19 = vsel %vm881_vm9, %v2493_v14, -inf }
 0x321   :  { %1106 = vmax.xlane.f32.xlu1 %v1105_v19 }
 0x322   :  { %v1093_v17 = vsel %vm881_vm9, %v932_v16, -inf }
 0x323   :  { %1094 = vmax.xlane.f32.xlu2 %v1093_v17 }
 0x325   :  { %v1061_v18 = vpop.f32.mrf.mxu3 }
 0x326   :  { %v1062_v25 = vadd.f32 %v1061_v18, %v880_v56 }
 0x327   :  { %v983_v26 = vpop.f32.mrf.mxu2 }
 0x328   :  { %v984_v27 = vadd.f32 %v983_v26, %v880_v56  ;;  %v1108_v28 = vsel %vm881_vm9, %v1062_v25, -inf }
 0x32a   :  { %v1099_v30 = vsel %vm881_vm9, %v984_v27, -inf }
 0x32b   :  { %1109 = vmax.xlane.f32.xlu2 %v1108_v28  ;;  %1100 = vmax.xlane.f32.xlu1 %v1099_v30 }
 0x32f   :  { %v1009_v24 = vpop.f32.mrf.mxu2 }
 0x330   :  { %v1010_v32 = vadd.f32 %v1009_v24, %v880_v56 }
 0x332   :  { %v1102_v33 = vsel %vm881_vm9, %v1010_v32, -inf }
 0x333   :  { %1103 = vmax.xlane.f32.xlu1 %v1102_v33 }
 0x337   :  { %v1087_v34 = vpop.f32.mrf.mxu2 }
 0x338   :  { %v2501_v35 = vadd.f32 %v1087_v34, %v880_v56 }
 0x33a   :  { %v1111_v36 = vsel %vm881_vm9, %v2501_v35, -inf }
 0x33b   :  { %1112 = vmax.xlane.f32.xlu0 %v1111_v36 }
 0x343   :  { %2004 = vrot.lane.b32.xlu2 %v2003_v37, %s2111_s15 }
 0x34c   :  { %2014 = vrot.lane.b32.xlu1 %v2013_v20, %s2111_s15 }
 0x34f   :  { %2009 = vrot.lane.b32.xlu0 %v2008_v38, %s2111_s15 }
 0x38a   :  { %v1098_v41 = vpop.xlane.xlu0 %1097 }
 0x38b   :  { %v1116_v42 = vsub.f32 %v958_v7, %v1098_v41 }
 0x38d   :  { %v1126_v43 = vmul.f32 1.442695, %v1116_v42 }
 0x38e   :  { %v1092_v44 = vpop.xlane.xlu2 %1091 }
 0x38f   :  { %2032 = vpow2.f32 %v1126_v43  ;;  %v1114_v45 = vsub.f32 %v906_v53, %v1092_v44 }
 0x391   :  { %v1122_v59 = vmul.f32 1.442695, %v1114_v45 }
 0x393   :  { %2034 = vpow2.f32 %v1122_v59 }
 0x394   :  { %v2515_v13 = vpop.xlane.xlu1 %1106 }
 0x395   :  { %v2517_v31 = vpop.eup %2032  ;;  %v1119_v44 = vsub.f32 %v2493_v14, %v2515_v13 }
 0x396   :  { %v1095_v63 = vpop.xlane.xlu2 %1094  ;;  %v1144_v12 = vsel %vm881_vm9, %v2517_v31, 0.0 }
 0x397   :  { %v1115_v57 = vsub.f32 %v932_v16, %v1095_v63  ;;  %1145 = vadd.xlane.f32.xlu2 %v1144_v12 }
 0x399   :  { %v2521_v20 = vpop.eup %2034  ;;  %v1124_v40 = vmul.f32 1.442695, %v1115_v57 }
 0x39a   :  { %v1138_v29 = vsel %vm881_vm9, %v2521_v20, 0.0 }
 0x39b   :  { %2036 = vpow2.f32 %v1124_v40  ;;  %1139 = vadd.xlane.f32.xlu1 %v1138_v29 }
 0x39e   :  { %v1110_v46 = vpop.xlane.xlu2 %1109  ;;  %v1101_v48 = vpop.xlane.xlu1 %1100 }
 0x39f   :  { %v1120_v49 = vsub.f32 %v1062_v25, %v1110_v46  ;;  %v1117_v50 = vsub.f32 %v984_v27, %v1101_v48 }
 0x3a1   :  { %v2525_v51 = vpop.eup %2036  ;;  %v1134_v52 = vmul.f32 1.442695, %v1120_v49  ;;  %v1128_v54 = vmul.f32 1.442695, %v1117_v50  ;;  %v1132_v49 = vmul.f32 1.442695, %v1119_v44 }
 0x3a2   :  { %v1141_v58 = vsel %vm881_vm9, %v2525_v51, 0.0 }
 0x3a3   :  { %2038 = vpow2.f32 %v1134_v52  ;;  %1142 = vadd.xlane.f32.xlu0 %v1141_v58 }
 0x3a4   :  { %2040 = vpow2.f32 %v1128_v54 }
 0x3a6   :  { %v2005_v47 = vpop.permute.xlu2 %2004  ;;  %v1104_v62 = vpop.xlane.xlu1 %1103 }
 0x3a7   :  { %v2007_v3 = vunpack.i.h.bf16 %v2005_v47  ;;  %v2006_v4 = vunpack.i.l.bf16 %v2005_v47  ;;  %v1118_v5 = vsub.f32 %v1010_v32, %v1104_v62 }
 0x3a9   :  { %v2529_v0 = vpop.eup %2038  ;;  %v672_v6 = vrot.slane %v2007_v3, 4  ;;  %v660_v56 = vrot.slane %v2006_v4, 4  ;;  %v663_v21 = vsel %vm172_vm8, %v2006_v4, %v662_v2  ;;  %v675_v7 = vsel %vm172_vm8, %v2007_v3, %v674_v61 }
 0x3aa   :  { %v2533_v22 = vpop.eup %2040  ;;  %v671_v8 = vperm.slane %v663_v21, %v2254_v1  ;;  %v683_v53 = vperm.slane %v675_v7, %v2254_v1  ;;  %v1130_v9 = vmul.f32 1.442695, %v1118_v5  ;;  %v1156_v11 = vsel %vm881_vm9, %v2529_v0, 0.0 }
 0x3ab   :  { %v661_v23 = vsel %vm172_vm8, %v660_v56, %v2001_v60  ;;  %v673_v16 = vsel %vm172_vm8, %v672_v6, %v2002_v55  ;;  %1157 = vadd.xlane.f32.xlu0 %v1156_v11  ;;  %v1147_v19 = vsel %vm881_vm9, %v2533_v22, 0.0 }
 0x3ac   :  { %v667_v17 = vperm.slane %v661_v23, %v2254_v1  ;;  %v679_v18 = vperm.slane %v673_v16, %v2254_v1  ;;  %v696_v25 = vrot.slane %v683_v53, 4  ;;  %v698_v26 = vrot.slane %v671_v8, 4  ;;  %1148 = vadd.xlane.f32.xlu1 %v1147_v19 }
 0x3ad   :  { %2042 = vpow2.f32 %v1130_v9 }
 0x3ae   :  { %v684_v27 = vrot.slane %v679_v18, 4  ;;  %v686_v28 = vrot.slane %v667_v17, 4  ;;  %v697_v30 = vsel %vm172_vm8, %v696_v25, %v671_v8  ;;  %v699_v24 = vsel %vm172_vm8, %v683_v53, %v698_v26  ;;  %v1113_v32 = vpop.xlane.xlu0 %1112 }
 0x3af   :  { %v703_v33 = vperm.slane %v697_v30, %v2270_v15  ;;  %v707_v34 = vperm.slane %v699_v24, %v2270_v15  ;;  %v1121_v36 = vsub.f32 %v2501_v35, %v1113_v32 }
 0x3b0   :  { %v685_v37 = vsel %vm172_vm8, %v684_v27, %v667_v17  ;;  %v687_v38 = vsel %vm172_vm8, %v679_v18, %v686_v28 }
 0x3b1   :  { %v691_v39 = vperm.slane %v685_v37, %v2270_v15  ;;  %v695_v41 = vperm.slane %v687_v38, %v2270_v15  ;;  %v712_v42 = vrot.slane %v703_v33, 4  ;;  %v714_v43 = vrot.slane %v707_v34, 4 }
 0x3b2   :  { %v1136_v45 = vmul.f32 1.442695, %v1121_v36 }
 0x3b3   :  { %v2556_v59 = vpop.eup %2042  ;;  %v710_v63 = vrot.slane %v695_v41, 4  ;;  %v715_v12 = vsel %vm172_vm8, 0.0, %v714_v43  ;;  %v708_v35 = vrot.slane %v691_v39, 4  ;;  %v783_v29 = vsel %vm172_vm8, %v714_v43, %v703_v33 }
 0x3b4   :  { %v788_v57 = vrot.slane %v715_v12, 4  ;;  %2044 = vpow2.f32 %v1136_v45  ;;  %v1150_v40 = vsel %vm881_vm9, %v2556_v59, 0.0  ;;  %v713_v48 = vsel %vm172_vm8, 0.0, %v712_v42 }
 0x3b5   :  { %1151 = vadd.xlane.f32.xlu1 %v1150_v40  ;;  %v711_v46 = vsel %vm172_vm8, 0.0, %v710_v63  ;;  %v772_v14 = vsel %vm172_vm8, %v710_v63, %v691_v39  ;;  %v787_v13 = vperm.slane %v783_v29, %v2254_v1  ;;  %v709_v55 = vsel %vm172_vm8, 0.0, %v708_v35 }
 0x3b6   :  { %v776_v50 = vperm.slane %v772_v14, %v2254_v1  ;;  %v777_v52 = vrot.slane %v711_v46, 4  ;;  %v789_v54 = vsel %vm172_vm8, %v788_v57, %v713_v48  ;;  %2046 = vpow2.f32 %v1132_v49 }
 0x3b7   :  { %v793_v58 = vperm.slane %v789_v54, %v2254_v1  ;;  %v808_v60 = vrot.slane %v787_v13, 4 }
 0x3b8   :  { %v778_v61 = vsel %vm172_vm8, %v777_v52, %v709_v55  ;;  %v796_v47 = vrot.slane %v776_v50, 4 }
 0x3b9   :  { %v782_v62 = vperm.slane %v778_v61, %v2254_v1  ;;  %v806_v2 = vrot.slane %v793_v58, 4  ;;  %v809_v3 = vsel %vm172_vm8, %v793_v58, %v808_v60 }
 0x3ba   :  { %v2573_v4 = vpop.eup %2044  ;;  %v817_v5 = vperm.slane %v809_v3, %v2270_v15 }
 0x3bb   :  { %v1159_v6 = vsel %vm881_vm9, %v2573_v4, 0.0  ;;  %v794_v56 = vrot.slane %v782_v62, 4  ;;  %v797_v21 = vsel %vm172_vm8, %v782_v62, %v796_v47  ;;  %v807_v7 = vsel %vm172_vm8, %v806_v2, %v787_v13 }
 0x3bc   :  { %1160 = vadd.xlane.f32.xlu2 %v1159_v6  ;;  %v805_v8 = vperm.slane %v797_v21, %v2270_v15  ;;  %v822_v53 = vrot.slane %v817_v5, 4  ;;  %v813_v9 = vperm.slane %v807_v7, %v2270_v15  ;;  %v2585_v27 = vpop.eup %2046 }
 0x3bd   :  { %v795_v11 = vsel %vm172_vm8, %v794_v56, %v776_v50  ;;  %v1153_v39 = vsel %vm881_vm9, %v2585_v27, 0.0 }
 0x3be   :  { %v2015_v23 = vpop.permute.xlu1 %2014  ;;  %v823_v16 = vsel %vm172_vm8, %v822_v53, %v805_v8  ;;  %v824_v19 = vrot.slane %v805_v8, 4  ;;  %v801_v17 = vperm.slane %v795_v11, %v2270_v15  ;;  %v818_v18 = vrot.slane %v813_v9, 4 }
 0x3bf   :  { %v2017_v25 = vunpack.i.h.bf16 %v2015_v23  ;;  %v2016_v26 = vunpack.i.l.bf16 %v2015_v23  ;;  %1346 = vmatpush.msra.mxu1 %v823_v16 }
 0x3c0   :  { %v819_v28 = vsel %vm172_vm8, %v818_v18, %v801_v17  ;;  %v825_v30 = vsel %vm172_vm8, %v817_v5, %v824_v19  ;;  %v820_v24 = vrot.slane %v801_v17, 4 }
 0x3c1   :  { %v2010_v32 = vpop.permute.xlu0 %2009  ;;  %v728_v33 = vrot.slane %v2017_v25, 4  ;;  %v716_v34 = vrot.slane %v2016_v26, 4  ;;  %1300 = vmatpush.msrb.mxu3 %v819_v28  ;;  %1369 = vmatpush.msrb.mxu2 %v825_v30 }
 0x3c2   :  { %v2012_v36 = vunpack.i.h.bf16 %v2010_v32  ;;  %v2011_v37 = vunpack.i.l.bf16 %v2010_v32  ;;  %v821_v38 = vsel %vm172_vm8, %v813_v9, %v820_v24 }
 0x3c3   :  { %1323 = vmatpush.msrb.mxu0 %v821_v38 }
 0x3c4   :  { %v730_v41 = vrot.slane %v2012_v36, 4  ;;  %v718_v42 = vrot.slane %v2011_v37, 4  ;;  %v717_v43 = vsel %vm172_vm8, %v716_v34, %v2011_v37  ;;  %v729_v44 = vsel %vm172_vm8, %v728_v33, %v2012_v36  ;;  %1154 = vadd.xlane.f32.xlu2 %v1153_v39 }
 0x3c5   :  { %v723_v45 = vperm.slane %v717_v43, %v2254_v1  ;;  %v735_v63 = vperm.slane %v729_v44, %v2254_v1 }
 0x3c6   :  { %v719_v12 = vsel %vm172_vm8, %v2016_v26, %v718_v42  ;;  %v731_v35 = vsel %vm172_vm8, %v2017_v25, %v730_v41 }
 0x3c7   :  { %v727_v57 = vperm.slane %v719_v12, %v2254_v1  ;;  %v739_v40 = vperm.slane %v731_v35, %v2254_v1  ;;  %v740_v29 = vrot.slane %v735_v63, 4  ;;  %v742_v46 = vrot.slane %v723_v45, 4 }
 0x3c9   :  { %v741_v48 = vsel %vm172_vm8, %v740_v29, %v723_v45  ;;  %v743_v14 = vsel %vm172_vm8, %v735_v63, %v742_v46  ;;  %v752_v13 = vrot.slane %v739_v40, 4  ;;  %v754_v49 = vrot.slane %v727_v57, 4 }
 0x3ca   :  { %v747_v50 = vperm.slane %v741_v48, %v2270_v15  ;;  %v751_v52 = vperm.slane %v743_v14, %v2270_v15 }
 0x3cb   :  { %v753_v54 = vsel %vm172_vm8, %v752_v13, %v727_v57  ;;  %v755_v55 = vsel %vm172_vm8, %v739_v40, %v754_v49 }
 0x3cc   :  { %v759_v58 = vperm.slane %v753_v54, %v2270_v15  ;;  %v763_v60 = vperm.slane %v755_v55, %v2270_v15  ;;  %v766_v61 = vrot.slane %v751_v52, 4  ;;  %v764_v47 = vrot.slane %v747_v50, 4 }
 0x3ce   :  { %v768_v62 = vrot.slane %v759_v58, 4  ;;  %v770_v2 = vrot.slane %v763_v60, 4  ;;  %v767_v3 = vsel %vm172_vm8, 0.0, %v766_v61  ;;  %v826_v5 = vsel %vm172_vm8, %v766_v61, %v747_v50 }
 0x3cf   :  { %v831_v6 = vrot.slane %v767_v3, 4  ;;  %v765_v21 = vsel %vm172_vm8, 0.0, %v764_v47  ;;  %v830_v7 = vperm.slane %v826_v5, %v2254_v1 }
 0x3d0   :  { %v771_v56 = vsel %vm172_vm8, 0.0, %v770_v2  ;;  %v837_v8 = vsel %vm172_vm8, %v770_v2, %v759_v58  ;;  %v769_v23 = vsel %vm172_vm8, 0.0, %v768_v62 }
 0x3d1   :  { %v842_v53 = vrot.slane %v771_v56, 4  ;;  %v832_v9 = vsel %vm172_vm8, %v831_v6, %v765_v21  ;;  %v841_v11 = vperm.slane %v837_v8, %v2254_v1  ;;  %v850_v19 = vrot.slane %v830_v7, 4 }
 0x3d2   :  { %v836_v16 = vperm.slane %v832_v9, %v2254_v1 }
 0x3d3   :  { %v843_v17 = vsel %vm172_vm8, %v842_v53, %v769_v23  ;;  %v862_v18 = vrot.slane %v841_v11, 4 }
 0x3d4   :  { %v847_v25 = vperm.slane %v843_v17, %v2254_v1  ;;  %v848_v26 = vrot.slane %v836_v16, 4  ;;  %v851_v28 = vsel %vm172_vm8, %v836_v16, %v850_v19 }
 0x3d5   :  { %v859_v30 = vperm.slane %v851_v28, %v2270_v15 }
 0x3d6   :  { %v860_v24 = vrot.slane %v847_v25, 4  ;;  %v863_v32 = vsel %vm172_vm8, %v847_v25, %v862_v18  ;;  %v849_v33 = vsel %vm172_vm8, %v848_v26, %v830_v7 }
 0x3d7   :  { %v871_v34 = vperm.slane %v863_v32, %v2270_v15  ;;  %v878_v36 = vrot.slane %v859_v30, 4  ;;  %v855_v37 = vperm.slane %v849_v33, %v2270_v15 }
 0x3d8   :  { %v861_v38 = vsel %vm172_vm8, %v860_v24, %v841_v11 }
 0x3d9   :  { %v876_v39 = vrot.slane %v871_v34, 4  ;;  %v879_v41 = vsel %vm172_vm8, %v871_v34, %v878_v36  ;;  %v867_v42 = vperm.slane %v861_v38, %v2270_v15  ;;  %v874_v43 = vrot.slane %v855_v37, 4 }
 0x3da   :  { %1461 = vmatpush.msra.mxu2 %v879_v41 }
 0x3db   :  { %v877_v44 = vsel %vm172_vm8, %v876_v39, %v859_v30  ;;  %v872_v45 = vrot.slane %v867_v42, 4  ;;  %v875_v63 = vsel %vm172_vm8, %v867_v42, %v874_v43 }
 0x3dc   :  { %1438 = vmatpush.msrb.mxu1 %v877_v44  ;;  %1415 = vmatpush.msra.mxu0 %v875_v63 }
 0x3dd   :  { %v873_v12 = vsel %vm172_vm8, %v872_v45, %v855_v37 }
 0x3de   :  { %1392 = vmatpush.msra.mxu3 %v873_v12 }
 0x40a   :  { %v1146_v35 = vpop.xlane.xlu2 %1145 }
 0x40b   :  { %2048 = vrcp.f32 %v1146_v35  ;;  %v1203_v14 = vand.u32 2147483648, %v1146_v35  ;;  %v1201_v13 = vand.u32 2147483647, %v1146_v35  ;;  %vm1197_vm11 = vweird.f32 %v1146_v35 }
 0x40d   :  { %v1204_v58 = vor.u32 1.1754944e-38, %v1203_v14  ;;  %vm1202_vm13 = vcmp.eq.f32.partialorder %v1201_v13, 8.507059e+37 }
 0x40e   :  { %v1140_v57 = vpop.xlane.xlu1 %1139 }
 0x40f   :  { %2050 = vrcp.f32 %v1140_v57  ;;  %v1173_v60 = vand.u32 2147483648, %v1140_v57  ;;  %v1171_v47 = vand.u32 2147483647, %v1140_v57  ;;  %vm1167_vm15 = vweird.f32 %v1140_v57 }
 0x411   :  { %v2049_v40 = vpop.eup %2048  ;;  %v1174_v56 = vor.u32 1.1754944e-38, %v1173_v60  ;;  %vm1172_vm2 = vcmp.eq.f32.partialorder %v1171_v47, 8.507059e+37 }
 0x412   :  { %v1193_v29 = vmul.f32 %v2049_v40, %v1146_v35  ;;  %vm1198_vm10 = vweird.f32 %v2049_v40 }
 0x413   :  { %vm1199_vm12 = vmor %vm1197_vm11, %vm1198_vm10 }
 0x414   :  { %v1194_v46 = vsub.f32 1.0, %v1193_v29 }
 0x415   :  { %v2051_v48 = vpop.eup %2050 }
 0x416   :  { %v1195_v49 = vmul.f32 %v2049_v40, %v1194_v46  ;;  %v1163_v50 = vmul.f32 %v2051_v48, %v1140_v57  ;;  %v1143_v52 = vpop.xlane.xlu0 %1142  ;;  %vm1168_vm14 = vweird.f32 %v2051_v48 }
 0x417   :  { %2052 = vrcp.f32 %v1143_v52  ;;  %vm1169_vm1 = vmor %vm1167_vm15, %vm1168_vm14  ;;  %v1188_v23 = vand.u32 2147483648, %v1143_v52  ;;  %vm1182_vm4 = vweird.f32 %v1143_v52 }
 0x418   :  { %v1164_v54 = vsub.f32 1.0, %v1163_v50  ;;  %v1196_v55 = vadd.f32 %v2049_v40, %v1195_v49 }
 0x419   :  { %v1189_v25 = vor.u32 1.1754944e-38, %v1188_v23 }
 0x41a   :  { %v1165_v61 = vmul.f32 %v2051_v48, %v1164_v54  ;;  %v1200_v62 = vsel %vm1199_vm12, %v2049_v40, %v1196_v55 }
 0x41b   :  { %v1205_v2 = vsel %vm1202_vm13, %v1204_v58, %v1200_v62 }
 0x41c   :  { %v1166_v3 = vadd.f32 %v2051_v48, %v1165_v61  ;;  %v1206_v5 = vmul.f32 %v2517_v31, %v1205_v2  ;;  %v1186_v31 = vand.u32 2147483647, %v1143_v52 }
 0x41d   :  { %v2053_v6 = vpop.eup %2052 }
 0x41e   :  { %v1170_v21 = vsel %vm1169_vm1, %v2051_v48, %v1166_v3  ;;  %v1178_v7 = vmul.f32 %v2053_v6, %v1143_v52  ;;  %1975 = vmatmul.msk.f32.vlgmr.msra.gmra.mxu1 %vm881_vm9, %v1206_v5  ;;  %v1158_v8 = vpop.xlane.xlu0 %1157  ;;  %vm1183_vm3 = vweird.f32 %v2053_v6  ;;  %vm1187_vm6 = vcmp.eq.f32.partialorder %v1186_v31, 8.507059e+37 }
 0x41f   :  { %v1175_v53 = vsel %vm1172_vm2, %v1174_v56, %v1170_v21  ;;  %v1149_v9 = vpop.xlane.xlu1 %1148  ;;  %2054 = vrcp.f32 %v1158_v8  ;;  %vm1184_vm5 = vmor %vm1182_vm4, %vm1183_vm3  ;;  %v1263_v37 = vand.u32 2147483648, %v1158_v8  ;;  %v1261_v41 = vand.u32 2147483647, %v1158_v8 }
 0x420   :  { %v1179_v11 = vsub.f32 1.0, %v1178_v7  ;;  %2056 = vrcp.f32 %v1149_v9  ;;  %v1176_v16 = vmul.f32 %v2521_v20, %v1175_v53  ;;  %v1218_v38 = vand.u32 2147483648, %v1149_v9 }
 0x421   :  { %v1216_v43 = vand.u32 2147483647, %v1149_v9  ;;  %vm1257_vm11 = vweird.f32 %v1158_v8  ;;  %vm1212_vm12 = vweird.f32 %v1149_v9  ;;  %v1264_v63 = vor.u32 1.1754944e-38, %v1263_v37 }
 0x422   :  { %v1180_v19 = vmul.f32 %v2053_v6, %v1179_v11  ;;  %1973 = vmatmul.msk.f32.vlgmr.msrb.gmra.mxu3 %vm881_vm9, %v1176_v16  ;;  %vm1262_vm15 = vcmp.eq.f32.partialorder %v1261_v41, 8.507059e+37 }
 0x423   :  { %vm1217_vm1 = vcmp.eq.f32.partialorder %v1216_v43, 8.507059e+37 }
 0x424   :  { %v1181_v17 = vadd.f32 %v2053_v6, %v1180_v19 }
 0x425   :  { %v2055_v18 = vpop.eup %2054 }
 0x426   :  { %v2057_v26 = vpop.eup %2056  ;;  %v1253_v28 = vmul.f32 %v2055_v18, %v1158_v8  ;;  %v1185_v30 = vsel %vm1184_vm5, %v2053_v6, %v1181_v17  ;;  %vm1258_vm7 = vweird.f32 %v2055_v18 }
 0x427   :  { %v1208_v24 = vmul.f32 %v2057_v26, %v1149_v9  ;;  %v1190_v32 = vsel %vm1187_vm6, %v1189_v25, %v1185_v30  ;;  %vm1213_vm10 = vweird.f32 %v2057_v26  ;;  %vm1259_vm13 = vmor %vm1257_vm11, %vm1258_vm7 }
 0x428   :  { %v1254_v33 = vsub.f32 1.0, %v1253_v28  ;;  %v1152_v34 = vpop.xlane.xlu1 %1151  ;;  %v1191_v20 = vmul.f32 %v2525_v51, %v1190_v32  ;;  %vm1214_vm14 = vmor %vm1212_vm12, %vm1213_vm10  ;;  %v1219_v51 = vor.u32 1.1754944e-38, %v1218_v38 }
 0x429   :  { %v1209_v36 = vsub.f32 1.0, %v1208_v24  ;;  %2058 = vrcp.f32 %v1152_v34  ;;  %v1233_v50 = vand.u32 2147483648, %v1152_v34  ;;  %v1231_v54 = vand.u32 2147483647, %v1152_v34 }
 0x42a   :  { %v1255_v39 = vmul.f32 %v2055_v18, %v1254_v33  ;;  %1974 = vmatmul.msk.f32.vlgmr.msrb.gmra.mxu0 %vm881_vm9, %v1191_v20  ;;  %vm1227_vm3 = vweird.f32 %v1152_v34 }
 0x42b   :  { %v1210_v42 = vmul.f32 %v2057_v26, %v1209_v36  ;;  %v1234_v60 = vor.u32 1.1754944e-38, %v1233_v50  ;;  %vm1232_vm5 = vcmp.eq.f32.partialorder %v1231_v54, 8.507059e+37 }
 0x42c   :  { %v1256_v44 = vadd.f32 %v2055_v18, %v1255_v39 }
 0x42d   :  { %v1211_v45 = vadd.f32 %v2057_v26, %v1210_v42 }
 0x42e   :  { %v1260_v12 = vsel %vm1259_vm13, %v2055_v18, %v1256_v44 }
 0x42f   :  { %v2059_v35 = vpop.eup %2058  ;;  %v1215_v57 = vsel %vm1214_vm14, %v2057_v26, %v1211_v45  ;;  %v1161_v40 = vpop.xlane.xlu2 %1160  ;;  %v1265_v29 = vsel %vm1262_vm15, %v1264_v63, %v1260_v12 }
 0x430   :  { %v1220_v46 = vsel %vm1217_vm1, %v1219_v51, %v1215_v57  ;;  %v1223_v48 = vmul.f32 %v2059_v35, %v1152_v34  ;;  %2060 = vrcp.f32 %v1161_v40  ;;  %v1266_v49 = vmul.f32 %v2529_v0, %v1265_v29 }
 0x431   :  { %v1221_v14 = vmul.f32 %v2533_v22, %v1220_v46  ;;  %vm1228_vm2 = vweird.f32 %v2059_v35  ;;  %v1278_v2 = vand.u32 2147483648, %v1161_v40  ;;  %v1276_v6 = vand.u32 2147483647, %v1161_v40 }
 0x432   :  { %v1224_v13 = vsub.f32 1.0, %v1223_v48  ;;  %1979 = vmatmul.msk.f32.vlgmr.msrb.gmra.mxu1 %vm881_vm9, %v1266_v49  ;;  %vm1229_vm4 = vmor %vm1227_vm3, %vm1228_vm2  ;;  %vm1272_vm7 = vweird.f32 %v1161_v40  ;;  %vm1715_vm1 = vcmask 195584  }
 0x433   :  { %1976 = vmatmul.msk.f32.vlgmr.msrb.gmra.mxu2 %vm881_vm9, %v1221_v14  ;;  %v1279_v7 = vor.u32 1.1754944e-38, %v1278_v2  ;;  %vm1277_vm11 = vcmp.eq.f32.partialorder %v1276_v6, 8.507059e+37 }
 0x434   :  { %v1225_v52 = vmul.f32 %v2059_v35, %v1224_v13 }
 0x436   :  { %v2061_v55 = vpop.eup %2060  ;;  %v1226_v58 = vadd.f32 %v2059_v35, %v1225_v52 }
 0x437   :  { %v1268_v61 = vmul.f32 %v2061_v55, %v1161_v40  ;;  %v1155_v47 = vpop.xlane.xlu2 %1154  ;;  %vm1273_vm6 = vweird.f32 %v2061_v55 }
 0x438   :  { %v1230_v62 = vsel %vm1229_vm4, %v2059_v35, %v1226_v58  ;;  %2062 = vrcp.f32 %v1155_v47  ;;  %vm1274_vm10 = vmor %vm1272_vm7, %vm1273_vm6  ;;  %v1248_v16 = vand.u32 2147483648, %v1155_v47  ;;  %vm1242_vm13 = vweird.f32 %v1155_v47 }
 0x439   :  { %v1235_v22 = vsel %vm1232_vm5, %v1234_v60, %v1230_v62  ;;  %v1269_v0 = vsub.f32 1.0, %v1268_v61 }
 0x43a   :  { %v1236_v3 = vmul.f32 %v2556_v59, %v1235_v22  ;;  %v1246_v59 = vand.u32 2147483647, %v1155_v47  ;;  %v1249_v17 = vor.u32 1.1754944e-38, %v1248_v16 }
 0x43b   :  { %v1270_v5 = vmul.f32 %v2061_v55, %v1269_v0 }
 0x43c   :  { %1977 = vmatmul.msk.f32.vlgmr.msra.gmra.mxu3 %vm881_vm9, %v1236_v3  ;;  %vm1247_vm15 = vcmp.eq.f32.partialorder %v1246_v59, 8.507059e+37 }
 0x43d   :  { %v1271_v56 = vadd.f32 %v2061_v55, %v1270_v5 }
 0x43e   :  { %v2063_v21 = vpop.eup %2062 }
 0x43f   :  { %v1275_v8 = vsel %vm1274_vm10, %v2061_v55, %v1271_v56  ;;  %v1238_v53 = vmul.f32 %v2063_v21, %v1155_v47  ;;  %vm1243_vm12 = vweird.f32 %v2063_v21 }
 0x440   :  { %v1280_v9 = vsel %vm1277_vm11, %v1279_v7, %v1275_v8  ;;  %vm1244_vm14 = vmor %vm1242_vm13, %vm1243_vm12 }
 0x441   :  { %v1239_v11 = vsub.f32 1.0, %v1238_v53  ;;  %v1281_v23 = vmul.f32 %v2573_v4, %v1280_v9 }
 0x443   :  { %v1240_v19 = vmul.f32 %v2063_v21, %v1239_v11  ;;  %1980 = vmatmul.msk.f32.vlgmr.msra.gmra.mxu2 %vm881_vm9, %v1281_v23 }
 0x445   :  { %v1241_v31 = vadd.f32 %v2063_v21, %v1240_v19 }
 0x447   :  { %v1245_v18 = vsel %vm1244_vm14, %v2063_v21, %v1241_v31 }
 0x448   :  { %v1250_v25 = vsel %vm1247_vm15, %v1249_v17, %v1245_v18 }
 0x449   :  { %v1251_v26 = vmul.f32 %v2585_v27, %v1250_v25 }
 0x44b   :  { %1978 = vmatmul.msk.f32.vlgmr.msra.gmra.mxu0 %vm881_vm9, %v1251_v26 }
 0x49b   :  { %v1348_v4 = vpop.f32.mrf.mxu1 }
 0x49c   :  { %v1466_v24 = vrot.slane %v1348_v4, 4 }
 0x4a5   :  { %v1302_v28 = vpop.f32.mrf.mxu3 }
 0x4a6   :  { %v1468_v30 = vrot.slane %v1302_v28, 4  ;;  %v1467_v34 = vsel %vm172_vm8, %v1466_v24, %v1302_v28 }
 0x4a7   :  { %v1325_v33 = vpop.f32.mrf.mxu0  ;;  %v1473_v37 = vperm.slane %v1467_v34, %v2254_v1 }
 0x4a8   :  { %v1469_v32 = vsel %vm172_vm8, %v1348_v4, %v1468_v30  ;;  %v1480_v36 = vrot.slane %v1325_v33, 4 }
 0x4a9   :  { %v1477_v20 = vperm.slane %v1469_v32, %v2254_v1  ;;  %v1492_v44 = vrot.slane %v1473_v37, 4 }
 0x4ab   :  { %v1504_v41 = vrot.slane %v1477_v20, 4 }
 0x4af   :  { %v1440_v12 = vpop.f32.mrf.mxu1 }
 0x4b0   :  { %v1522_v13 = vrot.slane %v1440_v12, 4 }
 0x4b6   :  { %v1371_v38 = vpop.f32.mrf.mxu2 }
 0x4b7   :  { %v1478_v39 = vrot.slane %v1371_v38, 4  ;;  %v1481_v27 = vsel %vm172_vm8, %v1371_v38, %v1480_v36 }
 0x4b8   :  { %v1489_v42 = vperm.slane %v1481_v27, %v2254_v1 }
 0x4b9   :  { %v1479_v43 = vsel %vm172_vm8, %v1478_v39, %v1325_v33 }
 0x4ba   :  { %v1485_v45 = vperm.slane %v1479_v43, %v2254_v1  ;;  %v1502_v63 = vrot.slane %v1489_v42, 4  ;;  %v1505_v51 = vsel %vm172_vm8, %v1489_v42, %v1504_v41 }
 0x4bb   :  { %v1513_v35 = vperm.slane %v1505_v51, %v2270_v15 }
 0x4bc   :  { %v1490_v57 = vrot.slane %v1485_v45, 4  ;;  %v1493_v40 = vsel %vm172_vm8, %v1485_v45, %v1492_v44  ;;  %v1503_v29 = vsel %vm172_vm8, %v1502_v63, %v1477_v20 }
 0x4bd   :  { %v1501_v46 = vperm.slane %v1493_v40, %v2270_v15  ;;  %v1509_v48 = vperm.slane %v1503_v29, %v2270_v15  ;;  %v1520_v14 = vrot.slane %v1513_v35, 4 }
 0x4be   :  { %v1491_v49 = vsel %vm172_vm8, %v1490_v57, %v1473_v37 }
 0x4bf   :  { %v1497_v50 = vperm.slane %v1491_v49, %v2270_v15  ;;  %v1516_v52 = vrot.slane %v1501_v46, 4  ;;  %v1518_v54 = vrot.slane %v1509_v48, 4  ;;  %v1521_v55 = vsel %vm172_vm8, 0.0, %v1520_v14  ;;  %v1394_v58 = vpop.f32.mrf.mxu3 }
 0x4c0   :  { %v1589_v60 = vsel %vm172_vm8, %v1520_v14, %v1509_v48  ;;  %v1594_v61 = vrot.slane %v1521_v55, 4  ;;  %v1523_v47 = vsel %vm172_vm8, %v1522_v13, %v1394_v58  ;;  %v1524_v62 = vrot.slane %v1394_v58, 4 }
 0x4c1   :  { %v1514_v22 = vrot.slane %v1497_v50, 4  ;;  %v1517_v0 = vsel %vm172_vm8, 0.0, %v1516_v52  ;;  %v1519_v2 = vsel %vm172_vm8, 0.0, %v1518_v54  ;;  %v1593_v3 = vperm.slane %v1589_v60, %v2254_v1 }
 0x4c2   :  { %v1583_v5 = vrot.slane %v1517_v0, 4  ;;  %v1578_v6 = vsel %vm172_vm8, %v1516_v52, %v1497_v50  ;;  %v1525_v56 = vsel %vm172_vm8, %v1440_v12, %v1524_v62  ;;  %v1595_v8 = vsel %vm172_vm8, %v1594_v61, %v1519_v2 }
 0x4c3   :  { %v1515_v21 = vsel %vm172_vm8, 0.0, %v1514_v22  ;;  %v1582_v7 = vperm.slane %v1578_v6, %v2254_v1  ;;  %v1529_v53 = vperm.slane %v1523_v47, %v2254_v1  ;;  %v1599_v11 = vperm.slane %v1595_v8, %v2254_v1 }
 0x4c4   :  { %v1584_v9 = vsel %vm172_vm8, %v1583_v5, %v1515_v21  ;;  %v1614_v23 = vrot.slane %v1593_v3, 4  ;;  %v1533_v59 = vperm.slane %v1525_v56, %v2254_v1 }
 0x4c5   :  { %v1588_v16 = vperm.slane %v1584_v9, %v2254_v1  ;;  %v1602_v19 = vrot.slane %v1582_v7, 4  ;;  %v1612_v18 = vrot.slane %v1599_v11, 4  ;;  %v1548_v4 = vrot.slane %v1529_v53, 4 }
 0x4c6   :  { %v1463_v31 = vpop.f32.mrf.mxu2  ;;  %v1615_v17 = vsel %vm172_vm8, %v1599_v11, %v1614_v23  ;;  %v1560_v42 = vrot.slane %v1533_v59, 4 }
 0x4c7   :  { %v1534_v25 = vrot.slane %v1463_v31, 4  ;;  %v1603_v26 = vsel %vm172_vm8, %v1588_v16, %v1602_v19  ;;  %v1623_v28 = vperm.slane %v1615_v17, %v2270_v15  ;;  %v1600_v30 = vrot.slane %v1588_v16, 4 }
 0x4c8   :  { %v1417_v24 = vpop.f32.mrf.mxu0  ;;  %v1611_v32 = vperm.slane %v1603_v26, %v2270_v15  ;;  %v1613_v33 = vsel %vm172_vm8, %v1612_v18, %v1593_v3 }
 0x4c9   :  { %v1535_v34 = vsel %vm172_vm8, %v1534_v25, %v1417_v24  ;;  %v1536_v20 = vrot.slane %v1417_v24, 4  ;;  %v1628_v36 = vrot.slane %v1623_v28, 4  ;;  %v1601_v37 = vsel %vm172_vm8, %v1600_v30, %v1582_v7 }
 0x4ca   :  { %v1541_v38 = vperm.slane %v1535_v34, %v2254_v1  ;;  %v1630_v39 = vrot.slane %v1611_v32, 4  ;;  %v1607_v27 = vperm.slane %v1601_v37, %v2270_v15  ;;  %v1619_v41 = vperm.slane %v1613_v33, %v2270_v15  ;;  %v1721_v37 = vld [vmem:[%s2863_s6 + $0x18] sm:$0xff] }
 0x4cb   :  { %v1537_v43 = vsel %vm172_vm8, %v1463_v31, %v1536_v20  ;;  %v1629_v44 = vsel %vm172_vm8, %v1628_v36, %v1611_v32  ;;  %1744 = vmatpush.msrb.mxu3 %v1721_v37 }
 0x4cc   :  { %v1545_v45 = vperm.slane %v1537_v43, %v2254_v1  ;;  %v1546_v63 = vrot.slane %v1541_v38, 4  ;;  %v1549_v51 = vsel %vm172_vm8, %v1541_v38, %v1548_v4  ;;  %1696 = vrot.lane.b32.xlu2 %v1629_v44, %s2112_s1  ;;  %v1631_v12 = vsel %vm172_vm8, %v1623_v28, %v1630_v39  ;;  %v1719_v38 = vld [vmem:[%s2863_s6 + $0x8] sm:$0xff]  ;;  %v1718_v39 = vld [vmem:[%s2863_s6] sm:$0xff] }
 0x4cd   :  { %v1557_v35 = vperm.slane %v1549_v51, %v2270_v15  ;;  %1704 = vrot.lane.b32.xlu1 %v1631_v12, %s2113_s18  ;;  %v1624_v57 = vrot.slane %v1619_v41, 4  ;;  %v1626_v40 = vrot.slane %v1607_v27, 4 }
 0x4ce   :  { %v1547_v29 = vsel %vm172_vm8, %v1546_v63, %v1529_v53  ;;  %v1558_v46 = vrot.slane %v1545_v45, 4  ;;  %v1561_v48 = vsel %vm172_vm8, %v1545_v45, %v1560_v42 }
 0x4cf   :  { %v1553_v14 = vperm.slane %v1547_v29, %v2270_v15  ;;  %v1569_v13 = vperm.slane %v1561_v48, %v2270_v15  ;;  %v1572_v49 = vrot.slane %v1557_v35, 4  ;;  %v1627_v50 = vsel %vm172_vm8, %v1619_v41, %v1626_v40  ;;  %v2021_v29 = vld [vmem:[%s2864_s7] ss:$0 sm:$0xff] }
 0x4d0   :  { %v1559_v52 = vsel %vm172_vm8, %v1558_v46, %v1533_v59  ;;  %1688 = vrot.lane.b32.xlu0 %v1627_v50, %s2114_s19  ;;  %v1625_v54 = vsel %vm172_vm8, %v1624_v57, %v1607_v27 }
 0x4d1   :  { %v1565_v55 = vperm.slane %v1559_v52, %v2270_v15  ;;  %v1570_v58 = vrot.slane %v1553_v14, 4  ;;  %v1573_v60 = vsel %vm172_vm8, 0.0, %v1572_v49  ;;  %v1576_v61 = vrot.slane %v1569_v13, 4 }
 0x4d2   :  { %v1632_v47 = vsel %vm172_vm8, %v1572_v49, %v1553_v14  ;;  %v1637_v62 = vrot.slane %v1573_v60, 4  ;;  %v2076_v14 = vld [vmem:[%s2857_s0] sm:$0xff] }
 0x4d3   :  { %v1571_v22 = vsel %vm172_vm8, 0.0, %v1570_v58  ;;  %v1574_v0 = vrot.slane %v1565_v55, 4  ;;  %v1577_v2 = vsel %vm172_vm8, 0.0, %v1576_v61  ;;  %v1636_v3 = vperm.slane %v1632_v47, %v2254_v1 }
 0x4d4   :  { %v1648_v5 = vrot.slane %v1577_v2, 4  ;;  %v1638_v6 = vsel %vm172_vm8, %v1637_v62, %v1571_v22  ;;  %v1643_v56 = vsel %vm172_vm8, %v1576_v61, %v1565_v55 }
 0x4d5   :  { %v1575_v21 = vsel %vm172_vm8, 0.0, %v1574_v0  ;;  %v1642_v7 = vperm.slane %v1638_v6, %v2254_v1  ;;  %v1647_v8 = vperm.slane %v1643_v56, %v2254_v1  ;;  %v1656_v53 = vrot.slane %v1636_v3, 4 }
 0x4d6   :  { %v1649_v9 = vsel %vm172_vm8, %v1648_v5, %v1575_v21 }
 0x4d7   :  { %v1653_v11 = vperm.slane %v1649_v9, %v2254_v1  ;;  %v1657_v23 = vsel %vm172_vm8, %v1642_v7, %v1656_v53  ;;  %v1668_v16 = vrot.slane %v1647_v8, 4  ;;  %v1654_v19 = vrot.slane %v1642_v7, 4  ;;  %v1816_v7 = vld [vmem:[%s2867_s10 + $0x18] sm:$0xff]  ;;  %v1815_v53 = vld [vmem:[%s2867_s10 + $0x10] sm:$0xff]  ;;  %v1814_v9 = vld [vmem:[%s2867_s10 + $0x8] sm:$0xff] }
 0x4d8   :  { %v1665_v59 = vperm.slane %v1657_v23, %v2270_v15  ;;  %1839 = vmatpush.msrb.mxu0 %v1816_v7 }
 0x4d9   :  { %v1669_v31 = vsel %vm172_vm8, %v1653_v11, %v1668_v16  ;;  %v1655_v17 = vsel %vm172_vm8, %v1654_v19, %v1636_v3  ;;  %v1666_v18 = vrot.slane %v1653_v11, 4  ;;  %v1813_v11 = vld [vmem:[%s2867_s10] sm:$0xff] }
 0x4da   :  { %v1677_v25 = vperm.slane %v1669_v31, %v2270_v15  ;;  %v1684_v26 = vrot.slane %v1665_v59, 4  ;;  %v1661_v28 = vperm.slane %v1655_v17, %v2270_v15  ;;  %1840 = vmatpush.msrb.mxu0 %v1815_v53 }
 0x4db   :  { %v1667_v30 = vsel %vm172_vm8, %v1666_v18, %v1647_v8  ;;  %v2022_v18 = vld [vmem:[%s2865_s8] ss:$0 sm:$0xff] }
 0x4dc   :  { %v1685_v1 = vsel %vm172_vm8, %v1677_v25, %v1684_v26  ;;  %v1673_v4 = vperm.slane %v1667_v30, %v2270_v15  ;;  %v1680_v24 = vrot.slane %v1661_v28, 4  ;;  %v1682_v20 = vrot.slane %v1677_v25, 4  ;;  %v1720_v15 = vld [vmem:[%s2863_s6 + $0x10] sm:$0xff]  ;;  %1841 = vmatpush.msrb.mxu0 %v1814_v9 }
 0x4dd   :  { %1706 = vrot.lane.b32.xlu2 %v1685_v1, %s2113_s18  ;;  %1745 = vmatpush.msrb.mxu3 %v1720_v15  ;;  %v2023_v1 = vld [vmem:[%s2866_s9] ss:$0 sm:$0xff] }
 0x4de   :  { %v1678_v32 = vrot.slane %v1673_v4, 4  ;;  %v1681_v33 = vsel %vm172_vm8, %v1673_v4, %v1680_v24  ;;  %v1683_v36 = vsel %vm172_vm8, %v1682_v20, %v1665_v59  ;;  %1842 = vmatpush.msrb.mxu0 %v1813_v11 }
 0x4df   :  { %1690 = vrot.lane.b32.xlu0 %v1681_v33, %s2114_s19  ;;  %1746 = vmatpush.msrb.mxu3 %v1719_v38 }
 0x4e0   :  { %v1679_v34 = vsel %vm172_vm8, %v1678_v32, %v1661_v28  ;;  %vm1712_vm8 = vcmask 130048  }
 0x4e1   :  { %1747 = vmatpush.msrb.mxu3 %v1718_v39 }
 0x4e7   :  { %1698 = vrot.lane.b32.xlu0 %v1683_v36, %s2112_s1 }
 0x526   :  { %v1697_v41 = vpop.permute.xlu2 %1696 }
 0x537   :  { %v1707_v35 = vpop.permute.xlu2 %1706 }
 0x53f   :  { %v1705_v43 = vpop.permute.xlu1 %1704 }
 0x542   :  { %v1689_v27 = vpop.permute.xlu0 %1688 }
 0x543   :  { %v1710_v42 = vsel %vm881_vm9, %v1625_v54, %v1689_v27  ;;  %v2077_v54 = vld [vmem:[%s2857_s0 + $0x8] sm:$0xff] }
 0x544   :  { %v1713_v44 = vsel %vm1712_vm8, %v1710_v42, %v1697_v41  ;;  %v1905_v41 = vld [vmem:[%s2869_s12 + $0x78] sm:$0xff]  ;;  %v1904_v42 = vld [vmem:[%s2869_s12 + $0x70] sm:$0xff] }
 0x545   :  { %v1716_v45 = vsel %vm1715_vm1, %v1713_v44, %v1705_v43  ;;  %1910 = vmatpush.msra.mxu1 %v1905_v41  ;;  %v1903_v43 = vld [vmem:[%s2869_s12 + $0x68] sm:$0xff]  ;;  %v1902_v44 = vld [vmem:[%s2869_s12 + $0x60] sm:$0xff] }
 0x546   :  { %1981 = vmatmul.msk.f32.vlgmr.msrb.gmra.mxu3 %vm50_vm0, %v1716_v45  ;;  %v1901_v45 = vld [vmem:[%s2869_s12 + $0x58] sm:$0xff] }
 0x547   :  { %1911 = vmatpush.msra.mxu1 %v1904_v42 }
 0x549   :  { %1912 = vmatpush.msra.mxu1 %v1903_v43 }
 0x54b   :  { %1913 = vmatpush.msra.mxu1 %v1902_v44 }
 0x54d   :  { %1914 = vmatpush.msra.mxu1 %v1901_v45 }
 0x551   :  { %v1691_v63 = vpop.permute.xlu0 %1690 }
 0x552   :  { %v1711_v51 = vsel %vm881_vm9, %v1679_v34, %v1691_v63  ;;  %v1900_v63 = vld [vmem:[%s2869_s12 + $0x50] sm:$0xff] }
 0x553   :  { %1915 = vmatpush.msra.mxu1 %v1900_v63 }
 0x559   :  { %v1699_v12 = vpop.permute.xlu0 %1698 }
 0x55a   :  { %v1714_v57 = vsel %vm1712_vm8, %v1711_v51, %v1699_v12  ;;  %v1899_v51 = vld [vmem:[%s2869_s12 + $0x48] sm:$0xff]  ;;  %v2024_v12 = vld [vmem:[%s2868_s11] ss:$0 sm:$0xff] }
 0x55b   :  { %v1717_v40 = vsel %vm1715_vm1, %v1714_v57, %v1707_v35  ;;  %1916 = vmatpush.msra.mxu1 %v1899_v51  ;;  %v1898_v35 = vld [vmem:[%s2869_s12 + $0x40] sm:$0xff]  ;;  %v1897_v57 = vld [vmem:[%s2869_s12 + $0x38] sm:$0xff] }
 0x55c   :  { %1982 = vmatmul.msk.f32.gmra.mxu3 %vm50_vm0, %v1717_v40 }
 0x55d   :  { %1917 = vmatpush.msra.mxu1 %v1898_v35 }
 0x55f   :  { %1918 = vmatpush.msra.mxu1 %v1897_v57 }
 0x5c9   :  { %v1749_v46 = vpop.f32.mrf.mxu3 }
 0x5ca   :  { %v1750_v48 = vadd.f32 %v2021_v29, %v1749_v46  ;;  %v1896_v46 = vld [vmem:[%s2869_s12 + $0x30] sm:$0xff] }
 0x5cb   :  { %1919 = vmatpush.msra.mxu1 %v1896_v46 }
 0x5cc   :  { %v2756_v13 = vadd.f32 %v2076_v14, %v1750_v48  ;;  %v1895_v14 = vld [vmem:[%s2869_s12 + $0x28] sm:$0xff] }
 0x5cd   :  { %1920 = vmatpush.msra.mxu1 %v1895_v14 }
 0x5ce   :  { %v1757_v49 = vsel %vm50_vm0, %v2756_v13, 0.0 }
 0x5cf   :  { %1758 = vadd.xlane.f32.xlu1 %v1757_v49 }
 0x5df   :  { %v1752_v50 = vpop.f32.mrf.mxu3 }
 0x5e0   :  { %v1753_v52 = vadd.f32 %v2021_v29, %v1752_v50  ;;  %v1894_v50 = vld [vmem:[%s2869_s12 + $0x20] sm:$0xff] }
 0x5e1   :  { %1921 = vmatpush.msra.mxu1 %v1894_v50 }
 0x5e2   :  { %v2763_v55 = vadd.f32 %v2077_v54, %v1753_v52  ;;  %v1893_v52 = vld [vmem:[%s2869_s12 + $0x18] sm:$0xff]  ;;  %v1892_v54 = vld [vmem:[%s2869_s12 + $0x10] sm:$0xff] }
 0x5e3   :  { %1922 = vmatpush.msra.mxu1 %v1893_v52 }
 0x5e4   :  { %v1760_v58 = vsel %vm50_vm0, %v2763_v55, 0.0 }
 0x5e5   :  { %1761 = vadd.xlane.f32.xlu0 %v1760_v58  ;;  %v1891_v58 = vld [vmem:[%s2869_s12 + $0x8] sm:$0xff]  ;;  %1923 = vmatpush.msra.mxu1 %v1892_v54 }
 0x5e7   :  { %1924 = vmatpush.msra.mxu1 %v1891_v58 }
 0x642   :  { %v1759_v60 = vpop.xlane.xlu1 %1758 }
 0x643   :  { %v1763_v61 = vmul.f32 %v1759_v60, %v2200_v10  ;;  %v1890_v60 = vld [vmem:[%s2869_s12] sm:$0xff] }
 0x644   :  { %1925 = vmatpush.msra.mxu1 %v1890_v60 }
 0x645   :  { %v1765_v47 = vsub.f32 %v2756_v13, %v1763_v61 }
 0x647   :  { %v1767_v62 = vmul.f32 %v1765_v47, %v1765_v47 }
 0x649   :  { %v1769_v22 = vsel %vm50_vm0, %v1767_v62, 0.0 }
 0x64a   :  { %1770 = vadd.xlane.f32.xlu2 %v1769_v22 }
 0x658   :  { %v1762_v0 = vpop.xlane.xlu0 %1761 }
 0x659   :  { %v1764_v2 = vmul.f32 %v1762_v0, %v2200_v10 }
 0x65b   :  { %v1766_v3 = vsub.f32 %v2763_v55, %v1764_v2 }
 0x65d   :  { %v1768_v5 = vmul.f32 %v1766_v3, %v1766_v3 }
 0x65f   :  { %v1772_v6 = vsel %vm50_vm0, %v1768_v5, 0.0 }
 0x660   :  { %1773 = vadd.xlane.f32.xlu1 %v1772_v6 }
 0x6bd   :  { %v1771_v56 = vpop.xlane.xlu2 %1770 }
 0x6be   :  { %v1775_v21 = vmul.f32 %v1771_v56, %v2200_v10 }
 0x6c0   :  { %v1777_v8 = vadd.f32 1e-05, %v1775_v21 }
 0x6c2   :  { %2064 = vrsqrt.f32 %v1777_v8  ;;  %vm1785_vm2 = vweird.f32 %v1777_v8 }
 0x6c8   :  { %v2065_v23 = vpop.eup %2064 }
 0x6c9   :  { %v1780_v16 = vmul.f32 %v2065_v23, %v1777_v8  ;;  %vm1786_vm9 = vweird.f32 %v2065_v23 }
 0x6ca   :  { %vm1787_vm3 = vmor %vm1785_vm2, %vm1786_vm9 }
 0x6cb   :  { %v1781_v19 = vmul.f32 %v2065_v23, %v1780_v16 }
 0x6cd   :  { %v1782_v59 = vmul.f32 0.5, %v1781_v19 }
 0x6cf   :  { %v1783_v31 = vsub.f32 1.5, %v1782_v59 }
 0x6d1   :  { %v1784_v17 = vmul.f32 %v2065_v23, %v1783_v31 }
 0x6d3   :  { %v1788_v25 = vsel %vm1787_vm3, %v2065_v23, %v1784_v17  ;;  %v1774_v26 = vpop.xlane.xlu1 %1773 }
 0x6d4   :  { %v1799_v28 = vmul.f32 %v1788_v25, %v1765_v47  ;;  %v1776_v30 = vmul.f32 %v1774_v26, %v2200_v10 }
 0x6d6   :  { %v1805_v4 = vmul.f32 %v2022_v18, %v1799_v28  ;;  %v1778_v24 = vadd.f32 1e-05, %v1776_v30 }
 0x6d8   :  { %2066 = vrsqrt.f32 %v1778_v24  ;;  %v1811_v32 = vadd.f32 %v2023_v1, %v1805_v4  ;;  %vm1795_vm5 = vweird.f32 %v1778_v24 }
 0x6da   :  { %1983 = vmatmul.msk.f32.vlgmr.msrb.gmra.mxu0 %vm50_vm0, %v1811_v32  ;;  %v2025_v32 = vld [vmem:[%s2870_s13] ss:$0 sm:$0xff]  ;;  %s2116_s13 = smov 128  }
 0x6de   :  { %v2067_v33 = vpop.eup %2066 }
 0x6df   :  { %v1790_v34 = vmul.f32 %v2067_v33, %v1778_v24  ;;  %vm1796_vm4 = vweird.f32 %v2067_v33 }
 0x6e0   :  { %vm1797_vm6 = vmor %vm1795_vm5, %vm1796_vm4 }
 0x6e1   :  { %v1791_v20 = vmul.f32 %v2067_v33, %v1790_v34 }
 0x6e3   :  { %v1792_v36 = vmul.f32 0.5, %v1791_v20 }
 0x6e5   :  { %v1793_v37 = vsub.f32 1.5, %v1792_v36 }
 0x6e7   :  { %v1794_v15 = vmul.f32 %v2067_v33, %v1793_v37 }
 0x6e9   :  { %v1798_v10 = vsel %vm1797_vm6, %v2067_v33, %v1794_v15 }
 0x6ea   :  { %v1800_v38 = vmul.f32 %v1798_v10, %v1766_v3 }
 0x6ec   :  { %v1806_v39 = vmul.f32 %v2022_v18, %v1800_v38 }
 0x6ee   :  { %v1812_v27 = vadd.f32 %v2023_v1, %v1806_v39 }
 0x6f0   :  { %1984 = vmatmul.msk.f32.gmra.mxu0 %vm50_vm0, %v1812_v27 }
 0x757   :  { %v1844_v40 = vpop.f32.mrf.mxu0 }
 0x758   :  { %v1845_v29 = vadd.f32 %v2024_v12, %v1844_v40 }
 0x75a   :  { %v1850_v48 = vmul.f32 -1.702, %v1845_v29 }
 0x75c   :  { %v1852_v49 = vmul.f32 1.442695, %v1850_v48 }
 0x75e   :  { %2068 = vpow2.f32 %v1852_v49 }
 0x764   :  { %v2069_v61 = vpop.eup %2068 }
 0x765   :  { %v1856_v47 = vadd.f32 1.0, %v2069_v61 }
 0x767   :  { %2070 = vrcp.f32 %v1856_v47  ;;  %v1869_v6 = vand.u32 2147483648, %v1856_v47  ;;  %v1867_v21 = vand.u32 2147483647, %v1856_v47  ;;  %vm1863_vm10 = vweird.f32 %v1856_v47 }
 0x769   :  { %v1870_v53 = vor.u32 1.1754944e-38, %v1869_v6  ;;  %vm1868_vm12 = vcmp.eq.f32.partialorder %v1867_v21, 8.507059e+37 }
 0x76d   :  { %v2071_v62 = vpop.eup %2070  ;;  %v1847_v22 = vpop.f32.mrf.mxu0 }
 0x76e   :  { %v1859_v0 = vmul.f32 %v2071_v62, %v1856_v47  ;;  %v1848_v2 = vadd.f32 %v2024_v12, %v1847_v22  ;;  %vm1864_vm7 = vweird.f32 %v2071_v62 }
 0x76f   :  { %vm1865_vm11 = vmor %vm1863_vm10, %vm1864_vm7 }
 0x770   :  { %v1860_v3 = vsub.f32 1.0, %v1859_v0  ;;  %v1851_v5 = vmul.f32 -1.702, %v1848_v2 }
 0x772   :  { %v1861_v56 = vmul.f32 %v2071_v62, %v1860_v3  ;;  %v1854_v7 = vmul.f32 1.442695, %v1851_v5 }
 0x774   :  { %v1862_v8 = vadd.f32 %v2071_v62, %v1861_v56  ;;  %2072 = vpow2.f32 %v1854_v7 }
 0x776   :  { %v1866_v9 = vsel %vm1865_vm11, %v2071_v62, %v1862_v8 }
 0x777   :  { %v1871_v11 = vsel %vm1868_vm12, %v1870_v53, %v1866_v9 }
 0x778   :  { %v1888_v23 = vmul.f32 %v1871_v11, %v1845_v29 }
 0x77a   :  { %v2073_v16 = vpop.eup %2072  ;;  %1926 = vmatmul.f32.vlgmr.msra.gmra.mxu1 %v1888_v23 }
 0x77b   :  { %v1857_v19 = vadd.f32 1.0, %v2073_v16 }
 0x77d   :  { %2074 = vrcp.f32 %v1857_v19  ;;  %v1884_v18 = vand.u32 2147483648, %v1857_v19  ;;  %v1882_v26 = vand.u32 2147483647, %v1857_v19  ;;  %vm1878_vm14 = vweird.f32 %v1857_v19 }
 0x77f   :  { %v1885_v30 = vor.u32 1.1754944e-38, %v1884_v18  ;;  %vm1883_vm8 = vcmp.eq.f32.partialorder %v1882_v26, 8.507059e+37 }
 0x783   :  { %v2075_v59 = vpop.eup %2074 }
 0x784   :  { %v1874_v31 = vmul.f32 %v2075_v59, %v1857_v19  ;;  %vm1879_vm13 = vweird.f32 %v2075_v59 }
 0x785   :  { %vm1880_vm15 = vmor %vm1878_vm14, %vm1879_vm13 }
 0x786   :  { %v1875_v17 = vsub.f32 1.0, %v1874_v31 }
 0x788   :  { %v1876_v25 = vmul.f32 %v2075_v59, %v1875_v17 }
 0x78a   :  { %v1877_v28 = vadd.f32 %v2075_v59, %v1876_v25 }
 0x78c   :  { %v1881_v1 = vsel %vm1880_vm15, %v2075_v59, %v1877_v28 }
 0x78d   :  { %v1886_v4 = vsel %vm1883_vm8, %v1885_v30, %v1881_v1 }
 0x78e   :  { %v1889_v24 = vmul.f32 %v1886_v4, %v1848_v2 }
 0x790   :  { %1929 = vmatmul.f32.gmra.mxu1 %v1889_v24 }
 0x7f7   :  { %v1927_v33 = vpop.f32.mrf.mxu1 }
 0x7f8   :  { %v1928_v34 = vadd.f32 %v2025_v32, %v1927_v33 }
 0x7fa   :  { %v1933_v20 = vadd.f32 %v1928_v34, %v2756_v13 }
 0x7fc   :  { %1935 = vst.msk [vmem:[#allocation2] sm:$0xff] %vm50_vm0, %v1933_v20 }
 0x80d   :  { %v1930_v36 = vpop.f32.mrf.mxu1 }
 0x80e   :  { %v1931_v37 = vadd.f32 %v2025_v32, %v1930_v36 }
 0x810   :  { %v1934_v15 = vadd.f32 %v1931_v37, %v2763_v55 }
 0x812   :  { %1936 = vst.msk [vmem:[#allocation2 + $0x8] sm:$0xff] %vm50_vm0, %v1934_v15 }
 0x813   :  { %1949 = dma.vmem_to_hbm [thread:$0]  %s1942_s3, 256, %s1944_s2, [#allocation3], %s2116_s13, %s2116_s13, %s2114_s19  }
 0x814   :  { %2102 = dma.done.wait [#allocation3], 256  }
 0x815   :  { %2103 = vsyncadd [#allocation3], 4294967040 }
 0x816   :  { %1954 = vsyncpa [#allocation3], 1 }

// kernel: tpu_custom_call.1
= control target key start
LH: loop header
LB: loop body
LE: loop exit
PB: predicated region body
PF: predicated region fallthrough
CT: control target
= control target key end

     0   :  { %vm50_vm0 = vcmask 261120   ;;  %s1608_s0 = inlined_call_operand.vmem [shape: f32[2,8,32], index: 0, kind: input, shape index: {}]   ;;  %s1609_s1 = inlined_call_operand.vmem [shape: f32[8,8], index: 1, kind: input, shape index: {}]   ;;  %s1610_s2 = inlined_call_operand.vmem [shape: f32[1,32], index: 2, kind: input, shape index: {}]   ;;  %s1611_s3 = inlined_call_operand.vmem [shape: f32[1,32], index: 3, kind: input, shape index: {}]   ;;  %s1612_s4 = inlined_call_operand.vmem [shape: f32[32,96], index: 4, kind: input, shape index: {}]   ;;  %s1613_s5 = inlined_call_operand.vmem [shape: f32[1,96], index: 5, kind: input, shape index: {}]   ;;  %s1614_s6 = inlined_call_operand.vmem [shape: f32[32,32], index: 6, kind: input, shape index: {}]   ;;  %s1615_s7 = inlined_call_operand.vmem [shape: f32[1,32], index: 7, kind: input, shape index: {}]   ;;  %s1616_s8 = inlined_call_operand.vmem [shape: f32[1,32], index: 8, kind: input, shape index: {}]   ;;  %s1617_s9 = inlined_call_operand.vmem [shape: f32[1,32], index: 9, kind: input, shape index: {}]   ;;  %s1618_s10 = inlined_call_operand.vmem [shape: f32[32,128], index: 10, kind: input, shape index: {}]   ;;  %s1619_s11 = inlined_call_operand.vmem [shape: f32[1,128], index: 11, kind: input, shape index: {}]   ;;  %s1620_s12 = inlined_call_operand.vmem [shape: f32[128,32], index: 12, kind: input, shape index: {}]   ;;  %s1621_s13 = inlined_call_operand.vmem [shape: f32[1,32], index: 13, kind: input, shape index: {}]   ;;  %s1622_s14 = inlined_call_operand.hbm [shape: f32[2,8,32], index: 14, kind: output, shape index: {}]  }
   0x1   :  { %v1273_v0 = vld [vmem:[%s1608_s0] sm:$0xff] }
   0x2   :  { %v51_v1 = vsel %vm50_vm0, %v1273_v0, 0.0 }
   0x3   :  { %52 = vadd.xlane.f32.xlu0 %v51_v1 }
   0x4   :  { %19 = vsyncpa [#allocation3], 0  ;;  %v1280_v2 = vld [vmem:[%s1608_s0 + $0x8] sm:$0xff]  ;;  %v1184_v4 = vmov 32.0   ;;  %v117_v21 = vld [vmem:[%s1612_s4 + $0x18] sm:$0xff]  ;;  %s1186_s28 = smov 120  }
   0x5   :  { %v54_v3 = vsel %vm50_vm0, %v1280_v2, 0.0  ;;  %1108 = vrcp.f32 %v1184_v4  ;;  %140 = vmatpush.msra.mxu0 %v117_v21  ;;  %v116_v22 = vld [vmem:[%s1612_s4 + $0x10] sm:$0xff]  ;;  %v115_v23 = vld [vmem:[%s1612_s4 + $0x8] sm:$0xff]  ;;  %v114_v24 = vld [vmem:[%s1612_s4] sm:$0xff]  ;;  %s1187_s29 = smov 104   ;;  %vm168_vm8 = vcmask 64512  }
   0x6   :  { %v1100_v39 = vld [vmem:[%s1610_s2] ss:$0 sm:$0xff]  ;;  %s1190_s16 = smov 8   ;;  %s1191_s0 = smov 24  }
   0x7   :  { %141 = vmatpush.msra.mxu0 %v116_v22  ;;  %v1101_v43 = vld [vmem:[%s1611_s3] ss:$0 sm:$0xff]  ;;  %s1185_s3 = smov 112   ;;  %s1192_s17 = smov 16  }
   0x8   :  { %v1102_v53 = vld [vmem:[%s1613_s5] ss:$0 sm:$0xff]  ;;  %s1188_s5 = smov 96   ;;  %s1193_s22 = smov [#allocation2]  }
   0x9   :  { %142 = vmatpush.msra.mxu0 %v115_v23  ;;  %s1030_s23 = sshll.u32 %s1193_s22, 4  ;;  %s1031_s23 = int_to_ptr.vmem [resolvable:$true] %s1030_s23 }
   0xb   :  { %55 = vadd.xlane.f32.xlu0 %v54_v3  ;;  %v1109_v5 = vpop.eup %1108  ;;  %143 = vmatpush.msra.mxu0 %v114_v24 }
   0xc   :  { %v58_v6 = vmul.f32 32.0, %v1109_v5  ;;  %vm62_vm1 = vweird.f32 %v1109_v5 }
   0xe   :  { %v59_v7 = vsub.f32 1.0, %v58_v6 }
  0x10   :  { %v60_v8 = vmul.f32 %v1109_v5, %v59_v7 }
  0x12   :  { %v61_v9 = vadd.f32 %v1109_v5, %v60_v8 }
  0x14   :  { %v1284_v10 = vsel %vm62_vm1, %v1109_v5, %v61_v9 }
  0x76   :  { %v53_v11 = vpop.xlane.xlu0 %52 }
  0x77   :  { %v64_v12 = vmul.f32 %v1284_v10, %v53_v11 }
  0x79   :  { %v66_v13 = vsub.f32 %v1273_v0, %v64_v12  ;;  %v165_v12 = vld [vmem:[%s1609_s1] sm:$0xff]  ;;  %s1189_s1 = smov 64  }
  0x7b   :  { %v68_v14 = vmul.f32 %v66_v13, %v66_v13 }
  0x7d   :  { %v70_v15 = vsel %vm50_vm0, %v68_v14, 0.0 }
  0x7e   :  { %71 = vadd.xlane.f32.xlu1 %v70_v15  ;;  %v56_v16 = vpop.xlane.xlu0 %55 }
  0x7f   :  { %v65_v17 = vmul.f32 %v1284_v10, %v56_v16 }
  0x81   :  { %v67_v18 = vsub.f32 %v1280_v2, %v65_v17 }
  0x83   :  { %v69_v19 = vmul.f32 %v67_v18, %v67_v18 }
  0x85   :  { %v73_v20 = vsel %vm50_vm0, %v69_v19, 0.0 }
  0x86   :  { %74 = vadd.xlane.f32.xlu1 %v73_v20 }
  0xf1   :  { %v72_v25 = vpop.xlane.xlu1 %71 }
  0xf2   :  { %v76_v26 = vmul.f32 %v72_v25, %v1284_v10 }
  0xf4   :  { %v78_v27 = vadd.f32 1e-05, %v76_v26 }
  0xf6   :  { %1110 = vrsqrt.f32 %v78_v27  ;;  %vm86_vm3 = vweird.f32 %v78_v27 }
  0xf9   :  { %v75_v28 = vpop.xlane.xlu1 %74 }
  0xfa   :  { %v77_v29 = vmul.f32 %v75_v28, %v1284_v10 }
  0xfc   :  { %v1111_v30 = vpop.eup %1110  ;;  %v79_v31 = vadd.f32 1e-05, %v77_v29 }
  0xfd   :  { %v81_v32 = vmul.f32 %v1111_v30, %v78_v27  ;;  %vm87_vm2 = vweird.f32 %v1111_v30 }
  0xfe   :  { %1112 = vrsqrt.f32 %v79_v31  ;;  %vm88_vm4 = vmor %vm86_vm3, %vm87_vm2  ;;  %vm96_vm5 = vweird.f32 %v79_v31 }
  0xff   :  { %v82_v33 = vmul.f32 %v1111_v30, %v81_v32 }
 0x101   :  { %v83_v34 = vmul.f32 0.5, %v82_v33 }
 0x103   :  { %v84_v35 = vsub.f32 1.5, %v83_v34 }
 0x104   :  { %v1113_v36 = vpop.eup %1112 }
 0x105   :  { %v85_v37 = vmul.f32 %v1111_v30, %v84_v35  ;;  %v91_v38 = vmul.f32 %v1113_v36, %v79_v31  ;;  %vm97_vm6 = vweird.f32 %v1113_v36 }
 0x106   :  { %vm98_vm7 = vmor %vm96_vm5, %vm97_vm6 }
 0x107   :  { %v89_v40 = vsel %vm88_vm4, %v1111_v30, %v85_v37  ;;  %v92_v41 = vmul.f32 %v1113_v36, %v91_v38 }
 0x108   :  { %v100_v42 = vmul.f32 %v89_v40, %v66_v13 }
 0x109   :  { %v93_v44 = vmul.f32 0.5, %v92_v41 }
 0x10a   :  { %v106_v45 = vmul.f32 %v1100_v39, %v100_v42 }
 0x10b   :  { %v94_v46 = vsub.f32 1.5, %v93_v44 }
 0x10c   :  { %v112_v47 = vadd.f32 %v1101_v43, %v106_v45 }
 0x10d   :  { %v95_v48 = vmul.f32 %v1113_v36, %v94_v46 }
 0x10e   :  { %1044 = vmatmul.msk.f32.vlgmr.msra.gmra.mxu0 %vm50_vm0, %v112_v47 }
 0x10f   :  { %v99_v49 = vsel %vm98_vm7, %v1113_v36, %v95_v48 }
 0x110   :  { %v101_v50 = vmul.f32 %v99_v49, %v67_v18 }
 0x112   :  { %v107_v51 = vmul.f32 %v1100_v39, %v101_v50 }
 0x114   :  { %v113_v52 = vadd.f32 %v1101_v43, %v107_v51 }
 0x116   :  { %1045 = vmatmul.msk.f32.gmra.mxu0 %vm50_vm0, %v113_v52 }
 0x18b   :  { %v145_v54 = vpop.f32.mrf.mxu0 }
 0x18c   :  { %v1317_v55 = vadd.f32 %v1102_v53, %v145_v54 }
 0x18e   :  { %157 = vrot.lane.b32.xlu0 %v1317_v55, %s1185_s3  ;;  %153 = vrot.lane.b32.xlu2 %v1317_v55, %s1186_s28 }
 0x193   :  { %v148_v56 = vpop.f32.mrf.mxu0 }
 0x194   :  { %v1321_v57 = vadd.f32 %v1102_v53, %v148_v56 }
 0x196   :  { %161 = vrot.lane.b32.xlu2 %v1317_v55, %s1187_s29  ;;  %155 = vrot.lane.b32.xlu1 %v1321_v57, %s1186_s28 }
 0x19e   :  { %163 = vrot.lane.b32.xlu2 %v1321_v57, %s1187_s29 }
 0x1a6   :  { %159 = vrot.lane.b32.xlu2 %v1321_v57, %s1185_s3 }
 0x1ae   :  { %166 = vrot.lane.b32.xlu2 %v1317_v55, %s1188_s5 }
 0x1e8   :  { %v1328_v58 = vpop.permute.xlu2 %153 }
 0x1e9   :  { %193 = vrot.lane.b32.xlu0 %v1328_v58, %s1188_s5 }
 0x1f0   :  { %v1331_v59 = vpop.permute.xlu2 %161 }
 0x1f1   :  { %271 = vrot.lane.b32.xlu0 %v1321_v57, %s1188_s5  ;;  %245 = vrot.lane.b32.xlu2 %v1331_v59, %s1188_s5 }
 0x1f8   :  { %v1335_v60 = vpop.permute.xlu2 %163 }
 0x200   :  { %v1337_v61 = vpop.permute.xlu2 %159  ;;  %v1339_v62 = vpop.permute.xlu0 %157 }
 0x201   :  { %323 = vrot.lane.b32.xlu0 %v1337_v61, %s1188_s5  ;;  %219 = vrot.lane.b32.xlu1 %v1339_v62, %s1188_s5 }
 0x208   :  { %v167_v63 = vpop.permute.xlu2 %166  ;;  %v1343_v1 = vpop.permute.xlu1 %155 }
 0x209   :  { %1046 = vmatpush.xpose.msk.msra.mxu2 %vm168_vm8, %v167_v63  ;;  %297 = vrot.lane.b32.xlu2 %v1343_v1, %s1188_s5 }
 0x20a   :  { %349 = vrot.lane.b32.xlu1 %v1335_v60, %s1188_s5 }
 0x20c   :  { %1047 = vmatmul.msk.f32.vlgmr.msra.gmra.mxu2 %vm168_vm8, %v1317_v55 }
 0x24b   :  { %v246_v4 = vpop.permute.xlu2 %245 }
 0x25b   :  { %v194_v3 = vpop.permute.xlu0 %193 }
 0x25c   :  { %1048 = vmatpush.xpose.msk.msrb.mxu2 %vm168_vm8, %v194_v3 }
 0x25f   :  { %1049 = vmatmul.msk.f32.vlgmr.msrb.gmra.mxu2 %vm168_vm8, %v1328_v58 }
 0x260   :  { %1052 = vmatpush.xpose.msk.msra.mxu2 %vm168_vm8, %v246_v4 }
 0x263   :  { %v272_v5 = vpop.permute.xlu0 %271  ;;  %v298_v7 = vpop.permute.xlu2 %297 }
 0x264   :  { %1054 = vmatpush.xpose.msk.msrb.mxu2 %vm168_vm8, %v272_v5 }
 0x267   :  { %1053 = vmatmul.msk.f32.vlgmr.msra.gmra.mxu2 %vm168_vm8, %v1331_v59 }
 0x26f   :  { %1055 = vmatmul.msk.f32.vlgmr.msrb.gmra.mxu2 %vm168_vm8, %v1321_v57 }
 0x273   :  { %v220_v6 = vpop.permute.xlu1 %219  ;;  %v324_v8 = vpop.permute.xlu0 %323 }
 0x274   :  { %1050 = vmatpush.xpose.msk.msra.mxu3 %vm168_vm8, %v220_v6 }
 0x277   :  { %1051 = vmatmul.msk.f32.vlgmr.msra.gmra.mxu3 %vm168_vm8, %v1339_v62 }
 0x278   :  { %1056 = vmatpush.xpose.msk.msrb.mxu3 %vm168_vm8, %v298_v7 }
 0x27c   :  { %1058 = vmatpush.xpose.msk.msra.mxu3 %vm168_vm8, %v324_v8  ;;  %v350_v9 = vpop.permute.xlu1 %349 }
 0x27d   :  { %1060 = vmatpush.xpose.msk.msra.mxu2 %vm168_vm8, %v350_v9 }
 0x27f   :  { %1057 = vmatmul.msk.f32.vlgmr.msrb.gmra.mxu3 %vm168_vm8, %v1343_v1 }
 0x280   :  { %1061 = vmatmul.msk.f32.vlgmr.msra.gmra.mxu2 %vm168_vm8, %v1335_v60 }
 0x287   :  { %1059 = vmatmul.msk.f32.vlgmr.msra.gmra.mxu3 %vm168_vm8, %v1337_v61 }
 0x28f   :  { %v190_v11 = vpop.f32.mrf.mxu2 }
 0x290   :  { %v1381_v30 = vadd.f32 %v190_v11, %v165_v12 }
 0x292   :  { %v375_v35 = vsel %vm168_vm8, %v1381_v30, -inf }
 0x2e2   :  { %v216_v13 = vpop.f32.mrf.mxu2 }
 0x2e3   :  { %v217_v14 = vadd.f32 %v216_v13, %v165_v12  ;;  %v1085_v13 = vpack.i.bf16 %v1328_v58, %v1331_v59 }
 0x2e5   :  { %v378_v15 = vsel %vm168_vm8, %v217_v14, -inf }
 0x2e6   :  { %379 = vmax.xlane.f32.xlu1 %v378_v15  ;;  %v1095_v15 = vpack.i.bf16 %v1337_v61, %v1343_v1 }
 0x2ea   :  { %v268_v16 = vpop.f32.mrf.mxu2 }
 0x2eb   :  { %v269_v17 = vadd.f32 %v268_v16, %v165_v12 }
 0x2ed   :  { %v384_v18 = vsel %vm168_vm8, %v269_v17, -inf }
 0x2ee   :  { %385 = vmax.xlane.f32.xlu2 %v384_v18 }
 0x2f2   :  { %v294_v20 = vpop.f32.mrf.mxu2 }
 0x2f3   :  { %v1379_v29 = vadd.f32 %v294_v20, %v165_v12 }
 0x2f5   :  { %v387_v33 = vsel %vm168_vm8, %v1379_v29, -inf }
 0x2fa   :  { %v242_v19 = vpop.f32.mrf.mxu3 }
 0x2fb   :  { %v243_v21 = vadd.f32 %v242_v19, %v165_v12 }
 0x2fd   :  { %v381_v22 = vsel %vm168_vm8, %v243_v21, -inf }
 0x2fe   :  { %382 = vmax.xlane.f32.xlu0 %v381_v22 }
 0x302   :  { %v320_v23 = vpop.f32.mrf.mxu3 }
 0x303   :  { %v321_v24 = vadd.f32 %v320_v23, %v165_v12  ;;  %v372_v25 = vpop.f32.mrf.mxu2 }
 0x304   :  { %v373_v26 = vadd.f32 %v372_v25, %v165_v12 }
 0x305   :  { %v390_v27 = vsel %vm168_vm8, %v321_v24, -inf }
 0x306   :  { %391 = vmax.xlane.f32.xlu1 %v390_v27  ;;  %v396_v28 = vsel %vm168_vm8, %v373_v26, -inf }
 0x307   :  { %397 = vmax.xlane.f32.xlu2 %v396_v28 }
 0x30a   :  { %v346_v31 = vpop.f32.mrf.mxu3 }
 0x30b   :  { %v347_v32 = vadd.f32 %v346_v31, %v165_v12 }
 0x30d   :  { %v393_v34 = vsel %vm168_vm8, %v347_v32, -inf }
 0x30e   :  { %388 = vmax.xlane.f32.xlu1 %v387_v33  ;;  %394 = vmax.xlane.f32.xlu0 %v393_v34 }
 0x30f   :  { %376 = vmax.xlane.f32.xlu2 %v375_v35 }
 0x359   :  { %v380_v36 = vpop.xlane.xlu1 %379 }
 0x35a   :  { %v400_v37 = vsub.f32 %v217_v14, %v380_v36  ;;  %v1090_v14 = vpack.i.bf16 %v1335_v60, %v1339_v62 }
 0x35c   :  { %v409_v38 = vmul.f32 1.442695, %v400_v37 }
 0x35e   :  { %1114 = vpow2.f32 %v409_v38 }
 0x361   :  { %v386_v39 = vpop.xlane.xlu2 %385 }
 0x362   :  { %v402_v40 = vsub.f32 %v269_v17, %v386_v39 }
 0x364   :  { %v1388_v41 = vpop.eup %1114  ;;  %v413_v42 = vmul.f32 1.442695, %v402_v40 }
 0x365   :  { %v426_v43 = vsel %vm168_vm8, %v1388_v41, 0.0 }
 0x366   :  { %1116 = vpow2.f32 %v413_v42  ;;  %427 = vadd.xlane.f32.xlu2 %v426_v43 }
 0x36c   :  { %v1392_v44 = vpop.eup %1116 }
 0x36d   :  { %v432_v45 = vsel %vm168_vm8, %v1392_v44, 0.0 }
 0x36e   :  { %433 = vadd.xlane.f32.xlu0 %v432_v45 }
 0x371   :  { %v383_v46 = vpop.xlane.xlu0 %382 }
 0x372   :  { %v401_v47 = vsub.f32 %v243_v21, %v383_v46 }
 0x374   :  { %v411_v48 = vmul.f32 1.442695, %v401_v47 }
 0x376   :  { %1118 = vpow2.f32 %v411_v48 }
 0x379   :  { %v392_v49 = vpop.xlane.xlu1 %391 }
 0x37a   :  { %v404_v50 = vsub.f32 %v321_v24, %v392_v49  ;;  %v398_v51 = vpop.xlane.xlu2 %397 }
 0x37b   :  { %v406_v52 = vsub.f32 %v373_v26, %v398_v51 }
 0x37c   :  { %v1396_v53 = vpop.eup %1118  ;;  %v417_v54 = vmul.f32 1.442695, %v404_v50 }
 0x37d   :  { %v421_v56 = vmul.f32 1.442695, %v406_v52  ;;  %v429_v63 = vsel %vm168_vm8, %v1396_v53, 0.0 }
 0x37e   :  { %1120 = vpow2.f32 %v417_v54  ;;  %430 = vadd.xlane.f32.xlu1 %v429_v63 }
 0x37f   :  { %1122 = vpow2.f32 %v421_v56 }
 0x381   :  { %v395_v3 = vpop.xlane.xlu0 %394  ;;  %v389_v17 = vpop.xlane.xlu1 %388 }
 0x382   :  { %v405_v4 = vsub.f32 %v347_v32, %v395_v3  ;;  %v377_v16 = vpop.xlane.xlu2 %376  ;;  %v403_v19 = vsub.f32 %v1379_v29, %v389_v17 }
 0x383   :  { %v399_v18 = vsub.f32 %v1381_v30, %v377_v16 }
 0x384   :  { %v1400_v5 = vpop.eup %1120  ;;  %v419_v6 = vmul.f32 1.442695, %v405_v4  ;;  %v415_v58 = vmul.f32 1.442695, %v403_v19 }
 0x385   :  { %v1402_v7 = vpop.eup %1122  ;;  %v438_v8 = vsel %vm168_vm8, %v1400_v5, 0.0  ;;  %v407_v20 = vmul.f32 1.442695, %v399_v18 }
 0x386   :  { %439 = vadd.xlane.f32.xlu2 %v438_v8  ;;  %v444_v9 = vsel %vm168_vm8, %v1402_v7, 0.0  ;;  %1124 = vpow2.f32 %v419_v6 }
 0x387   :  { %445 = vadd.xlane.f32.xlu0 %v444_v9  ;;  %1126 = vpow2.f32 %v407_v20 }
 0x388   :  { %1128 = vpow2.f32 %v415_v58 }
 0x38c   :  { %v1408_v11 = vpop.eup %1124 }
 0x38d   :  { %v441_v12 = vsel %vm168_vm8, %v1408_v11, 0.0  ;;  %v1422_v59 = vpop.eup %1126 }
 0x38e   :  { %442 = vadd.xlane.f32.xlu1 %v441_v12  ;;  %v1424_v60 = vpop.eup %1128  ;;  %v423_v61 = vsel %vm168_vm8, %v1422_v59, 0.0 }
 0x39b   :  { %1086 = vrot.lane.b32.xlu0 %v1085_v13, %s1189_s1 }
 0x39e   :  { %1091 = vrot.lane.b32.xlu2 %v1090_v14, %s1189_s1 }
 0x3a7   :  { %1096 = vrot.lane.b32.xlu1 %v1095_v15, %s1189_s1 }
 0x3af   :  { %567 = vrot.lane.b32.xlu1 %v1317_v55, %s1189_s1  ;;  %v435_v55 = vsel %vm168_vm8, %v1424_v60, 0.0 }
 0x3b7   :  { %671 = vrot.lane.b32.xlu1 %v1321_v57, %s1189_s1 }
 0x3c5   :  { %424 = vadd.xlane.f32.xlu0 %v423_v61 }
 0x3c7   :  { %436 = vadd.xlane.f32.xlu2 %v435_v55 }
 0x3d9   :  { %v428_v62 = vpop.xlane.xlu2 %427 }
 0x3da   :  { %1130 = vrcp.f32 %v428_v62  ;;  %vm467_vm13 = vweird.f32 %v428_v62  ;;  %v473_v50 = vand.u32 2147483648, %v428_v62  ;;  %v471_v52 = vand.u32 2147483647, %v428_v62 }
 0x3dc   :  { %v474_v8 = vor.u32 1.1754944e-38, %v473_v50  ;;  %vm472_vm4 = vcmp.eq.f32.partialorder %v471_v52, 8.507059e+37 }
 0x3e0   :  { %v1131_v57 = vpop.eup %1130 }
 0x3e1   :  { %v434_v1 = vpop.xlane.xlu0 %433  ;;  %v463_v23 = vmul.f32 %v1131_v57, %v428_v62  ;;  %vm468_vm14 = vweird.f32 %v1131_v57 }
 0x3e2   :  { %1132 = vrcp.f32 %v434_v1  ;;  %v503_v54 = vand.u32 2147483648, %v434_v1  ;;  %vm469_vm1 = vmor %vm467_vm13, %vm468_vm14  ;;  %vm497_vm2 = vweird.f32 %v434_v1  ;;  %v501_v3 = vand.u32 2147483647, %v434_v1 }
 0x3e3   :  { %v464_v29 = vsub.f32 1.0, %v463_v23 }
 0x3e4   :  { %v504_v12 = vor.u32 1.1754944e-38, %v503_v54  ;;  %vm502_vm5 = vcmp.eq.f32.partialorder %v501_v3, 8.507059e+37 }
 0x3e5   :  { %v465_v35 = vmul.f32 %v1131_v57, %v464_v29 }
 0x3e7   :  { %v466_v46 = vadd.f32 %v1131_v57, %v465_v35 }
 0x3e8   :  { %v1133_v22 = vpop.eup %1132 }
 0x3e9   :  { %v493_v25 = vmul.f32 %v1133_v22, %v434_v1  ;;  %vm498_vm15 = vweird.f32 %v1133_v22  ;;  %v470_v6 = vsel %vm469_vm1, %v1131_v57, %v466_v46 }
 0x3ea   :  { %vm499_vm3 = vmor %vm497_vm2, %vm498_vm15  ;;  %v475_v15 = vsel %vm472_vm4, %v474_v8, %v470_v6 }
 0x3eb   :  { %v494_v31 = vsub.f32 1.0, %v493_v25  ;;  %v476_v58 = vmul.f32 %v1388_v41, %v475_v15 }
 0x3ed   :  { %v495_v37 = vmul.f32 %v1133_v22, %v494_v31 }
 0x3ef   :  { %v496_v51 = vadd.f32 %v1133_v22, %v495_v37 }
 0x3f1   :  { %v431_v21 = vpop.xlane.xlu1 %430  ;;  %v500_v9 = vsel %vm499_vm3, %v1133_v22, %v496_v51 }
 0x3f2   :  { %1134 = vrcp.f32 %v431_v21  ;;  %v488_v33 = vand.u32 2147483648, %v431_v21  ;;  %v486_v34 = vand.u32 2147483647, %v431_v21  ;;  %vm482_vm10 = vweird.f32 %v431_v21 }
 0x3f4   :  { %v489_v39 = vor.u32 1.1754944e-38, %v488_v33  ;;  %vm487_vm12 = vcmp.eq.f32.partialorder %v486_v34, 8.507059e+37 }
 0x3f8   :  { %v1135_v24 = vpop.eup %1134 }
 0x3f9   :  { %v478_v26 = vmul.f32 %v1135_v24, %v431_v21  ;;  %v1430_v27 = vpop.xlane.xlu2 %439  ;;  %vm483_vm9 = vweird.f32 %v1135_v24 }
 0x3fa   :  { %v1432_v28 = vpop.xlane.xlu0 %445  ;;  %vm484_vm11 = vmor %vm482_vm10, %vm483_vm9  ;;  %vm527_vm13 = vweird.f32 %v1430_v27  ;;  %v531_v31 = vand.u32 2147483647, %v1430_v27 }
 0x3fb   :  { %v479_v30 = vsub.f32 1.0, %v478_v26  ;;  %1136 = vrcp.f32 %v1432_v28  ;;  %v563_v61 = vand.u32 2147483648, %v1432_v28  ;;  %vm557_vm7 = vweird.f32 %v1432_v28 }
 0x3fc   :  { %1138 = vrcp.f32 %v1430_v27  ;;  %v561_v57 = vand.u32 2147483647, %v1432_v28  ;;  %vm532_vm2 = vcmp.eq.f32.partialorder %v531_v31, 8.507059e+37 }
 0x3fd   :  { %v480_v32 = vmul.f32 %v1135_v24, %v479_v30 }
 0x3ff   :  { %v481_v36 = vadd.f32 %v1135_v24, %v480_v32 }
 0x401   :  { %v1436_v38 = vpop.eup %1136  ;;  %v1092_v40 = vpop.permute.xlu2 %1091  ;;  %v485_v42 = vsel %vm484_vm11, %v1135_v24, %v481_v36  ;;  %vm562_vm11 = vcmp.eq.f32.partialorder %v561_v57, 8.507059e+37 }
 0x402   :  { %v553_v43 = vmul.f32 %v1436_v38, %v1432_v28  ;;  %v1093_v45 = vunpack.i.l.bf16 %v1092_v40  ;;  %v1440_v47 = vpop.xlane.xlu1 %442  ;;  %v490_v48 = vsel %vm487_vm12, %v489_v39, %v485_v42  ;;  %v1442_v49 = vpop.eup %1138  ;;  %vm558_vm6 = vweird.f32 %v1436_v38 }
 0x403   :  { %1140 = vrcp.f32 %v1440_v47  ;;  %v491_v63 = vmul.f32 %v1396_v53, %v490_v48  ;;  %v523_v4 = vmul.f32 %v1442_v49, %v1430_v27  ;;  %v505_v53 = vsel %vm502_vm5, %v504_v12, %v500_v9  ;;  %vm1459_vm9 = vmor %vm557_vm7, %vm558_vm6 }
 0x404   :  { %640 = vmatpush.msra.mxu1 %v1093_v45  ;;  %v554_v56 = vsub.f32 1.0, %v553_v43  ;;  %v506_v1 = vmul.f32 %v1392_v44, %v505_v53  ;;  %v1094_v24 = vunpack.i.h.bf16 %v1092_v40  ;;  %vm528_vm10 = vweird.f32 %v1442_v49 }
 0x405   :  { %1064 = vmatmul.msk.f32.vlgmr.msra.gmra.mxu1 %vm168_vm8, %v491_v63  ;;  %v524_v16 = vsub.f32 1.0, %v523_v4  ;;  %v564_v44 = vor.u32 1.1754944e-38, %v563_v61  ;;  %v533_v28 = vand.u32 2147483648, %v1430_v27  ;;  %v548_v30 = vand.u32 2147483648, %v1440_v47  ;;  %vm529_vm14 = vmor %vm527_vm13, %vm528_vm10 }
 0x406   :  { %v555_v13 = vmul.f32 %v1436_v38, %v554_v56  ;;  %vm542_vm15 = vweird.f32 %v1440_v47  ;;  %v546_v32 = vand.u32 2147483647, %v1440_v47  ;;  %vm801_vm13 = vcmask 130048  }
 0x407   :  { %v525_v21 = vmul.f32 %v1442_v49, %v524_v16  ;;  %v534_v36 = vor.u32 1.1754944e-38, %v533_v28  ;;  %v549_v37 = vor.u32 1.1754944e-38, %v548_v30 }
 0x408   :  { %v556_v18 = vadd.f32 %v1436_v38, %v555_v13  ;;  %vm547_vm3 = vcmp.eq.f32.partialorder %v546_v32, 8.507059e+37 }
 0x409   :  { %v1141_v14 = vpop.eup %1140  ;;  %v526_v25 = vadd.f32 %v1442_v49, %v525_v21  ;;  %v807_v21 = vld [vmem:[%s1614_s6] sm:$0xff] }
 0x40a   :  { %v538_v17 = vmul.f32 %v1141_v14, %v1440_v47  ;;  %v560_v41 = vsel %vm1459_vm9, %v1436_v38, %v556_v18  ;;  %vm543_vm12 = vweird.f32 %v1141_v14 }
 0x40b   :  { %v565_v29 = vsel %vm562_vm11, %v564_v44, %v560_v41  ;;  %vm544_vm1 = vmor %vm542_vm15, %vm543_vm12  ;;  %v530_v33 = vsel %vm529_vm14, %v1442_v49, %v526_v25  ;;  %vm804_vm14 = vcmask 195584  }
 0x40c   :  { %v539_v19 = vsub.f32 1.0, %v538_v17  ;;  %v566_v34 = vmul.f32 %v1402_v7, %v565_v29  ;;  %v535_v38 = vsel %vm532_vm2, %v534_v36, %v530_v33 }
 0x40d   :  { %v1087_v20 = vpop.permute.xlu0 %1086  ;;  %v536_v43 = vmul.f32 %v1400_v5, %v535_v38 }
 0x40e   :  { %v1088_v55 = vunpack.i.l.bf16 %v1087_v20  ;;  %v1089_v62 = vunpack.i.h.bf16 %v1087_v20  ;;  %v540_v22 = vmul.f32 %v1141_v14, %v539_v19 }
 0x410   :  { %614 = vmatpush.msrb.mxu0 %v1089_v62  ;;  %666 = vmatpush.msrb.mxu2 %v1088_v55  ;;  %v541_v26 = vadd.f32 %v1141_v14, %v540_v22  ;;  %v809_v62 = vld [vmem:[%s1614_s6 + $0x10] sm:$0xff] }
 0x411   :  { %1063 = vmatmul.msk.f32.vlgmr.msrb.gmra.mxu0 %vm168_vm8, %v476_v58  ;;  %1065 = vmatmul.msk.f32.vlgmr.msrb.gmra.mxu2 %vm168_vm8, %v506_v1  ;;  %v808_v1 = vld [vmem:[%s1614_s6 + $0x8] sm:$0xff] }
 0x412   :  { %770 = vmatpush.msra.mxu2 %v1094_v24  ;;  %v545_v35 = vsel %vm544_vm1, %v1141_v14, %v541_v26 }
 0x413   :  { %v550_v39 = vsel %vm547_vm3, %v549_v37, %v545_v35 }
 0x414   :  { %v551_v45 = vmul.f32 %v1408_v11, %v550_v39 }
 0x419   :  { %1069 = vmatmul.msk.f32.vlgmr.msra.gmra.mxu2 %vm168_vm8, %v566_v34  ;;  %v1097_v40 = vpop.permute.xlu1 %1096  ;;  %v1103_v34 = vld [vmem:[%s1615_s7] ss:$0 sm:$0xff] }
 0x41a   :  { %v1098_v27 = vunpack.i.l.bf16 %v1097_v40  ;;  %v1099_v42 = vunpack.i.h.bf16 %v1097_v40 }
 0x41c   :  { %718 = vmatpush.msra.mxu0 %v1098_v27  ;;  %744 = vmatpush.msrb.mxu1 %v1099_v42 }
 0x41d   :  { %1067 = vmatmul.msk.f32.vlgmr.msra.gmra.mxu0 %vm168_vm8, %v536_v43  ;;  %1068 = vmatmul.msk.f32.vlgmr.msrb.gmra.mxu1 %vm168_vm8, %v551_v45 }
 0x421   :  { %v568_v7 = vpop.permute.xlu1 %567 }
 0x422   :  { %588 = vmatpush.msrb.mxu3 %v568_v7 }
 0x429   :  { %v672_v46 = vpop.permute.xlu1 %671 }
 0x42a   :  { %692 = vmatpush.msra.mxu3 %v672_v46 }
 0x438   :  { %v425_v47 = vpop.xlane.xlu0 %424 }
 0x439   :  { %1142 = vrcp.f32 %v425_v47  ;;  %v458_v11 = vand.u32 2147483648, %v425_v47  ;;  %v456_v56 = vand.u32 2147483647, %v425_v47  ;;  %vm452_vm5 = vweird.f32 %v425_v47 }
 0x43a   :  { %v437_v48 = vpop.xlane.xlu2 %436 }
 0x43b   :  { %1144 = vrcp.f32 %v437_v48  ;;  %v459_v6 = vor.u32 1.1754944e-38, %v458_v11  ;;  %vm457_vm7 = vcmp.eq.f32.partialorder %v456_v56, 8.507059e+37  ;;  %v518_v13 = vand.u32 2147483648, %v437_v48  ;;  %v902_v11 = vld [vmem:[%s1618_s10] sm:$0xff] }
 0x43c   :  { %vm512_vm10 = vweird.f32 %v437_v48  ;;  %v516_v14 = vand.u32 2147483647, %v437_v48 }
 0x43d   :  { %v519_v16 = vor.u32 1.1754944e-38, %v518_v13 }
 0x43e   :  { %vm517_vm12 = vcmp.eq.f32.partialorder %v516_v14, 8.507059e+37 }
 0x43f   :  { %v1143_v49 = vpop.eup %1142 }
 0x440   :  { %v448_v50 = vmul.f32 %v1143_v49, %v425_v47  ;;  %vm453_vm4 = vweird.f32 %v1143_v49 }
 0x441   :  { %v1145_v51 = vpop.eup %1144  ;;  %vm454_vm6 = vmor %vm452_vm5, %vm453_vm4 }
 0x442   :  { %v449_v5 = vsub.f32 1.0, %v448_v50  ;;  %v508_v52 = vmul.f32 %v1145_v51, %v437_v48  ;;  %vm513_vm9 = vweird.f32 %v1145_v51 }
 0x443   :  { %vm514_vm11 = vmor %vm512_vm10, %vm513_vm9 }
 0x444   :  { %v450_v54 = vmul.f32 %v1143_v49, %v449_v5  ;;  %v509_v63 = vsub.f32 1.0, %v508_v52  ;;  %v904_v5 = vld [vmem:[%s1618_s10 + $0x10] sm:$0xff]  ;;  %v903_v52 = vld [vmem:[%s1618_s10 + $0x8] sm:$0xff] }
 0x446   :  { %v451_v3 = vadd.f32 %v1143_v49, %v450_v54  ;;  %v510_v4 = vmul.f32 %v1145_v51, %v509_v63 }
 0x448   :  { %v455_v8 = vsel %vm454_vm6, %v1143_v49, %v451_v3  ;;  %v511_v9 = vadd.f32 %v1145_v51, %v510_v4 }
 0x449   :  { %v460_v12 = vsel %vm457_vm7, %v459_v6, %v455_v8 }
 0x44a   :  { %v461_v15 = vmul.f32 %v1422_v59, %v460_v12  ;;  %v515_v53 = vsel %vm514_vm11, %v1145_v51, %v511_v9  ;;  %v905_v51 = vld [vmem:[%s1618_s10 + $0x18] sm:$0xff] }
 0x44b   :  { %v520_v17 = vsel %vm517_vm12, %v519_v16, %v515_v53  ;;  %928 = vmatpush.msrb.mxu0 %v905_v51  ;;  %v1104_v53 = vld [vmem:[%s1616_s8] ss:$0 sm:$0xff] }
 0x44c   :  { %1062 = vmatmul.msk.f32.vlgmr.msrb.gmra.mxu3 %vm168_vm8, %v461_v15  ;;  %v521_v18 = vmul.f32 %v1424_v60, %v520_v17  ;;  %v810_v60 = vld [vmem:[%s1614_s6 + $0x18] sm:$0xff]  ;;  %s1032_s6 = sshll.u32 %s1622_s14, 4  ;;  %s1033_s6 = int_to_ptr.hbm [resolvable:$true] %s1032_s6 }
 0x44d   :  { %833 = vmatpush.msrb.mxu3 %v810_v60  ;;  %929 = vmatpush.msrb.mxu0 %v904_v5 }
 0x44f   :  { %834 = vmatpush.msrb.mxu3 %v809_v62  ;;  %930 = vmatpush.msrb.mxu0 %v903_v52 }
 0x451   :  { %835 = vmatpush.msrb.mxu3 %v808_v1  ;;  %931 = vmatpush.msrb.mxu0 %v902_v11 }
 0x453   :  { %836 = vmatpush.msrb.mxu3 %v807_v21 }
 0x454   :  { %1066 = vmatmul.msk.f32.vlgmr.msra.gmra.mxu3 %vm168_vm8, %v521_v18  ;;  %v1105_v18 = vld [vmem:[%s1617_s9] ss:$0 sm:$0xff] }
 0x482   :  { %v642_v20 = vpop.f32.mrf.mxu1 }
 0x48e   :  { %v616_v19 = vpop.f32.mrf.mxu0 }
 0x48f   :  { %777 = vrot.lane.b32.xlu1 %v616_v19, %s1190_s16 }
 0x494   :  { %v668_v58 = vpop.f32.mrf.mxu2 }
 0x495   :  { %793 = vrot.lane.b32.xlu0 %v668_v58, %s1191_s0 }
 0x497   :  { %785 = vrot.lane.b32.xlu1 %v642_v20, %s1192_s17 }
 0x49a   :  { %v746_v59 = vpop.f32.mrf.mxu1  ;;  %v720_v61 = vpop.f32.mrf.mxu0 }
 0x49b   :  { %787 = vrot.lane.b32.xlu2 %v746_v59, %s1192_s17 }
 0x49c   :  { %v772_v55 = vpop.f32.mrf.mxu2 }
 0x49f   :  { %779 = vrot.lane.b32.xlu1 %v720_v61, %s1190_s16 }
 0x4a7   :  { %795 = vrot.lane.b32.xlu1 %v772_v55, %s1191_s0 }
 0x4cf   :  { %v590_v22 = vpop.f32.mrf.mxu3 }
 0x4d7   :  { %v694_v28 = vpop.f32.mrf.mxu3 }
 0x4f5   :  { %v788_v30 = vpop.permute.xlu2 %787 }
 0x501   :  { %v778_v57 = vpop.permute.xlu1 %777 }
 0x502   :  { %v799_v23 = vsel %vm168_vm8, %v590_v22, %v778_v57  ;;  %v994_v22 = vld [vmem:[%s1620_s12 + $0x78] sm:$0xff] }
 0x503   :  { %999 = vmatpush.msra.mxu1 %v994_v22 }
 0x507   :  { %v794_v41 = vpop.permute.xlu0 %793 }
 0x509   :  { %v786_v24 = vpop.permute.xlu1 %785 }
 0x50a   :  { %v802_v44 = vsel %vm801_vm13, %v799_v23, %v786_v24  ;;  %v993_v23 = vld [vmem:[%s1620_s12 + $0x70] sm:$0xff]  ;;  %v992_v24 = vld [vmem:[%s1620_s12 + $0x68] sm:$0xff] }
 0x50b   :  { %v805_v25 = vsel %vm804_vm14, %v802_v44, %v794_v41  ;;  %1000 = vmatpush.msra.mxu1 %v993_v23  ;;  %v991_v41 = vld [vmem:[%s1620_s12 + $0x60] sm:$0xff]  ;;  %v990_v44 = vld [vmem:[%s1620_s12 + $0x58] sm:$0xff] }
 0x50c   :  { %1070 = vmatmul.msk.f32.vlgmr.msrb.gmra.mxu3 %vm50_vm0, %v805_v25  ;;  %v989_v25 = vld [vmem:[%s1620_s12 + $0x50] sm:$0xff] }
 0x50d   :  { %1001 = vmatpush.msra.mxu1 %v992_v24 }
 0x50f   :  { %1002 = vmatpush.msra.mxu1 %v991_v41 }
 0x511   :  { %v780_v26 = vpop.permute.xlu1 %779  ;;  %1003 = vmatpush.msra.mxu1 %v990_v44 }
 0x512   :  { %v800_v29 = vsel %vm168_vm8, %v694_v28, %v780_v26  ;;  %v988_v26 = vld [vmem:[%s1620_s12 + $0x48] sm:$0xff]  ;;  %v987_v28 = vld [vmem:[%s1620_s12 + $0x40] sm:$0xff] }
 0x513   :  { %v803_v32 = vsel %vm801_vm13, %v800_v29, %v788_v30  ;;  %1004 = vmatpush.msra.mxu1 %v989_v25  ;;  %v986_v29 = vld [vmem:[%s1620_s12 + $0x38] sm:$0xff]  ;;  %v985_v30 = vld [vmem:[%s1620_s12 + $0x30] sm:$0xff] }
 0x515   :  { %1005 = vmatpush.msra.mxu1 %v988_v26 }
 0x517   :  { %1006 = vmatpush.msra.mxu1 %v987_v28 }
 0x519   :  { %v796_v31 = vpop.permute.xlu1 %795  ;;  %1007 = vmatpush.msra.mxu1 %v986_v29 }
 0x51a   :  { %v806_v33 = vsel %vm804_vm14, %v803_v32, %v796_v31  ;;  %v984_v31 = vld [vmem:[%s1620_s12 + $0x28] sm:$0xff]  ;;  %v983_v32 = vld [vmem:[%s1620_s12 + $0x20] sm:$0xff] }
 0x51b   :  { %1071 = vmatmul.msk.f32.gmra.mxu3 %vm50_vm0, %v806_v33  ;;  %1008 = vmatpush.msra.mxu1 %v985_v30  ;;  %v1106_v33 = vld [vmem:[%s1619_s11] ss:$0 sm:$0xff] }
 0x51d   :  { %1009 = vmatpush.msra.mxu1 %v984_v31 }
 0x51f   :  { %1010 = vmatpush.msra.mxu1 %v983_v32 }
 0x58f   :  { %v838_v35 = vpop.f32.mrf.mxu3 }
 0x590   :  { %v839_v36 = vadd.f32 %v1103_v34, %v838_v35  ;;  %v981_v35 = vld [vmem:[%s1620_s12 + $0x10] sm:$0xff] }
 0x592   :  { %v1509_v37 = vadd.f32 %v839_v36, %v1273_v0 }
 0x594   :  { %v846_v38 = vsel %vm50_vm0, %v1509_v37, 0.0 }
 0x595   :  { %847 = vadd.xlane.f32.xlu1 %v846_v38 }
 0x59e   :  { %v841_v39 = vpop.f32.mrf.mxu3 }
 0x59f   :  { %v842_v40 = vadd.f32 %v1103_v34, %v841_v39  ;;  %v982_v34 = vld [vmem:[%s1620_s12 + $0x18] sm:$0xff]  ;;  %v980_v39 = vld [vmem:[%s1620_s12 + $0x8] sm:$0xff] }
 0x5a0   :  { %1011 = vmatpush.msra.mxu1 %v982_v34 }
 0x5a1   :  { %v1514_v27 = vadd.f32 %v842_v40, %v1280_v2  ;;  %v979_v40 = vld [vmem:[%s1620_s12] sm:$0xff] }
 0x5a2   :  { %1012 = vmatpush.msra.mxu1 %v981_v35 }
 0x5a3   :  { %v849_v42 = vsel %vm50_vm0, %v1514_v27, 0.0 }
 0x5a4   :  { %850 = vadd.xlane.f32.xlu0 %v849_v42  ;;  %1013 = vmatpush.msra.mxu1 %v980_v39 }
 0x5a6   :  { %1014 = vmatpush.msra.mxu1 %v979_v40 }
 0x608   :  { %v848_v43 = vpop.xlane.xlu1 %847 }
 0x609   :  { %v852_v45 = vmul.f32 %v848_v43, %v1284_v10 }
 0x60b   :  { %v854_v7 = vsub.f32 %v1509_v37, %v852_v45 }
 0x60d   :  { %v856_v0 = vmul.f32 %v854_v7, %v854_v7 }
 0x60f   :  { %v858_v46 = vsel %vm50_vm0, %v856_v0, 0.0 }
 0x610   :  { %859 = vadd.xlane.f32.xlu2 %v858_v46 }
 0x617   :  { %v851_v47 = vpop.xlane.xlu0 %850 }
 0x618   :  { %v853_v48 = vmul.f32 %v851_v47, %v1284_v10 }
 0x61a   :  { %v855_v49 = vsub.f32 %v1514_v27, %v853_v48 }
 0x61c   :  { %v857_v2 = vmul.f32 %v855_v49, %v855_v49 }
 0x61e   :  { %v861_v50 = vsel %vm50_vm0, %v857_v2, 0.0 }
 0x61f   :  { %862 = vadd.xlane.f32.xlu1 %v861_v50 }
 0x683   :  { %v860_v54 = vpop.xlane.xlu2 %859 }
 0x684   :  { %v864_v56 = vmul.f32 %v860_v54, %v1284_v10 }
 0x686   :  { %v866_v63 = vadd.f32 1e-05, %v864_v56 }
 0x688   :  { %1146 = vrsqrt.f32 %v866_v63  ;;  %vm874_vm15 = vweird.f32 %v866_v63 }
 0x68e   :  { %v1147_v3 = vpop.eup %1146 }
 0x68f   :  { %v869_v4 = vmul.f32 %v1147_v3, %v866_v63  ;;  %vm875_vm8 = vweird.f32 %v1147_v3 }
 0x690   :  { %vm876_vm1 = vmor %vm874_vm15, %vm875_vm8 }
 0x691   :  { %v870_v6 = vmul.f32 %v1147_v3, %v869_v4 }
 0x692   :  { %v863_v8 = vpop.xlane.xlu1 %862 }
 0x693   :  { %v871_v9 = vmul.f32 0.5, %v870_v6  ;;  %v865_v12 = vmul.f32 %v863_v8, %v1284_v10 }
 0x695   :  { %v872_v13 = vsub.f32 1.5, %v871_v9  ;;  %v867_v14 = vadd.f32 1e-05, %v865_v12 }
 0x697   :  { %v873_v15 = vmul.f32 %v1147_v3, %v872_v13  ;;  %1148 = vrsqrt.f32 %v867_v14  ;;  %vm884_vm3 = vweird.f32 %v867_v14 }
 0x699   :  { %v877_v16 = vsel %vm876_vm1, %v1147_v3, %v873_v15 }
 0x69a   :  { %v888_v17 = vmul.f32 %v877_v16, %v854_v7 }
 0x69c   :  { %v894_v19 = vmul.f32 %v1104_v53, %v888_v17 }
 0x69d   :  { %v1149_v20 = vpop.eup %1148 }
 0x69e   :  { %v879_v10 = vmul.f32 %v1149_v20, %v867_v14  ;;  %v900_v58 = vadd.f32 %v1105_v18, %v894_v19  ;;  %vm885_vm2 = vweird.f32 %v1149_v20 }
 0x69f   :  { %vm886_vm4 = vmor %vm884_vm3, %vm885_vm2 }
 0x6a0   :  { %v880_v59 = vmul.f32 %v1149_v20, %v879_v10  ;;  %1072 = vmatmul.msk.f32.vlgmr.msrb.gmra.mxu0 %vm50_vm0, %v900_v58 }
 0x6a2   :  { %v881_v61 = vmul.f32 0.5, %v880_v59 }
 0x6a4   :  { %v882_v55 = vsub.f32 1.5, %v881_v61 }
 0x6a6   :  { %v883_v60 = vmul.f32 %v1149_v20, %v882_v55 }
 0x6a8   :  { %v887_v62 = vsel %vm886_vm4, %v1149_v20, %v883_v60  ;;  %v1107_v20 = vld [vmem:[%s1621_s13] ss:$0 sm:$0xff]  ;;  %s1194_s13 = smov 128  }
 0x6a9   :  { %v889_v1 = vmul.f32 %v887_v62, %v855_v49 }
 0x6ab   :  { %v895_v21 = vmul.f32 %v1104_v53, %v889_v1 }
 0x6ad   :  { %v901_v57 = vadd.f32 %v1105_v18, %v895_v21 }
 0x6af   :  { %1073 = vmatmul.msk.f32.gmra.mxu0 %vm50_vm0, %v901_v57 }
 0x71d   :  { %v933_v36 = vpop.f32.mrf.mxu0 }
 0x71e   :  { %v934_v38 = vadd.f32 %v1106_v33, %v933_v36 }
 0x720   :  { %v939_v42 = vmul.f32 -1.702, %v934_v38 }
 0x722   :  { %v941_v43 = vmul.f32 1.442695, %v939_v42 }
 0x724   :  { %1150 = vpow2.f32 %v941_v43 }
 0x72a   :  { %v1151_v45 = vpop.eup %1150 }
 0x72b   :  { %v945_v7 = vadd.f32 1.0, %v1151_v45 }
 0x72c   :  { %v936_v0 = vpop.f32.mrf.mxu0 }
 0x72d   :  { %1152 = vrcp.f32 %v945_v7  ;;  %v937_v46 = vadd.f32 %v1106_v33, %v936_v0  ;;  %v958_v51 = vand.u32 2147483648, %v945_v7  ;;  %v956_v52 = vand.u32 2147483647, %v945_v7 }
 0x72e   :  { %vm952_vm6 = vweird.f32 %v945_v7 }
 0x72f   :  { %v940_v47 = vmul.f32 -1.702, %v937_v46  ;;  %v959_v56 = vor.u32 1.1754944e-38, %v958_v51  ;;  %vm957_vm9 = vcmp.eq.f32.partialorder %v956_v52, 8.507059e+37 }
 0x731   :  { %v943_v48 = vmul.f32 1.442695, %v940_v47 }
 0x733   :  { %v1153_v49 = vpop.eup %1152  ;;  %1154 = vpow2.f32 %v943_v48 }
 0x734   :  { %v948_v2 = vmul.f32 %v1153_v49, %v945_v7  ;;  %vm953_vm5 = vweird.f32 %v1153_v49 }
 0x735   :  { %vm954_vm7 = vmor %vm952_vm6, %vm953_vm5 }
 0x736   :  { %v949_v50 = vsub.f32 1.0, %v948_v2 }
 0x738   :  { %v950_v5 = vmul.f32 %v1153_v49, %v949_v50 }
 0x739   :  { %v1155_v11 = vpop.eup %1154 }
 0x73a   :  { %v951_v54 = vadd.f32 %v1153_v49, %v950_v5  ;;  %v946_v63 = vadd.f32 1.0, %v1155_v11 }
 0x73c   :  { %v955_v3 = vsel %vm954_vm7, %v1153_v49, %v951_v54  ;;  %1156 = vrcp.f32 %v946_v63  ;;  %v973_v13 = vand.u32 2147483648, %v946_v63  ;;  %v971_v15 = vand.u32 2147483647, %v946_v63 }
 0x73d   :  { %v960_v4 = vsel %vm957_vm9, %v959_v56, %v955_v3  ;;  %vm967_vm11 = vweird.f32 %v946_v63 }
 0x73e   :  { %v977_v6 = vmul.f32 %v960_v4, %v934_v38  ;;  %v974_v16 = vor.u32 1.1754944e-38, %v973_v13  ;;  %vm972_vm13 = vcmp.eq.f32.partialorder %v971_v15, 8.507059e+37 }
 0x740   :  { %1015 = vmatmul.f32.vlgmr.msra.gmra.mxu1 %v977_v6 }
 0x742   :  { %v1157_v8 = vpop.eup %1156 }
 0x743   :  { %v963_v9 = vmul.f32 %v1157_v8, %v946_v63  ;;  %vm968_vm10 = vweird.f32 %v1157_v8 }
 0x744   :  { %vm969_vm12 = vmor %vm967_vm11, %vm968_vm10 }
 0x745   :  { %v964_v12 = vsub.f32 1.0, %v963_v9 }
 0x747   :  { %v965_v14 = vmul.f32 %v1157_v8, %v964_v12 }
 0x749   :  { %v966_v53 = vadd.f32 %v1157_v8, %v965_v14 }
 0x74b   :  { %v970_v17 = vsel %vm969_vm12, %v1157_v8, %v966_v53 }
 0x74c   :  { %v975_v18 = vsel %vm972_vm13, %v974_v16, %v970_v17 }
 0x74d   :  { %v978_v19 = vmul.f32 %v975_v18, %v937_v46 }
 0x74f   :  { %1018 = vmatmul.f32.gmra.mxu1 %v978_v19 }
 0x7bd   :  { %v1016_v10 = vpop.f32.mrf.mxu1 }
 0x7be   :  { %v1017_v58 = vadd.f32 %v1107_v20, %v1016_v10 }
 0x7c0   :  { %v1022_v59 = vadd.f32 %v1017_v58, %v1509_v37 }
 0x7c2   :  { %1024 = vst.msk [vmem:[#allocation2] sm:$0xff] %vm50_vm0, %v1022_v59 }
 0x7cc   :  { %v1019_v61 = vpop.f32.mrf.mxu1 }
 0x7cd   :  { %v1020_v55 = vadd.f32 %v1107_v20, %v1019_v61 }
 0x7cf   :  { %v1023_v60 = vadd.f32 %v1020_v55, %v1514_v27 }
 0x7d1   :  { %1025 = vst.msk [vmem:[#allocation2 + $0x8] sm:$0xff] %vm50_vm0, %v1023_v60 }
 0x7d2   :  { %1038 = dma.vmem_to_hbm [thread:$0]  %s1031_s23, 256, %s1033_s6, [#allocation3], %s1194_s13, %s1194_s13, %s1190_s16  }
 0x7d3   :  { %1182 = dma.done.wait [#allocation3], 256  }
 0x7d4   :  { %1183 = vsyncadd [#allocation3], 4294967040 }
 0x7d5   :  { %1043 = vsyncpa [#allocation3], 1 }

// kernel: tpu_custom_call.1
= control target key start
LH: loop header
LB: loop body
LE: loop exit
PB: predicated region body
PF: predicated region fallthrough
CT: control target
= control target key end

     0   :  { %vm50_vm0 = vcmask 261120   ;;  %s1608_s0 = inlined_call_operand.vmem [shape: f32[2,8,32], index: 0, kind: input, shape index: {}]   ;;  %s1609_s1 = inlined_call_operand.vmem [shape: f32[8,8], index: 1, kind: input, shape index: {}]   ;;  %s1610_s2 = inlined_call_operand.vmem [shape: f32[1,32], index: 2, kind: input, shape index: {}]   ;;  %s1611_s3 = inlined_call_operand.vmem [shape: f32[1,32], index: 3, kind: input, shape index: {}]   ;;  %s1612_s4 = inlined_call_operand.vmem [shape: f32[32,96], index: 4, kind: input, shape index: {}]   ;;  %s1613_s5 = inlined_call_operand.vmem [shape: f32[1,96], index: 5, kind: input, shape index: {}]   ;;  %s1614_s6 = inlined_call_operand.vmem [shape: f32[32,32], index: 6, kind: input, shape index: {}]   ;;  %s1615_s7 = inlined_call_operand.vmem [shape: f32[1,32], index: 7, kind: input, shape index: {}]   ;;  %s1616_s8 = inlined_call_operand.vmem [shape: f32[1,32], index: 8, kind: input, shape index: {}]   ;;  %s1617_s9 = inlined_call_operand.vmem [shape: f32[1,32], index: 9, kind: input, shape index: {}]   ;;  %s1618_s10 = inlined_call_operand.vmem [shape: f32[32,128], index: 10, kind: input, shape index: {}]   ;;  %s1619_s11 = inlined_call_operand.vmem [shape: f32[1,128], index: 11, kind: input, shape index: {}]   ;;  %s1620_s12 = inlined_call_operand.vmem [shape: f32[128,32], index: 12, kind: input, shape index: {}]   ;;  %s1621_s13 = inlined_call_operand.vmem [shape: f32[1,32], index: 13, kind: input, shape index: {}]   ;;  %s1622_s14 = inlined_call_operand.hbm [shape: f32[2,8,32], index: 14, kind: output, shape index: {}]  }
   0x1   :  { %v1273_v0 = vld [vmem:[%s1608_s0] sm:$0xff] }
   0x2   :  { %v51_v1 = vsel %vm50_vm0, %v1273_v0, 0.0 }
   0x3   :  { %52 = vadd.xlane.f32.xlu0 %v51_v1 }
   0x4   :  { %19 = vsyncpa [#allocation3], 0  ;;  %v1280_v2 = vld [vmem:[%s1608_s0 + $0x8] sm:$0xff]  ;;  %v1184_v4 = vmov 32.0   ;;  %v117_v21 = vld [vmem:[%s1612_s4 + $0x18] sm:$0xff]  ;;  %s1186_s28 = smov 120  }
   0x5   :  { %v54_v3 = vsel %vm50_vm0, %v1280_v2, 0.0  ;;  %1108 = vrcp.f32 %v1184_v4  ;;  %140 = vmatpush.msra.mxu0 %v117_v21  ;;  %v116_v22 = vld [vmem:[%s1612_s4 + $0x10] sm:$0xff]  ;;  %v115_v23 = vld [vmem:[%s1612_s4 + $0x8] sm:$0xff]  ;;  %v114_v24 = vld [vmem:[%s1612_s4] sm:$0xff]  ;;  %s1187_s29 = smov 104   ;;  %vm168_vm8 = vcmask 64512  }
   0x6   :  { %v1100_v39 = vld [vmem:[%s1610_s2] ss:$0 sm:$0xff]  ;;  %s1190_s16 = smov 8   ;;  %s1191_s0 = smov 24  }
   0x7   :  { %141 = vmatpush.msra.mxu0 %v116_v22  ;;  %v1101_v43 = vld [vmem:[%s1611_s3] ss:$0 sm:$0xff]  ;;  %s1185_s3 = smov 112   ;;  %s1192_s17 = smov 16  }
   0x8   :  { %v1102_v53 = vld [vmem:[%s1613_s5] ss:$0 sm:$0xff]  ;;  %s1188_s5 = smov 96   ;;  %s1193_s22 = smov [#allocation2]  }
   0x9   :  { %142 = vmatpush.msra.mxu0 %v115_v23  ;;  %s1030_s23 = sshll.u32 %s1193_s22, 4  ;;  %s1031_s23 = int_to_ptr.vmem [resolvable:$true] %s1030_s23 }
   0xb   :  { %55 = vadd.xlane.f32.xlu0 %v54_v3  ;;  %v1109_v5 = vpop.eup %1108  ;;  %143 = vmatpush.msra.mxu0 %v114_v24 }
   0xc   :  { %v58_v6 = vmul.f32 32.0, %v1109_v5  ;;  %vm62_vm1 = vweird.f32 %v1109_v5 }
   0xe   :  { %v59_v7 = vsub.f32 1.0, %v58_v6 }
  0x10   :  { %v60_v8 = vmul.f32 %v1109_v5, %v59_v7 }
  0x12   :  { %v61_v9 = vadd.f32 %v1109_v5, %v60_v8 }
  0x14   :  { %v1284_v10 = vsel %vm62_vm1, %v1109_v5, %v61_v9 }
  0x76   :  { %v53_v11 = vpop.xlane.xlu0 %52 }
  0x77   :  { %v64_v12 = vmul.f32 %v1284_v10, %v53_v11 }
  0x79   :  { %v66_v13 = vsub.f32 %v1273_v0, %v64_v12  ;;  %v165_v12 = vld [vmem:[%s1609_s1] sm:$0xff]  ;;  %s1189_s1 = smov 64  }
  0x7b   :  { %v68_v14 = vmul.f32 %v66_v13, %v66_v13 }
  0x7d   :  { %v70_v15 = vsel %vm50_vm0, %v68_v14, 0.0 }
  0x7e   :  { %71 = vadd.xlane.f32.xlu1 %v70_v15  ;;  %v56_v16 = vpop.xlane.xlu0 %55 }
  0x7f   :  { %v65_v17 = vmul.f32 %v1284_v10, %v56_v16 }
  0x81   :  { %v67_v18 = vsub.f32 %v1280_v2, %v65_v17 }
  0x83   :  { %v69_v19 = vmul.f32 %v67_v18, %v67_v18 }
  0x85   :  { %v73_v20 = vsel %vm50_vm0, %v69_v19, 0.0 }
  0x86   :  { %74 = vadd.xlane.f32.xlu1 %v73_v20 }
  0xf1   :  { %v72_v25 = vpop.xlane.xlu1 %71 }
  0xf2   :  { %v76_v26 = vmul.f32 %v72_v25, %v1284_v10 }
  0xf4   :  { %v78_v27 = vadd.f32 1e-05, %v76_v26 }
  0xf6   :  { %1110 = vrsqrt.f32 %v78_v27  ;;  %vm86_vm3 = vweird.f32 %v78_v27 }
  0xf9   :  { %v75_v28 = vpop.xlane.xlu1 %74 }
  0xfa   :  { %v77_v29 = vmul.f32 %v75_v28, %v1284_v10 }
  0xfc   :  { %v1111_v30 = vpop.eup %1110  ;;  %v79_v31 = vadd.f32 1e-05, %v77_v29 }
  0xfd   :  { %v81_v32 = vmul.f32 %v1111_v30, %v78_v27  ;;  %vm87_vm2 = vweird.f32 %v1111_v30 }
  0xfe   :  { %1112 = vrsqrt.f32 %v79_v31  ;;  %vm88_vm4 = vmor %vm86_vm3, %vm87_vm2  ;;  %vm96_vm5 = vweird.f32 %v79_v31 }
  0xff   :  { %v82_v33 = vmul.f32 %v1111_v30, %v81_v32 }
 0x101   :  { %v83_v34 = vmul.f32 0.5, %v82_v33 }
 0x103   :  { %v84_v35 = vsub.f32 1.5, %v83_v34 }
 0x104   :  { %v1113_v36 = vpop.eup %1112 }
 0x105   :  { %v85_v37 = vmul.f32 %v1111_v30, %v84_v35  ;;  %v91_v38 = vmul.f32 %v1113_v36, %v79_v31  ;;  %vm97_vm6 = vweird.f32 %v1113_v36 }
 0x106   :  { %vm98_vm7 = vmor %vm96_vm5, %vm97_vm6 }
 0x107   :  { %v89_v40 = vsel %vm88_vm4, %v1111_v30, %v85_v37  ;;  %v92_v41 = vmul.f32 %v1113_v36, %v91_v38 }
 0x108   :  { %v100_v42 = vmul.f32 %v89_v40, %v66_v13 }
 0x109   :  { %v93_v44 = vmul.f32 0.5, %v92_v41 }
 0x10a   :  { %v106_v45 = vmul.f32 %v1100_v39, %v100_v42 }
 0x10b   :  { %v94_v46 = vsub.f32 1.5, %v93_v44 }
 0x10c   :  { %v112_v47 = vadd.f32 %v1101_v43, %v106_v45 }
 0x10d   :  { %v95_v48 = vmul.f32 %v1113_v36, %v94_v46 }
 0x10e   :  { %1044 = vmatmul.msk.f32.vlgmr.msra.gmra.mxu0 %vm50_vm0, %v112_v47 }
 0x10f   :  { %v99_v49 = vsel %vm98_vm7, %v1113_v36, %v95_v48 }
 0x110   :  { %v101_v50 = vmul.f32 %v99_v49, %v67_v18 }
 0x112   :  { %v107_v51 = vmul.f32 %v1100_v39, %v101_v50 }
 0x114   :  { %v113_v52 = vadd.f32 %v1101_v43, %v107_v51 }
 0x116   :  { %1045 = vmatmul.msk.f32.gmra.mxu0 %vm50_vm0, %v113_v52 }
 0x18b   :  { %v145_v54 = vpop.f32.mrf.mxu0 }
 0x18c   :  { %v1317_v55 = vadd.f32 %v1102_v53, %v145_v54 }
 0x18e   :  { %157 = vrot.lane.b32.xlu0 %v1317_v55, %s1185_s3  ;;  %153 = vrot.lane.b32.xlu2 %v1317_v55, %s1186_s28 }
 0x193   :  { %v148_v56 = vpop.f32.mrf.mxu0 }
 0x194   :  { %v1321_v57 = vadd.f32 %v1102_v53, %v148_v56 }
 0x196   :  { %161 = vrot.lane.b32.xlu2 %v1317_v55, %s1187_s29  ;;  %155 = vrot.lane.b32.xlu1 %v1321_v57, %s1186_s28 }
 0x19e   :  { %163 = vrot.lane.b32.xlu2 %v1321_v57, %s1187_s29 }
 0x1a6   :  { %159 = vrot.lane.b32.xlu2 %v1321_v57, %s1185_s3 }
 0x1ae   :  { %166 = vrot.lane.b32.xlu2 %v1317_v55, %s1188_s5 }
 0x1e8   :  { %v1328_v58 = vpop.permute.xlu2 %153 }
 0x1e9   :  { %193 = vrot.lane.b32.xlu0 %v1328_v58, %s1188_s5 }
 0x1f0   :  { %v1331_v59 = vpop.permute.xlu2 %161 }
 0x1f1   :  { %271 = vrot.lane.b32.xlu0 %v1321_v57, %s1188_s5  ;;  %245 = vrot.lane.b32.xlu2 %v1331_v59, %s1188_s5 }
 0x1f8   :  { %v1335_v60 = vpop.permute.xlu2 %163 }
 0x200   :  { %v1337_v61 = vpop.permute.xlu2 %159  ;;  %v1339_v62 = vpop.permute.xlu0 %157 }
 0x201   :  { %323 = vrot.lane.b32.xlu0 %v1337_v61, %s1188_s5  ;;  %219 = vrot.lane.b32.xlu1 %v1339_v62, %s1188_s5 }
 0x208   :  { %v167_v63 = vpop.permute.xlu2 %166  ;;  %v1343_v1 = vpop.permute.xlu1 %155 }
 0x209   :  { %1046 = vmatpush.xpose.msk.msra.mxu2 %vm168_vm8, %v167_v63  ;;  %297 = vrot.lane.b32.xlu2 %v1343_v1, %s1188_s5 }
 0x20a   :  { %349 = vrot.lane.b32.xlu1 %v1335_v60, %s1188_s5 }
 0x20c   :  { %1047 = vmatmul.msk.f32.vlgmr.msra.gmra.mxu2 %vm168_vm8, %v1317_v55 }
 0x24b   :  { %v246_v4 = vpop.permute.xlu2 %245 }
 0x25b   :  { %v194_v3 = vpop.permute.xlu0 %193 }
 0x25c   :  { %1048 = vmatpush.xpose.msk.msrb.mxu2 %vm168_vm8, %v194_v3 }
 0x25f   :  { %1049 = vmatmul.msk.f32.vlgmr.msrb.gmra.mxu2 %vm168_vm8, %v1328_v58 }
 0x260   :  { %1052 = vmatpush.xpose.msk.msra.mxu2 %vm168_vm8, %v246_v4 }
 0x263   :  { %v272_v5 = vpop.permute.xlu0 %271  ;;  %v298_v7 = vpop.permute.xlu2 %297 }
 0x264   :  { %1054 = vmatpush.xpose.msk.msrb.mxu2 %vm168_vm8, %v272_v5 }
 0x267   :  { %1053 = vmatmul.msk.f32.vlgmr.msra.gmra.mxu2 %vm168_vm8, %v1331_v59 }
 0x26f   :  { %1055 = vmatmul.msk.f32.vlgmr.msrb.gmra.mxu2 %vm168_vm8, %v1321_v57 }
 0x273   :  { %v220_v6 = vpop.permute.xlu1 %219  ;;  %v324_v8 = vpop.permute.xlu0 %323 }
 0x274   :  { %1050 = vmatpush.xpose.msk.msra.mxu3 %vm168_vm8, %v220_v6 }
 0x277   :  { %1051 = vmatmul.msk.f32.vlgmr.msra.gmra.mxu3 %vm168_vm8, %v1339_v62 }
 0x278   :  { %1056 = vmatpush.xpose.msk.msrb.mxu3 %vm168_vm8, %v298_v7 }
 0x27c   :  { %1058 = vmatpush.xpose.msk.msra.mxu3 %vm168_vm8, %v324_v8  ;;  %v350_v9 = vpop.permute.xlu1 %349 }
 0x27d   :  { %1060 = vmatpush.xpose.msk.msra.mxu2 %vm168_vm8, %v350_v9 }
 0x27f   :  { %1057 = vmatmul.msk.f32.vlgmr.msrb.gmra.mxu3 %vm168_vm8, %v1343_v1 }
 0x280   :  { %1061 = vmatmul.msk.f32.vlgmr.msra.gmra.mxu2 %vm168_vm8, %v1335_v60 }
 0x287   :  { %1059 = vmatmul.msk.f32.vlgmr.msra.gmra.mxu3 %vm168_vm8, %v1337_v61 }
 0x28f   :  { %v190_v11 = vpop.f32.mrf.mxu2 }
 0x290   :  { %v1381_v30 = vadd.f32 %v190_v11, %v165_v12 }
 0x292   :  { %v375_v35 = vsel %vm168_vm8, %v1381_v30, -inf }
 0x2e2   :  { %v216_v13 = vpop.f32.mrf.mxu2 }
 0x2e3   :  { %v217_v14 = vadd.f32 %v216_v13, %v165_v12  ;;  %v1085_v13 = vpack.i.bf16 %v1328_v58, %v1331_v59 }
 0x2e5   :  { %v378_v15 = vsel %vm168_vm8, %v217_v14, -inf }
 0x2e6   :  { %379 = vmax.xlane.f32.xlu1 %v378_v15  ;;  %v1095_v15 = vpack.i.bf16 %v1337_v61, %v1343_v1 }
 0x2ea   :  { %v268_v16 = vpop.f32.mrf.mxu2 }
 0x2eb   :  { %v269_v17 = vadd.f32 %v268_v16, %v165_v12 }
 0x2ed   :  { %v384_v18 = vsel %vm168_vm8, %v269_v17, -inf }
 0x2ee   :  { %385 = vmax.xlane.f32.xlu2 %v384_v18 }
 0x2f2   :  { %v294_v20 = vpop.f32.mrf.mxu2 }
 0x2f3   :  { %v1379_v29 = vadd.f32 %v294_v20, %v165_v12 }
 0x2f5   :  { %v387_v33 = vsel %vm168_vm8, %v1379_v29, -inf }
 0x2fa   :  { %v242_v19 = vpop.f32.mrf.mxu3 }
 0x2fb   :  { %v243_v21 = vadd.f32 %v242_v19, %v165_v12 }
 0x2fd   :  { %v381_v22 = vsel %vm168_vm8, %v243_v21, -inf }
 0x2fe   :  { %382 = vmax.xlane.f32.xlu0 %v381_v22 }
 0x302   :  { %v320_v23 = vpop.f32.mrf.mxu3 }
 0x303   :  { %v321_v24 = vadd.f32 %v320_v23, %v165_v12  ;;  %v372_v25 = vpop.f32.mrf.mxu2 }
 0x304   :  { %v373_v26 = vadd.f32 %v372_v25, %v165_v12 }
 0x305   :  { %v390_v27 = vsel %vm168_vm8, %v321_v24, -inf }
 0x306   :  { %391 = vmax.xlane.f32.xlu1 %v390_v27  ;;  %v396_v28 = vsel %vm168_vm8, %v373_v26, -inf }
 0x307   :  { %397 = vmax.xlane.f32.xlu2 %v396_v28 }
 0x30a   :  { %v346_v31 = vpop.f32.mrf.mxu3 }
 0x30b   :  { %v347_v32 = vadd.f32 %v346_v31, %v165_v12 }
 0x30d   :  { %v393_v34 = vsel %vm168_vm8, %v347_v32, -inf }
 0x30e   :  { %388 = vmax.xlane.f32.xlu1 %v387_v33  ;;  %394 = vmax.xlane.f32.xlu0 %v393_v34 }
 0x30f   :  { %376 = vmax.xlane.f32.xlu2 %v375_v35 }
 0x359   :  { %v380_v36 = vpop.xlane.xlu1 %379 }
 0x35a   :  { %v400_v37 = vsub.f32 %v217_v14, %v380_v36  ;;  %v1090_v14 = vpack.i.bf16 %v1335_v60, %v1339_v62 }
 0x35c   :  { %v409_v38 = vmul.f32 1.442695, %v400_v37 }
 0x35e   :  { %1114 = vpow2.f32 %v409_v38 }
 0x361   :  { %v386_v39 = vpop.xlane.xlu2 %385 }
 0x362   :  { %v402_v40 = vsub.f32 %v269_v17, %v386_v39 }
 0x364   :  { %v1388_v41 = vpop.eup %1114  ;;  %v413_v42 = vmul.f32 1.442695, %v402_v40 }
 0x365   :  { %v426_v43 = vsel %vm168_vm8, %v1388_v41, 0.0 }
 0x366   :  { %1116 = vpow2.f32 %v413_v42  ;;  %427 = vadd.xlane.f32.xlu2 %v426_v43 }
 0x36c   :  { %v1392_v44 = vpop.eup %1116 }
 0x36d   :  { %v432_v45 = vsel %vm168_vm8, %v1392_v44, 0.0 }
 0x36e   :  { %433 = vadd.xlane.f32.xlu0 %v432_v45 }
 0x371   :  { %v383_v46 = vpop.xlane.xlu0 %382 }
 0x372   :  { %v401_v47 = vsub.f32 %v243_v21, %v383_v46 }
 0x374   :  { %v411_v48 = vmul.f32 1.442695, %v401_v47 }
 0x376   :  { %1118 = vpow2.f32 %v411_v48 }
 0x379   :  { %v392_v49 = vpop.xlane.xlu1 %391 }
 0x37a   :  { %v404_v50 = vsub.f32 %v321_v24, %v392_v49  ;;  %v398_v51 = vpop.xlane.xlu2 %397 }
 0x37b   :  { %v406_v52 = vsub.f32 %v373_v26, %v398_v51 }
 0x37c   :  { %v1396_v53 = vpop.eup %1118  ;;  %v417_v54 = vmul.f32 1.442695, %v404_v50 }
 0x37d   :  { %v421_v56 = vmul.f32 1.442695, %v406_v52  ;;  %v429_v63 = vsel %vm168_vm8, %v1396_v53, 0.0 }
 0x37e   :  { %1120 = vpow2.f32 %v417_v54  ;;  %430 = vadd.xlane.f32.xlu1 %v429_v63 }
 0x37f   :  { %1122 = vpow2.f32 %v421_v56 }
 0x381   :  { %v395_v3 = vpop.xlane.xlu0 %394  ;;  %v389_v17 = vpop.xlane.xlu1 %388 }
 0x382   :  { %v405_v4 = vsub.f32 %v347_v32, %v395_v3  ;;  %v377_v16 = vpop.xlane.xlu2 %376  ;;  %v403_v19 = vsub.f32 %v1379_v29, %v389_v17 }
 0x383   :  { %v399_v18 = vsub.f32 %v1381_v30, %v377_v16 }
 0x384   :  { %v1400_v5 = vpop.eup %1120  ;;  %v419_v6 = vmul.f32 1.442695, %v405_v4  ;;  %v415_v58 = vmul.f32 1.442695, %v403_v19 }
 0x385   :  { %v1402_v7 = vpop.eup %1122  ;;  %v438_v8 = vsel %vm168_vm8, %v1400_v5, 0.0  ;;  %v407_v20 = vmul.f32 1.442695, %v399_v18 }
 0x386   :  { %439 = vadd.xlane.f32.xlu2 %v438_v8  ;;  %v444_v9 = vsel %vm168_vm8, %v1402_v7, 0.0  ;;  %1124 = vpow2.f32 %v419_v6 }
 0x387   :  { %445 = vadd.xlane.f32.xlu0 %v444_v9  ;;  %1126 = vpow2.f32 %v407_v20 }
 0x388   :  { %1128 = vpow2.f32 %v415_v58 }
 0x38c   :  { %v1408_v11 = vpop.eup %1124 }
 0x38d   :  { %v441_v12 = vsel %vm168_vm8, %v1408_v11, 0.0  ;;  %v1422_v59 = vpop.eup %1126 }
 0x38e   :  { %442 = vadd.xlane.f32.xlu1 %v441_v12  ;;  %v1424_v60 = vpop.eup %1128  ;;  %v423_v61 = vsel %vm168_vm8, %v1422_v59, 0.0 }
 0x39b   :  { %1086 = vrot.lane.b32.xlu0 %v1085_v13, %s1189_s1 }
 0x39e   :  { %1091 = vrot.lane.b32.xlu2 %v1090_v14, %s1189_s1 }
 0x3a7   :  { %1096 = vrot.lane.b32.xlu1 %v1095_v15, %s1189_s1 }
 0x3af   :  { %567 = vrot.lane.b32.xlu1 %v1317_v55, %s1189_s1  ;;  %v435_v55 = vsel %vm168_vm8, %v1424_v60, 0.0 }
 0x3b7   :  { %671 = vrot.lane.b32.xlu1 %v1321_v57, %s1189_s1 }
 0x3c5   :  { %424 = vadd.xlane.f32.xlu0 %v423_v61 }
 0x3c7   :  { %436 = vadd.xlane.f32.xlu2 %v435_v55 }
 0x3d9   :  { %v428_v62 = vpop.xlane.xlu2 %427 }
 0x3da   :  { %1130 = vrcp.f32 %v428_v62  ;;  %vm467_vm13 = vweird.f32 %v428_v62  ;;  %v473_v50 = vand.u32 2147483648, %v428_v62  ;;  %v471_v52 = vand.u32 2147483647, %v428_v62 }
 0x3dc   :  { %v474_v8 = vor.u32 1.1754944e-38, %v473_v50  ;;  %vm472_vm4 = vcmp.eq.f32.partialorder %v471_v52, 8.507059e+37 }
 0x3e0   :  { %v1131_v57 = vpop.eup %1130 }
 0x3e1   :  { %v434_v1 = vpop.xlane.xlu0 %433  ;;  %v463_v23 = vmul.f32 %v1131_v57, %v428_v62  ;;  %vm468_vm14 = vweird.f32 %v1131_v57 }
 0x3e2   :  { %1132 = vrcp.f32 %v434_v1  ;;  %v503_v54 = vand.u32 2147483648, %v434_v1  ;;  %vm469_vm1 = vmor %vm467_vm13, %vm468_vm14  ;;  %vm497_vm2 = vweird.f32 %v434_v1  ;;  %v501_v3 = vand.u32 2147483647, %v434_v1 }
 0x3e3   :  { %v464_v29 = vsub.f32 1.0, %v463_v23 }
 0x3e4   :  { %v504_v12 = vor.u32 1.1754944e-38, %v503_v54  ;;  %vm502_vm5 = vcmp.eq.f32.partialorder %v501_v3, 8.507059e+37 }
 0x3e5   :  { %v465_v35 = vmul.f32 %v1131_v57, %v464_v29 }
 0x3e7   :  { %v466_v46 = vadd.f32 %v1131_v57, %v465_v35 }
 0x3e8   :  { %v1133_v22 = vpop.eup %1132 }
 0x3e9   :  { %v493_v25 = vmul.f32 %v1133_v22, %v434_v1  ;;  %vm498_vm15 = vweird.f32 %v1133_v22  ;;  %v470_v6 = vsel %vm469_vm1, %v1131_v57, %v466_v46 }
 0x3ea   :  { %vm499_vm3 = vmor %vm497_vm2, %vm498_vm15  ;;  %v475_v15 = vsel %vm472_vm4, %v474_v8, %v470_v6 }
 0x3eb   :  { %v494_v31 = vsub.f32 1.0, %v493_v25  ;;  %v476_v58 = vmul.f32 %v1388_v41, %v475_v15 }
 0x3ed   :  { %v495_v37 = vmul.f32 %v1133_v22, %v494_v31 }
 0x3ef   :  { %v496_v51 = vadd.f32 %v1133_v22, %v495_v37 }
 0x3f1   :  { %v431_v21 = vpop.xlane.xlu1 %430  ;;  %v500_v9 = vsel %vm499_vm3, %v1133_v22, %v496_v51 }
 0x3f2   :  { %1134 = vrcp.f32 %v431_v21  ;;  %v488_v33 = vand.u32 2147483648, %v431_v21  ;;  %v486_v34 = vand.u32 2147483647, %v431_v21  ;;  %vm482_vm10 = vweird.f32 %v431_v21 }
 0x3f4   :  { %v489_v39 = vor.u32 1.1754944e-38, %v488_v33  ;;  %vm487_vm12 = vcmp.eq.f32.partialorder %v486_v34, 8.507059e+37 }
 0x3f8   :  { %v1135_v24 = vpop.eup %1134 }
 0x3f9   :  { %v478_v26 = vmul.f32 %v1135_v24, %v431_v21  ;;  %v1430_v27 = vpop.xlane.xlu2 %439  ;;  %vm483_vm9 = vweird.f32 %v1135_v24 }
 0x3fa   :  { %v1432_v28 = vpop.xlane.xlu0 %445  ;;  %vm484_vm11 = vmor %vm482_vm10, %vm483_vm9  ;;  %vm527_vm13 = vweird.f32 %v1430_v27  ;;  %v531_v31 = vand.u32 2147483647, %v1430_v27 }
 0x3fb   :  { %v479_v30 = vsub.f32 1.0, %v478_v26  ;;  %1136 = vrcp.f32 %v1432_v28  ;;  %v563_v61 = vand.u32 2147483648, %v1432_v28  ;;  %vm557_vm7 = vweird.f32 %v1432_v28 }
 0x3fc   :  { %1138 = vrcp.f32 %v1430_v27  ;;  %v561_v57 = vand.u32 2147483647, %v1432_v28  ;;  %vm532_vm2 = vcmp.eq.f32.partialorder %v531_v31, 8.507059e+37 }
 0x3fd   :  { %v480_v32 = vmul.f32 %v1135_v24, %v479_v30 }
 0x3ff   :  { %v481_v36 = vadd.f32 %v1135_v24, %v480_v32 }
 0x401   :  { %v1436_v38 = vpop.eup %1136  ;;  %v1092_v40 = vpop.permute.xlu2 %1091  ;;  %v485_v42 = vsel %vm484_vm11, %v1135_v24, %v481_v36  ;;  %vm562_vm11 = vcmp.eq.f32.partialorder %v561_v57, 8.507059e+37 }
 0x402   :  { %v553_v43 = vmul.f32 %v1436_v38, %v1432_v28  ;;  %v1093_v45 = vunpack.i.l.bf16 %v1092_v40  ;;  %v1440_v47 = vpop.xlane.xlu1 %442  ;;  %v490_v48 = vsel %vm487_vm12, %v489_v39, %v485_v42  ;;  %v1442_v49 = vpop.eup %1138  ;;  %vm558_vm6 = vweird.f32 %v1436_v38 }
 0x403   :  { %1140 = vrcp.f32 %v1440_v47  ;;  %v491_v63 = vmul.f32 %v1396_v53, %v490_v48  ;;  %v523_v4 = vmul.f32 %v1442_v49, %v1430_v27  ;;  %v505_v53 = vsel %vm502_vm5, %v504_v12, %v500_v9  ;;  %vm1459_vm9 = vmor %vm557_vm7, %vm558_vm6 }
 0x404   :  { %640 = vmatpush.msra.mxu1 %v1093_v45  ;;  %v554_v56 = vsub.f32 1.0, %v553_v43  ;;  %v506_v1 = vmul.f32 %v1392_v44, %v505_v53  ;;  %v1094_v24 = vunpack.i.h.bf16 %v1092_v40  ;;  %vm528_vm10 = vweird.f32 %v1442_v49 }
 0x405   :  { %1064 = vmatmul.msk.f32.vlgmr.msra.gmra.mxu1 %vm168_vm8, %v491_v63  ;;  %v524_v16 = vsub.f32 1.0, %v523_v4  ;;  %v564_v44 = vor.u32 1.1754944e-38, %v563_v61  ;;  %v533_v28 = vand.u32 2147483648, %v1430_v27  ;;  %v548_v30 = vand.u32 2147483648, %v1440_v47  ;;  %vm529_vm14 = vmor %vm527_vm13, %vm528_vm10 }
 0x406   :  { %v555_v13 = vmul.f32 %v1436_v38, %v554_v56  ;;  %vm542_vm15 = vweird.f32 %v1440_v47  ;;  %v546_v32 = vand.u32 2147483647, %v1440_v47  ;;  %vm801_vm13 = vcmask 130048  }
 0x407   :  { %v525_v21 = vmul.f32 %v1442_v49, %v524_v16  ;;  %v534_v36 = vor.u32 1.1754944e-38, %v533_v28  ;;  %v549_v37 = vor.u32 1.1754944e-38, %v548_v30 }
 0x408   :  { %v556_v18 = vadd.f32 %v1436_v38, %v555_v13  ;;  %vm547_vm3 = vcmp.eq.f32.partialorder %v546_v32, 8.507059e+37 }
 0x409   :  { %v1141_v14 = vpop.eup %1140  ;;  %v526_v25 = vadd.f32 %v1442_v49, %v525_v21  ;;  %v807_v21 = vld [vmem:[%s1614_s6] sm:$0xff] }
 0x40a   :  { %v538_v17 = vmul.f32 %v1141_v14, %v1440_v47  ;;  %v560_v41 = vsel %vm1459_vm9, %v1436_v38, %v556_v18  ;;  %vm543_vm12 = vweird.f32 %v1141_v14 }
 0x40b   :  { %v565_v29 = vsel %vm562_vm11, %v564_v44, %v560_v41  ;;  %vm544_vm1 = vmor %vm542_vm15, %vm543_vm12  ;;  %v530_v33 = vsel %vm529_vm14, %v1442_v49, %v526_v25  ;;  %vm804_vm14 = vcmask 195584  }
 0x40c   :  { %v539_v19 = vsub.f32 1.0, %v538_v17  ;;  %v566_v34 = vmul.f32 %v1402_v7, %v565_v29  ;;  %v535_v38 = vsel %vm532_vm2, %v534_v36, %v530_v33 }
 0x40d   :  { %v1087_v20 = vpop.permute.xlu0 %1086  ;;  %v536_v43 = vmul.f32 %v1400_v5, %v535_v38 }
 0x40e   :  { %v1088_v55 = vunpack.i.l.bf16 %v1087_v20  ;;  %v1089_v62 = vunpack.i.h.bf16 %v1087_v20  ;;  %v540_v22 = vmul.f32 %v1141_v14, %v539_v19 }
 0x410   :  { %614 = vmatpush.msrb.mxu0 %v1089_v62  ;;  %666 = vmatpush.msrb.mxu2 %v1088_v55  ;;  %v541_v26 = vadd.f32 %v1141_v14, %v540_v22  ;;  %v809_v62 = vld [vmem:[%s1614_s6 + $0x10] sm:$0xff] }
 0x411   :  { %1063 = vmatmul.msk.f32.vlgmr.msrb.gmra.mxu0 %vm168_vm8, %v476_v58  ;;  %1065 = vmatmul.msk.f32.vlgmr.msrb.gmra.mxu2 %vm168_vm8, %v506_v1  ;;  %v808_v1 = vld [vmem:[%s1614_s6 + $0x8] sm:$0xff] }
 0x412   :  { %770 = vmatpush.msra.mxu2 %v1094_v24  ;;  %v545_v35 = vsel %vm544_vm1, %v1141_v14, %v541_v26 }
 0x413   :  { %v550_v39 = vsel %vm547_vm3, %v549_v37, %v545_v35 }
 0x414   :  { %v551_v45 = vmul.f32 %v1408_v11, %v550_v39 }
 0x419   :  { %1069 = vmatmul.msk.f32.vlgmr.msra.gmra.mxu2 %vm168_vm8, %v566_v34  ;;  %v1097_v40 = vpop.permute.xlu1 %1096  ;;  %v1103_v34 = vld [vmem:[%s1615_s7] ss:$0 sm:$0xff] }
 0x41a   :  { %v1098_v27 = vunpack.i.l.bf16 %v1097_v40  ;;  %v1099_v42 = vunpack.i.h.bf16 %v1097_v40 }
 0x41c   :  { %718 = vmatpush.msra.mxu0 %v1098_v27  ;;  %744 = vmatpush.msrb.mxu1 %v1099_v42 }
 0x41d   :  { %1067 = vmatmul.msk.f32.vlgmr.msra.gmra.mxu0 %vm168_vm8, %v536_v43  ;;  %1068 = vmatmul.msk.f32.vlgmr.msrb.gmra.mxu1 %vm168_vm8, %v551_v45 }
 0x421   :  { %v568_v7 = vpop.permute.xlu1 %567 }
 0x422   :  { %588 = vmatpush.msrb.mxu3 %v568_v7 }
 0x429   :  { %v672_v46 = vpop.permute.xlu1 %671 }
 0x42a   :  { %692 = vmatpush.msra.mxu3 %v672_v46 }
 0x438   :  { %v425_v47 = vpop.xlane.xlu0 %424 }
 0x439   :  { %1142 = vrcp.f32 %v425_v47  ;;  %v458_v11 = vand.u32 2147483648, %v425_v47  ;;  %v456_v56 = vand.u32 2147483647, %v425_v47  ;;  %vm452_vm5 = vweird.f32 %v425_v47 }
 0x43a   :  { %v437_v48 = vpop.xlane.xlu2 %436 }
 0x43b   :  { %1144 = vrcp.f32 %v437_v48  ;;  %v459_v6 = vor.u32 1.1754944e-38, %v458_v11  ;;  %vm457_vm7 = vcmp.eq.f32.partialorder %v456_v56, 8.507059e+37  ;;  %v518_v13 = vand.u32 2147483648, %v437_v48  ;;  %v902_v11 = vld [vmem:[%s1618_s10] sm:$0xff] }
 0x43c   :  { %vm512_vm10 = vweird.f32 %v437_v48  ;;  %v516_v14 = vand.u32 2147483647, %v437_v48 }
 0x43d   :  { %v519_v16 = vor.u32 1.1754944e-38, %v518_v13 }
 0x43e   :  { %vm517_vm12 = vcmp.eq.f32.partialorder %v516_v14, 8.507059e+37 }
 0x43f   :  { %v1143_v49 = vpop.eup %1142 }
 0x440   :  { %v448_v50 = vmul.f32 %v1143_v49, %v425_v47  ;;  %vm453_vm4 = vweird.f32 %v1143_v49 }
 0x441   :  { %v1145_v51 = vpop.eup %1144  ;;  %vm454_vm6 = vmor %vm452_vm5, %vm453_vm4 }
 0x442   :  { %v449_v5 = vsub.f32 1.0, %v448_v50  ;;  %v508_v52 = vmul.f32 %v1145_v51, %v437_v48  ;;  %vm513_vm9 = vweird.f32 %v1145_v51 }
 0x443   :  { %vm514_vm11 = vmor %vm512_vm10, %vm513_vm9 }
 0x444   :  { %v450_v54 = vmul.f32 %v1143_v49, %v449_v5  ;;  %v509_v63 = vsub.f32 1.0, %v508_v52  ;;  %v904_v5 = vld [vmem:[%s1618_s10 + $0x10] sm:$0xff]  ;;  %v903_v52 = vld [vmem:[%s1618_s10 + $0x8] sm:$0xff] }
 0x446   :  { %v451_v3 = vadd.f32 %v1143_v49, %v450_v54  ;;  %v510_v4 = vmul.f32 %v1145_v51, %v509_v63 }
 0x448   :  { %v455_v8 = vsel %vm454_vm6, %v1143_v49, %v451_v3  ;;  %v511_v9 = vadd.f32 %v1145_v51, %v510_v4 }
 0x449   :  { %v460_v12 = vsel %vm457_vm7, %v459_v6, %v455_v8 }
 0x44a   :  { %v461_v15 = vmul.f32 %v1422_v59, %v460_v12  ;;  %v515_v53 = vsel %vm514_vm11, %v1145_v51, %v511_v9  ;;  %v905_v51 = vld [vmem:[%s1618_s10 + $0x18] sm:$0xff] }
 0x44b   :  { %v520_v17 = vsel %vm517_vm12, %v519_v16, %v515_v53  ;;  %928 = vmatpush.msrb.mxu0 %v905_v51  ;;  %v1104_v53 = vld [vmem:[%s1616_s8] ss:$0 sm:$0xff] }
 0x44c   :  { %1062 = vmatmul.msk.f32.vlgmr.msrb.gmra.mxu3 %vm168_vm8, %v461_v15  ;;  %v521_v18 = vmul.f32 %v1424_v60, %v520_v17  ;;  %v810_v60 = vld [vmem:[%s1614_s6 + $0x18] sm:$0xff]  ;;  %s1032_s6 = sshll.u32 %s1622_s14, 4  ;;  %s1033_s6 = int_to_ptr.hbm [resolvable:$true] %s1032_s6 }
 0x44d   :  { %833 = vmatpush.msrb.mxu3 %v810_v60  ;;  %929 = vmatpush.msrb.mxu0 %v904_v5 }
 0x44f   :  { %834 = vmatpush.msrb.mxu3 %v809_v62  ;;  %930 = vmatpush.msrb.mxu0 %v903_v52 }
 0x451   :  { %835 = vmatpush.msrb.mxu3 %v808_v1  ;;  %931 = vmatpush.msrb.mxu0 %v902_v11 }
 0x453   :  { %836 = vmatpush.msrb.mxu3 %v807_v21 }
 0x454   :  { %1066 = vmatmul.msk.f32.vlgmr.msra.gmra.mxu3 %vm168_vm8, %v521_v18  ;;  %v1105_v18 = vld [vmem:[%s1617_s9] ss:$0 sm:$0xff] }
 0x482   :  { %v642_v20 = vpop.f32.mrf.mxu1 }
 0x48e   :  { %v616_v19 = vpop.f32.mrf.mxu0 }
 0x48f   :  { %777 = vrot.lane.b32.xlu1 %v616_v19, %s1190_s16 }
 0x494   :  { %v668_v58 = vpop.f32.mrf.mxu2 }
 0x495   :  { %793 = vrot.lane.b32.xlu0 %v668_v58, %s1191_s0 }
 0x497   :  { %785 = vrot.lane.b32.xlu1 %v642_v20, %s1192_s17 }
 0x49a   :  { %v746_v59 = vpop.f32.mrf.mxu1  ;;  %v720_v61 = vpop.f32.mrf.mxu0 }
 0x49b   :  { %787 = vrot.lane.b32.xlu2 %v746_v59, %s1192_s17 }
 0x49c   :  { %v772_v55 = vpop.f32.mrf.mxu2 }
 0x49f   :  { %779 = vrot.lane.b32.xlu1 %v720_v61, %s1190_s16 }
 0x4a7   :  { %795 = vrot.lane.b32.xlu1 %v772_v55, %s1191_s0 }
 0x4cf   :  { %v590_v22 = vpop.f32.mrf.mxu3 }
 0x4d7   :  { %v694_v28 = vpop.f32.mrf.mxu3 }
 0x4f5   :  { %v788_v30 = vpop.permute.xlu2 %787 }
 0x501   :  { %v778_v57 = vpop.permute.xlu1 %777 }
 0x502   :  { %v799_v23 = vsel %vm168_vm8, %v590_v22, %v778_v57  ;;  %v994_v22 = vld [vmem:[%s1620_s12 + $0x78] sm:$0xff] }
 0x503   :  { %999 = vmatpush.msra.mxu1 %v994_v22 }
 0x507   :  { %v794_v41 = vpop.permute.xlu0 %793 }
 0x509   :  { %v786_v24 = vpop.permute.xlu1 %785 }
 0x50a   :  { %v802_v44 = vsel %vm801_vm13, %v799_v23, %v786_v24  ;;  %v993_v23 = vld [vmem:[%s1620_s12 + $0x70] sm:$0xff]  ;;  %v992_v24 = vld [vmem:[%s1620_s12 + $0x68] sm:$0xff] }
 0x50b   :  { %v805_v25 = vsel %vm804_vm14, %v802_v44, %v794_v41  ;;  %1000 = vmatpush.msra.mxu1 %v993_v23  ;;  %v991_v41 = vld [vmem:[%s1620_s12 + $0x60] sm:$0xff]  ;;  %v990_v44 = vld [vmem:[%s1620_s12 + $0x58] sm:$0xff] }
 0x50c   :  { %1070 = vmatmul.msk.f32.vlgmr.msrb.gmra.mxu3 %vm50_vm0, %v805_v25  ;;  %v989_v25 = vld [vmem:[%s1620_s12 + $0x50] sm:$0xff] }
 0x50d   :  { %1001 = vmatpush.msra.mxu1 %v992_v24 }
 0x50f   :  { %1002 = vmatpush.msra.mxu1 %v991_v41 }
 0x511   :  { %v780_v26 = vpop.permute.xlu1 %779  ;;  %1003 = vmatpush.msra.mxu1 %v990_v44 }
 0x512   :  { %v800_v29 = vsel %vm168_vm8, %v694_v28, %v780_v26  ;;  %v988_v26 = vld [vmem:[%s1620_s12 + $0x48] sm:$0xff]  ;;  %v987_v28 = vld [vmem:[%s1620_s12 + $0x40] sm:$0xff] }
 0x513   :  { %v803_v32 = vsel %vm801_vm13, %v800_v29, %v788_v30  ;;  %1004 = vmatpush.msra.mxu1 %v989_v25  ;;  %v986_v29 = vld [vmem:[%s1620_s12 + $0x38] sm:$0xff]  ;;  %v985_v30 = vld [vmem:[%s1620_s12 + $0x30] sm:$0xff] }
 0x515   :  { %1005 = vmatpush.msra.mxu1 %v988_v26 }
 0x517   :  { %1006 = vmatpush.msra.mxu1 %v987_v28 }
 0x519   :  { %v796_v31 = vpop.permute.xlu1 %795  ;;  %1007 = vmatpush.msra.mxu1 %v986_v29 }
 0x51a   :  { %v806_v33 = vsel %vm804_vm14, %v803_v32, %v796_v31  ;;  %v984_v31 = vld [vmem:[%s1620_s12 + $0x28] sm:$0xff]  ;;  %v983_v32 = vld [vmem:[%s1620_s12 + $0x20] sm:$0xff] }
 0x51b   :  { %1071 = vmatmul.msk.f32.gmra.mxu3 %vm50_vm0, %v806_v33  ;;  %1008 = vmatpush.msra.mxu1 %v985_v30  ;;  %v1106_v33 = vld [vmem:[%s1619_s11] ss:$0 sm:$0xff] }
 0x51d   :  { %1009 = vmatpush.msra.mxu1 %v984_v31 }
 0x51f   :  { %1010 = vmatpush.msra.mxu1 %v983_v32 }
 0x58f   :  { %v838_v35 = vpop.f32.mrf.mxu3 }
 0x590   :  { %v839_v36 = vadd.f32 %v1103_v34, %v838_v35  ;;  %v981_v35 = vld [vmem:[%s1620_s12 + $0x10] sm:$0xff] }
 0x592   :  { %v1509_v37 = vadd.f32 %v839_v36, %v1273_v0 }
 0x594   :  { %v846_v38 = vsel %vm50_vm0, %v1509_v37, 0.0 }
 0x595   :  { %847 = vadd.xlane.f32.xlu1 %v846_v38 }
 0x59e   :  { %v841_v39 = vpop.f32.mrf.mxu3 }
 0x59f   :  { %v842_v40 = vadd.f32 %v1103_v34, %v841_v39  ;;  %v982_v34 = vld [vmem:[%s1620_s12 + $0x18] sm:$0xff]  ;;  %v980_v39 = vld [vmem:[%s1620_s12 + $0x8] sm:$0xff] }
 0x5a0   :  { %1011 = vmatpush.msra.mxu1 %v982_v34 }
 0x5a1   :  { %v1514_v27 = vadd.f32 %v842_v40, %v1280_v2  ;;  %v979_v40 = vld [vmem:[%s1620_s12] sm:$0xff] }
 0x5a2   :  { %1012 = vmatpush.msra.mxu1 %v981_v35 }
 0x5a3   :  { %v849_v42 = vsel %vm50_vm0, %v1514_v27, 0.0 }
 0x5a4   :  { %850 = vadd.xlane.f32.xlu0 %v849_v42  ;;  %1013 = vmatpush.msra.mxu1 %v980_v39 }
 0x5a6   :  { %1014 = vmatpush.msra.mxu1 %v979_v40 }
 0x608   :  { %v848_v43 = vpop.xlane.xlu1 %847 }
 0x609   :  { %v852_v45 = vmul.f32 %v848_v43, %v1284_v10 }
 0x60b   :  { %v854_v7 = vsub.f32 %v1509_v37, %v852_v45 }
 0x60d   :  { %v856_v0 = vmul.f32 %v854_v7, %v854_v7 }
 0x60f   :  { %v858_v46 = vsel %vm50_vm0, %v856_v0, 0.0 }
 0x610   :  { %859 = vadd.xlane.f32.xlu2 %v858_v46 }
 0x617   :  { %v851_v47 = vpop.xlane.xlu0 %850 }
 0x618   :  { %v853_v48 = vmul.f32 %v851_v47, %v1284_v10 }
 0x61a   :  { %v855_v49 = vsub.f32 %v1514_v27, %v853_v48 }
 0x61c   :  { %v857_v2 = vmul.f32 %v855_v49, %v855_v49 }
 0x61e   :  { %v861_v50 = vsel %vm50_vm0, %v857_v2, 0.0 }
 0x61f   :  { %862 = vadd.xlane.f32.xlu1 %v861_v50 }
 0x683   :  { %v860_v54 = vpop.xlane.xlu2 %859 }
 0x684   :  { %v864_v56 = vmul.f32 %v860_v54, %v1284_v10 }
 0x686   :  { %v866_v63 = vadd.f32 1e-05, %v864_v56 }
 0x688   :  { %1146 = vrsqrt.f32 %v866_v63  ;;  %vm874_vm15 = vweird.f32 %v866_v63 }
 0x68e   :  { %v1147_v3 = vpop.eup %1146 }
 0x68f   :  { %v869_v4 = vmul.f32 %v1147_v3, %v866_v63  ;;  %vm875_vm8 = vweird.f32 %v1147_v3 }
 0x690   :  { %vm876_vm1 = vmor %vm874_vm15, %vm875_vm8 }
 0x691   :  { %v870_v6 = vmul.f32 %v1147_v3, %v869_v4 }
 0x692   :  { %v863_v8 = vpop.xlane.xlu1 %862 }
 0x693   :  { %v871_v9 = vmul.f32 0.5, %v870_v6  ;;  %v865_v12 = vmul.f32 %v863_v8, %v1284_v10 }
 0x695   :  { %v872_v13 = vsub.f32 1.5, %v871_v9  ;;  %v867_v14 = vadd.f32 1e-05, %v865_v12 }
 0x697   :  { %v873_v15 = vmul.f32 %v1147_v3, %v872_v13  ;;  %1148 = vrsqrt.f32 %v867_v14  ;;  %vm884_vm3 = vweird.f32 %v867_v14 }
 0x699   :  { %v877_v16 = vsel %vm876_vm1, %v1147_v3, %v873_v15 }
 0x69a   :  { %v888_v17 = vmul.f32 %v877_v16, %v854_v7 }
 0x69c   :  { %v894_v19 = vmul.f32 %v1104_v53, %v888_v17 }
 0x69d   :  { %v1149_v20 = vpop.eup %1148 }
 0x69e   :  { %v879_v10 = vmul.f32 %v1149_v20, %v867_v14  ;;  %v900_v58 = vadd.f32 %v1105_v18, %v894_v19  ;;  %vm885_vm2 = vweird.f32 %v1149_v20 }
 0x69f   :  { %vm886_vm4 = vmor %vm884_vm3, %vm885_vm2 }
 0x6a0   :  { %v880_v59 = vmul.f32 %v1149_v20, %v879_v10  ;;  %1072 = vmatmul.msk.f32.vlgmr.msrb.gmra.mxu0 %vm50_vm0, %v900_v58 }
 0x6a2   :  { %v881_v61 = vmul.f32 0.5, %v880_v59 }
 0x6a4   :  { %v882_v55 = vsub.f32 1.5, %v881_v61 }
 0x6a6   :  { %v883_v60 = vmul.f32 %v1149_v20, %v882_v55 }
 0x6a8   :  { %v887_v62 = vsel %vm886_vm4, %v1149_v20, %v883_v60  ;;  %v1107_v20 = vld [vmem:[%s1621_s13] ss:$0 sm:$0xff]  ;;  %s1194_s13 = smov 128  }
 0x6a9   :  { %v889_v1 = vmul.f32 %v887_v62, %v855_v49 }
 0x6ab   :  { %v895_v21 = vmul.f32 %v1104_v53, %v889_v1 }
 0x6ad   :  { %v901_v57 = vadd.f32 %v1105_v18, %v895_v21 }
 0x6af   :  { %1073 = vmatmul.msk.f32.gmra.mxu0 %vm50_vm0, %v901_v57 }
 0x71d   :  { %v933_v36 = vpop.f32.mrf.mxu0 }
 0x71e   :  { %v934_v38 = vadd.f32 %v1106_v33, %v933_v36 }
 0x720   :  { %v939_v42 = vmul.f32 -1.702, %v934_v38 }
 0x722   :  { %v941_v43 = vmul.f32 1.442695, %v939_v42 }
 0x724   :  { %1150 = vpow2.f32 %v941_v43 }
 0x72a   :  { %v1151_v45 = vpop.eup %1150 }
 0x72b   :  { %v945_v7 = vadd.f32 1.0, %v1151_v45 }
 0x72c   :  { %v936_v0 = vpop.f32.mrf.mxu0 }
 0x72d   :  { %1152 = vrcp.f32 %v945_v7  ;;  %v937_v46 = vadd.f32 %v1106_v33, %v936_v0  ;;  %v958_v51 = vand.u32 2147483648, %v945_v7  ;;  %v956_v52 = vand.u32 2147483647, %v945_v7 }
 0x72e   :  { %vm952_vm6 = vweird.f32 %v945_v7 }
 0x72f   :  { %v940_v47 = vmul.f32 -1.702, %v937_v46  ;;  %v959_v56 = vor.u32 1.1754944e-38, %v958_v51  ;;  %vm957_vm9 = vcmp.eq.f32.partialorder %v956_v52, 8.507059e+37 }
 0x731   :  { %v943_v48 = vmul.f32 1.442695, %v940_v47 }
 0x733   :  { %v1153_v49 = vpop.eup %1152  ;;  %1154 = vpow2.f32 %v943_v48 }
 0x734   :  { %v948_v2 = vmul.f32 %v1153_v49, %v945_v7  ;;  %vm953_vm5 = vweird.f32 %v1153_v49 }
 0x735   :  { %vm954_vm7 = vmor %vm952_vm6, %vm953_vm5 }
 0x736   :  { %v949_v50 = vsub.f32 1.0, %v948_v2 }
 0x738   :  { %v950_v5 = vmul.f32 %v1153_v49, %v949_v50 }
 0x739   :  { %v1155_v11 = vpop.eup %1154 }
 0x73a   :  { %v951_v54 = vadd.f32 %v1153_v49, %v950_v5  ;;  %v946_v63 = vadd.f32 1.0, %v1155_v11 }
 0x73c   :  { %v955_v3 = vsel %vm954_vm7, %v1153_v49, %v951_v54  ;;  %1156 = vrcp.f32 %v946_v63  ;;  %v973_v13 = vand.u32 2147483648, %v946_v63  ;;  %v971_v15 = vand.u32 2147483647, %v946_v63 }
 0x73d   :  { %v960_v4 = vsel %vm957_vm9, %v959_v56, %v955_v3  ;;  %vm967_vm11 = vweird.f32 %v946_v63 }
 0x73e   :  { %v977_v6 = vmul.f32 %v960_v4, %v934_v38  ;;  %v974_v16 = vor.u32 1.1754944e-38, %v973_v13  ;;  %vm972_vm13 = vcmp.eq.f32.partialorder %v971_v15, 8.507059e+37 }
 0x740   :  { %1015 = vmatmul.f32.vlgmr.msra.gmra.mxu1 %v977_v6 }
 0x742   :  { %v1157_v8 = vpop.eup %1156 }
 0x743   :  { %v963_v9 = vmul.f32 %v1157_v8, %v946_v63  ;;  %vm968_vm10 = vweird.f32 %v1157_v8 }
 0x744   :  { %vm969_vm12 = vmor %vm967_vm11, %vm968_vm10 }
 0x745   :  { %v964_v12 = vsub.f32 1.0, %v963_v9 }
 0x747   :  { %v965_v14 = vmul.f32 %v1157_v8, %v964_v12 }
 0x749   :  { %v966_v53 = vadd.f32 %v1157_v8, %v965_v14 }
 0x74b   :  { %v970_v17 = vsel %vm969_vm12, %v1157_v8, %v966_v53 }
 0x74c   :  { %v975_v18 = vsel %vm972_vm13, %v974_v16, %v970_v17 }
 0x74d   :  { %v978_v19 = vmul.f32 %v975_v18, %v937_v46 }
 0x74f   :  { %1018 = vmatmul.f32.gmra.mxu1 %v978_v19 }
 0x7bd   :  { %v1016_v10 = vpop.f32.mrf.mxu1 }
 0x7be   :  { %v1017_v58 = vadd.f32 %v1107_v20, %v1016_v10 }
 0x7c0   :  { %v1022_v59 = vadd.f32 %v1017_v58, %v1509_v37 }
 0x7c2   :  { %1024 = vst.msk [vmem:[#allocation2] sm:$0xff] %vm50_vm0, %v1022_v59 }
 0x7cc   :  { %v1019_v61 = vpop.f32.mrf.mxu1 }
 0x7cd   :  { %v1020_v55 = vadd.f32 %v1107_v20, %v1019_v61 }
 0x7cf   :  { %v1023_v60 = vadd.f32 %v1020_v55, %v1514_v27 }
 0x7d1   :  { %1025 = vst.msk [vmem:[#allocation2 + $0x8] sm:$0xff] %vm50_vm0, %v1023_v60 }
 0x7d2   :  { %1038 = dma.vmem_to_hbm [thread:$0]  %s1031_s23, 256, %s1033_s6, [#allocation3], %s1194_s13, %s1194_s13, %s1190_s16  }
 0x7d3   :  { %1182 = dma.done.wait [#allocation3], 256  }
 0x7d4   :  { %1183 = vsyncadd [#allocation3], 4294967040 }
 0x7d5   :  { %1043 = vsyncpa [#allocation3], 1 }

</bundles_post_ra>
